<compile_context>
chip_gen: v7x
topology: tpu7x:2x2x1
jax: 0.10.0
libtpu: 0.0.40
codegen_flags: <defaults>
</compile_context>

<pallas_src>
import math
import jax
import jax.numpy as jnp
from jax import lax
from jax.experimental import pallas as pl
from jax.experimental.pallas import tpu as pltpu


def _layernorm(z, g, b, eps=1e-5):
    mu = jnp.mean(z, axis=-1, keepdims=True)
    var = jnp.mean((z - mu) ** 2, axis=-1, keepdims=True)
    return (z - mu) * lax.rsqrt(var + eps) * g + b


def _kwta(z, k):
    # k-winners-take-all along the last dim: keep the k largest entries, zero the rest.
    # TODO(synk): the kWTA class (and the `mod` variable it is applied to) is not defined
    # in the source file; we apply the standard kWTA(0.25) to the h2mod output. With
    # duplicated values at the threshold, more than k entries may be kept.
    cur = z
    kth = z
    for _ in range(k):
        kth = jnp.max(cur, axis=-1, keepdims=True)
        cur = jnp.where(cur >= kth, -jnp.inf, cur)
    return jnp.where(z >= kth, z, jnp.zeros_like(z))


def _make_kernel(hidden_dim, kwta_k, t_chunk):
    H = hidden_dim
    Tc = t_chunk

    def kernel(wx_ref, h0_ref, v0_ref, dU0_ref, te0_ref, tE0_ref,
               wh_ref, bh_ref, gh_ref, bgh_ref,
               coef_ref, stau_ref,
               wm_ref, bm_ref, wmh_ref, bmh_ref,
               v_out, h_out, dU_out, te_out, tE_out, y_out):
        tc = pl.program_id(1)

        # Load initial state into the resident output buffers at the first time chunk
        # of each batch block.
        # TODO(synk): could be replaced by input_output_aliases to halve resident VMEM
        # of dU/trace_E at large B,H; kept explicit for robustness at these sizes.
        @pl.when(tc == 0)
        def _():
            v_out[...] = v0_ref[...]
            h_out[...] = h0_ref[...]
            dU_out[...] = dU0_ref[...]
            te_out[...] = te0_ref[...]
            tE_out[...] = tE0_ref[...]

        # Loop-invariant parameters: load once per grid step, reuse across the chunk.
        wh = wh_ref[...]
        bh = bh_ref[...]
        gh = gh_ref[...]
        bgh = bgh_ref[...]
        coef = coef_ref[...]                      # EI_mask * |alpha|, [1, H]
        stau = stau_ref[...][:, :, None]          # sigmoid(tau_U), [1, H, 1]
        wm = wm_ref[...]
        bm = bm_ref[...]
        wmh = wmh_ref[...]
        bmh = bmh_ref[...]

        def step(tt, carry):
            h, v, dU, te, tE = carry
            Wx = wx_ref[tt]                       # [Bb, 4H], precomputed lnx(x2h(x_t))
            Wh = _layernorm(
                jnp.dot(h, wh, preferred_element_type=jnp.float32) + bh, gh, bgh)
            g = Wx + Wh

            f = jax.nn.sigmoid(g[:, 0 * H:1 * H])
            i = jax.nn.sigmoid(g[:, 1 * H:2 * H])
            s = jax.nn.sigmoid(g[:, 2 * H:3 * H])

            # bmm(EI_mask * |alpha| * dU, h.unsqueeze(2)).squeeze(2)
            # TODO(synk): at large B/H move this contraction onto the MXU (batched
            # dot_general); at these tiny shapes the VPU multiply + lane reduce is fine.
            dUh = coef * jnp.sum(dU * h[:, None, :], axis=-1)
            dv = g[:, 3 * H:4 * H] + dUh

            v_new = f * v + i * dv
            h_new = jnp.tanh(v_new)               # activation == 'tanh'

            h2m = jnp.dot(h_new, wm, preferred_element_type=jnp.float32) + bm
            mWTA = _kwta(h2m, kwta_k)
            m2h = jnp.dot(mWTA, wmh, preferred_element_type=jnp.float32) + bmh

            te_new = f * te + i * h_new
            s3 = s[:, :, None]
            tE_new = (1.0 - s3) * tE + s3 * (
                h_new[:, :, None] * te[:, None, :]
                - te_new[:, :, None] * h[:, None, :])

            # Matches the torch code: the dU update uses the OLD trace_E.
            dU_new = jnp.clip(stau * dU + m2h[:, :, None] * tE, -5.0, 5.0)

            y_out[tt] = h_new
            return (h_new, v_new, dU_new, te_new, tE_new)

        carry0 = (h_out[...], v_out[...], dU_out[...], te_out[...], tE_out[...])
        h, v, dU, te, tE = lax.fori_loop(0, Tc, step, carry0, unroll=True)

        h_out[...] = h
        v_out[...] = v
        dU_out[...] = dU
        te_out[...] = te
        tE_out[...] = tE

    return kernel


def sgru_forward(x, h0, v0, dU0, te0, tE0, params, mod_rank,
                 kwta_frac=0.25, time_chunk=8, batch_block=None):
    T, B, Din = x.shape
    H = h0.shape[1]
    k = max(1, int(round(kwta_frac * mod_rank)))

    # ---- Hoisted x-path: lnx(x2h(x)) for the whole sequence as one big matmul. ----
    z = jnp.dot(x.reshape(T * B, Din), params["wx"],
                preferred_element_type=jnp.float32) + params["bx"]
    wx_all = _layernorm(z, params["gx"], params["bgx"]).reshape(T, B, 4 * H)
    # sigmoid(tau_U) is loop-invariant -> hoisted out of the kernel.
    sig_tau = jax.nn.sigmoid(params["tau"])

    # Time chunking: Tc steps per grid iteration (amortizes per-step grid overhead).
    Tc = max(1, min(time_chunk, T))
    while T % Tc != 0:
        Tc -= 1
    # Batch blocking: leading "parallel" grid axis (megacore split on v7x).
    Bb = B if batch_block is None else batch_block
    assert B % Bb == 0
    nB, nT = B // Bb, T // Tc

    kernel = _make_kernel(H, k, Tc)

    param_list = [
        params["wh"], params["bh"], params["gh"], params["bgh"],
        params["coef"], sig_tau,
        params["wm"], params["bm"], params["wmh"], params["bmh"],
    ]

    def _const_spec(a):
        nd = a.ndim
        return pl.BlockSpec(a.shape, lambda b, t, _nd=nd: (0,) * _nd)

    in_specs = [
        pl.BlockSpec((Tc, Bb, 4 * H), lambda b, t: (t, b, 0)),   # precomputed Wx
        pl.BlockSpec((Bb, H), lambda b, t: (b, 0)),              # h0
        pl.BlockSpec((Bb, H), lambda b, t: (b, 0)),              # v0
        pl.BlockSpec((Bb, H, H), lambda b, t: (b, 0, 0)),        # dU0
        pl.BlockSpec((Bb, H), lambda b, t: (b, 0)),              # trace_e0
        pl.BlockSpec((Bb, H, H), lambda b, t: (b, 0, 0)),        # trace_E0
    ]
    in_specs += [_const_spec(a) for a in param_list]

    out_shape = (
        jax.ShapeDtypeStruct((B, H), jnp.float32),      # v
        jax.ShapeDtypeStruct((B, H), jnp.float32),      # h
        jax.ShapeDtypeStruct((B, H, H), jnp.float32),   # dU
        jax.ShapeDtypeStruct((B, H), jnp.float32),      # trace_e
        jax.ShapeDtypeStruct((B, H, H), jnp.float32),   # trace_E
        jax.ShapeDtypeStruct((T, B, H), jnp.float32),   # stacked per-step h
    )
    out_specs = (
        pl.BlockSpec((Bb, H), lambda b, t: (b, 0)),
        pl.BlockSpec((Bb, H), lambda b, t: (b, 0)),
        pl.BlockSpec((Bb, H, H), lambda b, t: (b, 0, 0)),
        pl.BlockSpec((Bb, H), lambda b, t: (b, 0)),
        pl.BlockSpec((Bb, H, H), lambda b, t: (b, 0, 0)),
        pl.BlockSpec((Tc, Bb, H), lambda b, t: (t, b, 0)),
    )

    # Rough VMEM budget: resident state + double-buffered streamed blocks + params.
    f32 = 4
    est = ((3 * Bb * H + 2 * Bb * H * H) * f32 * 2              # resident state outputs
           + (3 * Bb * H + 2 * Bb * H * H) * f32 * 2            # init-state inputs
           + (Tc * Bb * 4 * H + Tc * Bb * H) * f32 * 2          # streamed Wx / y blocks
           + 2 * sum(int(a.size) for a in param_list) * f32)    # constant params
    vmem_limit = int(min(max(2 * est + (4 << 20), 16 << 20), 48 << 20))

    return pl.pallas_call(
        kernel,
        out_shape=out_shape,
        grid_spec=pltpu.PrefetchScalarGridSpec(
            num_scalar_prefetch=0,
            grid=(nB, nT),
            in_specs=in_specs,
            out_specs=out_specs,
        ),
        compiler_params=pltpu.CompilerParams(
            dimension_semantics=("parallel", "arbitrary"),
            vmem_limit_bytes=vmem_limit),
    )(wx_all, h0, v0, dU0, te0, tE0, *param_list)


def init_params(key, input_dim, hidden_dim, mod_rank, positive_proportion):
    H = hidden_dim
    ks = jax.random.split(key, 9)
    f32 = jnp.float32

    # x2h: xavier_uniform weight, zero bias
    a_x = math.sqrt(6.0 / (input_dim + 4 * H))
    wx = jax.random.uniform(ks[0], (input_dim, 4 * H), dtype=f32, minval=-a_x, maxval=a_x)
    bx = jnp.zeros((1, 4 * H), f32)

    # h2h: (orthogonal per-block in torch; deterministic scaled normal here) + custom bias
    # TODO(synk): torch uses per-block orthogonal init; scaled-normal used here instead.
    wh = jax.random.normal(ks[1], (H, 4 * H), dtype=f32) / math.sqrt(H)
    bh = jnp.concatenate([
        jnp.log(1.0 + jax.random.uniform(ks[2], (H,), dtype=f32) * 20.0),
        -jnp.log(1.0 + jax.random.uniform(ks[3], (H,), dtype=f32) * 20.0),
        -jnp.log(10.0 + jax.random.uniform(ks[4], (H,), dtype=f32) * 30.0),
        jnp.zeros((H,), f32),
    ])[None, :]

    # LayerNorm params (torch default: gamma=1, beta=0)
    gx, bgx = jnp.ones((1, 4 * H), f32), jnp.zeros((1, 4 * H), f32)
    gh, bgh = jnp.ones((1, 4 * H), f32), jnp.zeros((1, 4 * H), f32)

    # alpha, EI_mask, tau_U
    alpha = 0.1 * jax.random.uniform(ks[5], (1, H), dtype=f32) * math.sqrt(1.0 / H)
    n_pos = round(H * positive_proportion)
    ei = jnp.concatenate([jnp.ones((1, n_pos), f32), -jnp.ones((1, H - n_pos), f32)], axis=1)
    coef = ei * jnp.abs(alpha)                  # EI_mask * |alpha|, per-row scale
    tau = jnp.log(20.0 + jax.random.uniform(ks[6], (1, H), dtype=f32) * 40.0)

    # h2mod / mod2h: xavier_normal weights, zero bias
    wm = jax.random.normal(ks[7], (H, mod_rank), dtype=f32) * math.sqrt(2.0 / (H + mod_rank))
    bm = jnp.zeros((1, mod_rank), f32)
    wmh = jax.random.normal(ks[8], (mod_rank, H), dtype=f32) * math.sqrt(2.0 / (mod_rank + H))
    bmh = jnp.zeros((1, H), f32)

    return dict(wx=wx, bx=bx, wh=wh, bh=bh, gx=gx, bgx=bgx, gh=gh, bgh=bgh,
                coef=coef, tau=tau, wm=wm, bm=bm, wmh=wmh, bmh=bmh)


if __name__ == "__main__":
    T, B, Din, H, R = 8, 2, 16, 32, 8
    positive_proportion = 0.5

    key = jax.random.PRNGKey(0)
    kx, kp = jax.random.split(key)
    x = jax.random.normal(kx, (T, B, Din), dtype=jnp.float32)
    params = init_params(kp, Din, H, R, positive_proportion)

    # get_init_states
    h0 = jnp.zeros((B, H), jnp.float32)
    v0 = jnp.zeros((B, H), jnp.float32)
    dU0 = jnp.zeros((B, H, H), jnp.float32)
    te0 = jnp.zeros((B, H), jnp.float32)
    tE0 = jnp.zeros((B, H, H), jnp.float32)

    v, h, dU, trace_e, trace_E, curr_out = sgru_forward(
        x, h0, v0, dU0, te0, tE0, params, R)
    jax.block_until_ready((v, h, dU, trace_e, trace_E, curr_out))
    print("KERNEL_OK")
</pallas_src>

<mosaic_0001>
module attributes {stable_mosaic.version = 11 : i64} {
  func.func @kernel(%arg0: i32, %arg1: i32, %arg2: memref<8x2x128xf32, #tpu.memory_space<vmem>>, %arg3: memref<2x32xf32, #tpu.memory_space<vmem>>, %arg4: memref<2x32xf32, #tpu.memory_space<vmem>>, %arg5: memref<2x32x32xf32, #tpu.memory_space<vmem>>, %arg6: memref<2x32xf32, #tpu.memory_space<vmem>>, %arg7: memref<2x32x32xf32, #tpu.memory_space<vmem>>, %arg8: memref<32x128xf32, #tpu.memory_space<vmem>>, %arg9: memref<1x128xf32, #tpu.memory_space<vmem>>, %arg10: memref<1x128xf32, #tpu.memory_space<vmem>>, %arg11: memref<1x128xf32, #tpu.memory_space<vmem>>, %arg12: memref<1x32xf32, #tpu.memory_space<vmem>>, %arg13: memref<1x32xf32, #tpu.memory_space<vmem>>, %arg14: memref<32x8xf32, #tpu.memory_space<vmem>>, %arg15: memref<1x8xf32, #tpu.memory_space<vmem>>, %arg16: memref<8x32xf32, #tpu.memory_space<vmem>>, %arg17: memref<1x32xf32, #tpu.memory_space<vmem>>, %arg18: memref<2x32xf32, #tpu.memory_space<vmem>>, %arg19: memref<2x32xf32, #tpu.memory_space<vmem>>, %arg20: memref<2x32x32xf32, #tpu.memory_space<vmem>>, %arg21: memref<2x32xf32, #tpu.memory_space<vmem>>, %arg22: memref<2x32x32xf32, #tpu.memory_space<vmem>>, %arg23: memref<8x2x32xf32, #tpu.memory_space<vmem>>) attributes {dimension_semantics = [#tpu.dimension_semantics<parallel>, #tpu.dimension_semantics<arbitrary>], iteration_bounds = array<i64: 1, 1>, scalar_prefetch = 0 : i64, scratch_operands = 0 : i64, tpu.core_type = #tpu.core_type<tc>, window_params = [{transform_indices = @transform_0, window_bounds = array<i64: 8, 2, 128>}, {transform_indices = @transform_1, window_bounds = array<i64: 2, 32>}, {transform_indices = @transform_2, window_bounds = array<i64: 2, 32>}, {transform_indices = @transform_3, window_bounds = array<i64: 2, 32, 32>}, {transform_indices = @transform_4, window_bounds = array<i64: 2, 32>}, {transform_indices = @transform_5, window_bounds = array<i64: 2, 32, 32>}, {pipeline_mode = #tpu.pipeline_mode<synchronous>, transform_indices = @transform_6, window_bounds = array<i64: 32, 128>}, {pipeline_mode = #tpu.pipeline_mode<synchronous>, transform_indices = @transform_7, window_bounds = array<i64: 1, 128>}, {pipeline_mode = #tpu.pipeline_mode<synchronous>, transform_indices = @transform_8, window_bounds = array<i64: 1, 128>}, {pipeline_mode = #tpu.pipeline_mode<synchronous>, transform_indices = @transform_9, window_bounds = array<i64: 1, 128>}, {pipeline_mode = #tpu.pipeline_mode<synchronous>, transform_indices = @transform_10, window_bounds = array<i64: 1, 32>}, {pipeline_mode = #tpu.pipeline_mode<synchronous>, transform_indices = @transform_11, window_bounds = array<i64: 1, 32>}, {pipeline_mode = #tpu.pipeline_mode<synchronous>, transform_indices = @transform_12, window_bounds = array<i64: 32, 8>}, {pipeline_mode = #tpu.pipeline_mode<synchronous>, transform_indices = @transform_13, window_bounds = array<i64: 1, 8>}, {pipeline_mode = #tpu.pipeline_mode<synchronous>, transform_indices = @transform_14, window_bounds = array<i64: 8, 32>}, {pipeline_mode = #tpu.pipeline_mode<synchronous>, transform_indices = @transform_15, window_bounds = array<i64: 1, 32>}, {transform_indices = @transform_16, window_bounds = array<i64: 2, 32>}, {transform_indices = @transform_17, window_bounds = array<i64: 2, 32>}, {transform_indices = @transform_18, window_bounds = array<i64: 2, 32, 32>}, {transform_indices = @transform_19, window_bounds = array<i64: 2, 32>}, {transform_indices = @transform_20, window_bounds = array<i64: 2, 32, 32>}, {transform_indices = @transform_21, window_bounds = array<i64: 8, 2, 32>}]} {
    %c0_i32 = arith.constant 0 : i32
    %0 = arith.cmpi eq, %arg1, %c0_i32 : i32
    %1 = arith.extui %0 : i1 to i32
    %c0_i32_0 = arith.constant 0 : i32
    %2 = arith.cmpi ne, %1, %c0_i32_0 : i32
    scf.if %2 {
      %c0_228 = arith.constant 0 : index
      %c0_229 = arith.constant 0 : index
      %928 = vector.load %arg4[%c0_228, %c0_229] : memref<2x32xf32, #tpu.memory_space<vmem>>, vector<2x32xf32>
      %c0_230 = arith.constant 0 : index
      %c0_231 = arith.constant 0 : index
      %929 = vector.load %arg18[%c0_230, %c0_231] : memref<2x32xf32, #tpu.memory_space<vmem>>, vector<2x32xf32>
      tpu.vector_store %arg18[%c0_230, %c0_231], %928 {strides = array<i32>} : memref<2x32xf32, #tpu.memory_space<vmem>>, vector<2x32xf32>,
      %c0_232 = arith.constant 0 : index
      %c0_233 = arith.constant 0 : index
      %930 = vector.load %arg3[%c0_232, %c0_233] : memref<2x32xf32, #tpu.memory_space<vmem>>, vector<2x32xf32>
      %c0_234 = arith.constant 0 : index
      %c0_235 = arith.constant 0 : index
      %931 = vector.load %arg19[%c0_234, %c0_235] : memref<2x32xf32, #tpu.memory_space<vmem>>, vector<2x32xf32>
      tpu.vector_store %arg19[%c0_234, %c0_235], %930 {strides = array<i32>} : memref<2x32xf32, #tpu.memory_space<vmem>>, vector<2x32xf32>,
      %c0_236 = arith.constant 0 : index
      %c0_237 = arith.constant 0 : index
      %c0_238 = arith.constant 0 : index
      %932 = vector.load %arg5[%c0_236, %c0_237, %c0_238] : memref<2x32x32xf32, #tpu.memory_space<vmem>>, vector<2x32x32xf32>
      %c0_239 = arith.constant 0 : index
      %c0_240 = arith.constant 0 : index
      %c0_241 = arith.constant 0 : index
      %933 = vector.load %arg20[%c0_239, %c0_240, %c0_241] : memref<2x32x32xf32, #tpu.memory_space<vmem>>, vector<2x32x32xf32>
      tpu.vector_store %arg20[%c0_239, %c0_240, %c0_241], %932 {strides = array<i32>} : memref<2x32x32xf32, #tpu.memory_space<vmem>>, vector<2x32x32xf32>,
      %c0_242 = arith.constant 0 : index
      %c0_243 = arith.constant 0 : index
      %934 = vector.load %arg6[%c0_242, %c0_243] : memref<2x32xf32, #tpu.memory_space<vmem>>, vector<2x32xf32>
      %c0_244 = arith.constant 0 : index
      %c0_245 = arith.constant 0 : index
      %935 = vector.load %arg21[%c0_244, %c0_245] : memref<2x32xf32, #tpu.memory_space<vmem>>, vector<2x32xf32>
      tpu.vector_store %arg21[%c0_244, %c0_245], %934 {strides = array<i32>} : memref<2x32xf32, #tpu.memory_space<vmem>>, vector<2x32xf32>,
      %c0_246 = arith.constant 0 : index
      %c0_247 = arith.constant 0 : index
      %c0_248 = arith.constant 0 : index
      %936 = vector.load %arg7[%c0_246, %c0_247, %c0_248] : memref<2x32x32xf32, #tpu.memory_space<vmem>>, vector<2x32x32xf32>
      %c0_249 = arith.constant 0 : index
      %c0_250 = arith.constant 0 : index
      %c0_251 = arith.constant 0 : index
      %937 = vector.load %arg22[%c0_249, %c0_250, %c0_251] : memref<2x32x32xf32, #tpu.memory_space<vmem>>, vector<2x32x32xf32>
      tpu.vector_store %arg22[%c0_249, %c0_250, %c0_251], %936 {strides = array<i32>} : memref<2x32x32xf32, #tpu.memory_space<vmem>>, vector<2x32x32xf32>,
    } else {
    }
    %c0 = arith.constant 0 : index
    %c0_1 = arith.constant 0 : index
    %3 = vector.load %arg8[%c0, %c0_1] : memref<32x128xf32, #tpu.memory_space<vmem>>, vector<32x128xf32>
    %c0_2 = arith.constant 0 : index
    %c0_3 = arith.constant 0 : index
    %4 = vector.load %arg9[%c0_2, %c0_3] : memref<1x128xf32, #tpu.memory_space<vmem>>, vector<1x128xf32>
    %c0_4 = arith.constant 0 : index
    %c0_5 = arith.constant 0 : index
    %5 = vector.load %arg10[%c0_4, %c0_5] : memref<1x128xf32, #tpu.memory_space<vmem>>, vector<1x128xf32>
    %c0_6 = arith.constant 0 : index
    %c0_7 = arith.constant 0 : index
    %6 = vector.load %arg11[%c0_6, %c0_7] : memref<1x128xf32, #tpu.memory_space<vmem>>, vector<1x128xf32>
    %c0_8 = arith.constant 0 : index
    %c0_9 = arith.constant 0 : index
    %7 = vector.load %arg12[%c0_8, %c0_9] : memref<1x32xf32, #tpu.memory_space<vmem>>, vector<1x32xf32>
    %c0_10 = arith.constant 0 : index
    %c0_11 = arith.constant 0 : index
    %8 = vector.load %arg13[%c0_10, %c0_11] : memref<1x32xf32, #tpu.memory_space<vmem>>, vector<1x32xf32>
    %9 = vector.shape_cast %8 : vector<1x32xf32> to vector<1x32x1xf32>
    %c0_12 = arith.constant 0 : index
    %c0_13 = arith.constant 0 : index
    %10 = vector.load %arg14[%c0_12, %c0_13] : memref<32x8xf32, #tpu.memory_space<vmem>>, vector<32x8xf32>
    %c0_14 = arith.constant 0 : index
    %c0_15 = arith.constant 0 : index
    %11 = vector.load %arg15[%c0_14, %c0_15] : memref<1x8xf32, #tpu.memory_space<vmem>>, vector<1x8xf32>
    %c0_16 = arith.constant 0 : index
    %c0_17 = arith.constant 0 : index
    %12 = vector.load %arg16[%c0_16, %c0_17] : memref<8x32xf32, #tpu.memory_space<vmem>>, vector<8x32xf32>
    %c0_18 = arith.constant 0 : index
    %c0_19 = arith.constant 0 : index
    %13 = vector.load %arg17[%c0_18, %c0_19] : memref<1x32xf32, #tpu.memory_space<vmem>>, vector<1x32xf32>
    %c0_20 = arith.constant 0 : index
    %c0_21 = arith.constant 0 : index
    %14 = vector.load %arg19[%c0_20, %c0_21] : memref<2x32xf32, #tpu.memory_space<vmem>>, vector<2x32xf32>
    %c0_22 = arith.constant 0 : index
    %c0_23 = arith.constant 0 : index
    %15 = vector.load %arg18[%c0_22, %c0_23] : memref<2x32xf32, #tpu.memory_space<vmem>>, vector<2x32xf32>
    %c0_24 = arith.constant 0 : index
    %c0_25 = arith.constant 0 : index
    %c0_26 = arith.constant 0 : index
    %16 = vector.load %arg20[%c0_24, %c0_25, %c0_26] : memref<2x32x32xf32, #tpu.memory_space<vmem>>, vector<2x32x32xf32>
    %c0_27 = arith.constant 0 : index
    %c0_28 = arith.constant 0 : index
    %17 = vector.load %arg21[%c0_27, %c0_28] : memref<2x32xf32, #tpu.memory_space<vmem>>, vector<2x32xf32>
    %c0_29 = arith.constant 0 : index
    %c0_30 = arith.constant 0 : index
    %c0_31 = arith.constant 0 : index
    %18 = vector.load %arg22[%c0_29, %c0_30, %c0_31] : memref<2x32x32xf32, #tpu.memory_space<vmem>>, vector<2x32x32xf32>
    %c0_i32_32 = arith.constant 0 : i32
    %19 = arith.index_cast %c0_i32_32 : i32 to index
    %c0_33 = arith.constant 0 : index
    %c0_34 = arith.constant 0 : index
    %20 = vector.load %arg2[%19, %c0_33, %c0_34] : memref<8x2x128xf32, #tpu.memory_space<vmem>>, vector<1x2x128xf32>
    %21 = vector.shape_cast %20 : vector<1x2x128xf32> to vector<2x128xf32>
    %cst = arith.constant dense<0.000000e+00> : vector<2x128xf32>
    %22 = tpu.matmul %14, %3, %cst {dimension_numbers = #tpu.dot_dimension_numbers<[1], [0], [0], [1], [0, 0, 1, 1], [], []>} : vector<2x32xf32>, vector<32x128xf32>, vector<2x128xf32> -> vector<2x128xf32>
    %23 = vector.broadcast %4 : vector<1x128xf32> to vector<2x128xf32>
    %24 = arith.addf %22, %23 : vector<2x128xf32>
    %cst_35 = arith.constant dense<0.000000e+00> : vector<2xf32>
    %25 = vector.multi_reduction <add>, %24, %cst_35 [1] : vector<2x128xf32> to vector<2xf32>
    %26 = vector.shape_cast %25 : vector<2xf32> to vector<2x1xf32>
    %cst_36 = arith.constant 1.280000e+02 : f32
    %27 = vector.broadcast %cst_36 : f32 to vector<2x1xf32>
    %28 = arith.divf %26, %27 : vector<2x1xf32>
    %29 = vector.broadcast %28 : vector<2x1xf32> to vector<2x128xf32>
    %30 = arith.subf %24, %29 : vector<2x128xf32>
    %31 = arith.mulf %30, %30 : vector<2x128xf32>
    %cst_37 = arith.constant dense<0.000000e+00> : vector<2xf32>
    %32 = vector.multi_reduction <add>, %31, %cst_37 [1] : vector<2x128xf32> to vector<2xf32>
    %33 = vector.shape_cast %32 : vector<2xf32> to vector<2x1xf32>
    %cst_38 = arith.constant 1.280000e+02 : f32
    %34 = vector.broadcast %cst_38 : f32 to vector<2x1xf32>
    %35 = arith.divf %33, %34 : vector<2x1xf32>
    %36 = vector.broadcast %28 : vector<2x1xf32> to vector<2x128xf32>
    %37 = arith.subf %24, %36 : vector<2x128xf32>
    %cst_39 = arith.constant 9.99999974E-6 : f32
    %38 = vector.broadcast %cst_39 : f32 to vector<2x1xf32>
    %39 = arith.addf %35, %38 : vector<2x1xf32>
    %40 = math.rsqrt %39 : vector<2x1xf32>
    %41 = vector.broadcast %40 : vector<2x1xf32> to vector<2x128xf32>
    %42 = arith.mulf %37, %41 : vector<2x128xf32>
    %43 = vector.broadcast %5 : vector<1x128xf32> to vector<2x128xf32>
    %44 = arith.mulf %42, %43 : vector<2x128xf32>
    %45 = vector.broadcast %6 : vector<1x128xf32> to vector<2x128xf32>
    %46 = arith.addf %44, %45 : vector<2x128xf32>
    %47 = arith.addf %21, %46 : vector<2x128xf32>
    %48 = vector.extract_strided_slice %47 {offsets = [0, 0], sizes = [2, 32], strides = [1, 1]} : vector<2x128xf32> to vector<2x32xf32>
    %49 = arith.negf %48 : vector<2x32xf32>
    %50 = math.exp %49 : vector<2x32xf32>
    %cst_40 = arith.constant 1.000000e+00 : f32
    %51 = vector.broadcast %cst_40 : f32 to vector<2x32xf32>
    %52 = arith.addf %51, %50 : vector<2x32xf32>
    %53 = arith.divf %51, %52 : vector<2x32xf32>
    %54 = vector.extract_strided_slice %47 {offsets = [0, 32], sizes = [2, 32], strides = [1, 1]} : vector<2x128xf32> to vector<2x32xf32>
    %55 = arith.negf %54 : vector<2x32xf32>
    %56 = math.exp %55 : vector<2x32xf32>
    %cst_41 = arith.constant 1.000000e+00 : f32
    %57 = vector.broadcast %cst_41 : f32 to vector<2x32xf32>
    %58 = arith.addf %57, %56 : vector<2x32xf32>
    %59 = arith.divf %57, %58 : vector<2x32xf32>
    %60 = vector.extract_strided_slice %47 {offsets = [0, 64], sizes = [2, 32], strides = [1, 1]} : vector<2x128xf32> to vector<2x32xf32>
    %61 = arith.negf %60 : vector<2x32xf32>
    %62 = math.exp %61 : vector<2x32xf32>
    %cst_42 = arith.constant 1.000000e+00 : f32
    %63 = vector.broadcast %cst_42 : f32 to vector<2x32xf32>
    %64 = arith.addf %63, %62 : vector<2x32xf32>
    %65 = arith.divf %63, %64 : vector<2x32xf32>
    %66 = vector.shape_cast %14 : vector<2x32xf32> to vector<2x1x32xf32>
    %67 = vector.broadcast %66 : vector<2x1x32xf32> to vector<2x32x32xf32>
    %68 = arith.mulf %16, %67 : vector<2x32x32xf32>
    %cst_43 = arith.constant dense<0.000000e+00> : vector<2x32xf32>
    %69 = vector.multi_reduction <add>, %68, %cst_43 [2] : vector<2x32x32xf32> to vector<2x32xf32>
    %70 = vector.broadcast %7 : vector<1x32xf32> to vector<2x32xf32>
    %71 = arith.mulf %70, %69 : vector<2x32xf32>
    %72 = vector.extract_strided_slice %47 {offsets = [0, 96], sizes = [2, 32], strides = [1, 1]} : vector<2x128xf32> to vector<2x32xf32>
    %73 = arith.addf %72, %71 : vector<2x32xf32>
    %74 = arith.mulf %53, %15 : vector<2x32xf32>
    %75 = arith.mulf %59, %73 : vector<2x32xf32>
    %76 = arith.addf %74, %75 : vector<2x32xf32>
    %77 = math.tanh %76 : vector<2x32xf32>
    %cst_44 = arith.constant dense<0.000000e+00> : vector<2x8xf32>
    %78 = tpu.matmul %77, %10, %cst_44 {dimension_numbers = #tpu.dot_dimension_numbers<[1], [0], [0], [1], [0, 0, 1, 1], [], []>} : vector<2x32xf32>, vector<32x8xf32>, vector<2x8xf32> -> vector<2x8xf32>
    %79 = vector.broadcast %11 : vector<1x8xf32> to vector<2x8xf32>
    %80 = arith.addf %78, %79 : vector<2x8xf32>
    %cst_45 = arith.constant dense<0xFF800000> : vector<2xf32>
    %81 = vector.multi_reduction <maximumf>, %80, %cst_45 [1] : vector<2x8xf32> to vector<2xf32>
    %82 = vector.shape_cast %81 : vector<2xf32> to vector<2x1xf32>
    %83 = vector.broadcast %82 : vector<2x1xf32> to vector<2x8xf32>
    %84 = arith.cmpf oge, %80, %83 : vector<2x8xf32>
    %cst_46 = arith.constant 0xFF800000 : f32
    %85 = vector.broadcast %cst_46 : f32 to vector<2x8xf32>
    %86 = arith.select %84, %85, %80 : vector<2x8xi1>, vector<2x8xf32>
    %cst_47 = arith.constant dense<0xFF800000> : vector<2xf32>
    %87 = vector.multi_reduction <maximumf>, %86, %cst_47 [1] : vector<2x8xf32> to vector<2xf32>
    %88 = vector.shape_cast %87 : vector<2xf32> to vector<2x1xf32>
    %89 = vector.broadcast %88 : vector<2x1xf32> to vector<2x8xf32>
    %90 = arith.cmpf oge, %80, %89 : vector<2x8xf32>
    %cst_48 = arith.constant 0.000000e+00 : f32
    %91 = vector.broadcast %cst_48 : f32 to vector<2x8xf32>
    %92 = arith.select %90, %80, %91 : vector<2x8xi1>, vector<2x8xf32>
    %cst_49 = arith.constant dense<0.000000e+00> : vector<2x32xf32>
    %93 = tpu.matmul %92, %12, %cst_49 {dimension_numbers = #tpu.dot_dimension_numbers<[1], [0], [0], [1], [0, 0, 1, 1], [], []>} : vector<2x8xf32>, vector<8x32xf32>, vector<2x32xf32> -> vector<2x32xf32>
    %94 = vector.broadcast %13 : vector<1x32xf32> to vector<2x32xf32>
    %95 = arith.addf %93, %94 : vector<2x32xf32>
    %96 = arith.mulf %53, %17 : vector<2x32xf32>
    %97 = arith.mulf %59, %77 : vector<2x32xf32>
    %98 = arith.addf %96, %97 : vector<2x32xf32>
    %99 = vector.shape_cast %65 : vector<2x32xf32> to vector<2x32x1xf32>
    %cst_50 = arith.constant 1.000000e+00 : f32
    %100 = vector.broadcast %cst_50 : f32 to vector<2x32x1xf32>
    %101 = arith.subf %100, %99 : vector<2x32x1xf32>
    %102 = vector.broadcast %101 : vector<2x32x1xf32> to vector<2x32x32xf32>
    %103 = arith.mulf %102, %18 : vector<2x32x32xf32>
    %104 = vector.shape_cast %77 : vector<2x32xf32> to vector<2x32x1xf32>
    %105 = vector.shape_cast %17 : vector<2x32xf32> to vector<2x1x32xf32>
    %106 = vector.broadcast %104 : vector<2x32x1xf32> to vector<2x32x32xf32>
    %107 = vector.broadcast %105 : vector<2x1x32xf32> to vector<2x32x32xf32>
    %108 = arith.mulf %106, %107 : vector<2x32x32xf32>
    %109 = vector.shape_cast %98 : vector<2x32xf32> to vector<2x32x1xf32>
    %110 = vector.shape_cast %14 : vector<2x32xf32> to vector<2x1x32xf32>
    %111 = vector.broadcast %109 : vector<2x32x1xf32> to vector<2x32x32xf32>
    %112 = vector.broadcast %110 : vector<2x1x32xf32> to vector<2x32x32xf32>
    %113 = arith.mulf %111, %112 : vector<2x32x32xf32>
    %114 = arith.subf %108, %113 : vector<2x32x32xf32>
    %115 = vector.broadcast %99 : vector<2x32x1xf32> to vector<2x32x32xf32>
    %116 = arith.mulf %115, %114 : vector<2x32x32xf32>
    %117 = arith.addf %103, %116 : vector<2x32x32xf32>
    %118 = vector.broadcast %9 : vector<1x32x1xf32> to vector<2x32x32xf32>
    %119 = arith.mulf %118, %16 : vector<2x32x32xf32>
    %120 = vector.shape_cast %95 : vector<2x32xf32> to vector<2x32x1xf32>
    %121 = vector.broadcast %120 : vector<2x32x1xf32> to vector<2x32x32xf32>
    %122 = arith.mulf %121, %18 : vector<2x32x32xf32>
    %123 = arith.addf %119, %122 : vector<2x32x32xf32>
    %cst_51 = arith.constant -5.000000e+00 : f32
    %cst_52 = arith.constant 5.000000e+00 : f32
    %124 = vector.broadcast %cst_51 : f32 to vector<2x32x32xf32>
    %125 = arith.maximumf %124, %123 : vector<2x32x32xf32>
    %126 = vector.broadcast %cst_52 : f32 to vector<2x32x32xf32>
    %127 = arith.minimumf %126, %125 : vector<2x32x32xf32>
    %128 = arith.index_cast %c0_i32_32 : i32 to index
    %c0_53 = arith.constant 0 : index
    %c0_54 = arith.constant 0 : index
    %129 = vector.load %arg23[%128, %c0_53, %c0_54] : memref<8x2x32xf32, #tpu.memory_space<vmem>>, vector<1x2x32xf32>
    %130 = vector.shape_cast %129 : vector<1x2x32xf32> to vector<2x32xf32>
    %131 = vector.shape_cast %77 : vector<2x32xf32> to vector<1x2x32xf32>
    tpu.vector_store %arg23[%128, %c0_53, %c0_54], %131 {strides = array<i32>} : memref<8x2x32xf32, #tpu.memory_space<vmem>>, vector<1x2x32xf32>,
    %c1_i32 = arith.constant 1 : i32
    %132 = arith.index_cast %c1_i32 : i32 to index
    %c0_55 = arith.constant 0 : index
    %c0_56 = arith.constant 0 : index
    %133 = vector.load %arg2[%132, %c0_55, %c0_56] : memref<8x2x128xf32, #tpu.memory_space<vmem>>, vector<1x2x128xf32>
    %134 = vector.shape_cast %133 : vector<1x2x128xf32> to vector<2x128xf32>
    %cst_57 = arith.constant dense<0.000000e+00> : vector<2x128xf32>
    %135 = tpu.matmul %77, %3, %cst_57 {dimension_numbers = #tpu.dot_dimension_numbers<[1], [0], [0], [1], [0, 0, 1, 1], [], []>} : vector<2x32xf32>, vector<32x128xf32>, vector<2x128xf32> -> vector<2x128xf32>
    %136 = vector.broadcast %4 : vector<1x128xf32> to vector<2x128xf32>
    %137 = arith.addf %135, %136 : vector<2x128xf32>
    %cst_58 = arith.constant dense<0.000000e+00> : vector<2xf32>
    %138 = vector.multi_reduction <add>, %137, %cst_58 [1] : vector<2x128xf32> to vector<2xf32>
    %139 = vector.shape_cast %138 : vector<2xf32> to vector<2x1xf32>
    %cst_59 = arith.constant 1.280000e+02 : f32
    %140 = vector.broadcast %cst_59 : f32 to vector<2x1xf32>
    %141 = arith.divf %139, %140 : vector<2x1xf32>
    %142 = vector.broadcast %141 : vector<2x1xf32> to vector<2x128xf32>
    %143 = arith.subf %137, %142 : vector<2x128xf32>
    %144 = arith.mulf %143, %143 : vector<2x128xf32>
    %cst_60 = arith.constant dense<0.000000e+00> : vector<2xf32>
    %145 = vector.multi_reduction <add>, %144, %cst_60 [1] : vector<2x128xf32> to vector<2xf32>
    %146 = vector.shape_cast %145 : vector<2xf32> to vector<2x1xf32>
    %cst_61 = arith.constant 1.280000e+02 : f32
    %147 = vector.broadcast %cst_61 : f32 to vector<2x1xf32>
    %148 = arith.divf %146, %147 : vector<2x1xf32>
    %149 = vector.broadcast %141 : vector<2x1xf32> to vector<2x128xf32>
    %150 = arith.subf %137, %149 : vector<2x128xf32>
    %cst_62 = arith.constant 9.99999974E-6 : f32
    %151 = vector.broadcast %cst_62 : f32 to vector<2x1xf32>
    %152 = arith.addf %148, %151 : vector<2x1xf32>
    %153 = math.rsqrt %152 : vector<2x1xf32>
    %154 = vector.broadcast %153 : vector<2x1xf32> to vector<2x128xf32>
    %155 = arith.mulf %150, %154 : vector<2x128xf32>
    %156 = vector.broadcast %5 : vector<1x128xf32> to vector<2x128xf32>
    %157 = arith.mulf %155, %156 : vector<2x128xf32>
    %158 = vector.broadcast %6 : vector<1x128xf32> to vector<2x128xf32>
    %159 = arith.addf %157, %158 : vector<2x128xf32>
    %160 = arith.addf %134, %159 : vector<2x128xf32>
    %161 = vector.extract_strided_slice %160 {offsets = [0, 0], sizes = [2, 32], strides = [1, 1]} : vector<2x128xf32> to vector<2x32xf32>
    %162 = arith.negf %161 : vector<2x32xf32>
    %163 = math.exp %162 : vector<2x32xf32>
    %cst_63 = arith.constant 1.000000e+00 : f32
    %164 = vector.broadcast %cst_63 : f32 to vector<2x32xf32>
    %165 = arith.addf %164, %163 : vector<2x32xf32>
    %166 = arith.divf %164, %165 : vector<2x32xf32>
    %167 = vector.extract_strided_slice %160 {offsets = [0, 32], sizes = [2, 32], strides = [1, 1]} : vector<2x128xf32> to vector<2x32xf32>
    %168 = arith.negf %167 : vector<2x32xf32>
    %169 = math.exp %168 : vector<2x32xf32>
    %cst_64 = arith.constant 1.000000e+00 : f32
    %170 = vector.broadcast %cst_64 : f32 to vector<2x32xf32>
    %171 = arith.addf %170, %169 : vector<2x32xf32>
    %172 = arith.divf %170, %171 : vector<2x32xf32>
    %173 = vector.extract_strided_slice %160 {offsets = [0, 64], sizes = [2, 32], strides = [1, 1]} : vector<2x128xf32> to vector<2x32xf32>
    %174 = arith.negf %173 : vector<2x32xf32>
    %175 = math.exp %174 : vector<2x32xf32>
    %cst_65 = arith.constant 1.000000e+00 : f32
    %176 = vector.broadcast %cst_65 : f32 to vector<2x32xf32>
    %177 = arith.addf %176, %175 : vector<2x32xf32>
    %178 = arith.divf %176, %177 : vector<2x32xf32>
    %179 = vector.shape_cast %77 : vector<2x32xf32> to vector<2x1x32xf32>
    %180 = vector.broadcast %179 : vector<2x1x32xf32> to vector<2x32x32xf32>
    %181 = arith.mulf %127, %180 : vector<2x32x32xf32>
    %cst_66 = arith.constant dense<0.000000e+00> : vector<2x32xf32>
    %182 = vector.multi_reduction <add>, %181, %cst_66 [2] : vector<2x32x32xf32> to vector<2x32xf32>
    %183 = vector.broadcast %7 : vector<1x32xf32> to vector<2x32xf32>
    %184 = arith.mulf %183, %182 : vector<2x32xf32>
    %185 = vector.extract_strided_slice %160 {offsets = [0, 96], sizes = [2, 32], strides = [1, 1]} : vector<2x128xf32> to vector<2x32xf32>
    %186 = arith.addf %185, %184 : vector<2x32xf32>
    %187 = arith.mulf %166, %76 : vector<2x32xf32>
    %188 = arith.mulf %172, %186 : vector<2x32xf32>
    %189 = arith.addf %187, %188 : vector<2x32xf32>
    %190 = math.tanh %189 : vector<2x32xf32>
    %cst_67 = arith.constant dense<0.000000e+00> : vector<2x8xf32>
    %191 = tpu.matmul %190, %10, %cst_67 {dimension_numbers = #tpu.dot_dimension_numbers<[1], [0], [0], [1], [0, 0, 1, 1], [], []>} : vector<2x32xf32>, vector<32x8xf32>, vector<2x8xf32> -> vector<2x8xf32>
    %192 = vector.broadcast %11 : vector<1x8xf32> to vector<2x8xf32>
    %193 = arith.addf %191, %192 : vector<2x8xf32>
    %cst_68 = arith.constant dense<0xFF800000> : vector<2xf32>
    %194 = vector.multi_reduction <maximumf>, %193, %cst_68 [1] : vector<2x8xf32> to vector<2xf32>
    %195 = vector.shape_cast %194 : vector<2xf32> to vector<2x1xf32>
    %196 = vector.broadcast %195 : vector<2x1xf32> to vector<2x8xf32>
    %197 = arith.cmpf oge, %193, %196 : vector<2x8xf32>
    %cst_69 = arith.constant 0xFF800000 : f32
    %198 = vector.broadcast %cst_69 : f32 to vector<2x8xf32>
    %199 = arith.select %197, %198, %193 : vector<2x8xi1>, vector<2x8xf32>
    %cst_70 = arith.constant dense<0xFF800000> : vector<2xf32>
    %200 = vector.multi_reduction <maximumf>, %199, %cst_70 [1] : vector<2x8xf32> to vector<2xf32>
    %201 = vector.shape_cast %200 : vector<2xf32> to vector<2x1xf32>
    %202 = vector.broadcast %201 : vector<2x1xf32> to vector<2x8xf32>
    %203 = arith.cmpf oge, %193, %202 : vector<2x8xf32>
    %cst_71 = arith.constant 0.000000e+00 : f32
    %204 = vector.broadcast %cst_71 : f32 to vector<2x8xf32>
    %205 = arith.select %203, %193, %204 : vector<2x8xi1>, vector<2x8xf32>
    %cst_72 = arith.constant dense<0.000000e+00> : vector<2x32xf32>
    %206 = tpu.matmul %205, %12, %cst_72 {dimension_numbers = #tpu.dot_dimension_numbers<[1], [0], [0], [1], [0, 0, 1, 1], [], []>} : vector<2x8xf32>, vector<8x32xf32>, vector<2x32xf32> -> vector<2x32xf32>
    %207 = vector.broadcast %13 : vector<1x32xf32> to vector<2x32xf32>
    %208 = arith.addf %206, %207 : vector<2x32xf32>
    %209 = arith.mulf %166, %98 : vector<2x32xf32>
    %210 = arith.mulf %172, %190 : vector<2x32xf32>
    %211 = arith.addf %209, %210 : vector<2x32xf32>
    %212 = vector.shape_cast %178 : vector<2x32xf32> to vector<2x32x1xf32>
    %cst_73 = arith.constant 1.000000e+00 : f32
    %213 = vector.broadcast %cst_73 : f32 to vector<2x32x1xf32>
    %214 = arith.subf %213, %212 : vector<2x32x1xf32>
    %215 = vector.broadcast %214 : vector<2x32x1xf32> to vector<2x32x32xf32>
    %216 = arith.mulf %215, %117 : vector<2x32x32xf32>
    %217 = vector.shape_cast %190 : vector<2x32xf32> to vector<2x32x1xf32>
    %218 = vector.shape_cast %98 : vector<2x32xf32> to vector<2x1x32xf32>
    %219 = vector.broadcast %217 : vector<2x32x1xf32> to vector<2x32x32xf32>
    %220 = vector.broadcast %218 : vector<2x1x32xf32> to vector<2x32x32xf32>
    %221 = arith.mulf %219, %220 : vector<2x32x32xf32>
    %222 = vector.shape_cast %211 : vector<2x32xf32> to vector<2x32x1xf32>
    %223 = vector.shape_cast %77 : vector<2x32xf32> to vector<2x1x32xf32>
    %224 = vector.broadcast %222 : vector<2x32x1xf32> to vector<2x32x32xf32>
    %225 = vector.broadcast %223 : vector<2x1x32xf32> to vector<2x32x32xf32>
    %226 = arith.mulf %224, %225 : vector<2x32x32xf32>
    %227 = arith.subf %221, %226 : vector<2x32x32xf32>
    %228 = vector.broadcast %212 : vector<2x32x1xf32> to vector<2x32x32xf32>
    %229 = arith.mulf %228, %227 : vector<2x32x32xf32>
    %230 = arith.addf %216, %229 : vector<2x32x32xf32>
    %231 = vector.broadcast %9 : vector<1x32x1xf32> to vector<2x32x32xf32>
    %232 = arith.mulf %231, %127 : vector<2x32x32xf32>
    %233 = vector.shape_cast %208 : vector<2x32xf32> to vector<2x32x1xf32>
    %234 = vector.broadcast %233 : vector<2x32x1xf32> to vector<2x32x32xf32>
    %235 = arith.mulf %234, %117 : vector<2x32x32xf32>
    %236 = arith.addf %232, %235 : vector<2x32x32xf32>
    %cst_74 = arith.constant -5.000000e+00 : f32
    %cst_75 = arith.constant 5.000000e+00 : f32
    %237 = vector.broadcast %cst_74 : f32 to vector<2x32x32xf32>
    %238 = arith.maximumf %237, %236 : vector<2x32x32xf32>
    %239 = vector.broadcast %cst_75 : f32 to vector<2x32x32xf32>
    %240 = arith.minimumf %239, %238 : vector<2x32x32xf32>
    %241 = arith.index_cast %c1_i32 : i32 to index
    %c0_76 = arith.constant 0 : index
    %c0_77 = arith.constant 0 : index
    %242 = vector.load %arg23[%241, %c0_76, %c0_77] : memref<8x2x32xf32, #tpu.memory_space<vmem>>, vector<1x2x32xf32>
    %243 = vector.shape_cast %242 : vector<1x2x32xf32> to vector<2x32xf32>
    %244 = vector.shape_cast %190 : vector<2x32xf32> to vector<1x2x32xf32>
    tpu.vector_store %arg23[%241, %c0_76, %c0_77], %244 {strides = array<i32>} : memref<8x2x32xf32, #tpu.memory_space<vmem>>, vector<1x2x32xf32>,
    %c2_i32 = arith.constant 2 : i32
    %245 = arith.index_cast %c2_i32 : i32 to index
    %c0_78 = arith.constant 0 : index
    %c0_79 = arith.constant 0 : index
    %246 = vector.load %arg2[%245, %c0_78, %c0_79] : memref<8x2x128xf32, #tpu.memory_space<vmem>>, vector<1x2x128xf32>
    %247 = vector.shape_cast %246 : vector<1x2x128xf32> to vector<2x128xf32>
    %cst_80 = arith.constant dense<0.000000e+00> : vector<2x128xf32>
    %248 = tpu.matmul %190, %3, %cst_80 {dimension_numbers = #tpu.dot_dimension_numbers<[1], [0], [0], [1], [0, 0, 1, 1], [], []>} : vector<2x32xf32>, vector<32x128xf32>, vector<2x128xf32> -> vector<2x128xf32>
    %249 = vector.broadcast %4 : vector<1x128xf32> to vector<2x128xf32>
    %250 = arith.addf %248, %249 : vector<2x128xf32>
    %cst_81 = arith.constant dense<0.000000e+00> : vector<2xf32>
    %251 = vector.multi_reduction <add>, %250, %cst_81 [1] : vector<2x128xf32> to vector<2xf32>
    %252 = vector.shape_cast %251 : vector<2xf32> to vector<2x1xf32>
    %cst_82 = arith.constant 1.280000e+02 : f32
    %253 = vector.broadcast %cst_82 : f32 to vector<2x1xf32>
    %254 = arith.divf %252, %253 : vector<2x1xf32>
    %255 = vector.broadcast %254 : vector<2x1xf32> to vector<2x128xf32>
    %256 = arith.subf %250, %255 : vector<2x128xf32>
    %257 = arith.mulf %256, %256 : vector<2x128xf32>
    %cst_83 = arith.constant dense<0.000000e+00> : vector<2xf32>
    %258 = vector.multi_reduction <add>, %257, %cst_83 [1] : vector<2x128xf32> to vector<2xf32>
    %259 = vector.shape_cast %258 : vector<2xf32> to vector<2x1xf32>
    %cst_84 = arith.constant 1.280000e+02 : f32
    %260 = vector.broadcast %cst_84 : f32 to vector<2x1xf32>
    %261 = arith.divf %259, %260 : vector<2x1xf32>
    %262 = vector.broadcast %254 : vector<2x1xf32> to vector<2x128xf32>
    %263 = arith.subf %250, %262 : vector<2x128xf32>
    %cst_85 = arith.constant 9.99999974E-6 : f32
    %264 = vector.broadcast %cst_85 : f32 to vector<2x1xf32>
    %265 = arith.addf %261, %264 : vector<2x1xf32>
    %266 = math.rsqrt %265 : vector<2x1xf32>
    %267 = vector.broadcast %266 : vector<2x1xf32> to vector<2x128xf32>
    %268 = arith.mulf %263, %267 : vector<2x128xf32>
    %269 = vector.broadcast %5 : vector<1x128xf32> to vector<2x128xf32>
    %270 = arith.mulf %268, %269 : vector<2x128xf32>
    %271 = vector.broadcast %6 : vector<1x128xf32> to vector<2x128xf32>
    %272 = arith.addf %270, %271 : vector<2x128xf32>
    %273 = arith.addf %247, %272 : vector<2x128xf32>
    %274 = vector.extract_strided_slice %273 {offsets = [0, 0], sizes = [2, 32], strides = [1, 1]} : vector<2x128xf32> to vector<2x32xf32>
    %275 = arith.negf %274 : vector<2x32xf32>
    %276 = math.exp %275 : vector<2x32xf32>
    %cst_86 = arith.constant 1.000000e+00 : f32
    %277 = vector.broadcast %cst_86 : f32 to vector<2x32xf32>
    %278 = arith.addf %277, %276 : vector<2x32xf32>
    %279 = arith.divf %277, %278 : vector<2x32xf32>
    %280 = vector.extract_strided_slice %273 {offsets = [0, 32], sizes = [2, 32], strides = [1, 1]} : vector<2x128xf32> to vector<2x32xf32>
    %281 = arith.negf %280 : vector<2x32xf32>
    %282 = math.exp %281 : vector<2x32xf32>
    %cst_87 = arith.constant 1.000000e+00 : f32
    %283 = vector.broadcast %cst_87 : f32 to vector<2x32xf32>
    %284 = arith.addf %283, %282 : vector<2x32xf32>
    %285 = arith.divf %283, %284 : vector<2x32xf32>
    %286 = vector.extract_strided_slice %273 {offsets = [0, 64], sizes = [2, 32], strides = [1, 1]} : vector<2x128xf32> to vector<2x32xf32>
    %287 = arith.negf %286 : vector<2x32xf32>
    %288 = math.exp %287 : vector<2x32xf32>
    %cst_88 = arith.constant 1.000000e+00 : f32
    %289 = vector.broadcast %cst_88 : f32 to vector<2x32xf32>
    %290 = arith.addf %289, %288 : vector<2x32xf32>
    %291 = arith.divf %289, %290 : vector<2x32xf32>
    %292 = vector.shape_cast %190 : vector<2x32xf32> to vector<2x1x32xf32>
    %293 = vector.broadcast %292 : vector<2x1x32xf32> to vector<2x32x32xf32>
    %294 = arith.mulf %240, %293 : vector<2x32x32xf32>
    %cst_89 = arith.constant dense<0.000000e+00> : vector<2x32xf32>
    %295 = vector.multi_reduction <add>, %294, %cst_89 [2] : vector<2x32x32xf32> to vector<2x32xf32>
    %296 = vector.broadcast %7 : vector<1x32xf32> to vector<2x32xf32>
    %297 = arith.mulf %296, %295 : vector<2x32xf32>
    %298 = vector.extract_strided_slice %273 {offsets = [0, 96], sizes = [2, 32], strides = [1, 1]} : vector<2x128xf32> to vector<2x32xf32>
    %299 = arith.addf %298, %297 : vector<2x32xf32>
    %300 = arith.mulf %279, %189 : vector<2x32xf32>
    %301 = arith.mulf %285, %299 : vector<2x32xf32>
    %302 = arith.addf %300, %301 : vector<2x32xf32>
    %303 = math.tanh %302 : vector<2x32xf32>
    %cst_90 = arith.constant dense<0.000000e+00> : vector<2x8xf32>
    %304 = tpu.matmul %303, %10, %cst_90 {dimension_numbers = #tpu.dot_dimension_numbers<[1], [0], [0], [1], [0, 0, 1, 1], [], []>} : vector<2x32xf32>, vector<32x8xf32>, vector<2x8xf32> -> vector<2x8xf32>
    %305 = vector.broadcast %11 : vector<1x8xf32> to vector<2x8xf32>
    %306 = arith.addf %304, %305 : vector<2x8xf32>
    %cst_91 = arith.constant dense<0xFF800000> : vector<2xf32>
    %307 = vector.multi_reduction <maximumf>, %306, %cst_91 [1] : vector<2x8xf32> to vector<2xf32>
    %308 = vector.shape_cast %307 : vector<2xf32> to vector<2x1xf32>
    %309 = vector.broadcast %308 : vector<2x1xf32> to vector<2x8xf32>
    %310 = arith.cmpf oge, %306, %309 : vector<2x8xf32>
    %cst_92 = arith.constant 0xFF800000 : f32
    %311 = vector.broadcast %cst_92 : f32 to vector<2x8xf32>
    %312 = arith.select %310, %311, %306 : vector<2x8xi1>, vector<2x8xf32>
    %cst_93 = arith.constant dense<0xFF800000> : vector<2xf32>
    %313 = vector.multi_reduction <maximumf>, %312, %cst_93 [1] : vector<2x8xf32> to vector<2xf32>
    %314 = vector.shape_cast %313 : vector<2xf32> to vector<2x1xf32>
    %315 = vector.broadcast %314 : vector<2x1xf32> to vector<2x8xf32>
    %316 = arith.cmpf oge, %306, %315 : vector<2x8xf32>
    %cst_94 = arith.constant 0.000000e+00 : f32
    %317 = vector.broadcast %cst_94 : f32 to vector<2x8xf32>
    %318 = arith.select %316, %306, %317 : vector<2x8xi1>, vector<2x8xf32>
    %cst_95 = arith.constant dense<0.000000e+00> : vector<2x32xf32>
    %319 = tpu.matmul %318, %12, %cst_95 {dimension_numbers = #tpu.dot_dimension_numbers<[1], [0], [0], [1], [0, 0, 1, 1], [], []>} : vector<2x8xf32>, vector<8x32xf32>, vector<2x32xf32> -> vector<2x32xf32>
    %320 = vector.broadcast %13 : vector<1x32xf32> to vector<2x32xf32>
    %321 = arith.addf %319, %320 : vector<2x32xf32>
    %322 = arith.mulf %279, %211 : vector<2x32xf32>
    %323 = arith.mulf %285, %303 : vector<2x32xf32>
    %324 = arith.addf %322, %323 : vector<2x32xf32>
    %325 = vector.shape_cast %291 : vector<2x32xf32> to vector<2x32x1xf32>
    %cst_96 = arith.constant 1.000000e+00 : f32
    %326 = vector.broadcast %cst_96 : f32 to vector<2x32x1xf32>
    %327 = arith.subf %326, %325 : vector<2x32x1xf32>
    %328 = vector.broadcast %327 : vector<2x32x1xf32> to vector<2x32x32xf32>
    %329 = arith.mulf %328, %230 : vector<2x32x32xf32>
    %330 = vector.shape_cast %303 : vector<2x32xf32> to vector<2x32x1xf32>
    %331 = vector.shape_cast %211 : vector<2x32xf32> to vector<2x1x32xf32>
    %332 = vector.broadcast %330 : vector<2x32x1xf32> to vector<2x32x32xf32>
    %333 = vector.broadcast %331 : vector<2x1x32xf32> to vector<2x32x32xf32>
    %334 = arith.mulf %332, %333 : vector<2x32x32xf32>
    %335 = vector.shape_cast %324 : vector<2x32xf32> to vector<2x32x1xf32>
    %336 = vector.shape_cast %190 : vector<2x32xf32> to vector<2x1x32xf32>
    %337 = vector.broadcast %335 : vector<2x32x1xf32> to vector<2x32x32xf32>
    %338 = vector.broadcast %336 : vector<2x1x32xf32> to vector<2x32x32xf32>
    %339 = arith.mulf %337, %338 : vector<2x32x32xf32>
    %340 = arith.subf %334, %339 : vector<2x32x32xf32>
    %341 = vector.broadcast %325 : vector<2x32x1xf32> to vector<2x32x32xf32>
    %342 = arith.mulf %341, %340 : vector<2x32x32xf32>
    %343 = arith.addf %329, %342 : vector<2x32x32xf32>
    %344 = vector.broadcast %9 : vector<1x32x1xf32> to vector<2x32x32xf32>
    %345 = arith.mulf %344, %240 : vector<2x32x32xf32>
    %346 = vector.shape_cast %321 : vector<2x32xf32> to vector<2x32x1xf32>
    %347 = vector.broadcast %346 : vector<2x32x1xf32> to vector<2x32x32xf32>
    %348 = arith.mulf %347, %230 : vector<2x32x32xf32>
    %349 = arith.addf %345, %348 : vector<2x32x32xf32>
    %cst_97 = arith.constant -5.000000e+00 : f32
    %cst_98 = arith.constant 5.000000e+00 : f32
    %350 = vector.broadcast %cst_97 : f32 to vector<2x32x32xf32>
    %351 = arith.maximumf %350, %349 : vector<2x32x32xf32>
    %352 = vector.broadcast %cst_98 : f32 to vector<2x32x32xf32>
    %353 = arith.minimumf %352, %351 : vector<2x32x32xf32>
    %354 = arith.index_cast %c2_i32 : i32 to index
    %c0_99 = arith.constant 0 : index
    %c0_100 = arith.constant 0 : index
    %355 = vector.load %arg23[%354, %c0_99, %c0_100] : memref<8x2x32xf32, #tpu.memory_space<vmem>>, vector<1x2x32xf32>
    %356 = vector.shape_cast %355 : vector<1x2x32xf32> to vector<2x32xf32>
    %357 = vector.shape_cast %303 : vector<2x32xf32> to vector<1x2x32xf32>
    tpu.vector_store %arg23[%354, %c0_99, %c0_100], %357 {strides = array<i32>} : memref<8x2x32xf32, #tpu.memory_space<vmem>>, vector<1x2x32xf32>,
    %c3_i32 = arith.constant 3 : i32
    %358 = arith.index_cast %c3_i32 : i32 to index
    %c0_101 = arith.constant 0 : index
    %c0_102 = arith.constant 0 : index
    %359 = vector.load %arg2[%358, %c0_101, %c0_102] : memref<8x2x128xf32, #tpu.memory_space<vmem>>, vector<1x2x128xf32>
    %360 = vector.shape_cast %359 : vector<1x2x128xf32> to vector<2x128xf32>
    %cst_103 = arith.constant dense<0.000000e+00> : vector<2x128xf32>
    %361 = tpu.matmul %303, %3, %cst_103 {dimension_numbers = #tpu.dot_dimension_numbers<[1], [0], [0], [1], [0, 0, 1, 1], [], []>} : vector<2x32xf32>, vector<32x128xf32>, vector<2x128xf32> -> vector<2x128xf32>
    %362 = vector.broadcast %4 : vector<1x128xf32> to vector<2x128xf32>
    %363 = arith.addf %361, %362 : vector<2x128xf32>
    %cst_104 = arith.constant dense<0.000000e+00> : vector<2xf32>
    %364 = vector.multi_reduction <add>, %363, %cst_104 [1] : vector<2x128xf32> to vector<2xf32>
    %365 = vector.shape_cast %364 : vector<2xf32> to vector<2x1xf32>
    %cst_105 = arith.constant 1.280000e+02 : f32
    %366 = vector.broadcast %cst_105 : f32 to vector<2x1xf32>
    %367 = arith.divf %365, %366 : vector<2x1xf32>
    %368 = vector.broadcast %367 : vector<2x1xf32> to vector<2x128xf32>
    %369 = arith.subf %363, %368 : vector<2x128xf32>
    %370 = arith.mulf %369, %369 : vector<2x128xf32>
    %cst_106 = arith.constant dense<0.000000e+00> : vector<2xf32>
    %371 = vector.multi_reduction <add>, %370, %cst_106 [1] : vector<2x128xf32> to vector<2xf32>
    %372 = vector.shape_cast %371 : vector<2xf32> to vector<2x1xf32>
    %cst_107 = arith.constant 1.280000e+02 : f32
    %373 = vector.broadcast %cst_107 : f32 to vector<2x1xf32>
    %374 = arith.divf %372, %373 : vector<2x1xf32>
    %375 = vector.broadcast %367 : vector<2x1xf32> to vector<2x128xf32>
    %376 = arith.subf %363, %375 : vector<2x128xf32>
    %cst_108 = arith.constant 9.99999974E-6 : f32
    %377 = vector.broadcast %cst_108 : f32 to vector<2x1xf32>
    %378 = arith.addf %374, %377 : vector<2x1xf32>
    %379 = math.rsqrt %378 : vector<2x1xf32>
    %380 = vector.broadcast %379 : vector<2x1xf32> to vector<2x128xf32>
    %381 = arith.mulf %376, %380 : vector<2x128xf32>
    %382 = vector.broadcast %5 : vector<1x128xf32> to vector<2x128xf32>
    %383 = arith.mulf %381, %382 : vector<2x128xf32>
    %384 = vector.broadcast %6 : vector<1x128xf32> to vector<2x128xf32>
    %385 = arith.addf %383, %384 : vector<2x128xf32>
    %386 = arith.addf %360, %385 : vector<2x128xf32>
    %387 = vector.extract_strided_slice %386 {offsets = [0, 0], sizes = [2, 32], strides = [1, 1]} : vector<2x128xf32> to vector<2x32xf32>
    %388 = arith.negf %387 : vector<2x32xf32>
    %389 = math.exp %388 : vector<2x32xf32>
    %cst_109 = arith.constant 1.000000e+00 : f32
    %390 = vector.broadcast %cst_109 : f32 to vector<2x32xf32>
    %391 = arith.addf %390, %389 : vector<2x32xf32>
    %392 = arith.divf %390, %391 : vector<2x32xf32>
    %393 = vector.extract_strided_slice %386 {offsets = [0, 32], sizes = [2, 32], strides = [1, 1]} : vector<2x128xf32> to vector<2x32xf32>
    %394 = arith.negf %393 : vector<2x32xf32>
    %395 = math.exp %394 : vector<2x32xf32>
    %cst_110 = arith.constant 1.000000e+00 : f32
    %396 = vector.broadcast %cst_110 : f32 to vector<2x32xf32>
    %397 = arith.addf %396, %395 : vector<2x32xf32>
    %398 = arith.divf %396, %397 : vector<2x32xf32>
    %399 = vector.extract_strided_slice %386 {offsets = [0, 64], sizes = [2, 32], strides = [1, 1]} : vector<2x128xf32> to vector<2x32xf32>
    %400 = arith.negf %399 : vector<2x32xf32>
    %401 = math.exp %400 : vector<2x32xf32>
    %cst_111 = arith.constant 1.000000e+00 : f32
    %402 = vector.broadcast %cst_111 : f32 to vector<2x32xf32>
    %403 = arith.addf %402, %401 : vector<2x32xf32>
    %404 = arith.divf %402, %403 : vector<2x32xf32>
    %405 = vector.shape_cast %303 : vector<2x32xf32> to vector<2x1x32xf32>
    %406 = vector.broadcast %405 : vector<2x1x32xf32> to vector<2x32x32xf32>
    %407 = arith.mulf %353, %406 : vector<2x32x32xf32>
    %cst_112 = arith.constant dense<0.000000e+00> : vector<2x32xf32>
    %408 = vector.multi_reduction <add>, %407, %cst_112 [2] : vector<2x32x32xf32> to vector<2x32xf32>
    %409 = vector.broadcast %7 : vector<1x32xf32> to vector<2x32xf32>
    %410 = arith.mulf %409, %408 : vector<2x32xf32>
    %411 = vector.extract_strided_slice %386 {offsets = [0, 96], sizes = [2, 32], strides = [1, 1]} : vector<2x128xf32> to vector<2x32xf32>
    %412 = arith.addf %411, %410 : vector<2x32xf32>
    %413 = arith.mulf %392, %302 : vector<2x32xf32>
    %414 = arith.mulf %398, %412 : vector<2x32xf32>
    %415 = arith.addf %413, %414 : vector<2x32xf32>
    %416 = math.tanh %415 : vector<2x32xf32>
    %cst_113 = arith.constant dense<0.000000e+00> : vector<2x8xf32>
    %417 = tpu.matmul %416, %10, %cst_113 {dimension_numbers = #tpu.dot_dimension_numbers<[1], [0], [0], [1], [0, 0, 1, 1], [], []>} : vector<2x32xf32>, vector<32x8xf32>, vector<2x8xf32> -> vector<2x8xf32>
    %418 = vector.broadcast %11 : vector<1x8xf32> to vector<2x8xf32>
    %419 = arith.addf %417, %418 : vector<2x8xf32>
    %cst_114 = arith.constant dense<0xFF800000> : vector<2xf32>
    %420 = vector.multi_reduction <maximumf>, %419, %cst_114 [1] : vector<2x8xf32> to vector<2xf32>
    %421 = vector.shape_cast %420 : vector<2xf32> to vector<2x1xf32>
    %422 = vector.broadcast %421 : vector<2x1xf32> to vector<2x8xf32>
    %423 = arith.cmpf oge, %419, %422 : vector<2x8xf32>
    %cst_115 = arith.constant 0xFF800000 : f32
    %424 = vector.broadcast %cst_115 : f32 to vector<2x8xf32>
    %425 = arith.select %423, %424, %419 : vector<2x8xi1>, vector<2x8xf32>
    %cst_116 = arith.constant dense<0xFF800000> : vector<2xf32>
    %426 = vector.multi_reduction <maximumf>, %425, %cst_116 [1] : vector<2x8xf32> to vector<2xf32>
    %427 = vector.shape_cast %426 : vector<2xf32> to vector<2x1xf32>
    %428 = vector.broadcast %427 : vector<2x1xf32> to vector<2x8xf32>
    %429 = arith.cmpf oge, %419, %428 : vector<2x8xf32>
    %cst_117 = arith.constant 0.000000e+00 : f32
    %430 = vector.broadcast %cst_117 : f32 to vector<2x8xf32>
    %431 = arith.select %429, %419, %430 : vector<2x8xi1>, vector<2x8xf32>
    %cst_118 = arith.constant dense<0.000000e+00> : vector<2x32xf32>
    %432 = tpu.matmul %431, %12, %cst_118 {dimension_numbers = #tpu.dot_dimension_numbers<[1], [0], [0], [1], [0, 0, 1, 1], [], []>} : vector<2x8xf32>, vector<8x32xf32>, vector<2x32xf32> -> vector<2x32xf32>
    %433 = vector.broadcast %13 : vector<1x32xf32> to vector<2x32xf32>
    %434 = arith.addf %432, %433 : vector<2x32xf32>
    %435 = arith.mulf %392, %324 : vector<2x32xf32>
    %436 = arith.mulf %398, %416 : vector<2x32xf32>
    %437 = arith.addf %435, %436 : vector<2x32xf32>
    %438 = vector.shape_cast %404 : vector<2x32xf32> to vector<2x32x1xf32>
    %cst_119 = arith.constant 1.000000e+00 : f32
    %439 = vector.broadcast %cst_119 : f32 to vector<2x32x1xf32>
    %440 = arith.subf %439, %438 : vector<2x32x1xf32>
    %441 = vector.broadcast %440 : vector<2x32x1xf32> to vector<2x32x32xf32>
    %442 = arith.mulf %441, %343 : vector<2x32x32xf32>
    %443 = vector.shape_cast %416 : vector<2x32xf32> to vector<2x32x1xf32>
    %444 = vector.shape_cast %324 : vector<2x32xf32> to vector<2x1x32xf32>
    %445 = vector.broadcast %443 : vector<2x32x1xf32> to vector<2x32x32xf32>
    %446 = vector.broadcast %444 : vector<2x1x32xf32> to vector<2x32x32xf32>
    %447 = arith.mulf %445, %446 : vector<2x32x32xf32>
    %448 = vector.shape_cast %437 : vector<2x32xf32> to vector<2x32x1xf32>
    %449 = vector.shape_cast %303 : vector<2x32xf32> to vector<2x1x32xf32>
    %450 = vector.broadcast %448 : vector<2x32x1xf32> to vector<2x32x32xf32>
    %451 = vector.broadcast %449 : vector<2x1x32xf32> to vector<2x32x32xf32>
    %452 = arith.mulf %450, %451 : vector<2x32x32xf32>
    %453 = arith.subf %447, %452 : vector<2x32x32xf32>
    %454 = vector.broadcast %438 : vector<2x32x1xf32> to vector<2x32x32xf32>
    %455 = arith.mulf %454, %453 : vector<2x32x32xf32>
    %456 = arith.addf %442, %455 : vector<2x32x32xf32>
    %457 = vector.broadcast %9 : vector<1x32x1xf32> to vector<2x32x32xf32>
    %458 = arith.mulf %457, %353 : vector<2x32x32xf32>
    %459 = vector.shape_cast %434 : vector<2x32xf32> to vector<2x32x1xf32>
    %460 = vector.broadcast %459 : vector<2x32x1xf32> to vector<2x32x32xf32>
    %461 = arith.mulf %460, %343 : vector<2x32x32xf32>
    %462 = arith.addf %458, %461 : vector<2x32x32xf32>
    %cst_120 = arith.constant -5.000000e+00 : f32
    %cst_121 = arith.constant 5.000000e+00 : f32
    %463 = vector.broadcast %cst_120 : f32 to vector<2x32x32xf32>
    %464 = arith.maximumf %463, %462 : vector<2x32x32xf32>
    %465 = vector.broadcast %cst_121 : f32 to vector<2x32x32xf32>
    %466 = arith.minimumf %465, %464 : vector<2x32x32xf32>
    %467 = arith.index_cast %c3_i32 : i32 to index
    %c0_122 = arith.constant 0 : index
    %c0_123 = arith.constant 0 : index
    %468 = vector.load %arg23[%467, %c0_122, %c0_123] : memref<8x2x32xf32, #tpu.memory_space<vmem>>, vector<1x2x32xf32>
    %469 = vector.shape_cast %468 : vector<1x2x32xf32> to vector<2x32xf32>
    %470 = vector.shape_cast %416 : vector<2x32xf32> to vector<1x2x32xf32>
    tpu.vector_store %arg23[%467, %c0_122, %c0_123], %470 {strides = array<i32>} : memref<8x2x32xf32, #tpu.memory_space<vmem>>, vector<1x2x32xf32>,
    %c4_i32 = arith.constant 4 : i32
    %471 = arith.index_cast %c4_i32 : i32 to index
    %c0_124 = arith.constant 0 : index
    %c0_125 = arith.constant 0 : index
    %472 = vector.load %arg2[%471, %c0_124, %c0_125] : memref<8x2x128xf32, #tpu.memory_space<vmem>>, vector<1x2x128xf32>
    %473 = vector.shape_cast %472 : vector<1x2x128xf32> to vector<2x128xf32>
    %cst_126 = arith.constant dense<0.000000e+00> : vector<2x128xf32>
    %474 = tpu.matmul %416, %3, %cst_126 {dimension_numbers = #tpu.dot_dimension_numbers<[1], [0], [0], [1], [0, 0, 1, 1], [], []>} : vector<2x32xf32>, vector<32x128xf32>, vector<2x128xf32> -> vector<2x128xf32>
    %475 = vector.broadcast %4 : vector<1x128xf32> to vector<2x128xf32>
    %476 = arith.addf %474, %475 : vector<2x128xf32>
    %cst_127 = arith.constant dense<0.000000e+00> : vector<2xf32>
    %477 = vector.multi_reduction <add>, %476, %cst_127 [1] : vector<2x128xf32> to vector<2xf32>
    %478 = vector.shape_cast %477 : vector<2xf32> to vector<2x1xf32>
    %cst_128 = arith.constant 1.280000e+02 : f32
    %479 = vector.broadcast %cst_128 : f32 to vector<2x1xf32>
    %480 = arith.divf %478, %479 : vector<2x1xf32>
    %481 = vector.broadcast %480 : vector<2x1xf32> to vector<2x128xf32>
    %482 = arith.subf %476, %481 : vector<2x128xf32>
    %483 = arith.mulf %482, %482 : vector<2x128xf32>
    %cst_129 = arith.constant dense<0.000000e+00> : vector<2xf32>
    %484 = vector.multi_reduction <add>, %483, %cst_129 [1] : vector<2x128xf32> to vector<2xf32>
    %485 = vector.shape_cast %484 : vector<2xf32> to vector<2x1xf32>
    %cst_130 = arith.constant 1.280000e+02 : f32
    %486 = vector.broadcast %cst_130 : f32 to vector<2x1xf32>
    %487 = arith.divf %485, %486 : vector<2x1xf32>
    %488 = vector.broadcast %480 : vector<2x1xf32> to vector<2x128xf32>
    %489 = arith.subf %476, %488 : vector<2x128xf32>
    %cst_131 = arith.constant 9.99999974E-6 : f32
    %490 = vector.broadcast %cst_131 : f32 to vector<2x1xf32>
    %491 = arith.addf %487, %490 : vector<2x1xf32>
    %492 = math.rsqrt %491 : vector<2x1xf32>
    %493 = vector.broadcast %492 : vector<2x1xf32> to vector<2x128xf32>
    %494 = arith.mulf %489, %493 : vector<2x128xf32>
    %495 = vector.broadcast %5 : vector<1x128xf32> to vector<2x128xf32>
    %496 = arith.mulf %494, %495 : vector<2x128xf32>
    %497 = vector.broadcast %6 : vector<1x128xf32> to vector<2x128xf32>
    %498 = arith.addf %496, %497 : vector<2x128xf32>
    %499 = arith.addf %473, %498 : vector<2x128xf32>
    %500 = vector.extract_strided_slice %499 {offsets = [0, 0], sizes = [2, 32], strides = [1, 1]} : vector<2x128xf32> to vector<2x32xf32>
    %501 = arith.negf %500 : vector<2x32xf32>
    %502 = math.exp %501 : vector<2x32xf32>
    %cst_132 = arith.constant 1.000000e+00 : f32
    %503 = vector.broadcast %cst_132 : f32 to vector<2x32xf32>
    %504 = arith.addf %503, %502 : vector<2x32xf32>
    %505 = arith.divf %503, %504 : vector<2x32xf32>
    %506 = vector.extract_strided_slice %499 {offsets = [0, 32], sizes = [2, 32], strides = [1, 1]} : vector<2x128xf32> to vector<2x32xf32>
    %507 = arith.negf %506 : vector<2x32xf32>
    %508 = math.exp %507 : vector<2x32xf32>
    %cst_133 = arith.constant 1.000000e+00 : f32
    %509 = vector.broadcast %cst_133 : f32 to vector<2x32xf32>
    %510 = arith.addf %509, %508 : vector<2x32xf32>
    %511 = arith.divf %509, %510 : vector<2x32xf32>
    %512 = vector.extract_strided_slice %499 {offsets = [0, 64], sizes = [2, 32], strides = [1, 1]} : vector<2x128xf32> to vector<2x32xf32>
    %513 = arith.negf %512 : vector<2x32xf32>
    %514 = math.exp %513 : vector<2x32xf32>
    %cst_134 = arith.constant 1.000000e+00 : f32
    %515 = vector.broadcast %cst_134 : f32 to vector<2x32xf32>
    %516 = arith.addf %515, %514 : vector<2x32xf32>
    %517 = arith.divf %515, %516 : vector<2x32xf32>
    %518 = vector.shape_cast %416 : vector<2x32xf32> to vector<2x1x32xf32>
    %519 = vector.broadcast %518 : vector<2x1x32xf32> to vector<2x32x32xf32>
    %520 = arith.mulf %466, %519 : vector<2x32x32xf32>
    %cst_135 = arith.constant dense<0.000000e+00> : vector<2x32xf32>
    %521 = vector.multi_reduction <add>, %520, %cst_135 [2] : vector<2x32x32xf32> to vector<2x32xf32>
    %522 = vector.broadcast %7 : vector<1x32xf32> to vector<2x32xf32>
    %523 = arith.mulf %522, %521 : vector<2x32xf32>
    %524 = vector.extract_strided_slice %499 {offsets = [0, 96], sizes = [2, 32], strides = [1, 1]} : vector<2x128xf32> to vector<2x32xf32>
    %525 = arith.addf %524, %523 : vector<2x32xf32>
    %526 = arith.mulf %505, %415 : vector<2x32xf32>
    %527 = arith.mulf %511, %525 : vector<2x32xf32>
    %528 = arith.addf %526, %527 : vector<2x32xf32>
    %529 = math.tanh %528 : vector<2x32xf32>
    %cst_136 = arith.constant dense<0.000000e+00> : vector<2x8xf32>
    %530 = tpu.matmul %529, %10, %cst_136 {dimension_numbers = #tpu.dot_dimension_numbers<[1], [0], [0], [1], [0, 0, 1, 1], [], []>} : vector<2x32xf32>, vector<32x8xf32>, vector<2x8xf32> -> vector<2x8xf32>
    %531 = vector.broadcast %11 : vector<1x8xf32> to vector<2x8xf32>
    %532 = arith.addf %530, %531 : vector<2x8xf32>
    %cst_137 = arith.constant dense<0xFF800000> : vector<2xf32>
    %533 = vector.multi_reduction <maximumf>, %532, %cst_137 [1] : vector<2x8xf32> to vector<2xf32>
    %534 = vector.shape_cast %533 : vector<2xf32> to vector<2x1xf32>
    %535 = vector.broadcast %534 : vector<2x1xf32> to vector<2x8xf32>
    %536 = arith.cmpf oge, %532, %535 : vector<2x8xf32>
    %cst_138 = arith.constant 0xFF800000 : f32
    %537 = vector.broadcast %cst_138 : f32 to vector<2x8xf32>
    %538 = arith.select %536, %537, %532 : vector<2x8xi1>, vector<2x8xf32>
    %cst_139 = arith.constant dense<0xFF800000> : vector<2xf32>
    %539 = vector.multi_reduction <maximumf>, %538, %cst_139 [1] : vector<2x8xf32> to vector<2xf32>
    %540 = vector.shape_cast %539 : vector<2xf32> to vector<2x1xf32>
    %541 = vector.broadcast %540 : vector<2x1xf32> to vector<2x8xf32>
    %542 = arith.cmpf oge, %532, %541 : vector<2x8xf32>
    %cst_140 = arith.constant 0.000000e+00 : f32
    %543 = vector.broadcast %cst_140 : f32 to vector<2x8xf32>
    %544 = arith.select %542, %532, %543 : vector<2x8xi1>, vector<2x8xf32>
    %cst_141 = arith.constant dense<0.000000e+00> : vector<2x32xf32>
    %545 = tpu.matmul %544, %12, %cst_141 {dimension_numbers = #tpu.dot_dimension_numbers<[1], [0], [0], [1], [0, 0, 1, 1], [], []>} : vector<2x8xf32>, vector<8x32xf32>, vector<2x32xf32> -> vector<2x32xf32>
    %546 = vector.broadcast %13 : vector<1x32xf32> to vector<2x32xf32>
    %547 = arith.addf %545, %546 : vector<2x32xf32>
    %548 = arith.mulf %505, %437 : vector<2x32xf32>
    %549 = arith.mulf %511, %529 : vector<2x32xf32>
    %550 = arith.addf %548, %549 : vector<2x32xf32>
    %551 = vector.shape_cast %517 : vector<2x32xf32> to vector<2x32x1xf32>
    %cst_142 = arith.constant 1.000000e+00 : f32
    %552 = vector.broadcast %cst_142 : f32 to vector<2x32x1xf32>
    %553 = arith.subf %552, %551 : vector<2x32x1xf32>
    %554 = vector.broadcast %553 : vector<2x32x1xf32> to vector<2x32x32xf32>
    %555 = arith.mulf %554, %456 : vector<2x32x32xf32>
    %556 = vector.shape_cast %529 : vector<2x32xf32> to vector<2x32x1xf32>
    %557 = vector.shape_cast %437 : vector<2x32xf32> to vector<2x1x32xf32>
    %558 = vector.broadcast %556 : vector<2x32x1xf32> to vector<2x32x32xf32>
    %559 = vector.broadcast %557 : vector<2x1x32xf32> to vector<2x32x32xf32>
    %560 = arith.mulf %558, %559 : vector<2x32x32xf32>
    %561 = vector.shape_cast %550 : vector<2x32xf32> to vector<2x32x1xf32>
    %562 = vector.shape_cast %416 : vector<2x32xf32> to vector<2x1x32xf32>
    %563 = vector.broadcast %561 : vector<2x32x1xf32> to vector<2x32x32xf32>
    %564 = vector.broadcast %562 : vector<2x1x32xf32> to vector<2x32x32xf32>
    %565 = arith.mulf %563, %564 : vector<2x32x32xf32>
    %566 = arith.subf %560, %565 : vector<2x32x32xf32>
    %567 = vector.broadcast %551 : vector<2x32x1xf32> to vector<2x32x32xf32>
    %568 = arith.mulf %567, %566 : vector<2x32x32xf32>
    %569 = arith.addf %555, %568 : vector<2x32x32xf32>
    %570 = vector.broadcast %9 : vector<1x32x1xf32> to vector<2x32x32xf32>
    %571 = arith.mulf %570, %466 : vector<2x32x32xf32>
    %572 = vector.shape_cast %547 : vector<2x32xf32> to vector<2x32x1xf32>
    %573 = vector.broadcast %572 : vector<2x32x1xf32> to vector<2x32x32xf32>
    %574 = arith.mulf %573, %456 : vector<2x32x32xf32>
    %575 = arith.addf %571, %574 : vector<2x32x32xf32>
    %cst_143 = arith.constant -5.000000e+00 : f32
    %cst_144 = arith.constant 5.000000e+00 : f32
    %576 = vector.broadcast %cst_143 : f32 to vector<2x32x32xf32>
    %577 = arith.maximumf %576, %575 : vector<2x32x32xf32>
    %578 = vector.broadcast %cst_144 : f32 to vector<2x32x32xf32>
    %579 = arith.minimumf %578, %577 : vector<2x32x32xf32>
    %580 = arith.index_cast %c4_i32 : i32 to index
    %c0_145 = arith.constant 0 : index
    %c0_146 = arith.constant 0 : index
    %581 = vector.load %arg23[%580, %c0_145, %c0_146] : memref<8x2x32xf32, #tpu.memory_space<vmem>>, vector<1x2x32xf32>
    %582 = vector.shape_cast %581 : vector<1x2x32xf32> to vector<2x32xf32>
    %583 = vector.shape_cast %529 : vector<2x32xf32> to vector<1x2x32xf32>
    tpu.vector_store %arg23[%580, %c0_145, %c0_146], %583 {strides = array<i32>} : memref<8x2x32xf32, #tpu.memory_space<vmem>>, vector<1x2x32xf32>,
    %c5_i32 = arith.constant 5 : i32
    %584 = arith.index_cast %c5_i32 : i32 to index
    %c0_147 = arith.constant 0 : index
    %c0_148 = arith.constant 0 : index
    %585 = vector.load %arg2[%584, %c0_147, %c0_148] : memref<8x2x128xf32, #tpu.memory_space<vmem>>, vector<1x2x128xf32>
    %586 = vector.shape_cast %585 : vector<1x2x128xf32> to vector<2x128xf32>
    %cst_149 = arith.constant dense<0.000000e+00> : vector<2x128xf32>
    %587 = tpu.matmul %529, %3, %cst_149 {dimension_numbers = #tpu.dot_dimension_numbers<[1], [0], [0], [1], [0, 0, 1, 1], [], []>} : vector<2x32xf32>, vector<32x128xf32>, vector<2x128xf32> -> vector<2x128xf32>
    %588 = vector.broadcast %4 : vector<1x128xf32> to vector<2x128xf32>
    %589 = arith.addf %587, %588 : vector<2x128xf32>
    %cst_150 = arith.constant dense<0.000000e+00> : vector<2xf32>
    %590 = vector.multi_reduction <add>, %589, %cst_150 [1] : vector<2x128xf32> to vector<2xf32>
    %591 = vector.shape_cast %590 : vector<2xf32> to vector<2x1xf32>
    %cst_151 = arith.constant 1.280000e+02 : f32
    %592 = vector.broadcast %cst_151 : f32 to vector<2x1xf32>
    %593 = arith.divf %591, %592 : vector<2x1xf32>
    %594 = vector.broadcast %593 : vector<2x1xf32> to vector<2x128xf32>
    %595 = arith.subf %589, %594 : vector<2x128xf32>
    %596 = arith.mulf %595, %595 : vector<2x128xf32>
    %cst_152 = arith.constant dense<0.000000e+00> : vector<2xf32>
    %597 = vector.multi_reduction <add>, %596, %cst_152 [1] : vector<2x128xf32> to vector<2xf32>
    %598 = vector.shape_cast %597 : vector<2xf32> to vector<2x1xf32>
    %cst_153 = arith.constant 1.280000e+02 : f32
    %599 = vector.broadcast %cst_153 : f32 to vector<2x1xf32>
    %600 = arith.divf %598, %599 : vector<2x1xf32>
    %601 = vector.broadcast %593 : vector<2x1xf32> to vector<2x128xf32>
    %602 = arith.subf %589, %601 : vector<2x128xf32>
    %cst_154 = arith.constant 9.99999974E-6 : f32
    %603 = vector.broadcast %cst_154 : f32 to vector<2x1xf32>
    %604 = arith.addf %600, %603 : vector<2x1xf32>
    %605 = math.rsqrt %604 : vector<2x1xf32>
    %606 = vector.broadcast %605 : vector<2x1xf32> to vector<2x128xf32>
    %607 = arith.mulf %602, %606 : vector<2x128xf32>
    %608 = vector.broadcast %5 : vector<1x128xf32> to vector<2x128xf32>
    %609 = arith.mulf %607, %608 : vector<2x128xf32>
    %610 = vector.broadcast %6 : vector<1x128xf32> to vector<2x128xf32>
    %611 = arith.addf %609, %610 : vector<2x128xf32>
    %612 = arith.addf %586, %611 : vector<2x128xf32>
    %613 = vector.extract_strided_slice %612 {offsets = [0, 0], sizes = [2, 32], strides = [1, 1]} : vector<2x128xf32> to vector<2x32xf32>
    %614 = arith.negf %613 : vector<2x32xf32>
    %615 = math.exp %614 : vector<2x32xf32>
    %cst_155 = arith.constant 1.000000e+00 : f32
    %616 = vector.broadcast %cst_155 : f32 to vector<2x32xf32>
    %617 = arith.addf %616, %615 : vector<2x32xf32>
    %618 = arith.divf %616, %617 : vector<2x32xf32>
    %619 = vector.extract_strided_slice %612 {offsets = [0, 32], sizes = [2, 32], strides = [1, 1]} : vector<2x128xf32> to vector<2x32xf32>
    %620 = arith.negf %619 : vector<2x32xf32>
    %621 = math.exp %620 : vector<2x32xf32>
    %cst_156 = arith.constant 1.000000e+00 : f32
    %622 = vector.broadcast %cst_156 : f32 to vector<2x32xf32>
    %623 = arith.addf %622, %621 : vector<2x32xf32>
    %624 = arith.divf %622, %623 : vector<2x32xf32>
    %625 = vector.extract_strided_slice %612 {offsets = [0, 64], sizes = [2, 32], strides = [1, 1]} : vector<2x128xf32> to vector<2x32xf32>
    %626 = arith.negf %625 : vector<2x32xf32>
    %627 = math.exp %626 : vector<2x32xf32>
    %cst_157 = arith.constant 1.000000e+00 : f32
    %628 = vector.broadcast %cst_157 : f32 to vector<2x32xf32>
    %629 = arith.addf %628, %627 : vector<2x32xf32>
    %630 = arith.divf %628, %629 : vector<2x32xf32>
    %631 = vector.shape_cast %529 : vector<2x32xf32> to vector<2x1x32xf32>
    %632 = vector.broadcast %631 : vector<2x1x32xf32> to vector<2x32x32xf32>
    %633 = arith.mulf %579, %632 : vector<2x32x32xf32>
    %cst_158 = arith.constant dense<0.000000e+00> : vector<2x32xf32>
    %634 = vector.multi_reduction <add>, %633, %cst_158 [2] : vector<2x32x32xf32> to vector<2x32xf32>
    %635 = vector.broadcast %7 : vector<1x32xf32> to vector<2x32xf32>
    %636 = arith.mulf %635, %634 : vector<2x32xf32>
    %637 = vector.extract_strided_slice %612 {offsets = [0, 96], sizes = [2, 32], strides = [1, 1]} : vector<2x128xf32> to vector<2x32xf32>
    %638 = arith.addf %637, %636 : vector<2x32xf32>
    %639 = arith.mulf %618, %528 : vector<2x32xf32>
    %640 = arith.mulf %624, %638 : vector<2x32xf32>
    %641 = arith.addf %639, %640 : vector<2x32xf32>
    %642 = math.tanh %641 : vector<2x32xf32>
    %cst_159 = arith.constant dense<0.000000e+00> : vector<2x8xf32>
    %643 = tpu.matmul %642, %10, %cst_159 {dimension_numbers = #tpu.dot_dimension_numbers<[1], [0], [0], [1], [0, 0, 1, 1], [], []>} : vector<2x32xf32>, vector<32x8xf32>, vector<2x8xf32> -> vector<2x8xf32>
    %644 = vector.broadcast %11 : vector<1x8xf32> to vector<2x8xf32>
    %645 = arith.addf %643, %644 : vector<2x8xf32>
    %cst_160 = arith.constant dense<0xFF800000> : vector<2xf32>
    %646 = vector.multi_reduction <maximumf>, %645, %cst_160 [1] : vector<2x8xf32> to vector<2xf32>
    %647 = vector.shape_cast %646 : vector<2xf32> to vector<2x1xf32>
    %648 = vector.broadcast %647 : vector<2x1xf32> to vector<2x8xf32>
    %649 = arith.cmpf oge, %645, %648 : vector<2x8xf32>
    %cst_161 = arith.constant 0xFF800000 : f32
    %650 = vector.broadcast %cst_161 : f32 to vector<2x8xf32>
    %651 = arith.select %649, %650, %645 : vector<2x8xi1>, vector<2x8xf32>
    %cst_162 = arith.constant dense<0xFF800000> : vector<2xf32>
    %652 = vector.multi_reduction <maximumf>, %651, %cst_162 [1] : vector<2x8xf32> to vector<2xf32>
    %653 = vector.shape_cast %652 : vector<2xf32> to vector<2x1xf32>
    %654 = vector.broadcast %653 : vector<2x1xf32> to vector<2x8xf32>
    %655 = arith.cmpf oge, %645, %654 : vector<2x8xf32>
    %cst_163 = arith.constant 0.000000e+00 : f32
    %656 = vector.broadcast %cst_163 : f32 to vector<2x8xf32>
    %657 = arith.select %655, %645, %656 : vector<2x8xi1>, vector<2x8xf32>
    %cst_164 = arith.constant dense<0.000000e+00> : vector<2x32xf32>
    %658 = tpu.matmul %657, %12, %cst_164 {dimension_numbers = #tpu.dot_dimension_numbers<[1], [0], [0], [1], [0, 0, 1, 1], [], []>} : vector<2x8xf32>, vector<8x32xf32>, vector<2x32xf32> -> vector<2x32xf32>
    %659 = vector.broadcast %13 : vector<1x32xf32> to vector<2x32xf32>
    %660 = arith.addf %658, %659 : vector<2x32xf32>
    %661 = arith.mulf %618, %550 : vector<2x32xf32>
    %662 = arith.mulf %624, %642 : vector<2x32xf32>
    %663 = arith.addf %661, %662 : vector<2x32xf32>
    %664 = vector.shape_cast %630 : vector<2x32xf32> to vector<2x32x1xf32>
    %cst_165 = arith.constant 1.000000e+00 : f32
    %665 = vector.broadcast %cst_165 : f32 to vector<2x32x1xf32>
    %666 = arith.subf %665, %664 : vector<2x32x1xf32>
    %667 = vector.broadcast %666 : vector<2x32x1xf32> to vector<2x32x32xf32>
    %668 = arith.mulf %667, %569 : vector<2x32x32xf32>
    %669 = vector.shape_cast %642 : vector<2x32xf32> to vector<2x32x1xf32>
    %670 = vector.shape_cast %550 : vector<2x32xf32> to vector<2x1x32xf32>
    %671 = vector.broadcast %669 : vector<2x32x1xf32> to vector<2x32x32xf32>
    %672 = vector.broadcast %670 : vector<2x1x32xf32> to vector<2x32x32xf32>
    %673 = arith.mulf %671, %672 : vector<2x32x32xf32>
    %674 = vector.shape_cast %663 : vector<2x32xf32> to vector<2x32x1xf32>
    %675 = vector.shape_cast %529 : vector<2x32xf32> to vector<2x1x32xf32>
    %676 = vector.broadcast %674 : vector<2x32x1xf32> to vector<2x32x32xf32>
    %677 = vector.broadcast %675 : vector<2x1x32xf32> to vector<2x32x32xf32>
    %678 = arith.mulf %676, %677 : vector<2x32x32xf32>
    %679 = arith.subf %673, %678 : vector<2x32x32xf32>
    %680 = vector.broadcast %664 : vector<2x32x1xf32> to vector<2x32x32xf32>
    %681 = arith.mulf %680, %679 : vector<2x32x32xf32>
    %682 = arith.addf %668, %681 : vector<2x32x32xf32>
    %683 = vector.broadcast %9 : vector<1x32x1xf32> to vector<2x32x32xf32>
    %684 = arith.mulf %683, %579 : vector<2x32x32xf32>
    %685 = vector.shape_cast %660 : vector<2x32xf32> to vector<2x32x1xf32>
    %686 = vector.broadcast %685 : vector<2x32x1xf32> to vector<2x32x32xf32>
    %687 = arith.mulf %686, %569 : vector<2x32x32xf32>
    %688 = arith.addf %684, %687 : vector<2x32x32xf32>
    %cst_166 = arith.constant -5.000000e+00 : f32
    %cst_167 = arith.constant 5.000000e+00 : f32
    %689 = vector.broadcast %cst_166 : f32 to vector<2x32x32xf32>
    %690 = arith.maximumf %689, %688 : vector<2x32x32xf32>
    %691 = vector.broadcast %cst_167 : f32 to vector<2x32x32xf32>
    %692 = arith.minimumf %691, %690 : vector<2x32x32xf32>
    %693 = arith.index_cast %c5_i32 : i32 to index
    %c0_168 = arith.constant 0 : index
    %c0_169 = arith.constant 0 : index
    %694 = vector.load %arg23[%693, %c0_168, %c0_169] : memref<8x2x32xf32, #tpu.memory_space<vmem>>, vector<1x2x32xf32>
    %695 = vector.shape_cast %694 : vector<1x2x32xf32> to vector<2x32xf32>
    %696 = vector.shape_cast %642 : vector<2x32xf32> to vector<1x2x32xf32>
    tpu.vector_store %arg23[%693, %c0_168, %c0_169], %696 {strides = array<i32>} : memref<8x2x32xf32, #tpu.memory_space<vmem>>, vector<1x2x32xf32>,
    %c6_i32 = arith.constant 6 : i32
    %697 = arith.index_cast %c6_i32 : i32 to index
    %c0_170 = arith.constant 0 : index
    %c0_171 = arith.constant 0 : index
    %698 = vector.load %arg2[%697, %c0_170, %c0_171] : memref<8x2x128xf32, #tpu.memory_space<vmem>>, vector<1x2x128xf32>
    %699 = vector.shape_cast %698 : vector<1x2x128xf32> to vector<2x128xf32>
    %cst_172 = arith.constant dense<0.000000e+00> : vector<2x128xf32>
    %700 = tpu.matmul %642, %3, %cst_172 {dimension_numbers = #tpu.dot_dimension_numbers<[1], [0], [0], [1], [0, 0, 1, 1], [], []>} : vector<2x32xf32>, vector<32x128xf32>, vector<2x128xf32> -> vector<2x128xf32>
    %701 = vector.broadcast %4 : vector<1x128xf32> to vector<2x128xf32>
    %702 = arith.addf %700, %701 : vector<2x128xf32>
    %cst_173 = arith.constant dense<0.000000e+00> : vector<2xf32>
    %703 = vector.multi_reduction <add>, %702, %cst_173 [1] : vector<2x128xf32> to vector<2xf32>
    %704 = vector.shape_cast %703 : vector<2xf32> to vector<2x1xf32>
    %cst_174 = arith.constant 1.280000e+02 : f32
    %705 = vector.broadcast %cst_174 : f32 to vector<2x1xf32>
    %706 = arith.divf %704, %705 : vector<2x1xf32>
    %707 = vector.broadcast %706 : vector<2x1xf32> to vector<2x128xf32>
    %708 = arith.subf %702, %707 : vector<2x128xf32>
    %709 = arith.mulf %708, %708 : vector<2x128xf32>
    %cst_175 = arith.constant dense<0.000000e+00> : vector<2xf32>
    %710 = vector.multi_reduction <add>, %709, %cst_175 [1] : vector<2x128xf32> to vector<2xf32>
    %711 = vector.shape_cast %710 : vector<2xf32> to vector<2x1xf32>
    %cst_176 = arith.constant 1.280000e+02 : f32
    %712 = vector.broadcast %cst_176 : f32 to vector<2x1xf32>
    %713 = arith.divf %711, %712 : vector<2x1xf32>
    %714 = vector.broadcast %706 : vector<2x1xf32> to vector<2x128xf32>
    %715 = arith.subf %702, %714 : vector<2x128xf32>
    %cst_177 = arith.constant 9.99999974E-6 : f32
    %716 = vector.broadcast %cst_177 : f32 to vector<2x1xf32>
    %717 = arith.addf %713, %716 : vector<2x1xf32>
    %718 = math.rsqrt %717 : vector<2x1xf32>
    %719 = vector.broadcast %718 : vector<2x1xf32> to vector<2x128xf32>
    %720 = arith.mulf %715, %719 : vector<2x128xf32>
    %721 = vector.broadcast %5 : vector<1x128xf32> to vector<2x128xf32>
    %722 = arith.mulf %720, %721 : vector<2x128xf32>
    %723 = vector.broadcast %6 : vector<1x128xf32> to vector<2x128xf32>
    %724 = arith.addf %722, %723 : vector<2x128xf32>
    %725 = arith.addf %699, %724 : vector<2x128xf32>
    %726 = vector.extract_strided_slice %725 {offsets = [0, 0], sizes = [2, 32], strides = [1, 1]} : vector<2x128xf32> to vector<2x32xf32>
    %727 = arith.negf %726 : vector<2x32xf32>
    %728 = math.exp %727 : vector<2x32xf32>
    %cst_178 = arith.constant 1.000000e+00 : f32
    %729 = vector.broadcast %cst_178 : f32 to vector<2x32xf32>
    %730 = arith.addf %729, %728 : vector<2x32xf32>
    %731 = arith.divf %729, %730 : vector<2x32xf32>
    %732 = vector.extract_strided_slice %725 {offsets = [0, 32], sizes = [2, 32], strides = [1, 1]} : vector<2x128xf32> to vector<2x32xf32>
    %733 = arith.negf %732 : vector<2x32xf32>
    %734 = math.exp %733 : vector<2x32xf32>
    %cst_179 = arith.constant 1.000000e+00 : f32
    %735 = vector.broadcast %cst_179 : f32 to vector<2x32xf32>
    %736 = arith.addf %735, %734 : vector<2x32xf32>
    %737 = arith.divf %735, %736 : vector<2x32xf32>
    %738 = vector.extract_strided_slice %725 {offsets = [0, 64], sizes = [2, 32], strides = [1, 1]} : vector<2x128xf32> to vector<2x32xf32>
    %739 = arith.negf %738 : vector<2x32xf32>
    %740 = math.exp %739 : vector<2x32xf32>
    %cst_180 = arith.constant 1.000000e+00 : f32
    %741 = vector.broadcast %cst_180 : f32 to vector<2x32xf32>
    %742 = arith.addf %741, %740 : vector<2x32xf32>
    %743 = arith.divf %741, %742 : vector<2x32xf32>
    %744 = vector.shape_cast %642 : vector<2x32xf32> to vector<2x1x32xf32>
    %745 = vector.broadcast %744 : vector<2x1x32xf32> to vector<2x32x32xf32>
    %746 = arith.mulf %692, %745 : vector<2x32x32xf32>
    %cst_181 = arith.constant dense<0.000000e+00> : vector<2x32xf32>
    %747 = vector.multi_reduction <add>, %746, %cst_181 [2] : vector<2x32x32xf32> to vector<2x32xf32>
    %748 = vector.broadcast %7 : vector<1x32xf32> to vector<2x32xf32>
    %749 = arith.mulf %748, %747 : vector<2x32xf32>
    %750 = vector.extract_strided_slice %725 {offsets = [0, 96], sizes = [2, 32], strides = [1, 1]} : vector<2x128xf32> to vector<2x32xf32>
    %751 = arith.addf %750, %749 : vector<2x32xf32>
    %752 = arith.mulf %731, %641 : vector<2x32xf32>
    %753 = arith.mulf %737, %751 : vector<2x32xf32>
    %754 = arith.addf %752, %753 : vector<2x32xf32>
    %755 = math.tanh %754 : vector<2x32xf32>
    %cst_182 = arith.constant dense<0.000000e+00> : vector<2x8xf32>
    %756 = tpu.matmul %755, %10, %cst_182 {dimension_numbers = #tpu.dot_dimension_numbers<[1], [0], [0], [1], [0, 0, 1, 1], [], []>} : vector<2x32xf32>, vector<32x8xf32>, vector<2x8xf32> -> vector<2x8xf32>
    %757 = vector.broadcast %11 : vector<1x8xf32> to vector<2x8xf32>
    %758 = arith.addf %756, %757 : vector<2x8xf32>
    %cst_183 = arith.constant dense<0xFF800000> : vector<2xf32>
    %759 = vector.multi_reduction <maximumf>, %758, %cst_183 [1] : vector<2x8xf32> to vector<2xf32>
    %760 = vector.shape_cast %759 : vector<2xf32> to vector<2x1xf32>
    %761 = vector.broadcast %760 : vector<2x1xf32> to vector<2x8xf32>
    %762 = arith.cmpf oge, %758, %761 : vector<2x8xf32>
    %cst_184 = arith.constant 0xFF800000 : f32
    %763 = vector.broadcast %cst_184 : f32 to vector<2x8xf32>
    %764 = arith.select %762, %763, %758 : vector<2x8xi1>, vector<2x8xf32>
    %cst_185 = arith.constant dense<0xFF800000> : vector<2xf32>
    %765 = vector.multi_reduction <maximumf>, %764, %cst_185 [1] : vector<2x8xf32> to vector<2xf32>
    %766 = vector.shape_cast %765 : vector<2xf32> to vector<2x1xf32>
    %767 = vector.broadcast %766 : vector<2x1xf32> to vector<2x8xf32>
    %768 = arith.cmpf oge, %758, %767 : vector<2x8xf32>
    %cst_186 = arith.constant 0.000000e+00 : f32
    %769 = vector.broadcast %cst_186 : f32 to vector<2x8xf32>
    %770 = arith.select %768, %758, %769 : vector<2x8xi1>, vector<2x8xf32>
    %cst_187 = arith.constant dense<0.000000e+00> : vector<2x32xf32>
    %771 = tpu.matmul %770, %12, %cst_187 {dimension_numbers = #tpu.dot_dimension_numbers<[1], [0], [0], [1], [0, 0, 1, 1], [], []>} : vector<2x8xf32>, vector<8x32xf32>, vector<2x32xf32> -> vector<2x32xf32>
    %772 = vector.broadcast %13 : vector<1x32xf32> to vector<2x32xf32>
    %773 = arith.addf %771, %772 : vector<2x32xf32>
    %774 = arith.mulf %731, %663 : vector<2x32xf32>
    %775 = arith.mulf %737, %755 : vector<2x32xf32>
    %776 = arith.addf %774, %775 : vector<2x32xf32>
    %777 = vector.shape_cast %743 : vector<2x32xf32> to vector<2x32x1xf32>
    %cst_188 = arith.constant 1.000000e+00 : f32
    %778 = vector.broadcast %cst_188 : f32 to vector<2x32x1xf32>
    %779 = arith.subf %778, %777 : vector<2x32x1xf32>
    %780 = vector.broadcast %779 : vector<2x32x1xf32> to vector<2x32x32xf32>
    %781 = arith.mulf %780, %682 : vector<2x32x32xf32>
    %782 = vector.shape_cast %755 : vector<2x32xf32> to vector<2x32x1xf32>
    %783 = vector.shape_cast %663 : vector<2x32xf32> to vector<2x1x32xf32>
    %784 = vector.broadcast %782 : vector<2x32x1xf32> to vector<2x32x32xf32>
    %785 = vector.broadcast %783 : vector<2x1x32xf32> to vector<2x32x32xf32>
    %786 = arith.mulf %784, %785 : vector<2x32x32xf32>
    %787 = vector.shape_cast %776 : vector<2x32xf32> to vector<2x32x1xf32>
    %788 = vector.shape_cast %642 : vector<2x32xf32> to vector<2x1x32xf32>
    %789 = vector.broadcast %787 : vector<2x32x1xf32> to vector<2x32x32xf32>
    %790 = vector.broadcast %788 : vector<2x1x32xf32> to vector<2x32x32xf32>
    %791 = arith.mulf %789, %790 : vector<2x32x32xf32>
    %792 = arith.subf %786, %791 : vector<2x32x32xf32>
    %793 = vector.broadcast %777 : vector<2x32x1xf32> to vector<2x32x32xf32>
    %794 = arith.mulf %793, %792 : vector<2x32x32xf32>
    %795 = arith.addf %781, %794 : vector<2x32x32xf32>
    %796 = vector.broadcast %9 : vector<1x32x1xf32> to vector<2x32x32xf32>
    %797 = arith.mulf %796, %692 : vector<2x32x32xf32>
    %798 = vector.shape_cast %773 : vector<2x32xf32> to vector<2x32x1xf32>
    %799 = vector.broadcast %798 : vector<2x32x1xf32> to vector<2x32x32xf32>
    %800 = arith.mulf %799, %682 : vector<2x32x32xf32>
    %801 = arith.addf %797, %800 : vector<2x32x32xf32>
    %cst_189 = arith.constant -5.000000e+00 : f32
    %cst_190 = arith.constant 5.000000e+00 : f32
    %802 = vector.broadcast %cst_189 : f32 to vector<2x32x32xf32>
    %803 = arith.maximumf %802, %801 : vector<2x32x32xf32>
    %804 = vector.broadcast %cst_190 : f32 to vector<2x32x32xf32>
    %805 = arith.minimumf %804, %803 : vector<2x32x32xf32>
    %806 = arith.index_cast %c6_i32 : i32 to index
    %c0_191 = arith.constant 0 : index
    %c0_192 = arith.constant 0 : index
    %807 = vector.load %arg23[%806, %c0_191, %c0_192] : memref<8x2x32xf32, #tpu.memory_space<vmem>>, vector<1x2x32xf32>
    %808 = vector.shape_cast %807 : vector<1x2x32xf32> to vector<2x32xf32>
    %809 = vector.shape_cast %755 : vector<2x32xf32> to vector<1x2x32xf32>
    tpu.vector_store %arg23[%806, %c0_191, %c0_192], %809 {strides = array<i32>} : memref<8x2x32xf32, #tpu.memory_space<vmem>>, vector<1x2x32xf32>,
    %c7_i32 = arith.constant 7 : i32
    %810 = arith.index_cast %c7_i32 : i32 to index
    %c0_193 = arith.constant 0 : index
    %c0_194 = arith.constant 0 : index
    %811 = vector.load %arg2[%810, %c0_193, %c0_194] : memref<8x2x128xf32, #tpu.memory_space<vmem>>, vector<1x2x128xf32>
    %812 = vector.shape_cast %811 : vector<1x2x128xf32> to vector<2x128xf32>
    %cst_195 = arith.constant dense<0.000000e+00> : vector<2x128xf32>
    %813 = tpu.matmul %755, %3, %cst_195 {dimension_numbers = #tpu.dot_dimension_numbers<[1], [0], [0], [1], [0, 0, 1, 1], [], []>} : vector<2x32xf32>, vector<32x128xf32>, vector<2x128xf32> -> vector<2x128xf32>
    %814 = vector.broadcast %4 : vector<1x128xf32> to vector<2x128xf32>
    %815 = arith.addf %813, %814 : vector<2x128xf32>
    %cst_196 = arith.constant dense<0.000000e+00> : vector<2xf32>
    %816 = vector.multi_reduction <add>, %815, %cst_196 [1] : vector<2x128xf32> to vector<2xf32>
    %817 = vector.shape_cast %816 : vector<2xf32> to vector<2x1xf32>
    %cst_197 = arith.constant 1.280000e+02 : f32
    %818 = vector.broadcast %cst_197 : f32 to vector<2x1xf32>
    %819 = arith.divf %817, %818 : vector<2x1xf32>
    %820 = vector.broadcast %819 : vector<2x1xf32> to vector<2x128xf32>
    %821 = arith.subf %815, %820 : vector<2x128xf32>
    %822 = arith.mulf %821, %821 : vector<2x128xf32>
    %cst_198 = arith.constant dense<0.000000e+00> : vector<2xf32>
    %823 = vector.multi_reduction <add>, %822, %cst_198 [1] : vector<2x128xf32> to vector<2xf32>
    %824 = vector.shape_cast %823 : vector<2xf32> to vector<2x1xf32>
    %cst_199 = arith.constant 1.280000e+02 : f32
    %825 = vector.broadcast %cst_199 : f32 to vector<2x1xf32>
    %826 = arith.divf %824, %825 : vector<2x1xf32>
    %827 = vector.broadcast %819 : vector<2x1xf32> to vector<2x128xf32>
    %828 = arith.subf %815, %827 : vector<2x128xf32>
    %cst_200 = arith.constant 9.99999974E-6 : f32
    %829 = vector.broadcast %cst_200 : f32 to vector<2x1xf32>
    %830 = arith.addf %826, %829 : vector<2x1xf32>
    %831 = math.rsqrt %830 : vector<2x1xf32>
    %832 = vector.broadcast %831 : vector<2x1xf32> to vector<2x128xf32>
    %833 = arith.mulf %828, %832 : vector<2x128xf32>
    %834 = vector.broadcast %5 : vector<1x128xf32> to vector<2x128xf32>
    %835 = arith.mulf %833, %834 : vector<2x128xf32>
    %836 = vector.broadcast %6 : vector<1x128xf32> to vector<2x128xf32>
    %837 = arith.addf %835, %836 : vector<2x128xf32>
    %838 = arith.addf %812, %837 : vector<2x128xf32>
    %839 = vector.extract_strided_slice %838 {offsets = [0, 0], sizes = [2, 32], strides = [1, 1]} : vector<2x128xf32> to vector<2x32xf32>
    %840 = arith.negf %839 : vector<2x32xf32>
    %841 = math.exp %840 : vector<2x32xf32>
    %cst_201 = arith.constant 1.000000e+00 : f32
    %842 = vector.broadcast %cst_201 : f32 to vector<2x32xf32>
    %843 = arith.addf %842, %841 : vector<2x32xf32>
    %844 = arith.divf %842, %843 : vector<2x32xf32>
    %845 = vector.extract_strided_slice %838 {offsets = [0, 32], sizes = [2, 32], strides = [1, 1]} : vector<2x128xf32> to vector<2x32xf32>
    %846 = arith.negf %845 : vector<2x32xf32>
    %847 = math.exp %846 : vector<2x32xf32>
    %cst_202 = arith.constant 1.000000e+00 : f32
    %848 = vector.broadcast %cst_202 : f32 to vector<2x32xf32>
    %849 = arith.addf %848, %847 : vector<2x32xf32>
    %850 = arith.divf %848, %849 : vector<2x32xf32>
    %851 = vector.extract_strided_slice %838 {offsets = [0, 64], sizes = [2, 32], strides = [1, 1]} : vector<2x128xf32> to vector<2x32xf32>
    %852 = arith.negf %851 : vector<2x32xf32>
    %853 = math.exp %852 : vector<2x32xf32>
    %cst_203 = arith.constant 1.000000e+00 : f32
    %854 = vector.broadcast %cst_203 : f32 to vector<2x32xf32>
    %855 = arith.addf %854, %853 : vector<2x32xf32>
    %856 = arith.divf %854, %855 : vector<2x32xf32>
    %857 = vector.shape_cast %755 : vector<2x32xf32> to vector<2x1x32xf32>
    %858 = vector.broadcast %857 : vector<2x1x32xf32> to vector<2x32x32xf32>
    %859 = arith.mulf %805, %858 : vector<2x32x32xf32>
    %cst_204 = arith.constant dense<0.000000e+00> : vector<2x32xf32>
    %860 = vector.multi_reduction <add>, %859, %cst_204 [2] : vector<2x32x32xf32> to vector<2x32xf32>
    %861 = vector.broadcast %7 : vector<1x32xf32> to vector<2x32xf32>
    %862 = arith.mulf %861, %860 : vector<2x32xf32>
    %863 = vector.extract_strided_slice %838 {offsets = [0, 96], sizes = [2, 32], strides = [1, 1]} : vector<2x128xf32> to vector<2x32xf32>
    %864 = arith.addf %863, %862 : vector<2x32xf32>
    %865 = arith.mulf %844, %754 : vector<2x32xf32>
    %866 = arith.mulf %850, %864 : vector<2x32xf32>
    %867 = arith.addf %865, %866 : vector<2x32xf32>
    %868 = math.tanh %867 : vector<2x32xf32>
    %cst_205 = arith.constant dense<0.000000e+00> : vector<2x8xf32>
    %869 = tpu.matmul %868, %10, %cst_205 {dimension_numbers = #tpu.dot_dimension_numbers<[1], [0], [0], [1], [0, 0, 1, 1], [], []>} : vector<2x32xf32>, vector<32x8xf32>, vector<2x8xf32> -> vector<2x8xf32>
    %870 = vector.broadcast %11 : vector<1x8xf32> to vector<2x8xf32>
    %871 = arith.addf %869, %870 : vector<2x8xf32>
    %cst_206 = arith.constant dense<0xFF800000> : vector<2xf32>
    %872 = vector.multi_reduction <maximumf>, %871, %cst_206 [1] : vector<2x8xf32> to vector<2xf32>
    %873 = vector.shape_cast %872 : vector<2xf32> to vector<2x1xf32>
    %874 = vector.broadcast %873 : vector<2x1xf32> to vector<2x8xf32>
    %875 = arith.cmpf oge, %871, %874 : vector<2x8xf32>
    %cst_207 = arith.constant 0xFF800000 : f32
    %876 = vector.broadcast %cst_207 : f32 to vector<2x8xf32>
    %877 = arith.select %875, %876, %871 : vector<2x8xi1>, vector<2x8xf32>
    %cst_208 = arith.constant dense<0xFF800000> : vector<2xf32>
    %878 = vector.multi_reduction <maximumf>, %877, %cst_208 [1] : vector<2x8xf32> to vector<2xf32>
    %879 = vector.shape_cast %878 : vector<2xf32> to vector<2x1xf32>
    %880 = vector.broadcast %879 : vector<2x1xf32> to vector<2x8xf32>
    %881 = arith.cmpf oge, %871, %880 : vector<2x8xf32>
    %cst_209 = arith.constant 0.000000e+00 : f32
    %882 = vector.broadcast %cst_209 : f32 to vector<2x8xf32>
    %883 = arith.select %881, %871, %882 : vector<2x8xi1>, vector<2x8xf32>
    %cst_210 = arith.constant dense<0.000000e+00> : vector<2x32xf32>
    %884 = tpu.matmul %883, %12, %cst_210 {dimension_numbers = #tpu.dot_dimension_numbers<[1], [0], [0], [1], [0, 0, 1, 1], [], []>} : vector<2x8xf32>, vector<8x32xf32>, vector<2x32xf32> -> vector<2x32xf32>
    %885 = vector.broadcast %13 : vector<1x32xf32> to vector<2x32xf32>
    %886 = arith.addf %884, %885 : vector<2x32xf32>
    %887 = arith.mulf %844, %776 : vector<2x32xf32>
    %888 = arith.mulf %850, %868 : vector<2x32xf32>
    %889 = arith.addf %887, %888 : vector<2x32xf32>
    %890 = vector.shape_cast %856 : vector<2x32xf32> to vector<2x32x1xf32>
    %cst_211 = arith.constant 1.000000e+00 : f32
    %891 = vector.broadcast %cst_211 : f32 to vector<2x32x1xf32>
    %892 = arith.subf %891, %890 : vector<2x32x1xf32>
    %893 = vector.broadcast %892 : vector<2x32x1xf32> to vector<2x32x32xf32>
    %894 = arith.mulf %893, %795 : vector<2x32x32xf32>
    %895 = vector.shape_cast %868 : vector<2x32xf32> to vector<2x32x1xf32>
    %896 = vector.shape_cast %776 : vector<2x32xf32> to vector<2x1x32xf32>
    %897 = vector.broadcast %895 : vector<2x32x1xf32> to vector<2x32x32xf32>
    %898 = vector.broadcast %896 : vector<2x1x32xf32> to vector<2x32x32xf32>
    %899 = arith.mulf %897, %898 : vector<2x32x32xf32>
    %900 = vector.shape_cast %889 : vector<2x32xf32> to vector<2x32x1xf32>
    %901 = vector.shape_cast %755 : vector<2x32xf32> to vector<2x1x32xf32>
    %902 = vector.broadcast %900 : vector<2x32x1xf32> to vector<2x32x32xf32>
    %903 = vector.broadcast %901 : vector<2x1x32xf32> to vector<2x32x32xf32>
    %904 = arith.mulf %902, %903 : vector<2x32x32xf32>
    %905 = arith.subf %899, %904 : vector<2x32x32xf32>
    %906 = vector.broadcast %890 : vector<2x32x1xf32> to vector<2x32x32xf32>
    %907 = arith.mulf %906, %905 : vector<2x32x32xf32>
    %908 = arith.addf %894, %907 : vector<2x32x32xf32>
    %909 = vector.broadcast %9 : vector<1x32x1xf32> to vector<2x32x32xf32>
    %910 = arith.mulf %909, %805 : vector<2x32x32xf32>
    %911 = vector.shape_cast %886 : vector<2x32xf32> to vector<2x32x1xf32>
    %912 = vector.broadcast %911 : vector<2x32x1xf32> to vector<2x32x32xf32>
    %913 = arith.mulf %912, %795 : vector<2x32x32xf32>
    %914 = arith.addf %910, %913 : vector<2x32x32xf32>
    %cst_212 = arith.constant -5.000000e+00 : f32
    %cst_213 = arith.constant 5.000000e+00 : f32
    %915 = vector.broadcast %cst_212 : f32 to vector<2x32x32xf32>
    %916 = arith.maximumf %915, %914 : vector<2x32x32xf32>
    %917 = vector.broadcast %cst_213 : f32 to vector<2x32x32xf32>
    %918 = arith.minimumf %917, %916 : vector<2x32x32xf32>
    %919 = arith.index_cast %c7_i32 : i32 to index
    %c0_214 = arith.constant 0 : index
    %c0_215 = arith.constant 0 : index
    %920 = vector.load %arg23[%919, %c0_214, %c0_215] : memref<8x2x32xf32, #tpu.memory_space<vmem>>, vector<1x2x32xf32>
    %921 = vector.shape_cast %920 : vector<1x2x32xf32> to vector<2x32xf32>
    %922 = vector.shape_cast %868 : vector<2x32xf32> to vector<1x2x32xf32>
    tpu.vector_store %arg23[%919, %c0_214, %c0_215], %922 {strides = array<i32>} : memref<8x2x32xf32, #tpu.memory_space<vmem>>, vector<1x2x32xf32>,
    %c8_i32 = arith.constant 8 : i32
    %c0_216 = arith.constant 0 : index
    %c0_217 = arith.constant 0 : index
    %923 = vector.load %arg19[%c0_216, %c0_217] : memref<2x32xf32, #tpu.memory_space<vmem>>, vector<2x32xf32>
    tpu.vector_store %arg19[%c0_216, %c0_217], %868 {strides = array<i32>} : memref<2x32xf32, #tpu.memory_space<vmem>>, vector<2x32xf32>,
    %c0_218 = arith.constant 0 : index
    %c0_219 = arith.constant 0 : index
    %924 = vector.load %arg18[%c0_218, %c0_219] : memref<2x32xf32, #tpu.memory_space<vmem>>, vector<2x32xf32>
    tpu.vector_store %arg18[%c0_218, %c0_219], %867 {strides = array<i32>} : memref<2x32xf32, #tpu.memory_space<vmem>>, vector<2x32xf32>,
    %c0_220 = arith.constant 0 : index
    %c0_221 = arith.constant 0 : index
    %c0_222 = arith.constant 0 : index
    %925 = vector.load %arg20[%c0_220, %c0_221, %c0_222] : memref<2x32x32xf32, #tpu.memory_space<vmem>>, vector<2x32x32xf32>
    tpu.vector_store %arg20[%c0_220, %c0_221, %c0_222], %918 {strides = array<i32>} : memref<2x32x32xf32, #tpu.memory_space<vmem>>, vector<2x32x32xf32>,
    %c0_223 = arith.constant 0 : index
    %c0_224 = arith.constant 0 : index
    %926 = vector.load %arg21[%c0_223, %c0_224] : memref<2x32xf32, #tpu.memory_space<vmem>>, vector<2x32xf32>
    tpu.vector_store %arg21[%c0_223, %c0_224], %889 {strides = array<i32>} : memref<2x32xf32, #tpu.memory_space<vmem>>, vector<2x32xf32>,
    %c0_225 = arith.constant 0 : index
    %c0_226 = arith.constant 0 : index
    %c0_227 = arith.constant 0 : index
    %927 = vector.load %arg22[%c0_225, %c0_226, %c0_227] : memref<2x32x32xf32, #tpu.memory_space<vmem>>, vector<2x32x32xf32>
    tpu.vector_store %arg22[%c0_225, %c0_226, %c0_227], %908 {strides = array<i32>} : memref<2x32x32xf32, #tpu.memory_space<vmem>>, vector<2x32x32xf32>,
    return
  }
  func.func @transform_0(%arg0: i32, %arg1: i32) -> (i32, i32, i32) {
    %c0_i32 = arith.constant 0 : i32
    %c0_i32_0 = arith.constant 0 : i32
    return %arg1, %arg0, %c0_i32 : i32, i32, i32
  }
  func.func @transform_1(%arg0: i32, %arg1: i32) -> (i32, i32) {
    %c0_i32 = arith.constant 0 : i32
    %c0_i32_0 = arith.constant 0 : i32
    return %arg0, %c0_i32 : i32, i32
  }
  func.func @transform_2(%arg0: i32, %arg1: i32) -> (i32, i32) {
    %c0_i32 = arith.constant 0 : i32
    %c0_i32_0 = arith.constant 0 : i32
    return %arg0, %c0_i32 : i32, i32
  }
  func.func @transform_3(%arg0: i32, %arg1: i32) -> (i32, i32, i32) {
    %c0_i32 = arith.constant 0 : i32
    %c0_i32_0 = arith.constant 0 : i32
    %c0_i32_1 = arith.constant 0 : i32
    return %arg0, %c0_i32, %c0_i32_0 : i32, i32, i32
  }
  func.func @transform_4(%arg0: i32, %arg1: i32) -> (i32, i32) {
    %c0_i32 = arith.constant 0 : i32
    %c0_i32_0 = arith.constant 0 : i32
    return %arg0, %c0_i32 : i32, i32
  }
  func.func @transform_5(%arg0: i32, %arg1: i32) -> (i32, i32, i32) {
    %c0_i32 = arith.constant 0 : i32
    %c0_i32_0 = arith.constant 0 : i32
    %c0_i32_1 = arith.constant 0 : i32
    return %arg0, %c0_i32, %c0_i32_0 : i32, i32, i32
  }
  func.func @transform_6(%arg0: i32, %arg1: i32) -> (i32, i32) {
    %c0_i32 = arith.constant 0 : i32
    %c0_i32_0 = arith.constant 0 : i32
    %c0_i32_1 = arith.constant 0 : i32
    return %c0_i32, %c0_i32_0 : i32, i32
  }
  func.func @transform_7(%arg0: i32, %arg1: i32) -> (i32, i32) {
    %c0_i32 = arith.constant 0 : i32
    %c0_i32_0 = arith.constant 0 : i32
    %c0_i32_1 = arith.constant 0 : i32
    return %c0_i32, %c0_i32_0 : i32, i32
  }
  func.func @transform_8(%arg0: i32, %arg1: i32) -> (i32, i32) {
    %c0_i32 = arith.constant 0 : i32
    %c0_i32_0 = arith.constant 0 : i32
    %c0_i32_1 = arith.constant 0 : i32
    return %c0_i32, %c0_i32_0 : i32, i32
  }
  func.func @transform_9(%arg0: i32, %arg1: i32) -> (i32, i32) {
    %c0_i32 = arith.constant 0 : i32
    %c0_i32_0 = arith.constant 0 : i32
    %c0_i32_1 = arith.constant 0 : i32
    return %c0_i32, %c0_i32_0 : i32, i32
  }
  func.func @transform_10(%arg0: i32, %arg1: i32) -> (i32, i32) {
    %c0_i32 = arith.constant 0 : i32
    %c0_i32_0 = arith.constant 0 : i32
    %c0_i32_1 = arith.constant 0 : i32
    return %c0_i32, %c0_i32_0 : i32, i32
  }
  func.func @transform_11(%arg0: i32, %arg1: i32) -> (i32, i32) {
    %c0_i32 = arith.constant 0 : i32
    %c0_i32_0 = arith.constant 0 : i32
    %c0_i32_1 = arith.constant 0 : i32
    return %c0_i32, %c0_i32_0 : i32, i32
  }
  func.func @transform_12(%arg0: i32, %arg1: i32) -> (i32, i32) {
    %c0_i32 = arith.constant 0 : i32
    %c0_i32_0 = arith.constant 0 : i32
    %c0_i32_1 = arith.constant 0 : i32
    return %c0_i32, %c0_i32_0 : i32, i32
  }
  func.func @transform_13(%arg0: i32, %arg1: i32) -> (i32, i32) {
    %c0_i32 = arith.constant 0 : i32
    %c0_i32_0 = arith.constant 0 : i32
    %c0_i32_1 = arith.constant 0 : i32
    return %c0_i32, %c0_i32_0 : i32, i32
  }
  func.func @transform_14(%arg0: i32, %arg1: i32) -> (i32, i32) {
    %c0_i32 = arith.constant 0 : i32
    %c0_i32_0 = arith.constant 0 : i32
    %c0_i32_1 = arith.constant 0 : i32
    return %c0_i32, %c0_i32_0 : i32, i32
  }
  func.func @transform_15(%arg0: i32, %arg1: i32) -> (i32, i32) {
    %c0_i32 = arith.constant 0 : i32
    %c0_i32_0 = arith.constant 0 : i32
    %c0_i32_1 = arith.constant 0 : i32
    return %c0_i32, %c0_i32_0 : i32, i32
  }
  func.func @transform_16(%arg0: i32, %arg1: i32) -> (i32, i32) {
    %c0_i32 = arith.constant 0 : i32
    %c0_i32_0 = arith.constant 0 : i32
    return %arg0, %c0_i32 : i32, i32
  }
  func.func @transform_17(%arg0: i32, %arg1: i32) -> (i32, i32) {
    %c0_i32 = arith.constant 0 : i32
    %c0_i32_0 = arith.constant 0 : i32
    return %arg0, %c0_i32 : i32, i32
  }
  func.func @transform_18(%arg0: i32, %arg1: i32) -> (i32, i32, i32) {
    %c0_i32 = arith.constant 0 : i32
    %c0_i32_0 = arith.constant 0 : i32
    %c0_i32_1 = arith.constant 0 : i32
    return %arg0, %c0_i32, %c0_i32_0 : i32, i32, i32
  }
  func.func @transform_19(%arg0: i32, %arg1: i32) -> (i32, i32) {
    %c0_i32 = arith.constant 0 : i32
    %c0_i32_0 = arith.constant 0 : i32
    return %arg0, %c0_i32 : i32, i32
  }
  func.func @transform_20(%arg0: i32, %arg1: i32) -> (i32, i32, i32) {
    %c0_i32 = arith.constant 0 : i32
    %c0_i32_0 = arith.constant 0 : i32
    %c0_i32_1 = arith.constant 0 : i32
    return %arg0, %c0_i32, %c0_i32_0 : i32, i32, i32
  }
  func.func @transform_21(%arg0: i32, %arg1: i32) -> (i32, i32, i32) {
    %c0_i32 = arith.constant 0 : i32
    %c0_i32_0 = arith.constant 0 : i32
    return %arg1, %arg0, %c0_i32 : i32, i32, i32
  }
}

</mosaic_0001>

<bundles_post_ra>
// kernel: tpu_custom_call.1
= control target key start
LH: loop header
LB: loop body
LE: loop exit
PB: predicated region body
PF: predicated region fallthrough
CT: control target
= control target key end

     0   :  { %s9129_s0 = inlined_call_operand.vmem [shape: f32[8,2,128], index: 0, kind: input, shape index: {}]   ;;  %s9130_s1 = inlined_call_operand.vmem [shape: f32[2,32], index: 1, kind: input, shape index: {}]   ;;  %s9131_s2 = inlined_call_operand.hbm [shape: f32[2,32], index: 2, kind: input, shape index: {}]   ;;  %s9132_s3 = inlined_call_operand.hbm [shape: f32[2,32,32], index: 3, kind: input, shape index: {}]   ;;  %s9133_s4 = inlined_call_operand.hbm [shape: f32[2,32], index: 4, kind: input, shape index: {}]   ;;  %s9134_s5 = inlined_call_operand.hbm [shape: f32[2,32,32], index: 5, kind: input, shape index: {}]   ;;  %s9135_s6 = inlined_call_operand.vmem [shape: f32[32,128], index: 6, kind: input, shape index: {}]   ;;  %s9136_s7 = inlined_call_operand.hbm [shape: f32[1,128], index: 7, kind: input, shape index: {}]   ;;  %s9137_s8 = inlined_call_operand.vmem [shape: f32[1,128], index: 8, kind: input, shape index: {}]   ;;  %s9138_s9 = inlined_call_operand.vmem [shape: f32[1,128], index: 9, kind: input, shape index: {}]   ;;  %s9139_s10 = inlined_call_operand.vmem [shape: f32[1,32], index: 10, kind: input, shape index: {}]   ;;  %s9140_s11 = inlined_call_operand.vmem [shape: f32[1,32], index: 11, kind: input, shape index: {}]   ;;  %s9141_s12 = inlined_call_operand.vmem [shape: f32[32,8], index: 12, kind: input, shape index: {}]   ;;  %s9142_s13 = inlined_call_operand.vmem [shape: f32[1,8], index: 13, kind: input, shape index: {}]   ;;  %s9143_s14 = inlined_call_operand.vmem [shape: f32[8,32], index: 14, kind: input, shape index: {}]   ;;  %s9144_s15 = inlined_call_operand.vmem [shape: f32[1,32], index: 15, kind: input, shape index: {}]   ;;  %s9145_s16 = inlined_call_operand.hbm [shape: f32[2,32], index: 16, kind: output, shape index: {0}]   ;;  %s9146_s17 = inlined_call_operand.hbm [shape: f32[2,32], index: 17, kind: output, shape index: {1}]   ;;  %s9147_s18 = inlined_call_operand.hbm [shape: f32[2,32,32], index: 18, kind: output, shape index: {2}]   ;;  %s9148_s19 = inlined_call_operand.hbm [shape: f32[2,32], index: 19, kind: output, shape index: {3}]   ;;  %s9149_s20 = inlined_call_operand.hbm [shape: f32[2,32,32], index: 20, kind: output, shape index: {4}]   ;;  %s9150_s21 = inlined_call_operand.hbm [shape: f32[8,2,32], index: 21, kind: output, shape index: {5}]  }
   0x1   :  { %9398 = sst [smem:[#allocation57_spill]] %s9129_s0 }
   0x2   :  { %9399 = sst [smem:[#allocation58_spill]] %s9130_s1 }
   0x3   :  { %9400 = sst [smem:[#allocation59_spill]] %s9131_s2 }
   0x4   :  { %9401 = sst [smem:[#allocation60_spill]] %s9132_s3 }
   0x5   :  { %9402 = sst [smem:[#allocation61_spill]] %s9133_s4 }
   0x6   :  { %9403 = sst [smem:[#allocation62_spill]] %s9134_s5 }
   0x7   :  { %9404 = sst [smem:[#allocation63_spill]] %s9147_s18 }
   0x8   :  { %9405 = sst [smem:[#allocation64_spill]] %s9149_s20 }
   0x9   :  { %9406 = sst [smem:[#allocation65_spill]] %s9150_s21 }
   0xa   :  { %27 = vsyncpa [#allocation3], 0 }
   0xb   :  { %28 = vsyncpa [#allocation6], 0 }
   0xc   :  { %29 = vsyncpa [#allocation9], 0 }
   0xd   :  { %30 = vsyncpa [#allocation4], 0 }
   0xe   :  { %31 = vsyncpa [#allocation13], 0 }
   0xf   :  { %32 = vsyncpa [#allocation16], 0 }
  0x10   :  { %33 = vsyncpa [#allocation19], 0  ;;  %s6664_s2 = smov [#allocation5]   ;;  %s9407_s3 = sld [smem:[#allocation60_spill]] }
  0x11   :  { %s53_s25 = sshll.u32 %s6664_s2, 4  ;;  %s54_s25 = int_to_ptr.vmem [resolvable:$true] %s53_s25 }
  0x16   :  { %s6408_s28 = scalar_lea.hbm %s9407_s3, 1024 }
  0x17   :  { %p6409_p0 = scmp.ne.s32.totalorder %s9407_s3, %s6408_s28  ;;  %p6412_p1 = scmp.lt.u32.totalorder %s6408_s28, %s9407_s3 }
  0x19   :  { %p6414_p2 = pnand %p6412_p1, %p6409_p0 }
  0x1b   :  { %6417 = shalt.err (!%p6414_p2)
}
  0x1c   :  { %s6418_s5 = scalar_lea.vmem %s54_s25, 1024  ;;  %p6423_p4 = scmp.lt.s32.totalorder %s54_s25, %s54_s25 }
  0x1d   :  { %p6419_p3 = scmp.ne.s32.totalorder %s54_s25, %s6418_s5  ;;  %p6424_p5 = scmp.lt.s32.totalorder %s6418_s5, %s6418_s5 }
  0x1f   :  { %p6425_p6 = por %p6424_p5, %p6423_p4 }
  0x21   :  { %p6426_p7 = pnand %p6425_p6, %p6419_p3 }
  0x23   :  { %6429 = shalt.err (!%p6426_p7)
}
  0x24   :  { %s6665_s22 = smov 128   ;;  %s6666_s23 = smov 8  }
  0x25   :  { %59 = dma.hbm_to_vmem [thread:$0]  %s9407_s3, 1024, %s54_s25, [#allocation6], %s6665_s22, %s6665_s22, %s6666_s23  }
  0x26   :  { %s6667_s2 = smov [#allocation8]   ;;  %s6668_s27 = smov [#allocation2]  }
  0x27   :  { %s75_s26 = sshll.u32 %s6667_s2, 4  ;;  %s44_s28 = sshll.u32 %s6668_s27, 4  ;;  %s76_s26 = int_to_ptr.vmem [resolvable:$true] %s75_s26  ;;  %s45_s28 = int_to_ptr.vmem [resolvable:$true] %s44_s28 }
  0x28   :  { %s9408_s4 = sld [smem:[#allocation62_spill]] }
  0x2e   :  { %s6430_s30 = scalar_lea.hbm %s9408_s4, 1024 }
  0x2f   :  { %p6431_p8 = scmp.ne.s32.totalorder %s9408_s4, %s6430_s30  ;;  %p6434_p9 = scmp.lt.u32.totalorder %s6430_s30, %s9408_s4 }
  0x31   :  { %p6436_p10 = pnand %p6434_p9, %p6431_p8 }
  0x33   :  { %6439 = shalt.err (!%p6436_p10)
}
  0x34   :  { %s6440_s25 = scalar_lea.vmem %s76_s26, 1024  ;;  %p6445_p12 = scmp.lt.s32.totalorder %s76_s26, %s76_s26 }
  0x35   :  { %p6441_p11 = scmp.ne.s32.totalorder %s76_s26, %s6440_s25  ;;  %p6446_p13 = scmp.lt.s32.totalorder %s6440_s25, %s6440_s25 }
  0x37   :  { %p6447_p0 = por %p6446_p13, %p6445_p12 }
  0x39   :  { %p6448_p1 = pnand %p6447_p0, %p6441_p11 }
  0x3b   :  { %6451 = shalt.err (!%p6448_p1)
}
  0x3c   :  { %81 = dma.hbm_to_vmem [thread:$0]  %s9408_s4, 1024, %s76_s26, [#allocation9], %s6665_s22, %s6665_s22, %s6666_s23  }
  0x3d   :  { %s9409_s21 = sld [smem:[#allocation59_spill]] }
  0x43   :  { %s6452_s24 = scalar_lea.hbm %s9409_s21, 32 }
  0x44   :  { %p6453_p2 = scmp.ne.s32.totalorder %s9409_s21, %s6452_s24  ;;  %p6456_p3 = scmp.lt.u32.totalorder %s6452_s24, %s9409_s21 }
  0x46   :  { %p6458_p4 = pnand %p6456_p3, %p6453_p2 }
  0x48   :  { %6461 = shalt.err (!%p6458_p4)
}
  0x49   :  { %s6462_s30 = scalar_lea.vmem %s45_s28, 32  ;;  %p6467_p6 = scmp.lt.s32.totalorder %s45_s28, %s45_s28 }
  0x4a   :  { %p6463_p5 = scmp.ne.s32.totalorder %s45_s28, %s6462_s30  ;;  %p6468_p7 = scmp.lt.s32.totalorder %s6462_s30, %s6462_s30 }
  0x4c   :  { %p6469_p8 = por %p6468_p7, %p6467_p6 }
  0x4e   :  { %p6470_p9 = pnand %p6469_p8, %p6463_p5 }
  0x50   :  { %6473 = shalt.err (!%p6470_p9)
}
  0x51   :  { %47 = dma.hbm_to_vmem [thread:$0]  %s9409_s21, 32, %s45_s28, [#allocation3]  }
  0x52   :  { %s6669_s5 = smov [#allocation7]   ;;  %s6670_s3 = smov [#allocation10]  }
  0x53   :  { %s66_s25 = sshll.u32 %s6669_s5, 4  ;;  %s90_s1 = sshll.u32 %s6670_s3, 4  ;;  %s67_s25 = int_to_ptr.vmem [resolvable:$true] %s66_s25  ;;  %s91_s1 = int_to_ptr.vmem [resolvable:$true] %s90_s1 }
  0x54   :  { %s9410_s24 = sld [smem:[#allocation61_spill]] }
  0x5a   :  { %s6474_s2 = scalar_lea.hbm %s9410_s24, 32 }
  0x5b   :  { %p6475_p10 = scmp.ne.s32.totalorder %s9410_s24, %s6474_s2  ;;  %p6478_p11 = scmp.lt.u32.totalorder %s6474_s2, %s9410_s24 }
  0x5d   :  { %p6480_p12 = pnand %p6478_p11, %p6475_p10 }
  0x5f   :  { %6483 = shalt.err (!%p6480_p12)
}
  0x60   :  { %s6484_s28 = scalar_lea.vmem %s67_s25, 32  ;;  %p6489_p0 = scmp.lt.s32.totalorder %s67_s25, %s67_s25 }
  0x61   :  { %p6485_p13 = scmp.ne.s32.totalorder %s67_s25, %s6484_s28  ;;  %p6490_p1 = scmp.lt.s32.totalorder %s6484_s28, %s6484_s28 }
  0x63   :  { %p6491_p2 = por %p6490_p1, %p6489_p0 }
  0x65   :  { %p6492_p3 = pnand %p6491_p2, %p6485_p13 }
  0x67   :  { %6495 = shalt.err (!%p6492_p3)
}
  0x68   :  { %69 = dma.hbm_to_vmem [thread:$0]  %s9410_s24, 32, %s67_s25, [#allocation6]  }
  0x69   :  { %s6496_s3 = scalar_lea.hbm %s9136_s7, 16 }
  0x6a   :  { %p6497_p4 = scmp.ne.s32.totalorder %s9136_s7, %s6496_s3  ;;  %p6500_p5 = scmp.lt.u32.totalorder %s6496_s3, %s9136_s7 }
  0x6c   :  { %p6502_p6 = pnand %p6500_p5, %p6497_p4 }
  0x6e   :  { %6505 = shalt.err (!%p6502_p6)
}
  0x6f   :  { %s6506_s29 = scalar_lea.vmem %s91_s1, 16  ;;  %s6510_s0 = scalar_lea.vmem %s91_s1, 32 }
  0x70   :  { %p6507_p7 = scmp.ne.s32.totalorder %s91_s1, %s6506_s29  ;;  %p6511_p8 = scmp.lt.s32.totalorder %s91_s1, %s91_s1 }
  0x71   :  { %p6512_p9 = scmp.lt.s32.totalorder %s6510_s0, %s6506_s29 }
  0x73   :  { %p6513_p10 = por %p6512_p9, %p6511_p8 }
  0x75   :  { %p6514_p11 = pnand %p6513_p10, %p6507_p7 }
  0x77   :  { %6517 = shalt.err (!%p6514_p11)
}
  0x78   :  { %93 = dma.hbm_to_vmem [thread:$0]  %s9136_s7, 16, %s91_s1, [#allocation9]  }
  0x79   :  { %6650 = dma.done.wait [#allocation3], 32  }
  0x7a   :  { %6651 = vsyncadd [#allocation3], 4294967264 }
  0x7b   :  { %6652 = dma.done.wait [#allocation6], 1056  }
  0x7c   :  { %6653 = vsyncadd [#allocation6], 4294966240 }
  0x7d   :  { %6654 = dma.done.wait [#allocation9], 1040  }
  0x7e   :  { %6655 = vsyncadd [#allocation9], 4294966256  ;;  %v9167_v0 = vmov 0.0|0.0   ;;  %vm6672_vm0 = vmmov 0   ;;  %v9169_v1 = vmov 0.0   ;;  %vm130_vm1 = vcmask 254976  }
  0x7f   :  { %6207 = vmatprep.subr.bf16.mxu0 %v9167_v0  ;;  %5999 = vmatprep.mubr.msk.f32.mxu0 %vm6672_vm0, %v9169_v1  ;;  %v169_v2 = vld [vmem:[%s9135_s6] sm:$0xff]  ;;  %v170_v3 = vld [vmem:[%s9135_s6 + $0x8] sm:$0xff]  ;;  %v171_v4 = vld [vmem:[%s9135_s6 + $0x10] sm:$0xff]  ;;  %s9412_s20 = sld [smem:[#allocation58_spill]]  ;;  %vm142_vm2 = vcmask 261120   ;;  %v343_v12 = vlaneseq  ;;  %vm304_vm3 = vcmask 1041408  }
  0x80   :  { %6213 = vmatprep.subr.bf16.mxu1 %v9167_v0  ;;  %6010 = vmatprep.mubr.msk.f32.mxu1 %vm6672_vm0, %v9169_v1  ;;  %v6876_v5 = vpack.c.bf16 %v170_v3, %v169_v2  ;;  %v172_v6 = vld [vmem:[%s9135_s6 + $0x18] sm:$0xff]  ;;  %v6674_v10 = vmov 1966171168   ;;  %v135_v17 = vld [vmem:[#allocation5 + $0x8] sm:$0xff]  ;;  %v134_v18 = vld [vmem:[#allocation5] sm:$0xff]  ;;  %vm429_vm4 = vcmask 130112  }
  0x81   :  { %v6886_v8 = vpack.c.bf16 %v172_v6, %v171_v4  ;;  %v341_v11 = vunpack.c.l.s4 %v6674_v10  ;;  %v6895_v14 = vshrl.u32 %v343_v12, 7  ;;  %144 = vst.msk [vmem:[#allocation14 + $0x8] sm:$0xff] %vm142_vm2, %v135_v17  ;;  %143 = vst.msk [vmem:[#allocation14] sm:$0xff] %vm142_vm2, %v134_v18  ;;  %v138_v22 = vld [vmem:[#allocation5 + $0x20] sm:$0xff]  ;;  %v139_v23 = vld [vmem:[#allocation5 + $0x28] sm:$0xff]  ;;  %v419_v61 = vand.u32 127, %v343_v12 }
  0x82   :  { %9411 = vst [vmem:[#allocation27_spill] sm:$0xff] %v6876_v5  ;;  %6209 = vmatpush3.bf16.msra.mxu0 %v6876_v5  ;;  %147 = vst.msk [vmem:[#allocation14 + $0x20] sm:$0xff] %vm142_vm2, %v138_v22  ;;  %v136_v27 = vld [vmem:[#allocation5 + $0x10] sm:$0xff]  ;;  %v137_v33 = vld [vmem:[#allocation5 + $0x18] sm:$0xff]  ;;  %vm436_vm5 = vcmask 195712   ;;  %vm443_vm6 = vcmask 261312  }
  0x83   :  { %9413 = vst [vmem:[#allocation28_spill] sm:$0xff] %v6886_v8  ;;  %6210 = vmatprep.subr.bf16.mxu0 %v9167_v0  ;;  %v342_v13 = vunpack.c.0.s8 %v341_v11  ;;  %v6903_v21 = vsub.s32 0, %v6895_v14  ;;  %148 = vst.msk [vmem:[#allocation14 + $0x28] sm:$0xff] %vm142_vm2, %v139_v23  ;;  %v140_v30 = vld [vmem:[#allocation5 + $0x30] sm:$0xff]  ;;  %v141_v35 = vld [vmem:[#allocation5 + $0x38] sm:$0xff]  ;;  %v424_v63 = vadd.s32 4294967288, %v419_v61 }
  0x84   :  { %145 = vst.msk [vmem:[#allocation14 + $0x10] sm:$0xff] %vm142_vm2, %v136_v27  ;;  %149 = vst.msk [vmem:[#allocation14 + $0x30] sm:$0xff] %vm142_vm2, %v140_v30  ;;  %v6940_v43 = vld [vmem:[#allocation10] ss:$0 sm:$0xff]  ;;  %v431_v4 = vadd.s32 4294967280, %v419_v61  ;;  %vm464_vm7 = vcmask 1041409  }
  0x85   :  { %v132_v7 = vld [vmem:[%s9412_s20] sm:$0x3]  ;;  %v6898_v15 = vsub.s32 %v342_v13, %v6895_v14  ;;  %146 = vst.msk [vmem:[#allocation14 + $0x18] sm:$0xff] %vm142_vm2, %v137_v33  ;;  %150 = vst.msk [vmem:[#allocation14 + $0x38] sm:$0xff] %vm142_vm2, %v141_v35  ;;  %s6675_s27 = smov 96   ;;  %s9418_s30 = sld [smem:[#allocation57_spill]] }
  0x86   :  { %133 = vst.msk [vmem:[#allocation12] sm:$0x3] %vm130_vm1, %v132_v7  ;;  %6212 = vmatpush3.bf16.msra.mxu0 %v6886_v8  ;;  %v6966_v7 = vsub.s32 %v424_v63, %v6895_v14  ;;  %v6972_v17 = vsub.s32 %v431_v4, %v6895_v14  ;;  %s6676_s28 = smov 64   ;;  %vm564_vm8 = vcmask 58368   ;;  %vm581_vm10 = vcmask 64512   ;;  %s6677_s26 = smov 32  }
  0x87   :  { %6013 = vmatprep.subr.mxu0 %v9169_v1 }
  0x88   :  { %v6913_v26 = vld [vmem:[#allocation14 + $0x8] sm:$0xff]  ;;  %v6942_v44 = vld [vmem:[#allocation14] sm:$0xff]  ;;  %9414 = vst [vmem:[#allocation29_spill] sm:$0xff] %v6966_v7  ;;  %9416 = vst [vmem:[#allocation31_spill] sm:$0xff] %v6972_v17 }
  0x89   :  { %v6923_v32 = vld [vmem:[#allocation14 + $0x20] sm:$0xff] }
  0x8a   :  { %v6947_v49 = vld [vmem:[#allocation14 + $0x28] sm:$0xff] }
  0x8b   :  { %v6930_v37 = vld [vmem:[#allocation14 + $0x10] sm:$0xff] }
  0x8c   :  { %v6935_v40 = vld [vmem:[#allocation14 + $0x18] sm:$0xff]  ;;  %v6953_v53 = vld [vmem:[#allocation14 + $0x30] sm:$0xff] }
  0x8d   :  { %v204_v9 = vld [vmem:[#allocation12] sm:$0x3] }
  0x8e   :  { %6000 = vmatmul.mubr.msk.f32.vlgmr.msra.gmra.mrb[0].mxu0 %vm142_vm2, %v204_v9  ;;  %v346_v16 = vrot.slane %v204_v9, %v6898_v15  ;;  %v6958_v56 = vld [vmem:[#allocation14 + $0x38] sm:$0xff]  ;;  %v6969_v9 = vsub.s32 %v419_v61, %v6895_v14 }
  0x8f   :  { %6015 = vmatprep.mubr.msk.f32.mxu0 %vm6672_vm0, %v9169_v1 }
  0x90   :  { %v347_v19 = vcombine.high %v346_v16, %v346_v16  ;;  %v354_v20 = vrot.slane %v346_v16, %v6898_v15  ;;  %9415 = vst [vmem:[#allocation30_spill] sm:$0xff] %v6969_v9  ;;  %v438_v16 = vadd.s32 4294967272, %v419_v61 }
  0x92   :  { %v361_v24 = vrot.slane %v347_v19, %v6898_v15  ;;  %v6909_v25 = vrot.slane %v354_v20, %v6903_v21 }
  0x94   :  { %v6916_v28 = vrot.slane %v361_v24, %v6903_v21  ;;  %v373_v29 = vmul.f32 %v6909_v25, %v6913_v26  ;;  %v374_v38 = vmul.f32 %v6909_v25, %v6930_v37  ;;  %v375_v41 = vmul.f32 %v6909_v25, %v6935_v40 }
  0x95   :  { %v372_v48 = vmul.f32 %v6909_v25, %v6942_v44  ;;  %v6980_v24 = vsub.s32 %v438_v16, %v6895_v14  ;;  %v198_v16 = vld [vmem:[%s9141_s12 + $0x8] sm:$0xff] }
  0x96   :  { %v383_v31 = vsel %vm142_vm2, %v373_v29, 0.0  ;;  %v376_v34 = vmul.f32 %v6916_v28, %v6923_v32  ;;  %v386_v39 = vsel %vm142_vm2, %v374_v38, 0.0  ;;  %v389_v42 = vsel %vm142_vm2, %v375_v41, 0.0 }
  0x97   :  { %384 = vadd.xlane.f32.xlu1 %v383_v31  ;;  %v380_v51 = vsel %vm142_vm2, %v372_v48, 0.0  ;;  %v377_v52 = vmul.f32 %v6916_v28, %v6947_v49  ;;  %v378_v55 = vmul.f32 %v6916_v28, %v6953_v53  ;;  %v379_v58 = vmul.f32 %v6916_v28, %v6958_v56  ;;  %9417 = vst [vmem:[#allocation32_spill] sm:$0xff] %v6980_v24 }
  0x98   :  { %v392_v36 = vsel %vm142_vm2, %v376_v34, 0.0 }
  0x99   :  { %v395_v54 = vsel %vm142_vm2, %v377_v52, 0.0  ;;  %v398_v57 = vsel %vm142_vm2, %v378_v55, 0.0  ;;  %v401_v59 = vsel %vm142_vm2, %v379_v58, 0.0  ;;  %v7005_v58 = vld [vmem:[%s9137_s8] ss:$0 sm:$0xff] }
  0x9b   :  { %393 = vadd.xlane.f32.xlu1 %v392_v36 }
  0x9f   :  { %387 = vadd.xlane.f32.xlu1 %v386_v39 }
  0xa3   :  { %390 = vadd.xlane.f32.xlu1 %v389_v42 }
 0x124   :  { %v385_v60 = vpop.xlane.xlu1 %384 }
 0x125   :  { %v428_v18 = vrot.slane %v385_v60, %v6966_v7  ;;  %v7010_v60 = vld [vmem:[%s9138_s9] ss:$0 sm:$0xff] }
 0x128   :  { %v394_v62 = vpop.xlane.xlu1 %393 }
 0x129   :  { %v448_v22 = vrot.slane %v394_v62, %v6969_v9  ;;  %v223_v62 = vld [vmem:[%s9418_s30] sm:$0x3] }
 0x12c   :  { %v388_v11 = vpop.xlane.xlu1 %387 }
 0x12d   :  { %v435_v27 = vrot.slane %v388_v11, %v6972_v17 }
 0x130   :  { %v391_v29 = vpop.xlane.xlu1 %390 }
 0x131   :  { %v442_v35 = vrot.slane %v391_v29, %v6980_v24 }
 0x161   :  { %v300_v45 = vpop.f32.mrb[0].mxu0 }
 0x162   :  { %v301_v46 = vadd.f32 %v6940_v43, %v300_v45  ;;  %v6001_v47 = vpop.f32.mrb[1].mxu0  ;;  %v6994_v45 = vld [vmem:[%s9139_s10] ss:$0 sm:$0xff] }
 0x164   :  { %v305_v50 = vsel %vm304_vm3, %v301_v46, 0.0 }
 0x165   :  { %306 = vadd.xlane.f32.xlu0 %v305_v50  ;;  %v129_v50 = vld [vmem:[#allocation2] sm:$0x3] }
 0x166   :  { %131 = vst.msk [vmem:[#allocation11] sm:$0x3] %vm130_vm1, %v129_v50 }
 0x169   :  { %381 = vadd.xlane.f32.xlu0 %v380_v51  ;;  %v151_v51 = vld [vmem:[#allocation7] sm:$0x3] }
 0x16a   :  { %152 = vst.msk [vmem:[#allocation15] sm:$0x3] %vm130_vm1, %v151_v51 }
 0x16d   :  { %396 = vadd.xlane.f32.xlu0 %v395_v54  ;;  %v205_v29 = vld [vmem:[#allocation11] sm:$0x3] }
 0x171   :  { %399 = vadd.xlane.f32.xlu0 %v398_v57 }
 0x175   :  { %402 = vadd.xlane.f32.xlu0 %v401_v59 }
 0x1f2   :  { %v307_v2 = vpop.xlane.xlu0 %306 }
 0x1f3   :  { %v309_v3 = vmul.f32 0.0078125, %v307_v2 }
 0x1f5   :  { %v310_v6 = vsub.f32 %v301_v46, %v309_v3 }
 0x1f6   :  { %v382_v10 = vpop.xlane.xlu0 %381 }
 0x1f7   :  { %v311_v13 = vmul.f32 %v310_v6, %v310_v6  ;;  %v423_v19 = vrot.slane %v382_v10, %v6969_v9 }
 0x1f9   :  { %v312_v12 = vsel %vm304_vm3, %v311_v13, 0.0  ;;  %v430_v30 = vsel %vm429_vm4, %v428_v18, %v423_v19  ;;  %v197_v13 = vld [vmem:[%s9141_s12] sm:$0xff]  ;;  %v199_v18 = vld [vmem:[%s9141_s12 + $0x10] sm:$0xff]  ;;  %v200_v19 = vld [vmem:[%s9141_s12 + $0x18] sm:$0xff] }
 0x1fa   :  { %313 = vadd.xlane.f32.xlu1 %v312_v12  ;;  %v397_v20 = vpop.xlane.xlu0 %396  ;;  %v437_v36 = vsel %vm436_vm5, %v435_v27, %v430_v30  ;;  %v7024_v12 = vpack.c.bf16 %v198_v16, %v197_v13 }
 0x1fb   :  { %v452_v23 = vrot.slane %v397_v20, %v6966_v7  ;;  %v444_v41 = vsel %vm443_vm6, %v442_v35, %v437_v36  ;;  %v7034_v20 = vpack.c.bf16 %v200_v19, %v199_v18  ;;  %v7065_v35 = vld [vmem:[%s9142_s13] ss:$0 sm:$0xff]  ;;  %v7105_v18 = vsub.s32 1, %v6895_v14 }
 0x1fc   :  { %9419 = vst [vmem:[#allocation33_spill] sm:$0xff] %v7024_v12  ;;  %6215 = vmatpush3.bf16.msra.mxu1 %v7024_v12 }
 0x1fd   :  { %v453_v33 = vsel %vm429_vm4, %v452_v23, %v448_v22  ;;  %6216 = vmatprep.subr.bf16.mxu1 %v9167_v0  ;;  %9420 = vst [vmem:[#allocation34_spill] sm:$0xff] %v7034_v20  ;;  %9422 = vst [vmem:[#allocation36_spill] sm:$0xff] %v7105_v18 }
 0x1fe   :  { %v400_v31 = vpop.xlane.xlu0 %399 }
 0x1ff   :  { %v457_v34 = vrot.slane %v400_v31, %v6972_v17 }
 0x200   :  { %6218 = vmatpush3.bf16.msra.mxu1 %v7034_v20 }
 0x201   :  { %v458_v38 = vsel %vm436_vm5, %v457_v34, %v453_v33  ;;  %6219 = vmatprep.subr.bf16.mxu1 %v9167_v0 }
 0x202   :  { %v403_v39 = vpop.xlane.xlu0 %402 }
 0x203   :  { %v462_v42 = vrot.slane %v403_v39, %v6980_v24 }
 0x205   :  { %v463_v46 = vsel %vm443_vm6, %v462_v42, %v458_v38 }
 0x206   :  { %v465_v47 = vsel %vm464_vm7, %v463_v46, %v444_v41 }
 0x207   :  { %v467_v48 = vmul.f32 %v6994_v45, %v465_v47  ;;  %v7072_v47 = vld [vmem:[%s9143_s14] sm:$0xff] }
 0x208   :  { %9421 = vst [vmem:[#allocation35_spill] sm:$0xff] %v7072_v47  ;;  %6014 = vmatpush3.msra.mxu0 %v7072_v47 }
 0x209   :  { %469 = vrot.lane.b32.xlu0 %v467_v48, %s6675_s27  ;;  %6225 = vmatprep.subr.bf16.mxu0 %v9167_v0 }
 0x27b   :  { %v470_v3 = vpop.permute.xlu0 %469 }
 0x287   :  { %v314_v52 = vpop.xlane.xlu1 %313 }
 0x288   :  { %v315_v54 = vmul.f32 0.0078125, %v314_v52  ;;  %v5785_v52 = vld [vmem:[%s9140_s11] ss:$0 sm:$0xff] }
 0x28a   :  { %v316_v55 = vadd.f32 1e-05, %v315_v54 }
 0x28c   :  { %6324 = vrsqrt.f32 %v316_v55 }
 0x296   :  { %v6325_v57 = vpop.eup %6324 }
 0x297   :  { %v318_v59 = vmul.f32 %v6325_v57, %v310_v6  ;;  %v154_v57 = vld [vmem:[#allocation8 + $0x8] sm:$0xff] }
 0x298   :  { %162 = vst.msk [vmem:[#allocation17 + $0x8] sm:$0xff] %vm142_vm2, %v154_v57 }
 0x299   :  { %v325_v61 = vmul.f32 %v7005_v58, %v318_v59  ;;  %v153_v59 = vld [vmem:[#allocation8] sm:$0xff] }
 0x29a   :  { %161 = vst.msk [vmem:[#allocation17] sm:$0xff] %vm142_vm2, %v153_v59 }
 0x29b   :  { %v332_v63 = vadd.f32 %v7010_v60, %v325_v61  ;;  %v158_v61 = vld [vmem:[#allocation8 + $0x28] sm:$0xff] }
 0x29c   :  { %166 = vst.msk [vmem:[#allocation17 + $0x28] sm:$0xff] %vm142_vm2, %v158_v61 }
 0x29d   :  { %v333_v2 = vadd.f32 %v332_v63, %v223_v62  ;;  %v157_v62 = vld [vmem:[#allocation8 + $0x20] sm:$0xff]  ;;  %v155_v63 = vld [vmem:[#allocation8 + $0x10] sm:$0xff] }
 0x29e   :  { %165 = vst.msk [vmem:[#allocation17 + $0x20] sm:$0xff] %vm142_vm2, %v157_v62  ;;  %163 = vst.msk [vmem:[#allocation17 + $0x10] sm:$0xff] %vm142_vm2, %v155_v63 }
 0x29f   :  { %v472_v4 = vadd.f32 %v470_v3, %v333_v2  ;;  %v5790_v6 = vmul.f32 -1.442695, %v333_v2  ;;  %v159_v2 = vld [vmem:[#allocation8 + $0x30] sm:$0xff]  ;;  %v160_v3 = vld [vmem:[#allocation8 + $0x38] sm:$0xff] }
 0x2a0   :  { %167 = vst.msk [vmem:[#allocation17 + $0x30] sm:$0xff] %vm142_vm2, %v159_v2  ;;  %168 = vst.msk [vmem:[#allocation17 + $0x38] sm:$0xff] %vm142_vm2, %v160_v3 }
 0x2a1   :  { %475 = vrot.lane.b32.xlu1 %v472_v4, %s6676_s28  ;;  %6326 = vpow2.f32 %v5790_v6  ;;  %v156_v4 = vld [vmem:[#allocation8 + $0x18] sm:$0xff] }
 0x2a2   :  { %v7099_v6 = vld [vmem:[%s9144_s15] ss:$0 sm:$0xff]  ;;  %164 = vst.msk [vmem:[#allocation17 + $0x18] sm:$0xff] %vm142_vm2, %v156_v4 }
 0x2a5   :  { %v7136_v57 = vld [vmem:[#allocation17 + $0x20] sm:$0xff] }
 0x2ab   :  { %v6327_v10 = vpop.eup %6326 }
 0x2ac   :  { %v337_v11 = vadd.f32 1.0, %v6327_v10 }
 0x2ae   :  { %6328 = vrcp.f32 %v337_v11 }
 0x2b8   :  { %v7037_v22 = vpop.eup %6328 }
 0x2b9   :  { %v473_v30 = vmul.f32 %v7037_v22, %v205_v29 }
 0x313   :  { %v476_v23 = vpop.permute.xlu1 %475 }
 0x314   :  { %v478_v27 = vmul.f32 %v7037_v22, %v476_v23 }
 0x316   :  { %480 = vrot.lane.b32.xlu1 %v478_v27, %s6675_s27 }
 0x388   :  { %v481_v31 = vpop.permute.xlu1 %480 }
 0x389   :  { %v7043_v33 = vadd.f32 %v481_v31, %v473_v30 }
 0x38b   :  { %6330 = vtanh.f32 %v7043_v33 }
 0x395   :  { %v7046_v34 = vpop.eup %6330 }
 0x396   :  { %949 = vst.msk [vmem:[#allocation18] sm:$0x3] %vm130_vm1, %v7046_v34  ;;  %6011 = vmatmul.mubr.msk.f32.vlgmr.msra.gmra.mrb[0].mxu1 %vm142_vm2, %v7046_v34 }
 0x397   :  { %6221 = vmatpush3.bf16.msra.mxu1 %v6876_v5  ;;  %6026 = vmatprep.mubr.msk.f32.mxu1 %vm6672_vm0, %v9169_v1 }
 0x398   :  { %6222 = vmatprep.subr.bf16.mxu1 %v9167_v0 }
 0x39b   :  { %6224 = vmatpush3.bf16.msra.mxu1 %v6886_v8 }
 0x39c   :  { %6040 = vmatprep.subr.mxu1 %v9169_v1 }
 0x39e   :  { %6027 = vmatmul.mubr.msk.f32.vlgmr.msra.gmra.mrb[2].mxu1 %vm142_vm2, %v7046_v34 }
 0x39f   :  { %6042 = vmatprep.mubr.msk.f32.mxu1 %vm6672_vm0, %v9169_v1  ;;  %6041 = vmatpush3.msra.mxu1 %v7072_v47 }
 0x3a0   :  { %6237 = vmatprep.subr.bf16.mxu1 %v9167_v0 }
 0x469   :  { %v560_v36 = vpop.f32.mrb[0].mxu1 }
 0x46a   :  { %v561_v38 = vadd.f32 %v7065_v35, %v560_v36  ;;  %v6012_v39 = vpop.f32.mrb[1].mxu1  ;;  %v1050_v36 = vrot.slane %v7046_v34, %v6898_v15 }
 0x46b   :  { %v7125_v39 = vld [vmem:[#allocation17] sm:$0xff] }
 0x46c   :  { %v565_v41 = vsel %vm564_vm8, %v561_v38, -inf }
 0x46d   :  { %566 = vmax.xlane.f32.xlu1 %v565_v41 }
 0x471   :  { %v1018_v42 = vpop.f32.mrb[2].mxu1 }
 0x472   :  { %v6028_v46 = vpop.f32.mrb[3].mxu1  ;;  %v7109_v23 = vadd.f32 %v6940_v43, %v1018_v42 }
 0x473   :  { %v1058_v46 = vrot.slane %v1050_v36, %v6898_v15 }
 0x474   :  { %v1022_v27 = vsel %vm304_vm3, %v7109_v23, 0.0 }
 0x475   :  { %v7145_v2 = vrot.slane %v1058_v46, %v6903_v21 }
 0x477   :  { %9427 = vst [vmem:[#allocation41_spill] sm:$0xff] %v7145_v2 }
 0x47e   :  { %187 = vbcast.lane.b32.xlu1 %v5785_v52, 264 }
 0x482   :  { %191 = vbcast.lane.b32.xlu1 %v5785_v52, 272 }
 0x4fa   :  { %v567_v48 = vpop.xlane.xlu1 %566 }
 0x4fb   :  { %vm568_vm9 = vcmp.ge.f32.partialorder %v561_v38, %v567_v48  ;;  %v1051_v48 = vcombine.high %v1050_v36, %v1050_v36 }
 0x4fc   :  { %v569_v50 = vsel %vm568_vm9, -inf, %v561_v38 }
 0x4fd   :  { %v570_v51 = vsel %vm564_vm8, %v569_v50, -inf }
 0x4fe   :  { %571 = vmax.xlane.f32.xlu0 %v570_v51  ;;  %v7115_v14 = vpop.permute.xlu1 %187 }
 0x4ff   :  { %9424 = vst [vmem:[#allocation38_spill] sm:$0xff] %v7115_v14  ;;  %v871_v50 = vmul.f32 %v6913_v26, %v7115_v14  ;;  %v875_v63 = vmul.f32 %v6947_v49, %v7115_v14  ;;  %v7156_v49 = vld [vmem:[#allocation17 + $0x30] sm:$0xff] }
 0x502   :  { %v7119_v31 = vpop.permute.xlu1 %191 }
 0x503   :  { %9426 = vst [vmem:[#allocation40_spill] sm:$0xff] %v7119_v31 }
 0x514   :  { %183 = vbcast.lane.b32.xlu0 %v5785_v52, 256 }
 0x518   :  { %195 = vbcast.lane.b32.xlu0 %v5785_v52, 280 }
 0x58b   :  { %v572_v54 = vpop.xlane.xlu0 %571 }
 0x58c   :  { %vm573_vm11 = vcmp.ge.f32.partialorder %v561_v38, %v572_v54 }
 0x58d   :  { %v574_v55 = vsel %vm573_vm11, %v561_v38, 0.0  ;;  %v7123_v38 = vld [vmem:[#allocation17 + $0x8] sm:$0xff] }
 0x58e   :  { %6016 = vmatmul.mubr.msk.f32.vlgmr.msra.gmra.mrb[2].mxu0 %vm581_vm10, %v574_v55  ;;  %v7134_v55 = vld [vmem:[#allocation17 + $0x28] sm:$0xff] }
 0x58f   :  { %6227 = vmatpush3.bf16.msra.mxu0 %v7024_v12  ;;  %6037 = vmatprep.mubr.msk.f32.mxu0 %vm6672_vm0, %v9169_v1  ;;  %v7113_v29 = vpop.permute.xlu0 %183 }
 0x590   :  { %6228 = vmatprep.subr.bf16.mxu0 %v9167_v0  ;;  %9423 = vst [vmem:[#allocation37_spill] sm:$0xff] %v7113_v29  ;;  %v870_v52 = vmul.f32 %v6942_v44, %v7113_v29  ;;  %v1065_v44 = vrot.slane %v1051_v48, %v6898_v15 }
 0x592   :  { %v7168_v46 = vrot.slane %v1065_v44, %v6903_v21 }
 0x593   :  { %6230 = vmatpush3.bf16.msra.mxu0 %v7034_v20  ;;  %v7117_v30 = vpop.permute.xlu0 %195 }
 0x594   :  { %6231 = vmatprep.subr.bf16.mxu0 %v9167_v0  ;;  %9425 = vst [vmem:[#allocation39_spill] sm:$0xff] %v7117_v30  ;;  %9428 = vst [vmem:[#allocation42_spill] sm:$0xff] %v7168_v46 }
 0x661   :  { %v651_v10 = vpop.f32.mrb[2].mxu0 }
 0x662   :  { %v652_v11 = vadd.f32 %v7099_v6, %v651_v10  ;;  %v6017_v13 = vpop.f32.mrb[3].mxu0  ;;  %v874_v10 = vmul.f32 %v6923_v32, %v7113_v29  ;;  %v872_v32 = vmul.f32 %v6930_v37, %v7119_v31  ;;  %v7179_v37 = vld [vmem:[#allocation17 + $0x18] sm:$0xff] }
 0x664   :  { %v881_v16 = vrot.slane %v652_v11, %v6903_v21  ;;  %v900_v19 = vrot.slane %v652_v11, %v7105_v18 }
 0x666   :  { %887 = vbcast.lane.b32.xlu0 %v881_v16, 264  ;;  %883 = vbcast.lane.b32.xlu1 %v881_v16, 256 }
 0x66a   :  { %906 = vbcast.lane.b32.xlu0 %v900_v19, 264  ;;  %902 = vbcast.lane.b32.xlu1 %v900_v19, 256 }
 0x66e   :  { %891 = vbcast.lane.b32.xlu0 %v881_v16, 272  ;;  %910 = vbcast.lane.b32.xlu1 %v900_v19, 272 }
 0x672   :  { %914 = vbcast.lane.b32.xlu0 %v900_v19, 280  ;;  %895 = vbcast.lane.b32.xlu1 %v881_v16, 280  ;;  %v7154_v16 = vld [vmem:[#allocation17 + $0x10] sm:$0xff] }
 0x696   :  { %1023 = vadd.xlane.f32.xlu1 %v1022_v27 }
 0x6d8   :  { %v888_v41 = vpop.permute.xlu0 %887  ;;  %v884_v42 = vpop.permute.xlu1 %883 }
 0x6d9   :  { %v917_v51 = vmul.f32 %v888_v41, %v7123_v38  ;;  %v916_v54 = vmul.f32 %v884_v42, %v7125_v39 }
 0x6db   :  { %v7138_v59 = vadd.f32 %v917_v51, %v871_v50  ;;  %v7140_v61 = vadd.f32 %v916_v54, %v870_v52  ;;  %v876_v51 = vmul.f32 %v6953_v53, %v7119_v31 }
 0x6dc   :  { %v907_v62 = vpop.permute.xlu0 %906  ;;  %v903_v26 = vpop.permute.xlu1 %902 }
 0x6dd   :  { %v9160_v3 = vclamps-f32 %v7140_v61, 5.0  ;;  %v921_v4 = vmul.f32 %v907_v62, %v7134_v55  ;;  %v920_v11 = vmul.f32 %v903_v26, %v7136_v57  ;;  %v9166_v13 = vclamps-f32 %v7138_v59, 5.0 }
 0x6df   :  { %v7158_v19 = vadd.f32 %v921_v4, %v875_v63  ;;  %v7160_v27 = vadd.f32 %v920_v11, %v874_v10  ;;  %v1076_v36 = vmul.f32 %v9160_v3, %v7145_v2  ;;  %v7177_v63 = vld [vmem:[#allocation17 + $0x38] sm:$0xff]  ;;  %v1077_v26 = vmul.f32 %v9166_v13, %v7145_v2 }
 0x6e0   :  { %v892_v41 = vpop.permute.xlu0 %891  ;;  %v911_v42 = vpop.permute.xlu1 %910  ;;  %v877_v10 = vmul.f32 %v6958_v56, %v7117_v30 }
 0x6e1   :  { %v9159_v48 = vclamps-f32 %v7158_v19, 5.0  ;;  %v918_v50 = vmul.f32 %v892_v41, %v7154_v16  ;;  %v922_v52 = vmul.f32 %v911_v42, %v7156_v49  ;;  %v9164_v54 = vclamps-f32 %v7160_v27, 5.0 }
 0x6e2   :  { %v1084_v62 = vsel %vm142_vm2, %v1076_v36, 0.0 }
 0x6e3   :  { %v7184_v44 = vadd.f32 %v918_v50, %v872_v32  ;;  %v7186_v4 = vadd.f32 %v922_v52, %v876_v51  ;;  %1085 = vadd.xlane.f32.xlu0 %v1084_v62  ;;  %v1081_v53 = vmul.f32 %v9159_v48, %v7168_v46  ;;  %v873_v32 = vmul.f32 %v6935_v40, %v7117_v30 }
 0x6e4   :  { %v915_v11 = vpop.permute.xlu0 %914  ;;  %v896_v36 = vpop.permute.xlu1 %895  ;;  %v1087_v52 = vsel %vm142_vm2, %v1077_v26, 0.0  ;;  %v1080_v56 = vmul.f32 %v9164_v54, %v7168_v46 }
 0x6e5   :  { %v9163_v41 = vclamps-f32 %v7186_v4, 5.0  ;;  %v923_v42 = vmul.f32 %v915_v11, %v7177_v63  ;;  %v919_v50 = vmul.f32 %v896_v36, %v7179_v37  ;;  %v9162_v51 = vclamps-f32 %v7184_v44, 5.0 }
 0x6e6   :  { %v1099_v62 = vsel %vm142_vm2, %v1081_v53, 0.0  ;;  %v1096_v36 = vsel %vm142_vm2, %v1080_v56, 0.0 }
 0x6e7   :  { %v7204_v48 = vadd.f32 %v923_v42, %v877_v10  ;;  %v7206_v3 = vadd.f32 %v919_v50, %v873_v32  ;;  %1088 = vadd.xlane.f32.xlu0 %v1087_v52  ;;  %1100 = vadd.xlane.f32.xlu1 %v1099_v62  ;;  %v1082_v40 = vmul.f32 %v9163_v41, %v7168_v46 }
 0x6e8   :  { %v1078_v10 = vmul.f32 %v9162_v51, %v7145_v2 }
 0x6e9   :  { %9429 = vst [vmem:[#allocation43_spill] sm:$0xff] %v7206_v3  ;;  %v9161_v11 = vclamps-f32 %v7204_v48, 5.0  ;;  %v1102_v26 = vsel %vm142_vm2, %v1082_v40, 0.0  ;;  %v9165_v53 = vclamps-f32 %v7206_v3, 5.0 }
 0x6ea   :  { %v1090_v50 = vsel %vm142_vm2, %v1078_v10, 0.0 }
 0x6eb   :  { %1097 = vadd.xlane.f32.xlu0 %v1096_v36  ;;  %1103 = vadd.xlane.f32.xlu1 %v1102_v26  ;;  %v1083_v42 = vmul.f32 %v9161_v11, %v7168_v46  ;;  %v1079_v52 = vmul.f32 %v9165_v53, %v7145_v2 }
 0x6ed   :  { %v1105_v32 = vsel %vm142_vm2, %v1083_v42, 0.0  ;;  %v1093_v62 = vsel %vm142_vm2, %v1079_v52, 0.0 }
 0x6ef   :  { %1091 = vadd.xlane.f32.xlu0 %v1090_v50  ;;  %1106 = vadd.xlane.f32.xlu1 %v1105_v32 }
 0x6f3   :  { %1094 = vadd.xlane.f32.xlu0 %v1093_v62 }
 0x723   :  { %v1024_v56 = vpop.xlane.xlu1 %1023 }
 0x724   :  { %v1025_v40 = vmul.f32 0.0078125, %v1024_v56 }
 0x726   :  { %v1026_v26 = vsub.f32 %v7109_v23, %v1025_v40 }
 0x728   :  { %v1027_v36 = vmul.f32 %v1026_v26, %v1026_v26 }
 0x72a   :  { %v1028_v11 = vsel %vm304_vm3, %v1027_v36, 0.0 }
 0x72b   :  { %1029 = vadd.xlane.f32.xlu0 %v1028_v11 }
 0x770   :  { %v1086_v42 = vpop.xlane.xlu0 %1085 }
 0x771   :  { %v1119_v40 = vrot.slane %v1086_v42, %v6969_v9 }
 0x774   :  { %v1089_v51 = vpop.xlane.xlu0 %1088  ;;  %v1101_v10 = vpop.xlane.xlu1 %1100 }
 0x775   :  { %v1123_v52 = vrot.slane %v1089_v51, %v6966_v7  ;;  %v1142_v62 = vrot.slane %v1101_v10, %v6966_v7 }
 0x777   :  { %v1124_v0 = vsel %vm429_vm4, %v1123_v52, %v1119_v40 }
 0x778   :  { %v1098_v41 = vpop.xlane.xlu0 %1097  ;;  %v1104_v54 = vpop.xlane.xlu1 %1103 }
 0x779   :  { %v1138_v53 = vrot.slane %v1098_v41, %v6969_v9  ;;  %v1147_v56 = vrot.slane %v1104_v54, %v6972_v17 }
 0x77b   :  { %v1143_v11 = vsel %vm429_vm4, %v1142_v62, %v1138_v53 }
 0x77c   :  { %v1092_v50 = vpop.xlane.xlu0 %1091  ;;  %v1107_v32 = vpop.xlane.xlu1 %1106  ;;  %v1148_v1 = vsel %vm436_vm5, %v1147_v56, %v1143_v11 }
 0x77d   :  { %v1128_v23 = vrot.slane %v1092_v50, %v6972_v17  ;;  %v1152_v36 = vrot.slane %v1107_v32, %v6980_v24 }
 0x77f   :  { %v1129_v51 = vsel %vm436_vm5, %v1128_v23, %v1124_v0  ;;  %v1153_v10 = vsel %vm443_vm6, %v1152_v36, %v1148_v1  ;;  %v5804_v1 = vld [vmem:[%s9418_s30 + $0x2] sm:$0x3] }
 0x780   :  { %v1095_v13 = vpop.xlane.xlu0 %1094 }
 0x781   :  { %v1133_v41 = vrot.slane %v1095_v13, %v6980_v24 }
 0x783   :  { %v1134_v54 = vsel %vm443_vm6, %v1133_v41, %v1129_v51 }
 0x784   :  { %v1154_v50 = vsel %vm464_vm7, %v1153_v10, %v1134_v54 }
 0x785   :  { %v1156_v42 = vmul.f32 %v6994_v45, %v1154_v50 }
 0x787   :  { %1158 = vrot.lane.b32.xlu1 %v1156_v42, %s6675_s27  ;;  %v9433_v42 = vmov 0.0  }
 0x7b8   :  { %v1030_v53 = vpop.xlane.xlu0 %1029 }
 0x7b9   :  { %v1031_v32 = vmul.f32 0.0078125, %v1030_v53  ;;  %v9434_v53 = vmov 0.0|0.0  }
 0x7bb   :  { %v1032_v62 = vadd.f32 1e-05, %v1031_v32 }
 0x7bd   :  { %6332 = vrsqrt.f32 %v1032_v62 }
 0x7c7   :  { %v6333_v52 = vpop.eup %6332 }
 0x7c8   :  { %v1034_v13 = vmul.f32 %v6333_v52, %v1026_v26 }
 0x7ca   :  { %v1035_v56 = vmul.f32 %v7005_v58, %v1034_v13 }
 0x7cc   :  { %v1036_v0 = vadd.f32 %v7010_v60, %v1035_v56 }
 0x7ce   :  { %v1037_v23 = vadd.f32 %v5804_v1, %v1036_v0 }
 0x7d0   :  { %v5806_v45 = vmul.f32 -1.442695, %v1037_v23 }
 0x7d2   :  { %6334 = vpow2.f32 %v5806_v45 }
 0x7dc   :  { %v6335_v36 = vpop.eup %6334 }
 0x7dd   :  { %v1041_v41 = vadd.f32 1.0, %v6335_v36 }
 0x7df   :  { %6336 = vrcp.f32 %v1041_v41  ;;  %v724_v41 = vrot.slane %v7046_v34, %v6903_v21 }
 0x7e9   :  { %v7252_v51 = vpop.eup %6336 }
 0x7ea   :  { %9430 = vst [vmem:[#allocation44_spill] sm:$0xff] %v7252_v51  ;;  %v1162_v60 = vmul.f32 %v7252_v51, %v7043_v33 }
 0x7f9   :  { %v1159_v40 = vpop.permute.xlu1 %1158 }
 0x7fa   :  { %v1161_v11 = vadd.f32 %v1159_v40, %v1037_v23 }
 0x7fc   :  { %1164 = vrot.lane.b32.xlu0 %v1161_v11, %s6676_s28 }
 0x86e   :  { %v1165_v26 = vpop.permute.xlu0 %1164 }
 0x86f   :  { %v1167_v58 = vmul.f32 %v7252_v51, %v1165_v26  ;;  %v214_v26 = vld [vmem:[#allocation15] sm:$0x3] }
 0x871   :  { %1169 = vrot.lane.b32.xlu1 %v1167_v58, %s6675_s27  ;;  %v655_v58 = vmul.f32 %v7037_v22, %v214_v26 }
 0x8e3   :  { %v1170_v10 = vpop.permute.xlu1 %1169 }
 0x8e4   :  { %v7258_v54 = vadd.f32 %v1170_v10, %v1162_v60 }
 0x8e6   :  { %9431 = vst [vmem:[#allocation45_spill] sm:$0xff] %v7258_v54  ;;  %6338 = vtanh.f32 %v7258_v54 }
 0x8f0   :  { %v7261_v50 = vpop.eup %6338 }
 0x8f1   :  { %9432 = vst [vmem:[#allocation46_spill] sm:$0xff] %v7261_v50  ;;  %1624 = vst.msk [vmem:[#allocation18 + $0x2] sm:$0x3] %vm130_vm1, %v7261_v50  ;;  %6038 = vmatmul.mubr.msk.f32.vlgmr.msra.gmra.mrb[4].mxu0 %vm142_vm2, %v7261_v50  ;;  %v1725_v51 = vrot.slane %v7261_v50, %v6898_v15 }
 0x8f2   :  { %6233 = vmatpush3.bf16.msra.mxu0 %v6876_v5  ;;  %6053 = vmatprep.mubr.msk.f32.mxu0 %vm6672_vm0, %v9433_v42 }
 0x8f3   :  { %6234 = vmatprep.subr.bf16.mxu0 %v9434_v53 }
 0x8f6   :  { %6236 = vmatpush3.bf16.msra.mxu0 %v6886_v8 }
 0x8f7   :  { %6067 = vmatprep.subr.mxu0 %v9433_v42 }
 0x8f9   :  { %6054 = vmatmul.mubr.msk.f32.vlgmr.msra.gmra.mrb[6].mxu0 %vm142_vm2, %v7261_v50  ;;  %v9439_v50 = vclamps-f32 %v7158_v19, 5.0 }
 0x8fa   :  { %6068 = vmatpush3.msra.mxu0 %v7072_v47  ;;  %6069 = vmatprep.mubr.msk.f32.mxu0 %vm6672_vm0, %v9433_v42  ;;  %v9437_v47 = vclamps-f32 %v7138_v59, 5.0 }
 0x8fb   :  { %6249 = vmatprep.subr.bf16.mxu0 %v9434_v53 }
 0x9c4   :  { %v1243_v33 = vpop.f32.mrb[4].mxu0 }
 0x9c5   :  { %v1244_v32 = vadd.f32 %v7065_v35, %v1243_v33  ;;  %v6039_v62 = vpop.f32.mrb[5].mxu0  ;;  %v743_v35 = vrot.slane %v7046_v34, %v7105_v18 }
 0x9c6   :  { %v688_v62 = vrot.slane %v7037_v22, %v7105_v18 }
 0x9c7   :  { %v1247_v52 = vsel %vm564_vm8, %v1244_v32, -inf }
 0x9c8   :  { %1248 = vmax.xlane.f32.xlu1 %v1247_v52 }
 0x9cc   :  { %v7281_v13 = vpop.f32.mrb[6].mxu0 }
 0x9cd   :  { %v6055_v56 = vpop.f32.mrb[7].mxu0 }
 0xa55   :  { %v1249_v0 = vpop.xlane.xlu1 %1248 }
 0xa56   :  { %vm1250_vm12 = vcmp.ge.f32.partialorder %v1244_v32, %v1249_v0 }
 0xa57   :  { %v1251_v1 = vsel %vm1250_vm12, -inf, %v1244_v32 }
 0xa58   :  { %v1252_v23 = vsel %vm564_vm8, %v1251_v1, -inf }
 0xa59   :  { %1253 = vmax.xlane.f32.xlu0 %v1252_v23  ;;  %v7315_v23 = vadd.f32 %v6940_v43, %v7281_v13 }
 0xa5b   :  { %9436 = vst [vmem:[#allocation48_spill] sm:$0xff] %v7315_v23 }
 0xa6f   :  { %656 = vrot.lane.b32.xlu0 %v7046_v34, %s6677_s26  ;;  %v668_v34 = vrot.slane %v7037_v22, %v6903_v21 }
 0xa73   :  { %745 = vbcast.lane.b32.xlu0 %v743_v35, 256 }
 0xae6   :  { %v1254_v40 = vpop.xlane.xlu0 %1253 }
 0xae7   :  { %vm1255_vm13 = vcmp.ge.f32.partialorder %v1244_v32, %v1254_v40 }
 0xae8   :  { %v1256_v11 = vsel %vm1255_vm13, %v1244_v32, 0.0 }
 0xae9   :  { %6043 = vmatmul.mubr.msk.f32.vlgmr.msra.gmra.mrb[4].mxu1 %vm581_vm10, %v1256_v11 }
 0xaea   :  { %v657_v45 = vpop.permute.xlu0 %656  ;;  %6239 = vmatpush3.bf16.msra.mxu1 %v7024_v12  ;;  %6064 = vmatprep.mubr.msk.f32.mxu1 %vm6672_vm0, %v9433_v42 }
 0xaeb   :  { %v659_v36 = vmul.f32 %v7037_v22, %v657_v45  ;;  %6240 = vmatprep.subr.bf16.mxu1 %v9434_v53 }
 0xaed   :  { %661 = vrot.lane.b32.xlu1 %v659_v36, %s6675_s27 }
 0xaee   :  { %6242 = vmatpush3.bf16.msra.mxu1 %v7034_v20  ;;  %v746_v11 = vpop.permute.xlu0 %745 }
 0xaef   :  { %6243 = vmatprep.subr.bf16.mxu1 %v9434_v53 }
 0xaf1   :  { %726 = vbcast.lane.b32.xlu1 %v724_v41, 256 }
 0xaf5   :  { %730 = vbcast.lane.b32.xlu1 %v724_v41, 264 }
 0xaf9   :  { %749 = vbcast.lane.b32.xlu1 %v743_v35, 264 }
 0xb5f   :  { %v662_v60 = vpop.permute.xlu1 %661 }
 0xb60   :  { %v7300_v10 = vadd.f32 %v662_v60, %v655_v58 }
 0xb62   :  { %9435 = vst [vmem:[#allocation47_spill] sm:$0xff] %v7300_v10  ;;  %v803_v33 = vrot.slane %v7300_v10, %v6903_v21  ;;  %v822_v32 = vrot.slane %v7300_v10, %v7105_v18 }
 0xb64   :  { %809 = vbcast.lane.b32.xlu1 %v803_v33, 264  ;;  %805 = vbcast.lane.b32.xlu0 %v803_v33, 256 }
 0xb68   :  { %828 = vbcast.lane.b32.xlu1 %v822_v32, 264  ;;  %824 = vbcast.lane.b32.xlu0 %v822_v32, 256 }
 0xb6c   :  { %753 = vbcast.lane.b32.xlu1 %v743_v35, 272  ;;  %734 = vbcast.lane.b32.xlu0 %v724_v41, 272 }
 0xb70   :  { %832 = vbcast.lane.b32.xlu1 %v822_v32, 272  ;;  %813 = vbcast.lane.b32.xlu0 %v803_v33, 272 }
 0xb74   :  { %675 = vbcast.lane.b32.xlu1 %v668_v34, 328  ;;  %671 = vbcast.lane.b32.xlu0 %v668_v34, 320 }
 0xb78   :  { %695 = vbcast.lane.b32.xlu1 %v688_v62, 328  ;;  %691 = vbcast.lane.b32.xlu0 %v688_v62, 320 }
 0xb7c   :  { %757 = vbcast.lane.b32.xlu1 %v743_v35, 280  ;;  %738 = vbcast.lane.b32.xlu0 %v724_v41, 280  ;;  %v727_v35 = vpop.permute.xlu1 %726 }
 0xb80   :  { %836 = vbcast.lane.b32.xlu1 %v822_v32, 280  ;;  %817 = vbcast.lane.b32.xlu0 %v803_v33, 280  ;;  %v731_v40 = vpop.permute.xlu1 %730 }
 0xb84   :  { %699 = vbcast.lane.b32.xlu1 %v688_v62, 336  ;;  %679 = vbcast.lane.b32.xlu0 %v668_v34, 336  ;;  %v750_v45 = vpop.permute.xlu1 %749 }
 0xb88   :  { %703 = vbcast.lane.b32.xlu1 %v688_v62, 344  ;;  %683 = vbcast.lane.b32.xlu0 %v668_v34, 344 }
 0xbbc   :  { %v1326_v52 = vpop.f32.mrb[4].mxu1 }
 0xbbd   :  { %v1327_v56 = vadd.f32 %v7099_v6, %v1326_v52  ;;  %v6044_v0 = vpop.f32.mrb[5].mxu1  ;;  %v1697_v6 = vsel %vm304_vm3, %v7315_v23, 0.0 }
 0xbbe   :  { %v766_v0 = vrot.slane %v214_v26, %v6898_v15  ;;  %v1546_v26 = vmul.f32 %v9437_v47, %v7115_v14  ;;  %v9440_v47 = vclamps-f32 %v7160_v27, 5.0 }
 0xbbf   :  { %v1556_v1 = vrot.slane %v1327_v56, %v6903_v21  ;;  %v1575_v22 = vrot.slane %v1327_v56, %v7105_v18 }
 0xbc0   :  { %v774_v46 = vrot.slane %v766_v0, %v6898_v15  ;;  %v7342_v59 = vmul.f32 %v9440_v47, %v7113_v29 }
 0xbc1   :  { %1562 = vbcast.lane.b32.xlu1 %v1556_v1, 264  ;;  %1558 = vbcast.lane.b32.xlu0 %v1556_v1, 256 }
 0xbc2   :  { %v785_v12 = vrot.slane %v774_v46, %v6903_v21  ;;  %v7337_v46 = vmul.f32 %v9439_v50, %v7115_v14 }
 0xbc4   :  { %v793_v24 = vmul.f32 %v785_v12, %v731_v40 }
 0xbc5   :  { %1581 = vbcast.lane.b32.xlu1 %v1575_v22, 264  ;;  %1577 = vbcast.lane.b32.xlu0 %v1575_v22, 256 }
 0xbc9   :  { %1585 = vbcast.lane.b32.xlu1 %v1575_v22, 272  ;;  %1566 = vbcast.lane.b32.xlu0 %v1556_v1, 272 }
 0xbcd   :  { %1589 = vbcast.lane.b32.xlu1 %v1575_v22, 280  ;;  %1570 = vbcast.lane.b32.xlu0 %v1556_v1, 280 }
 0xbd6   :  { %v810_v36 = vpop.permute.xlu1 %809  ;;  %v806_v41 = vpop.permute.xlu0 %805 }
 0xbd7   :  { %v839_v8 = vmul.f32 %v810_v36, %v6909_v25  ;;  %v838_v53 = vmul.f32 %v806_v41, %v6909_v25  ;;  %v1733_v36 = vrot.slane %v1725_v51, %v6898_v15  ;;  %v792_v41 = vmul.f32 %v785_v12, %v727_v35 }
 0xbd9   :  { %v847_v14 = vsub.f32 %v793_v24, %v839_v8  ;;  %v846_v9 = vsub.f32 %v792_v41, %v838_v53 }
 0xbda   :  { %v829_v58 = vpop.permute.xlu1 %828  ;;  %v825_v60 = vpop.permute.xlu0 %824 }
 0xbdb   :  { %v843_v17 = vmul.f32 %v829_v58, %v6916_v28  ;;  %v842_v19 = vmul.f32 %v825_v60, %v6916_v28 }
 0xbde   :  { %v754_v33 = vpop.permute.xlu1 %753  ;;  %v735_v32 = vpop.permute.xlu0 %734 }
 0xbdf   :  { %v794_v58 = vmul.f32 %v785_v12, %v735_v32 }
 0xbe2   :  { %v833_v34 = vpop.permute.xlu1 %832  ;;  %v814_v62 = vpop.permute.xlu0 %813 }
 0xbe3   :  { %v844_v50 = vmul.f32 %v833_v34, %v6916_v28  ;;  %v840_v23 = vmul.f32 %v814_v62, %v6909_v25 }
 0xbe5   :  { %v848_v62 = vsub.f32 %v794_v58, %v840_v23 }
 0xbe6   :  { %v676_v52 = vpop.permute.xlu1 %675  ;;  %v672_v56 = vpop.permute.xlu0 %671 }
 0xbe7   :  { %v705_v54 = vsub.f32 1.0, %v672_v56  ;;  %v855_v53 = vmul.f32 %v847_v14, %v676_v52  ;;  %v854_v34 = vmul.f32 %v846_v9, %v672_v56 }
 0xbe9   :  { %v713_v35 = vmul.f32 %v705_v54, %v7125_v39 }
 0xbea   :  { %v696_v43 = vpop.permute.xlu1 %695  ;;  %v692_v13 = vpop.permute.xlu0 %691 }
 0xbeb   :  { %v710_v27 = vsub.f32 1.0, %v696_v43  ;;  %v709_v40 = vsub.f32 1.0, %v692_v13  ;;  %v7360_v54 = vadd.f32 %v854_v34, %v713_v35 }
 0xbec   :  { %1698 = vadd.xlane.f32.xlu0 %v1697_v6  ;;  %v767_v6 = vcombine.high %v766_v0, %v766_v0 }
 0xbed   :  { %v717_v39 = vmul.f32 %v709_v40, %v7136_v57 }
 0xbee   :  { %v758_v1 = vpop.permute.xlu1 %757  ;;  %v739_v22 = vpop.permute.xlu0 %738  ;;  %v781_v20 = vrot.slane %v767_v6, %v6898_v15  ;;  %v9438_v6 = vclamps-f32 %v7140_v61, 5.0  ;;  %v1726_v61 = vcombine.high %v1725_v51, %v1725_v51 }
 0xbf0   :  { %v789_v18 = vrot.slane %v781_v20, %v6903_v21  ;;  %v1545_v5 = vmul.f32 %v9438_v6, %v7113_v29  ;;  %v706_v20 = vsub.f32 1.0, %v676_v52  ;;  %v1740_v60 = vrot.slane %v1726_v61, %v6898_v15 }
 0xbf1   :  { %v795_v52 = vmul.f32 %v785_v12, %v739_v22 }
 0xbf2   :  { %v837_v2 = vpop.permute.xlu1 %836  ;;  %v818_v10 = vpop.permute.xlu0 %817  ;;  %v796_v6 = vmul.f32 %v789_v18, %v746_v11  ;;  %v797_v7 = vmul.f32 %v789_v18, %v750_v45  ;;  %v798_v47 = vmul.f32 %v789_v18, %v754_v33  ;;  %v714_v29 = vmul.f32 %v706_v20, %v7123_v38 }
 0xbf3   :  { %v7352_v45 = vrot.slane %v1733_v36, %v6903_v21  ;;  %v718_v33 = vmul.f32 %v710_v27, %v7134_v55  ;;  %v841_v41 = vmul.f32 %v818_v10, %v6909_v25  ;;  %v799_v23 = vmul.f32 %v789_v18, %v758_v1 }
 0xbf4   :  { %v851_v3 = vsub.f32 %v797_v7, %v843_v17  ;;  %v850_v8 = vsub.f32 %v796_v6, %v842_v19  ;;  %v852_v24 = vsub.f32 %v798_v47, %v844_v50  ;;  %v845_v7 = vmul.f32 %v837_v2, %v6916_v28 }
 0xbf5   :  { %9441 = vst [vmem:[#allocation49_spill] sm:$0xff] %v7352_v45  ;;  %v7358_v17 = vadd.f32 %v855_v53, %v714_v29  ;;  %v849_v18 = vsub.f32 %v795_v52, %v841_v41 }
 0xbf6   :  { %v700_v0 = vpop.permute.xlu1 %699  ;;  %v680_v42 = vpop.permute.xlu0 %679  ;;  %v859_v32 = vmul.f32 %v851_v3, %v696_v43  ;;  %v858_v36 = vmul.f32 %v850_v8, %v692_v13  ;;  %v853_v3 = vsub.f32 %v799_v23, %v845_v7  ;;  %v9445_v7 = vclamps-f32 %v7204_v48, 5.0 }
 0xbf7   :  { %v711_v38 = vsub.f32 1.0, %v700_v0  ;;  %v707_v20 = vsub.f32 1.0, %v680_v42  ;;  %v860_v12 = vmul.f32 %v852_v24, %v700_v0  ;;  %v856_v13 = vmul.f32 %v848_v62, %v680_v42 }
 0xbf8   :  { %v7367_v2 = vadd.f32 %v859_v32, %v718_v33  ;;  %v7373_v10 = vadd.f32 %v858_v36, %v717_v39  ;;  %v7404_v24 = vrot.slane %v1740_v60, %v6903_v21  ;;  %v1552_v32 = vmul.f32 %v9445_v7, %v7117_v30 }
 0xbf9   :  { %v719_v57 = vmul.f32 %v711_v38, %v7156_v49  ;;  %v715_v28 = vmul.f32 %v707_v20, %v7154_v16 }
 0xbfa   :  { %v704_v51 = vpop.permute.xlu1 %703  ;;  %v684_v11 = vpop.permute.xlu0 %683  ;;  %9444 = vst [vmem:[#allocation50_spill] sm:$0xff] %v7404_v24 }
 0xbfb   :  { %v712_v61 = vsub.f32 1.0, %v704_v51  ;;  %v708_v29 = vsub.f32 1.0, %v684_v11  ;;  %v861_v50 = vmul.f32 %v853_v3, %v704_v51  ;;  %v7381_v27 = vadd.f32 %v860_v12, %v719_v57 }
 0xbfc   :  { %v7383_v47 = vadd.f32 %v856_v13, %v715_v28  ;;  %v857_v40 = vmul.f32 %v849_v18, %v684_v11 }
 0xbfd   :  { %v720_v1 = vmul.f32 %v712_v61, %v7177_v63 }
 0xbff   :  { %v7409_v11 = vadd.f32 %v861_v50, %v720_v1 }
 0xc33   :  { %v1563_v14 = vpop.permute.xlu1 %1562  ;;  %v1559_v9 = vpop.permute.xlu0 %1558 }
 0xc34   :  { %v1592_v55 = vmul.f32 %v1563_v14, %v7358_v17  ;;  %v1591_v56 = vmul.f32 %v1559_v9, %v7360_v54  ;;  %v9446_v9 = vld [vmem:[#allocation43_spill] sm:$0xff] }
 0xc35   :  { %v9447_v23 = vclamps-f32 %v9446_v9, 5.0 }
 0xc36   :  { %v7369_v43 = vadd.f32 %v1592_v55, %v1546_v26  ;;  %v7371_v25 = vadd.f32 %v1591_v56, %v1545_v5  ;;  %v716_v5 = vmul.f32 %v708_v29, %v7179_v37  ;;  %v9442_v37 = vclamps-f32 %v7186_v4, 5.0 }
 0xc37   :  { %v1582_v22 = vpop.permute.xlu1 %1581  ;;  %v1578_v6 = vpop.permute.xlu0 %1577  ;;  %v1548_v52 = vmul.f32 %v9447_v23, %v7117_v30 }
 0xc38   :  { %v9215_v49 = vclamps-f32 %v7369_v43, 5.0  ;;  %v9216_v16 = vclamps-f32 %v7371_v25, 5.0  ;;  %v1596_v19 = vmul.f32 %v1582_v22, %v7367_v2  ;;  %v1595_v26 = vmul.f32 %v1578_v6, %v7373_v10 }
 0xc39   :  { %v1551_v58 = vmul.f32 %v9442_v37, %v7119_v31 }
 0xc3a   :  { %v7386_v42 = vadd.f32 %v1596_v19, %v7337_v46  ;;  %v7389_v63 = vadd.f32 %v1595_v26, %v7342_v59  ;;  %v1752_v0 = vmul.f32 %v9215_v49, %v7352_v45  ;;  %v1751_v35 = vmul.f32 %v9216_v16, %v7352_v45 }
 0xc3b   :  { %v1586_v51 = vpop.permute.xlu1 %1585  ;;  %v9443_v46 = vclamps-f32 %v7184_v44, 5.0  ;;  %v1567_v59 = vpop.permute.xlu0 %1566  ;;  %v7414_v44 = vadd.f32 %v857_v40, %v716_v5  ;;  %v9450_v40 = vld [vmem:[#allocation48_spill] sm:$0xff] }
 0xc3c   :  { %v9214_v53 = vclamps-f32 %v7389_v63, 5.0  ;;  %v1597_v34 = vmul.f32 %v1586_v51, %v7381_v27  ;;  %v1593_v62 = vmul.f32 %v1567_v59, %v7383_v47  ;;  %v9213_v4 = vclamps-f32 %v7386_v42, 5.0 }
 0xc3d   :  { %v1547_v8 = vmul.f32 %v9443_v46, %v7119_v31  ;;  %v1762_v33 = vsel %vm142_vm2, %v1752_v0, 0.0  ;;  %v1759_v38 = vsel %vm142_vm2, %v1751_v35, 0.0 }
 0xc3e   :  { %v7416_v20 = vadd.f32 %v1597_v34, %v1551_v58  ;;  %1763 = vadd.xlane.f32.xlu0 %v1762_v33  ;;  %1760 = vadd.xlane.f32.xlu1 %v1759_v38  ;;  %v1755_v39 = vmul.f32 %v9214_v53, %v7404_v24  ;;  %v1756_v48 = vmul.f32 %v9213_v4, %v7404_v24 }
 0xc3f   :  { %v7418_v60 = vadd.f32 %v1593_v62, %v1547_v8  ;;  %v1590_v36 = vpop.permute.xlu1 %1589  ;;  %v1571_v41 = vpop.permute.xlu0 %1570 }
 0xc40   :  { %v1598_v14 = vmul.f32 %v1590_v36, %v7409_v11  ;;  %v1594_v55 = vmul.f32 %v1571_v41, %v7414_v44  ;;  %v9211_v56 = vclamps-f32 %v7416_v20, 5.0  ;;  %v1771_v57 = vsel %vm142_vm2, %v1755_v39, 0.0  ;;  %v9451_v39 = vld [vmem:[#allocation30_spill] sm:$0xff] }
 0xc41   :  { %v9212_v61 = vclamps-f32 %v7418_v60, 5.0  ;;  %v1774_v1 = vsel %vm142_vm2, %v1756_v48, 0.0 }
 0xc42   :  { %v7437_v28 = vadd.f32 %v1598_v14, %v1552_v32  ;;  %v7439_v29 = vadd.f32 %v1594_v55, %v1548_v52  ;;  %1772 = vadd.xlane.f32.xlu0 %v1771_v57  ;;  %v1757_v22 = vmul.f32 %v9211_v56, %v7404_v24  ;;  %v9452_v32 = vld [vmem:[#allocation29_spill] sm:$0xff]  ;;  %v9453_v14 = vld [vmem:[#allocation31_spill] sm:$0xff]  ;;  %v9454_v55 = vld [vmem:[#allocation32_spill] sm:$0xff] }
 0xc43   :  { %v1753_v3 = vmul.f32 %v9212_v61, %v7352_v45 }
 0xc44   :  { %9448 = vst [vmem:[#allocation43_spill] sm:$0xff] %v7437_v28  ;;  %9449 = vst [vmem:[#allocation51_spill] sm:$0xff] %v7439_v29  ;;  %v9210_v18 = vclamps-f32 %v7439_v29, 5.0  ;;  %v9209_v13 = vclamps-f32 %v7437_v28, 5.0  ;;  %v1777_v26 = vsel %vm142_vm2, %v1757_v22, 0.0 }
 0xc45   :  { %v1765_v12 = vsel %vm142_vm2, %v1753_v3, 0.0 }
 0xc46   :  { %1766 = vadd.xlane.f32.xlu1 %v1765_v12  ;;  %1775 = vadd.xlane.f32.xlu0 %v1774_v1  ;;  %v1754_v6 = vmul.f32 %v9210_v18, %v7352_v45  ;;  %v1758_v50 = vmul.f32 %v9209_v13, %v7404_v24 }
 0xc48   :  { %v1768_v19 = vsel %vm142_vm2, %v1754_v6, 0.0  ;;  %v1780_v5 = vsel %vm142_vm2, %v1758_v50, 0.0 }
 0xc4a   :  { %1769 = vadd.xlane.f32.xlu1 %v1768_v19  ;;  %1778 = vadd.xlane.f32.xlu0 %v1777_v26 }
 0xc4e   :  { %1781 = vadd.xlane.f32.xlu0 %v1780_v5  ;;  %v7480_v5 = vld [vmem:[%s9139_s10] ss:$0 sm:$0xff] }
 0xc4f   :  { %9455 = vst [vmem:[#allocation48_spill] sm:$0xff] %v7480_v5 }
 0xc79   :  { %v1699_v0 = vpop.xlane.xlu0 %1698 }
 0xc7a   :  { %v1700_v35 = vmul.f32 0.0078125, %v1699_v0 }
 0xc7c   :  { %v1701_v37 = vsub.f32 %v9450_v40, %v1700_v35 }
 0xc7e   :  { %v1702_v58 = vmul.f32 %v1701_v37, %v1701_v37 }
 0xc80   :  { %v1703_v51 = vsel %vm304_vm3, %v1702_v58, 0.0 }
 0xc81   :  { %1704 = vadd.xlane.f32.xlu1 %v1703_v51 }
 0xccb   :  { %v1764_v46 = vpop.xlane.xlu0 %1763  ;;  %v1761_v8 = vpop.xlane.xlu1 %1760 }
 0xccc   :  { %v1794_v7 = vrot.slane %v1761_v8, %v9451_v39  ;;  %v1798_v36 = vrot.slane %v1764_v46, %v9452_v32  ;;  %v7487_v8 = vld [vmem:[%s9137_s8] ss:$0 sm:$0xff] }
 0xccd   :  { %9456 = vst [vmem:[#allocation52_spill] sm:$0xff] %v7487_v8 }
 0xcce   :  { %v1799_v3 = vsel %vm429_vm4, %v1798_v36, %v1794_v7 }
 0xccf   :  { %v1773_v59 = vpop.xlane.xlu0 %1772 }
 0xcd0   :  { %v1813_v52 = vrot.slane %v1773_v59, %v9451_v39 }
 0xcd3   :  { %v1767_v34 = vpop.xlane.xlu1 %1766  ;;  %v1776_v62 = vpop.xlane.xlu0 %1775 }
 0xcd4   :  { %v1817_v41 = vrot.slane %v1776_v62, %v9452_v32  ;;  %v1803_v9 = vrot.slane %v1767_v34, %v9453_v14  ;;  %v7493_v34 = vld [vmem:[%s9138_s9] ss:$0 sm:$0xff] }
 0xcd5   :  { %9457 = vst [vmem:[#allocation53_spill] sm:$0xff] %v7493_v34 }
 0xcd6   :  { %v1818_v12 = vsel %vm429_vm4, %v1817_v41, %v1813_v52  ;;  %v1804_v22 = vsel %vm436_vm5, %v1803_v9, %v1799_v3 }
 0xcd7   :  { %v1770_v33 = vpop.xlane.xlu1 %1769  ;;  %v1779_v38 = vpop.xlane.xlu0 %1778 }
 0xcd8   :  { %v1822_v23 = vrot.slane %v1779_v38, %v9453_v14  ;;  %v1808_v57 = vrot.slane %v1770_v33, %v9454_v55  ;;  %v5817_v33 = vld [vmem:[%s9418_s30 + $0x4] sm:$0x3] }
 0xcda   :  { %v1823_v6 = vsel %vm436_vm5, %v1822_v23, %v1818_v12  ;;  %v1809_v19 = vsel %vm443_vm6, %v1808_v57, %v1804_v22 }
 0xcdb   :  { %v1782_v48 = vpop.xlane.xlu0 %1781 }
 0xcdc   :  { %v1827_v1 = vrot.slane %v1782_v48, %v9454_v55  ;;  %v9459_v48 = vld [vmem:[#allocation45_spill] sm:$0xff] }
 0xcde   :  { %v1828_v26 = vsel %vm443_vm6, %v1827_v1, %v1823_v6  ;;  %v9462_v6 = vld [vmem:[#allocation27_spill] sm:$0xff] }
 0xcdf   :  { %v1829_v50 = vsel %vm464_vm7, %v1828_v26, %v1809_v19  ;;  %v9463_v19 = vmov 0.0   ;;  %v9464_v26 = vmov 0.0|0.0  }
 0xce0   :  { %v1831_v0 = vmul.f32 %v7480_v5, %v1829_v50  ;;  %v9465_v50 = vld [vmem:[#allocation28_spill] sm:$0xff] }
 0xce2   :  { %1833 = vrot.lane.b32.xlu0 %v1831_v0, %s6675_s27  ;;  %v9466_v0 = vld [vmem:[#allocation35_spill] sm:$0xff] }
 0xd0e   :  { %v1705_v35 = vpop.xlane.xlu1 %1704 }
 0xd0f   :  { %v1706_v40 = vmul.f32 0.0078125, %v1705_v35 }
 0xd11   :  { %v1707_v58 = vadd.f32 1e-05, %v1706_v40  ;;  %v7530_v40 = vld [vmem:[%s9142_s13] ss:$0 sm:$0xff] }
 0xd12   :  { %9467 = vst [vmem:[#allocation35_spill] sm:$0xff] %v7530_v40 }
 0xd13   :  { %6340 = vrsqrt.f32 %v1707_v58 }
 0xd1d   :  { %v6341_v51 = vpop.eup %6340 }
 0xd1e   :  { %v1709_v46 = vmul.f32 %v6341_v51, %v1701_v37 }
 0xd20   :  { %v1710_v59 = vmul.f32 %v7487_v8, %v1709_v46 }
 0xd22   :  { %v1711_v62 = vadd.f32 %v7493_v34, %v1710_v59  ;;  %v9481_v34 = vld [vmem:[#allocation38_spill] sm:$0xff] }
 0xd24   :  { %v1712_v38 = vadd.f32 %v5817_v33, %v1711_v62 }
 0xd26   :  { %v5819_v36 = vmul.f32 -1.442695, %v1712_v38 }
 0xd28   :  { %6342 = vpow2.f32 %v5819_v36 }
 0xd32   :  { %v6343_v41 = vpop.eup %6342 }
 0xd33   :  { %v1716_v9 = vadd.f32 1.0, %v6343_v41  ;;  %v9469_v41 = vld [vmem:[#allocation36_spill] sm:$0xff] }
 0xd35   :  { %6344 = vrcp.f32 %v1716_v9 }
 0xd3f   :  { %v7500_v23 = vpop.eup %6344 }
 0xd40   :  { %9458 = vst [vmem:[#allocation54_spill] sm:$0xff] %v7500_v23  ;;  %v1837_v3 = vmul.f32 %v7500_v23, %v9459_v48 }
 0xd54   :  { %v1834_v37 = vpop.permute.xlu0 %1833 }
 0xd55   :  { %v1836_v7 = vadd.f32 %v1834_v37, %v1712_v38 }
 0xd57   :  { %1839 = vrot.lane.b32.xlu1 %v1836_v7, %s6676_s28  ;;  %v9468_v7 = vld [vmem:[#allocation46_spill] sm:$0xff] }
 0xd58   :  { %v1399_v36 = vrot.slane %v9468_v7, %v6903_v21  ;;  %v1418_v9 = vrot.slane %v9468_v7, %v9469_v41 }
 0xdc9   :  { %v1840_v52 = vpop.permute.xlu1 %1839 }
 0xdca   :  { %v1842_v57 = vmul.f32 %v7500_v23, %v1840_v52 }
 0xdcc   :  { %1844 = vrot.lane.b32.xlu1 %v1842_v57, %s6675_s27 }
 0xe3e   :  { %v1845_v12 = vpop.permute.xlu1 %1844 }
 0xe3f   :  { %v7506_v1 = vadd.f32 %v1845_v12, %v1837_v3  ;;  %v9470_v3 = vld [vmem:[#allocation33_spill] sm:$0xff]  ;;  %v9471_v12 = vld [vmem:[#allocation44_spill] sm:$0xff] }
 0xe41   :  { %9460 = vst [vmem:[#allocation45_spill] sm:$0xff] %v7506_v1  ;;  %6346 = vtanh.f32 %v7506_v1 }
 0xe4b   :  { %v7509_v22 = vpop.eup %6346 }
 0xe4c   :  { %9461 = vst [vmem:[#allocation55_spill] sm:$0xff] %v7509_v22  ;;  %2299 = vst.msk [vmem:[#allocation18 + $0x4] sm:$0x3] %vm130_vm1, %v7509_v22  ;;  %6065 = vmatmul.mubr.msk.f32.vlgmr.msra.gmra.mrb[6].mxu1 %vm142_vm2, %v7509_v22 }
 0xe4d   :  { %6245 = vmatpush3.bf16.msra.mxu1 %v9462_v6  ;;  %6080 = vmatprep.mubr.msk.f32.mxu1 %vm6672_vm0, %v9463_v19  ;;  %v9480_v6 = vclamps-f32 %v7371_v25, 5.0 }
 0xe4e   :  { %6246 = vmatprep.subr.bf16.mxu1 %v9464_v26 }
 0xe51   :  { %6248 = vmatpush3.bf16.msra.mxu1 %v9465_v50 }
 0xe52   :  { %6094 = vmatprep.subr.mxu1 %v9463_v19 }
 0xe54   :  { %6081 = vmatmul.mubr.msk.f32.vlgmr.msra.gmra.mrb[8].mxu1 %vm142_vm2, %v7509_v22 }
 0xe55   :  { %6095 = vmatpush3.msra.mxu1 %v9466_v0  ;;  %6096 = vmatprep.mubr.msk.f32.mxu1 %vm6672_vm0, %v9463_v19 }
 0xe56   :  { %6261 = vmatprep.subr.bf16.mxu1 %v9464_v26 }
 0xf1f   :  { %v1918_v35 = vpop.f32.mrb[6].mxu1 }
 0xf20   :  { %v1919_v58 = vadd.f32 %v7530_v40, %v1918_v35  ;;  %v6066_v51 = vpop.f32.mrb[7].mxu1  ;;  %v9472_v35 = vld [vmem:[#allocation34_spill] sm:$0xff] }
 0xf22   :  { %v1922_v46 = vsel %vm564_vm8, %v1919_v58, -inf }
 0xf23   :  { %1923 = vmax.xlane.f32.xlu1 %v1922_v46 }
 0xf27   :  { %v7534_v59 = vpop.f32.mrb[8].mxu1 }
 0xf28   :  { %v6082_v62 = vpop.f32.mrb[9].mxu1 }
 0xfb0   :  { %v1924_v33 = vpop.xlane.xlu1 %1923 }
 0xfb1   :  { %vm1925_vm14 = vcmp.ge.f32.partialorder %v1919_v58, %v1924_v33 }
 0xfb2   :  { %v1926_v38 = vsel %vm1925_vm14, -inf, %v1919_v58 }
 0xfb3   :  { %v1927_v37 = vsel %vm564_vm8, %v1926_v38, -inf }
 0xfb4   :  { %1928 = vmax.xlane.f32.xlu0 %v1927_v37  ;;  %v1343_v37 = vrot.slane %v9471_v12, %v6903_v21 }
 0xfca   :  { %1331 = vrot.lane.b32.xlu0 %v9468_v7, %s6677_s26  ;;  %v1363_v7 = vrot.slane %v9471_v12, %v9469_v41 }
 0xfce   :  { %1405 = vbcast.lane.b32.xlu0 %v1399_v36, 264 }
 0xfd2   :  { %1424 = vbcast.lane.b32.xlu0 %v1418_v9, 264 }
0x1041   :  { %v1929_v52 = vpop.xlane.xlu0 %1928 }
0x1042   :  { %vm1930_vm15 = vcmp.ge.f32.partialorder %v1919_v58, %v1929_v52 }
0x1043   :  { %v1931_v57 = vsel %vm1930_vm15, %v1919_v58, 0.0  ;;  %v9473_v58 = vld [vmem:[#allocation47_spill] sm:$0xff] }
0x1044   :  { %6070 = vmatmul.mubr.msk.f32.vlgmr.msra.gmra.mrb[8].mxu0 %vm581_vm10, %v1931_v57  ;;  %v1330_v51 = vmul.f32 %v9471_v12, %v9473_v58  ;;  %v7567_v57 = vld [vmem:[%s9144_s15] ss:$0 sm:$0xff]  ;;  %v1441_v49 = vrot.slane %v9473_v58, %v6898_v15 }
0x1045   :  { %v1332_v48 = vpop.permute.xlu0 %1331  ;;  %6251 = vmatpush3.bf16.msra.mxu0 %v9470_v3  ;;  %6091 = vmatprep.mubr.msk.f32.mxu0 %vm6672_vm0, %v9463_v19  ;;  %9475 = vst [vmem:[#allocation44_spill] sm:$0xff] %v7567_v57  ;;  %v9479_v19 = vld [vmem:[#allocation37_spill] sm:$0xff] }
0x1046   :  { %v1334_v0 = vmul.f32 %v9471_v12, %v1332_v48  ;;  %6252 = vmatprep.subr.bf16.mxu0 %v9464_v26 }
0x1048   :  { %1336 = vrot.lane.b32.xlu1 %v1334_v0, %s6675_s27 }
0x1049   :  { %6254 = vmatpush3.bf16.msra.mxu0 %v9472_v35  ;;  %v7586_v35 = vrot.slane %v7509_v22, %v6898_v15  ;;  %v9482_v22 = vclamps-f32 %v7369_v43, 5.0  ;;  %v9485_v43 = vclamps-f32 %v7386_v42, 5.0 }
0x104a   :  { %6255 = vmatprep.subr.bf16.mxu0 %v9464_v26 }
0x104b   :  { %v2221_v8 = vmul.f32 %v9482_v22, %v9481_v34  ;;  %v2408_v14 = vrot.slane %v7586_v35, %v6898_v15  ;;  %v2225_v22 = vmul.f32 %v9485_v43, %v9481_v34  ;;  %v2401_v42 = vcombine.high %v7586_v35, %v7586_v35 }
0x104c   :  { %1401 = vbcast.lane.b32.xlu1 %v1399_v36, 256 }
0x104d   :  { %v7615_v29 = vrot.slane %v2408_v14, %v6903_v21 }
0x1050   :  { %1420 = vbcast.lane.b32.xlu1 %v1418_v9, 256 }
0x10ba   :  { %v1337_v46 = vpop.permute.xlu1 %1336 }
0x10bb   :  { %v7554_v62 = vadd.f32 %v1337_v46, %v1330_v51  ;;  %v1406_v46 = vpop.permute.xlu0 %1405 }
0x10bd   :  { %9474 = vst [vmem:[#allocation46_spill] sm:$0xff] %v7554_v62  ;;  %v1478_v33 = vrot.slane %v7554_v62, %v6903_v21  ;;  %v1497_v38 = vrot.slane %v7554_v62, %v9469_v41 }
0x10bf   :  { %1484 = vbcast.lane.b32.xlu0 %v1478_v33, 264  ;;  %1480 = vbcast.lane.b32.xlu1 %v1478_v33, 256 }
0x10c3   :  { %1503 = vbcast.lane.b32.xlu0 %v1497_v38, 264  ;;  %1499 = vbcast.lane.b32.xlu1 %v1497_v38, 256 }
0x10c7   :  { %1428 = vbcast.lane.b32.xlu0 %v1418_v9, 272  ;;  %1409 = vbcast.lane.b32.xlu1 %v1399_v36, 272 }
0x10cb   :  { %1507 = vbcast.lane.b32.xlu0 %v1497_v38, 272  ;;  %1488 = vbcast.lane.b32.xlu1 %v1478_v33, 272 }
0x10cf   :  { %1350 = vbcast.lane.b32.xlu0 %v1343_v37, 328  ;;  %1346 = vbcast.lane.b32.xlu1 %v1343_v37, 320 }
0x10d3   :  { %1370 = vbcast.lane.b32.xlu0 %v1363_v7, 328  ;;  %1366 = vbcast.lane.b32.xlu1 %v1363_v7, 320 }
0x10d7   :  { %1432 = vbcast.lane.b32.xlu0 %v1418_v9, 280  ;;  %1413 = vbcast.lane.b32.xlu1 %v1399_v36, 280  ;;  %v7572_v9 = vld [vmem:[#allocation10] ss:$0 sm:$0xff] }
0x10d8   :  { %9476 = vst [vmem:[#allocation47_spill] sm:$0xff] %v7572_v9  ;;  %v7576_v51 = vadd.f32 %v7572_v9, %v7534_v59 }
0x10da   :  { %9477 = vst [vmem:[#allocation56_spill] sm:$0xff] %v7576_v51 }
0x10db   :  { %1511 = vbcast.lane.b32.xlu0 %v1497_v38, 280  ;;  %1492 = vbcast.lane.b32.xlu1 %v1478_v33, 280  ;;  %v1402_v33 = vpop.permute.xlu1 %1401  ;;  %v2372_v38 = vsel %vm304_vm3, %v7576_v51, 0.0 }
0x10df   :  { %1374 = vbcast.lane.b32.xlu0 %v1363_v7, 336  ;;  %1354 = vbcast.lane.b32.xlu1 %v1343_v37, 336 }
0x10e3   :  { %1378 = vbcast.lane.b32.xlu0 %v1363_v7, 344  ;;  %1358 = vbcast.lane.b32.xlu1 %v1343_v37, 344  ;;  %v1425_v37 = vpop.permute.xlu0 %1424  ;;  %v1421_v7 = vpop.permute.xlu1 %1420 }
0x1117   :  { %v2001_v52 = vpop.f32.mrb[8].mxu0 }
0x1118   :  { %v2002_v48 = vadd.f32 %v7567_v57, %v2001_v52  ;;  %v6071_v0 = vpop.f32.mrb[9].mxu0  ;;  %v1449_v57 = vrot.slane %v1441_v49, %v6898_v15 }
0x111a   :  { %v2231_v12 = vrot.slane %v2002_v48, %v6903_v21  ;;  %v2250_v36 = vrot.slane %v2002_v48, %v9469_v41  ;;  %v1460_v23 = vrot.slane %v1449_v57, %v6903_v21  ;;  %v9478_v41 = vld [vmem:[#allocation41_spill] sm:$0xff]  ;;  %v9483_v57 = vclamps-f32 %v7389_v63, 5.0 }
0x111b   :  { %9486 = vst [vmem:[#allocation41_spill] sm:$0xff] %v7615_v29 }
0x111c   :  { %2237 = vbcast.lane.b32.xlu0 %v2231_v12, 264  ;;  %2233 = vbcast.lane.b32.xlu1 %v2231_v12, 256  ;;  %v1467_v5 = vmul.f32 %v1460_v23, %v1402_v33 }
0x1120   :  { %2256 = vbcast.lane.b32.xlu0 %v2250_v36, 264  ;;  %2252 = vbcast.lane.b32.xlu1 %v2250_v36, 256 }
0x1124   :  { %2260 = vbcast.lane.b32.xlu0 %v2250_v36, 272  ;;  %2241 = vbcast.lane.b32.xlu1 %v2231_v12, 272 }
0x1128   :  { %2264 = vbcast.lane.b32.xlu0 %v2250_v36, 280  ;;  %2245 = vbcast.lane.b32.xlu1 %v2231_v12, 280 }
0x1131   :  { %v1481_v52 = vpop.permute.xlu1 %1480  ;;  %v1485_v48 = vpop.permute.xlu0 %1484 }
0x1132   :  { %v1513_v40 = vmul.f32 %v1481_v52, %v9478_v41  ;;  %v1514_v58 = vmul.f32 %v1485_v48, %v9478_v41  ;;  %v1468_v52 = vmul.f32 %v1460_v23, %v1406_v46  ;;  %v9484_v48 = vld [vmem:[#allocation42_spill] sm:$0xff] }
0x1134   :  { %v1521_v39 = vsub.f32 %v1467_v5, %v1513_v40  ;;  %v1522_v51 = vsub.f32 %v1468_v52, %v1514_v58 }
0x1135   :  { %v1500_v0 = vpop.permute.xlu1 %1499  ;;  %v1504_v13 = vpop.permute.xlu0 %1503 }
0x1136   :  { %v1517_v55 = vmul.f32 %v1500_v0, %v9484_v48  ;;  %v1518_v32 = vmul.f32 %v1504_v13, %v9484_v48 }
0x1139   :  { %v1410_v36 = vpop.permute.xlu1 %1409  ;;  %v1429_v12 = vpop.permute.xlu0 %1428 }
0x113d   :  { %v1489_v18 = vpop.permute.xlu1 %1488  ;;  %v1508_v56 = vpop.permute.xlu0 %1507 }
0x113e   :  { %v1515_v63 = vmul.f32 %v1489_v18, %v9478_v41  ;;  %v1519_v46 = vmul.f32 %v1508_v56, %v9484_v48 }
0x1141   :  { %v1347_v61 = vpop.permute.xlu1 %1346  ;;  %v1351_v4 = vpop.permute.xlu0 %1350 }
0x1142   :  { %v1380_v1 = vsub.f32 1.0, %v1347_v61  ;;  %v1529_v40 = vmul.f32 %v1521_v39, %v1347_v61  ;;  %v1530_v58 = vmul.f32 %v1522_v51, %v1351_v4 }
0x1144   :  { %v1388_v33 = vmul.f32 %v1380_v1, %v7360_v54 }
0x1145   :  { %v1367_v59 = vpop.permute.xlu1 %1366  ;;  %v1371_v53 = vpop.permute.xlu0 %1370 }
0x1149   :  { %v1414_v16 = vpop.permute.xlu1 %1413  ;;  %v1433_v24 = vpop.permute.xlu0 %1432 }
0x114a   :  { %v1470_v43 = vmul.f32 %v1460_v23, %v1414_v16 }
0x114c   :  { %2373 = vadd.xlane.f32.xlu1 %v2372_v38  ;;  %v1442_v38 = vcombine.high %v1441_v49, %v1441_v49  ;;  %v2220_v49 = vmul.f32 %v9480_v6, %v9479_v19 }
0x114d   :  { %v1493_v45 = vpop.permute.xlu1 %1492  ;;  %v1512_v9 = vpop.permute.xlu0 %1511 }
0x114e   :  { %v1456_v62 = vrot.slane %v1442_v38, %v6898_v15  ;;  %v1381_v38 = vsub.f32 1.0, %v1351_v4  ;;  %v1520_v39 = vmul.f32 %v1512_v9, %v9484_v48  ;;  %v2415_v48 = vrot.slane %v2401_v42, %v6898_v15 }
0x1150   :  { %v1464_v3 = vrot.slane %v1456_v62, %v6903_v21  ;;  %v7601_v62 = vmul.f32 %v9483_v57, %v9479_v19  ;;  %v1384_v57 = vsub.f32 1.0, %v1367_v59  ;;  %v1389_v0 = vmul.f32 %v1381_v38, %v7358_v17 }
0x1151   :  { %v1355_v50 = vpop.permute.xlu1 %1354  ;;  %v1375_v26 = vpop.permute.xlu0 %1374  ;;  %v1385_v19 = vsub.f32 1.0, %v1371_v53 }
0x1152   :  { %v1472_v25 = vmul.f32 %v1464_v3, %v1425_v37  ;;  %v1471_v6 = vmul.f32 %v1464_v3, %v1421_v7  ;;  %v1469_v7 = vmul.f32 %v1460_v23, %v1410_v36  ;;  %v1473_v18 = vmul.f32 %v1464_v3, %v1429_v12 }
0x1153   :  { %v1392_v54 = vmul.f32 %v1384_v57, %v7373_v10  ;;  %v1382_v1 = vsub.f32 1.0, %v1355_v50  ;;  %v1386_v17 = vsub.f32 1.0, %v1375_v26  ;;  %v7621_v36 = vadd.f32 %v1529_v40, %v1388_v33 }
0x1154   :  { %v1525_v37 = vsub.f32 %v1471_v6, %v1517_v55  ;;  %v1526_v5 = vsub.f32 %v1472_v25, %v1518_v32  ;;  %v1523_v56 = vsub.f32 %v1469_v7, %v1515_v63  ;;  %v1527_v38 = vsub.f32 %v1473_v18, %v1519_v46 }
0x1155   :  { %v1359_v28 = vpop.permute.xlu1 %1358  ;;  %v1379_v13 = vpop.permute.xlu0 %1378  ;;  %v1393_v55 = vmul.f32 %v1385_v19, %v7367_v2  ;;  %v7623_v52 = vadd.f32 %v1530_v58, %v1389_v0  ;;  %v1516_v32 = vmul.f32 %v1493_v45, %v9478_v41  ;;  %v1474_v4 = vmul.f32 %v1464_v3, %v1433_v24 }
0x1156   :  { %v1533_v14 = vmul.f32 %v1525_v37, %v1367_v59  ;;  %v1534_v6 = vmul.f32 %v1526_v5, %v1371_v53  ;;  %v1390_v2 = vmul.f32 %v1382_v1, %v7383_v47  ;;  %v1394_v19 = vmul.f32 %v1386_v17, %v7381_v27 }
0x1157   :  { %v1383_v12 = vsub.f32 1.0, %v1359_v28  ;;  %v1387_v53 = vsub.f32 1.0, %v1379_v13  ;;  %v1524_v24 = vsub.f32 %v1470_v43, %v1516_v32  ;;  %v1531_v41 = vmul.f32 %v1523_v56, %v1355_v50 }
0x1158   :  { %v7631_v25 = vadd.f32 %v1533_v14, %v1392_v54  ;;  %v7637_v23 = vadd.f32 %v1534_v6, %v1393_v55  ;;  %v1535_v3 = vmul.f32 %v1527_v38, %v1375_v26  ;;  %v1528_v47 = vsub.f32 %v1474_v4, %v1520_v39  ;;  %v9490_v14 = vld [vmem:[#allocation51_spill] sm:$0xff] }
0x1159   :  { %v7645_v46 = vadd.f32 %v1531_v41, %v1390_v2  ;;  %v1395_v26 = vmul.f32 %v1387_v53, %v7409_v11  ;;  %v1532_v7 = vmul.f32 %v1524_v24, %v1359_v28  ;;  %v9488_v18 = vclamps-f32 %v7416_v20, 5.0  ;;  %v9492_v39 = vld [vmem:[#allocation43_spill] sm:$0xff] }
0x115a   :  { %v7647_v33 = vadd.f32 %v1535_v3, %v1394_v19  ;;  %v9491_v6 = vclamps-f32 %v9490_v14, 5.0  ;;  %v9496_v14 = vld [vmem:[#allocation30_spill] sm:$0xff] }
0x115b   :  { %v2226_v40 = vmul.f32 %v9488_v18, %v7119_v31  ;;  %v9495_v18 = vld [vmem:[#allocation56_spill] sm:$0xff] }
0x115c   :  { %v2223_v43 = vmul.f32 %v9491_v6, %v7117_v30 }
0x118e   :  { %v2234_v35 = vpop.permute.xlu1 %2233  ;;  %v2238_v61 = vpop.permute.xlu0 %2237 }
0x118f   :  { %v2266_v10 = vmul.f32 %v2234_v35, %v7621_v36  ;;  %v2267_v51 = vmul.f32 %v2238_v61, %v7623_v52 }
0x1191   :  { %v7633_v16 = vadd.f32 %v2266_v10, %v2220_v49  ;;  %v7635_v45 = vadd.f32 %v2267_v51, %v2221_v8  ;;  %v1391_v49 = vmul.f32 %v1383_v12, %v7414_v44  ;;  %v9487_v44 = vclamps-f32 %v7418_v60, 5.0 }
0x1192   :  { %v2253_v9 = vpop.permute.xlu1 %2252  ;;  %v2257_v59 = vpop.permute.xlu0 %2256  ;;  %v9493_v10 = vclamps-f32 %v9492_v39, 5.0 }
0x1193   :  { %v9251_v27 = vclamps-f32 %v7633_v16, 5.0  ;;  %v2270_v63 = vmul.f32 %v2253_v9, %v7631_v25  ;;  %v2271_v57 = vmul.f32 %v2257_v59, %v7637_v23  ;;  %v9252_v8 = vclamps-f32 %v7635_v45, 5.0 }
0x1194   :  { %v2222_v42 = vmul.f32 %v9487_v44, %v7119_v31  ;;  %v7672_v1 = vadd.f32 %v1532_v7, %v1391_v49  ;;  %v2227_v51 = vmul.f32 %v9493_v10, %v7117_v30  ;;  %v9498_v10 = vld [vmem:[#allocation31_spill] sm:$0xff] }
0x1195   :  { %v7651_v50 = vadd.f32 %v2270_v63, %v7601_v62  ;;  %v7653_v0 = vadd.f32 %v2271_v57, %v2225_v22  ;;  %v2426_v37 = vmul.f32 %v9251_v27, %v7615_v29  ;;  %v7665_v62 = vrot.slane %v2415_v48, %v6903_v21 }
0x1196   :  { %v2242_v5 = vpop.permute.xlu1 %2241  ;;  %v2261_v11 = vpop.permute.xlu0 %2260  ;;  %v1536_v22 = vmul.f32 %v1528_v47, %v1379_v13  ;;  %v2427_v20 = vmul.f32 %v9252_v8, %v7615_v29 }
0x1197   :  { %9489 = vst [vmem:[#allocation42_spill] sm:$0xff] %v7665_v62  ;;  %v9250_v58 = vclamps-f32 %v7653_v0, 5.0  ;;  %v2268_v56 = vmul.f32 %v2242_v5, %v7645_v46  ;;  %v2272_v28 = vmul.f32 %v2261_v11, %v7647_v33  ;;  %v9249_v54 = vclamps-f32 %v7651_v50, 5.0 }
0x1198   :  { %v2434_v60 = vsel %vm142_vm2, %v2426_v37, 0.0  ;;  %v7681_v13 = vadd.f32 %v1536_v22, %v1395_v26  ;;  %v2437_v12 = vsel %vm142_vm2, %v2427_v20, 0.0 }
0x1199   :  { %v7677_v17 = vadd.f32 %v2268_v56, %v2222_v42  ;;  %v7679_v38 = vadd.f32 %v2272_v28, %v2226_v40  ;;  %2435 = vadd.xlane.f32.xlu0 %v2434_v60  ;;  %v2431_v55 = vmul.f32 %v9250_v58, %v7665_v62  ;;  %v2430_v24 = vmul.f32 %v9249_v54, %v7665_v62 }
0x119a   :  { %v2246_v32 = vpop.permute.xlu1 %2245  ;;  %v2265_v35 = vpop.permute.xlu0 %2264 }
0x119b   :  { %v9248_v61 = vclamps-f32 %v7679_v38, 5.0  ;;  %v2269_v4 = vmul.f32 %v2246_v32, %v7672_v1  ;;  %v2273_v2 = vmul.f32 %v2265_v35, %v7681_v13  ;;  %v9247_v19 = vclamps-f32 %v7677_v17, 5.0  ;;  %v9497_v35 = vld [vmem:[#allocation29_spill] sm:$0xff] }
0x119c   :  { %v2449_v53 = vsel %vm142_vm2, %v2431_v55, 0.0  ;;  %v2446_v63 = vsel %vm142_vm2, %v2430_v24, 0.0  ;;  %v9499_v24 = vld [vmem:[#allocation32_spill] sm:$0xff] }
0x119d   :  { %v7701_v41 = vadd.f32 %v2269_v4, %v2223_v43  ;;  %v7703_v3 = vadd.f32 %v2273_v2, %v2227_v51  ;;  %2438 = vadd.xlane.f32.xlu0 %v2437_v12  ;;  %2450 = vadd.xlane.f32.xlu1 %v2449_v53  ;;  %v2432_v9 = vmul.f32 %v9248_v61, %v7665_v62 }
0x119e   :  { %v2428_v57 = vmul.f32 %v9247_v19, %v7615_v29 }
0x119f   :  { %9494 = vst [vmem:[#allocation51_spill] sm:$0xff] %v7701_v41  ;;  %v9246_v59 = vclamps-f32 %v7703_v3, 5.0  ;;  %v2452_v48 = vsel %vm142_vm2, %v2432_v9, 0.0  ;;  %v9245_v47 = vclamps-f32 %v7701_v41, 5.0 }
0x11a0   :  { %v2440_v37 = vsel %vm142_vm2, %v2428_v57, 0.0 }
0x11a1   :  { %2447 = vadd.xlane.f32.xlu0 %v2446_v63  ;;  %2453 = vadd.xlane.f32.xlu1 %v2452_v48  ;;  %v2433_v49 = vmul.f32 %v9246_v59, %v7665_v62  ;;  %v2429_v7 = vmul.f32 %v9245_v47, %v7615_v29 }
0x11a3   :  { %v2455_v26 = vsel %vm142_vm2, %v2433_v49, 0.0  ;;  %v2443_v44 = vsel %vm142_vm2, %v2429_v7, 0.0 }
0x11a5   :  { %2441 = vadd.xlane.f32.xlu0 %v2440_v37  ;;  %2456 = vadd.xlane.f32.xlu1 %v2455_v26 }
0x11a9   :  { %2444 = vadd.xlane.f32.xlu0 %v2443_v44 }
0x11d9   :  { %v2374_v42 = vpop.xlane.xlu1 %2373 }
0x11da   :  { %v2375_v5 = vmul.f32 0.0078125, %v2374_v42  ;;  %v9500_v42 = vld [vmem:[#allocation48_spill] sm:$0xff] }
0x11dc   :  { %v2376_v40 = vsub.f32 %v9495_v18, %v2375_v5 }
0x11de   :  { %v2377_v11 = vmul.f32 %v2376_v40, %v2376_v40 }
0x11e0   :  { %v2378_v22 = vsel %vm304_vm3, %v2377_v11, 0.0 }
0x11e1   :  { %2379 = vadd.xlane.f32.xlu0 %v2378_v22 }
0x1226   :  { %v2436_v56 = vpop.xlane.xlu0 %2435 }
0x1227   :  { %v2469_v12 = vrot.slane %v2436_v56, %v9496_v14 }
0x122a   :  { %v2439_v28 = vpop.xlane.xlu0 %2438  ;;  %v2451_v60 = vpop.xlane.xlu1 %2450 }
0x122b   :  { %v2473_v4 = vrot.slane %v2439_v28, %v9497_v35  ;;  %v2492_v39 = vrot.slane %v2451_v60, %v9497_v35  ;;  %v9501_v60 = vld [vmem:[#allocation52_spill] sm:$0xff] }
0x122d   :  { %v2474_v63 = vsel %vm429_vm4, %v2473_v4, %v2469_v12 }
0x122e   :  { %v2448_v20 = vpop.xlane.xlu0 %2447  ;;  %v2454_v55 = vpop.xlane.xlu1 %2453 }
0x122f   :  { %v2488_v6 = vrot.slane %v2448_v20, %v9496_v14  ;;  %v2497_v51 = vrot.slane %v2454_v55, %v9498_v10  ;;  %v9502_v55 = vld [vmem:[#allocation53_spill] sm:$0xff] }
0x1231   :  { %v2493_v53 = vsel %vm429_vm4, %v2492_v39, %v2488_v6 }
0x1232   :  { %v2442_v43 = vpop.xlane.xlu0 %2441  ;;  %v2457_v32 = vpop.xlane.xlu1 %2456  ;;  %v2498_v49 = vsel %vm436_vm5, %v2497_v51, %v2493_v53 }
0x1233   :  { %v2478_v2 = vrot.slane %v2442_v43, %v9498_v10  ;;  %v2502_v9 = vrot.slane %v2457_v32, %v9499_v24  ;;  %v5830_v43 = vld [vmem:[%s9418_s30 + $0x6] sm:$0x3] }
0x1235   :  { %v2479_v26 = vsel %vm436_vm5, %v2478_v2, %v2474_v63  ;;  %v2503_v37 = vsel %vm443_vm6, %v2502_v9, %v2498_v49 }
0x1236   :  { %v2445_v48 = vpop.xlane.xlu0 %2444 }
0x1237   :  { %v2483_v57 = vrot.slane %v2445_v48, %v9499_v24  ;;  %v9504_v48 = vld [vmem:[#allocation45_spill] sm:$0xff]  ;;  %v9529_v24 = vld [vmem:[#allocation50_spill] sm:$0xff] }
0x1239   :  { %v2484_v7 = vsel %vm443_vm6, %v2483_v57, %v2479_v26 }
0x123a   :  { %v2504_v44 = vsel %vm464_vm7, %v2503_v37, %v2484_v7  ;;  %v9507_v37 = vld [vmem:[#allocation27_spill] sm:$0xff]  ;;  %v9508_v7 = vmov 0.0  }
0x123b   :  { %v2506_v5 = vmul.f32 %v9500_v42, %v2504_v44  ;;  %v9509_v44 = vmov 0.0|0.0   ;;  %v9510_v42 = vld [vmem:[#allocation28_spill] sm:$0xff] }
0x123d   :  { %2508 = vrot.lane.b32.xlu1 %v2506_v5, %s6675_s27  ;;  %v7775_v5 = vld [vmem:[%s9143_s14] sm:$0xff] }
0x123e   :  { %9511 = vst [vmem:[#allocation52_spill] sm:$0xff] %v7775_v5 }
0x126e   :  { %v2380_v18 = vpop.xlane.xlu0 %2379 }
0x126f   :  { %v2381_v11 = vmul.f32 0.0078125, %v2380_v18 }
0x1271   :  { %v2382_v22 = vadd.f32 1e-05, %v2381_v11  ;;  %v9512_v11 = vld [vmem:[#allocation35_spill] sm:$0xff] }
0x1273   :  { %6348 = vrsqrt.f32 %v2382_v22 }
0x127d   :  { %v6349_v56 = vpop.eup %6348 }
0x127e   :  { %v2384_v28 = vmul.f32 %v6349_v56, %v2376_v40 }
0x1280   :  { %v2385_v20 = vmul.f32 %v9501_v60, %v2384_v28 }
0x1282   :  { %v2386_v6 = vadd.f32 %v9502_v55, %v2385_v20 }
0x1284   :  { %v2387_v32 = vadd.f32 %v5830_v43, %v2386_v6 }
0x1286   :  { %v5832_v51 = vmul.f32 -1.442695, %v2387_v32 }
0x1288   :  { %6350 = vpow2.f32 %v5832_v51 }
0x1292   :  { %v6351_v2 = vpop.eup %6350 }
0x1293   :  { %v2391_v12 = vadd.f32 1.0, %v6351_v2 }
0x1295   :  { %6352 = vrcp.f32 %v2391_v12 }
0x129f   :  { %v7749_v53 = vpop.eup %6352 }
0x12a0   :  { %9503 = vst [vmem:[#allocation43_spill] sm:$0xff] %v7749_v53  ;;  %v2512_v63 = vmul.f32 %v7749_v53, %v9504_v48 }
0x12af   :  { %v2509_v4 = vpop.permute.xlu1 %2508 }
0x12b0   :  { %v2511_v39 = vadd.f32 %v2509_v4, %v2387_v32  ;;  %v9513_v32 = vld [vmem:[#allocation55_spill] sm:$0xff]  ;;  %v9514_v4 = vld [vmem:[#allocation36_spill] sm:$0xff] }
0x12b2   :  { %2514 = vrot.lane.b32.xlu0 %v2511_v39, %s6676_s28  ;;  %v2093_v39 = vrot.slane %v9513_v32, %v9514_v4 }
0x1324   :  { %v2515_v40 = vpop.permute.xlu0 %2514 }
0x1325   :  { %v2517_v9 = vmul.f32 %v7749_v53, %v2515_v40  ;;  %v9515_v40 = vld [vmem:[#allocation33_spill] sm:$0xff]  ;;  %v9523_v53 = vclamps-f32 %v7635_v45, 5.0  ;;  %v9528_v45 = vclamps-f32 %v7651_v50, 5.0 }
0x1327   :  { %2519 = vrot.lane.b32.xlu1 %v2517_v9, %s6675_s27  ;;  %v9516_v9 = vld [vmem:[#allocation54_spill] sm:$0xff] }
0x1399   :  { %v2520_v57 = vpop.permute.xlu1 %2519 }
0x139a   :  { %v7755_v49 = vadd.f32 %v2520_v57, %v2512_v63  ;;  %v9517_v63 = vld [vmem:[#allocation34_spill] sm:$0xff]  ;;  %v2074_v57 = vrot.slane %v9513_v32, %v6903_v21 }
0x139c   :  { %9505 = vst [vmem:[#allocation56_spill] sm:$0xff] %v7755_v49  ;;  %6354 = vtanh.f32 %v7755_v49 }
0x13a6   :  { %v7758_v26 = vpop.eup %6354 }
0x13a7   :  { %9506 = vst [vmem:[#allocation48_spill] sm:$0xff] %v7758_v26  ;;  %2974 = vst.msk [vmem:[#allocation18 + $0x6] sm:$0x3] %vm130_vm1, %v7758_v26  ;;  %6092 = vmatmul.mubr.msk.f32.vlgmr.msra.gmra.mrb[10].mxu0 %vm142_vm2, %v7758_v26  ;;  %v3075_v29 = vrot.slane %v7758_v26, %v6898_v15 }
0x13a8   :  { %6257 = vmatpush3.bf16.msra.mxu0 %v9507_v37  ;;  %6107 = vmatprep.mubr.msk.f32.mxu0 %vm6672_vm0, %v9508_v7 }
0x13a9   :  { %6258 = vmatprep.subr.bf16.mxu0 %v9509_v44 }
0x13ac   :  { %6260 = vmatpush3.bf16.msra.mxu0 %v9510_v42 }
0x13ad   :  { %6121 = vmatprep.subr.mxu0 %v9508_v7 }
0x13af   :  { %6108 = vmatmul.mubr.msk.f32.vlgmr.msra.gmra.mrb[12].mxu0 %vm142_vm2, %v7758_v26  ;;  %v9527_v26 = vclamps-f32 %v7653_v0, 5.0 }
0x13b0   :  { %6122 = vmatpush3.msra.mxu0 %v7775_v5  ;;  %6123 = vmatprep.mubr.msk.f32.mxu0 %vm6672_vm0, %v9508_v7 }
0x13b1   :  { %6273 = vmatprep.subr.bf16.mxu0 %v9509_v44 }
0x147a   :  { %v2593_v18 = vpop.f32.mrb[10].mxu0 }
0x147b   :  { %v2594_v22 = vadd.f32 %v9512_v11, %v2593_v18  ;;  %v6093_v56 = vpop.f32.mrb[11].mxu0  ;;  %v9518_v18 = vld [vmem:[#allocation46_spill] sm:$0xff] }
0x147c   :  { %v2005_v11 = vmul.f32 %v9516_v9, %v9518_v18  ;;  %v2116_v19 = vrot.slane %v9518_v18, %v6898_v15  ;;  %v2896_v18 = vmul.f32 %v9523_v53, %v9481_v34 }
0x147d   :  { %v2597_v28 = vsel %vm564_vm8, %v2594_v22, -inf }
0x147e   :  { %2598 = vmax.xlane.f32.xlu1 %v2597_v28  ;;  %v2117_v54 = vcombine.high %v2116_v19, %v2116_v19  ;;  %v2124_v62 = vrot.slane %v2116_v19, %v6898_v15  ;;  %v9526_v19 = vclamps-f32 %v7633_v16, 5.0  ;;  %v3076_v16 = vcombine.high %v3075_v29, %v3075_v29 }
0x1480   :  { %v2131_v8 = vrot.slane %v2117_v54, %v6898_v15  ;;  %v9525_v54 = vld [vmem:[#allocation37_spill] sm:$0xff] }
0x1481   :  { %v7846_v53 = vmul.f32 %v9528_v45, %v9525_v54 }
0x1482   :  { %v7783_v60 = vpop.f32.mrb[12].mxu0 }
0x1483   :  { %v6109_v20 = vpop.f32.mrb[13].mxu0 }
0x150b   :  { %v2599_v55 = vpop.xlane.xlu1 %2598 }
0x150c   :  { %vm2600_vm9 = vcmp.ge.f32.partialorder %v2594_v22, %v2599_v55  ;;  %v2018_v55 = vrot.slane %v9516_v9, %v6903_v21 }
0x150d   :  { %v2601_v6 = vsel %vm2600_vm9, -inf, %v2594_v22 }
0x150e   :  { %v2602_v43 = vsel %vm564_vm8, %v2601_v6, -inf  ;;  %v2038_v6 = vrot.slane %v9516_v9, %v9514_v4 }
0x150f   :  { %2603 = vmax.xlane.f32.xlu0 %v2602_v43 }
0x1525   :  { %2006 = vrot.lane.b32.xlu0 %v9513_v32, %s6677_s26  ;;  %v9520_v32 = vld [vmem:[#allocation44_spill] sm:$0xff] }
0x1529   :  { %2095 = vbcast.lane.b32.xlu0 %v2093_v39, 256 }
0x159c   :  { %v2604_v51 = vpop.xlane.xlu0 %2603 }
0x159d   :  { %vm2605_vm11 = vcmp.ge.f32.partialorder %v2594_v22, %v2604_v51 }
0x159e   :  { %v2606_v2 = vsel %vm2605_vm11, %v2594_v22, 0.0 }
0x159f   :  { %6097 = vmatmul.mubr.msk.f32.vlgmr.msra.gmra.mrb[10].mxu1 %vm581_vm10, %v2606_v2 }
0x15a0   :  { %v2007_v12 = vpop.permute.xlu0 %2006  ;;  %6263 = vmatpush3.bf16.msra.mxu1 %v9515_v40  ;;  %6118 = vmatprep.mubr.msk.f32.mxu1 %vm6672_vm0, %v9508_v7  ;;  %v9524_v40 = vld [vmem:[#allocation49_spill] sm:$0xff]  ;;  %v2895_v7 = vmul.f32 %v9526_v19, %v9525_v54 }
0x15a1   :  { %v2009_v48 = vmul.f32 %v9516_v9, %v2007_v12  ;;  %6264 = vmatprep.subr.bf16.mxu1 %v9509_v44 }
0x15a3   :  { %2011 = vrot.lane.b32.xlu1 %v2009_v48, %s6675_s27 }
0x15a4   :  { %6266 = vmatpush3.bf16.msra.mxu1 %v9517_v63  ;;  %v2135_v63 = vrot.slane %v2124_v62, %v6903_v21 }
0x15a5   :  { %6267 = vmatprep.subr.bf16.mxu1 %v9509_v44 }
0x15a7   :  { %2076 = vbcast.lane.b32.xlu1 %v2074_v57, 256 }
0x15ab   :  { %2080 = vbcast.lane.b32.xlu1 %v2074_v57, 264 }
0x15af   :  { %2099 = vbcast.lane.b32.xlu1 %v2093_v39, 264 }
0x1615   :  { %v2012_v22 = vpop.permute.xlu1 %2011 }
0x1616   :  { %v7803_v56 = vadd.f32 %v2012_v22, %v2005_v11 }
0x1618   :  { %9519 = vst [vmem:[#allocation53_spill] sm:$0xff] %v7803_v56  ;;  %v2153_v28 = vrot.slane %v7803_v56, %v6903_v21  ;;  %v2172_v20 = vrot.slane %v7803_v56, %v9514_v4  ;;  %v2139_v56 = vrot.slane %v2131_v8, %v6903_v21  ;;  %v7841_v8 = vmul.f32 %v9527_v26, %v9481_v34 }
0x161a   :  { %2159 = vbcast.lane.b32.xlu1 %v2153_v28, 264  ;;  %2155 = vbcast.lane.b32.xlu0 %v2153_v28, 256 }
0x161e   :  { %2178 = vbcast.lane.b32.xlu1 %v2172_v20, 264  ;;  %2174 = vbcast.lane.b32.xlu0 %v2172_v20, 256 }
0x1622   :  { %2103 = vbcast.lane.b32.xlu1 %v2093_v39, 272  ;;  %2084 = vbcast.lane.b32.xlu0 %v2074_v57, 272 }
0x1626   :  { %2182 = vbcast.lane.b32.xlu1 %v2172_v20, 272  ;;  %2163 = vbcast.lane.b32.xlu0 %v2153_v28, 272 }
0x162a   :  { %2025 = vbcast.lane.b32.xlu1 %v2018_v55, 328  ;;  %2021 = vbcast.lane.b32.xlu0 %v2018_v55, 320 }
0x162e   :  { %2045 = vbcast.lane.b32.xlu1 %v2038_v6, 328  ;;  %2041 = vbcast.lane.b32.xlu0 %v2038_v6, 320 }
0x1632   :  { %2107 = vbcast.lane.b32.xlu1 %v2093_v39, 280  ;;  %2088 = vbcast.lane.b32.xlu0 %v2074_v57, 280  ;;  %v9521_v39 = vld [vmem:[#allocation47_spill] sm:$0xff]  ;;  %v2077_v57 = vpop.permute.xlu1 %2076 }
0x1633   :  { %v7818_v48 = vadd.f32 %v9521_v39, %v7783_v60 }
0x1635   :  { %9522 = vst [vmem:[#allocation45_spill] sm:$0xff] %v7818_v48  ;;  %v3047_v11 = vsel %vm304_vm3, %v7818_v48, 0.0 }
0x1636   :  { %2186 = vbcast.lane.b32.xlu1 %v2172_v20, 280  ;;  %2167 = vbcast.lane.b32.xlu0 %v2153_v28, 280  ;;  %v2081_v22 = vpop.permute.xlu1 %2080  ;;  %v2096_v28 = vpop.permute.xlu0 %2095 }
0x1637   :  { %v2143_v49 = vmul.f32 %v2135_v63, %v2081_v22  ;;  %v2146_v19 = vmul.f32 %v2139_v56, %v2096_v28 }
0x163a   :  { %2049 = vbcast.lane.b32.xlu1 %v2038_v6, 336  ;;  %2029 = vbcast.lane.b32.xlu0 %v2018_v55, 336  ;;  %v2100_v20 = vpop.permute.xlu1 %2099 }
0x163b   :  { %v2147_v35 = vmul.f32 %v2139_v56, %v2100_v20 }
0x163e   :  { %2053 = vbcast.lane.b32.xlu1 %v2038_v6, 344  ;;  %2033 = vbcast.lane.b32.xlu0 %v2018_v55, 344 }
0x1672   :  { %v2676_v43 = vpop.f32.mrb[10].mxu1 }
0x1673   :  { %v2677_v51 = vadd.f32 %v9520_v32, %v2676_v43  ;;  %v6098_v2 = vpop.f32.mrb[11].mxu1 }
0x1675   :  { %v2906_v12 = vrot.slane %v2677_v51, %v6903_v21  ;;  %v2925_v9 = vrot.slane %v2677_v51, %v9514_v4 }
0x1677   :  { %2912 = vbcast.lane.b32.xlu1 %v2906_v12, 264  ;;  %2908 = vbcast.lane.b32.xlu0 %v2906_v12, 256 }
0x167b   :  { %2931 = vbcast.lane.b32.xlu1 %v2925_v9, 264  ;;  %2927 = vbcast.lane.b32.xlu0 %v2925_v9, 256 }
0x167f   :  { %2935 = vbcast.lane.b32.xlu1 %v2925_v9, 272  ;;  %2916 = vbcast.lane.b32.xlu0 %v2906_v12, 272 }
0x1683   :  { %2939 = vbcast.lane.b32.xlu1 %v2925_v9, 280  ;;  %2920 = vbcast.lane.b32.xlu0 %v2906_v12, 280 }
0x168c   :  { %v2160_v55 = vpop.permute.xlu1 %2159  ;;  %v2156_v6 = vpop.permute.xlu0 %2155 }
0x168d   :  { %v2189_v4 = vmul.f32 %v2160_v55, %v9524_v40  ;;  %v2188_v5 = vmul.f32 %v2156_v6, %v9524_v40  ;;  %v3083_v55 = vrot.slane %v3075_v29, %v6898_v15  ;;  %v2142_v6 = vmul.f32 %v2135_v63, %v2077_v57 }
0x168f   :  { %v2197_v34 = vsub.f32 %v2143_v49, %v2189_v4  ;;  %v2196_v14 = vsub.f32 %v2142_v6, %v2188_v5  ;;  %v7856_v20 = vrot.slane %v3083_v55, %v6903_v21 }
0x1690   :  { %v2179_v43 = vpop.permute.xlu1 %2178  ;;  %v2175_v32 = vpop.permute.xlu0 %2174 }
0x1691   :  { %v2193_v10 = vmul.f32 %v2179_v43, %v9529_v24  ;;  %v2192_v0 = vmul.f32 %v2175_v32, %v9529_v24  ;;  %9530 = vst [vmem:[#allocation35_spill] sm:$0xff] %v7856_v20  ;;  %v3090_v32 = vrot.slane %v3076_v16, %v6898_v15 }
0x1693   :  { %v2201_v41 = vsub.f32 %v2147_v35, %v2193_v10  ;;  %v2200_v49 = vsub.f32 %v2146_v19, %v2192_v0 }
0x1694   :  { %v2104_v51 = vpop.permute.xlu1 %2103  ;;  %v2085_v2 = vpop.permute.xlu0 %2084 }
0x1695   :  { %v2148_v45 = vmul.f32 %v2139_v56, %v2104_v51  ;;  %v2144_v43 = vmul.f32 %v2135_v63, %v2085_v2 }
0x1698   :  { %v2183_v9 = vpop.permute.xlu1 %2182  ;;  %v2164_v12 = vpop.permute.xlu0 %2163 }
0x1699   :  { %v2194_v26 = vmul.f32 %v2183_v9, %v9529_v24  ;;  %v2190_v48 = vmul.f32 %v2164_v12, %v9524_v40 }
0x169b   :  { %v2202_v5 = vsub.f32 %v2148_v45, %v2194_v26  ;;  %v2198_v12 = vsub.f32 %v2144_v43, %v2190_v48 }
0x169c   :  { %v2026_v47 = vpop.permute.xlu1 %2025  ;;  %v2022_v59 = vpop.permute.xlu0 %2021 }
0x169d   :  { %v2056_v62 = vsub.f32 1.0, %v2026_v47  ;;  %v2055_v37 = vsub.f32 1.0, %v2022_v59  ;;  %v2205_v4 = vmul.f32 %v2197_v34, %v2026_v47  ;;  %v2204_v9 = vmul.f32 %v2196_v14, %v2022_v59 }
0x169f   :  { %v2064_v54 = vmul.f32 %v2056_v62, %v7623_v52  ;;  %v2063_v57 = vmul.f32 %v2055_v37, %v7621_v36 }
0x16a0   :  { %v2046_v60 = vpop.permute.xlu1 %2045  ;;  %v2042_v39 = vpop.permute.xlu0 %2041 }
0x16a1   :  { %v2060_v50 = vsub.f32 1.0, %v2046_v60  ;;  %v2059_v22 = vsub.f32 1.0, %v2042_v39  ;;  %v7862_v10 = vadd.f32 %v2205_v4, %v2064_v54  ;;  %v7864_v37 = vadd.f32 %v2204_v9, %v2063_v57 }
0x16a2   :  { %3048 = vadd.xlane.f32.xlu0 %v3047_v11  ;;  %v2209_v2 = vmul.f32 %v2201_v41, %v2046_v60  ;;  %v2208_v55 = vmul.f32 %v2200_v49, %v2042_v39 }
0x16a3   :  { %v2068_v51 = vmul.f32 %v2060_v50, %v7637_v23  ;;  %v2067_v36 = vmul.f32 %v2059_v22, %v7631_v25 }
0x16a4   :  { %v2108_v61 = vpop.permute.xlu1 %2107  ;;  %v2089_v11 = vpop.permute.xlu0 %2088 }
0x16a5   :  { %v2149_v47 = vmul.f32 %v2139_v56, %v2108_v61  ;;  %v2145_v14 = vmul.f32 %v2135_v63, %v2089_v11  ;;  %v7871_v54 = vadd.f32 %v2209_v2, %v2068_v51 }
0x16a8   :  { %v2187_v58 = vpop.permute.xlu1 %2186  ;;  %v2168_v27 = vpop.permute.xlu0 %2167 }
0x16a9   :  { %v2195_v35 = vmul.f32 %v2187_v58, %v9529_v24  ;;  %v2191_v6 = vmul.f32 %v2168_v27, %v9524_v40  ;;  %v7877_v40 = vadd.f32 %v2208_v55, %v2067_v36 }
0x16ab   :  { %v2203_v41 = vsub.f32 %v2149_v47, %v2195_v35  ;;  %v2199_v61 = vsub.f32 %v2145_v14, %v2191_v6  ;;  %v9534_v35 = vclamps-f32 %v7703_v3, 5.0 }
0x16ac   :  { %v2050_v42 = vpop.permute.xlu1 %2049  ;;  %v2030_v44 = vpop.permute.xlu0 %2029 }
0x16ad   :  { %v2061_v52 = vsub.f32 1.0, %v2050_v42  ;;  %v2057_v62 = vsub.f32 1.0, %v2030_v44  ;;  %v2210_v63 = vmul.f32 %v2202_v5, %v2050_v42  ;;  %v2206_v56 = vmul.f32 %v2198_v12, %v2030_v44 }
0x16ae   :  { %v7908_v5 = vrot.slane %v3090_v32, %v6903_v21  ;;  %v2902_v2 = vmul.f32 %v9534_v35, %v7117_v30 }
0x16af   :  { %v2069_v25 = vmul.f32 %v2061_v52, %v7647_v33  ;;  %v2065_v58 = vmul.f32 %v2057_v62, %v7645_v46 }
0x16b0   :  { %v2054_v29 = vpop.permute.xlu1 %2053  ;;  %v2034_v28 = vpop.permute.xlu0 %2033  ;;  %9533 = vst [vmem:[#allocation55_spill] sm:$0xff] %v7908_v5 }
0x16b1   :  { %v2062_v16 = vsub.f32 1.0, %v2054_v29  ;;  %v2058_v24 = vsub.f32 1.0, %v2034_v28  ;;  %v2211_v26 = vmul.f32 %v2203_v41, %v2054_v29  ;;  %v7885_v50 = vadd.f32 %v2210_v63, %v2069_v25 }
0x16b2   :  { %v7887_v45 = vadd.f32 %v2206_v56, %v2065_v58  ;;  %v2207_v22 = vmul.f32 %v2199_v61, %v2034_v28 }
0x16b3   :  { %v2070_v39 = vmul.f32 %v2062_v16, %v7681_v13 }
0x16b5   :  { %v7913_v28 = vadd.f32 %v2211_v26, %v2070_v39 }
0x16e9   :  { %v2913_v34 = vpop.permute.xlu1 %2912  ;;  %v2909_v59 = vpop.permute.xlu0 %2908 }
0x16ea   :  { %v2942_v23 = vmul.f32 %v2913_v34, %v7862_v10  ;;  %v2941_v48 = vmul.f32 %v2909_v59, %v7864_v37  ;;  %v9535_v59 = vld [vmem:[#allocation51_spill] sm:$0xff] }
0x16eb   :  { %v9536_v47 = vclamps-f32 %v9535_v59, 5.0 }
0x16ec   :  { %v7873_v60 = vadd.f32 %v2942_v23, %v2896_v18  ;;  %v7875_v27 = vadd.f32 %v2941_v48, %v2895_v7  ;;  %v2066_v7 = vmul.f32 %v2058_v24, %v7672_v1  ;;  %v9531_v1 = vclamps-f32 %v7679_v38, 5.0 }
0x16ed   :  { %v2932_v11 = vpop.permute.xlu1 %2931  ;;  %v2928_v19 = vpop.permute.xlu0 %2927  ;;  %v2898_v14 = vmul.f32 %v9536_v47, %v7117_v30 }
0x16ee   :  { %v9282_v33 = vclamps-f32 %v7873_v60, 5.0  ;;  %v9283_v46 = vclamps-f32 %v7875_v27, 5.0  ;;  %v2946_v0 = vmul.f32 %v2932_v11, %v7871_v54  ;;  %v2945_v18 = vmul.f32 %v2928_v19, %v7877_v40 }
0x16ef   :  { %v2901_v43 = vmul.f32 %v9531_v1, %v7119_v31 }
0x16f0   :  { %v7890_v44 = vadd.f32 %v2946_v0, %v7841_v8  ;;  %v7893_v13 = vadd.f32 %v2945_v18, %v7846_v53  ;;  %v3102_v42 = vmul.f32 %v9282_v33, %v7856_v20  ;;  %v3101_v57 = vmul.f32 %v9283_v46, %v7856_v20 }
0x16f1   :  { %v2936_v29 = vpop.permute.xlu1 %2935  ;;  %v9532_v8 = vclamps-f32 %v7677_v17, 5.0  ;;  %v2917_v53 = vpop.permute.xlu0 %2916  ;;  %v7918_v17 = vadd.f32 %v2207_v22, %v2066_v7  ;;  %v9539_v22 = vld [vmem:[#allocation45_spill] sm:$0xff] }
0x16f2   :  { %v9281_v4 = vclamps-f32 %v7893_v13, 5.0  ;;  %v2947_v9 = vmul.f32 %v2936_v29, %v7885_v50  ;;  %v2943_v12 = vmul.f32 %v2917_v53, %v7887_v45  ;;  %v9280_v38 = vclamps-f32 %v7890_v44, 5.0 }
0x16f3   :  { %v2897_v49 = vmul.f32 %v9532_v8, %v7119_v31  ;;  %v3112_v51 = vsel %vm142_vm2, %v3102_v42, 0.0  ;;  %v3109_v52 = vsel %vm142_vm2, %v3101_v57, 0.0 }
0x16f4   :  { %v7920_v62 = vadd.f32 %v2947_v9, %v2901_v43  ;;  %3113 = vadd.xlane.f32.xlu0 %v3112_v51  ;;  %3110 = vadd.xlane.f32.xlu1 %v3109_v52  ;;  %v3105_v36 = vmul.f32 %v9281_v4, %v7908_v5  ;;  %v3106_v3 = vmul.f32 %v9280_v38, %v7908_v5 }
0x16f5   :  { %v7922_v32 = vadd.f32 %v2943_v12, %v2897_v49  ;;  %v2940_v55 = vpop.permute.xlu1 %2939  ;;  %v2921_v6 = vpop.permute.xlu0 %2920 }
0x16f6   :  { %v2948_v34 = vmul.f32 %v2940_v55, %v7913_v28  ;;  %v2944_v23 = vmul.f32 %v2921_v6, %v7918_v17  ;;  %v9278_v48 = vclamps-f32 %v7920_v62, 5.0  ;;  %v3121_v25 = vsel %vm142_vm2, %v3105_v36, 0.0  ;;  %v9540_v36 = vld [vmem:[#allocation30_spill] sm:$0xff] }
0x16f7   :  { %v9279_v16 = vclamps-f32 %v7922_v32, 5.0  ;;  %v3124_v39 = vsel %vm142_vm2, %v3106_v3, 0.0 }
0x16f8   :  { %v7941_v58 = vadd.f32 %v2948_v34, %v2902_v2  ;;  %v7943_v24 = vadd.f32 %v2944_v23, %v2898_v14  ;;  %3122 = vadd.xlane.f32.xlu0 %v3121_v25  ;;  %v3107_v11 = vmul.f32 %v9278_v48, %v7908_v5  ;;  %v9541_v2 = vld [vmem:[#allocation29_spill] sm:$0xff]  ;;  %v9542_v34 = vld [vmem:[#allocation31_spill] sm:$0xff]  ;;  %v9543_v23 = vld [vmem:[#allocation32_spill] sm:$0xff] }
0x16f9   :  { %v3103_v41 = vmul.f32 %v9279_v16, %v7856_v20 }
0x16fa   :  { %9537 = vst [vmem:[#allocation54_spill] sm:$0xff] %v7941_v58  ;;  %9538 = vst [vmem:[#allocation46_spill] sm:$0xff] %v7943_v24  ;;  %v9277_v61 = vclamps-f32 %v7943_v24, 5.0  ;;  %v9276_v56 = vclamps-f32 %v7941_v58, 5.0  ;;  %v3127_v18 = vsel %vm142_vm2, %v3107_v11, 0.0 }
0x16fb   :  { %v3115_v63 = vsel %vm142_vm2, %v3103_v41, 0.0 }
0x16fc   :  { %3116 = vadd.xlane.f32.xlu1 %v3115_v63  ;;  %3125 = vadd.xlane.f32.xlu0 %v3124_v39  ;;  %v3104_v19 = vmul.f32 %v9277_v61, %v7856_v20  ;;  %v3108_v26 = vmul.f32 %v9276_v56, %v7908_v5 }
0x16fe   :  { %v3118_v0 = vsel %vm142_vm2, %v3104_v19, 0.0  ;;  %v3130_v7 = vsel %vm142_vm2, %v3108_v26, 0.0 }
0x1700   :  { %3119 = vadd.xlane.f32.xlu1 %v3118_v0  ;;  %3128 = vadd.xlane.f32.xlu0 %v3127_v18 }
0x1704   :  { %3131 = vadd.xlane.f32.xlu0 %v3130_v7  ;;  %v7984_v7 = vld [vmem:[%s9139_s10] ss:$0 sm:$0xff] }
0x1705   :  { %9544 = vst [vmem:[#allocation44_spill] sm:$0xff] %v7984_v7 }
0x172f   :  { %v3049_v42 = vpop.xlane.xlu0 %3048 }
0x1730   :  { %v3050_v57 = vmul.f32 0.0078125, %v3049_v42 }
0x1732   :  { %v3051_v1 = vsub.f32 %v9539_v22, %v3050_v57 }
0x1734   :  { %v3052_v43 = vmul.f32 %v3051_v1, %v3051_v1 }
0x1736   :  { %v3053_v29 = vsel %vm304_vm3, %v3052_v43, 0.0 }
0x1737   :  { %3054 = vadd.xlane.f32.xlu1 %v3053_v29 }
0x1781   :  { %v3114_v8 = vpop.xlane.xlu0 %3113  ;;  %v3111_v49 = vpop.xlane.xlu1 %3110 }
0x1782   :  { %v3144_v35 = vrot.slane %v3111_v49, %v9540_v36  ;;  %v3148_v55 = vrot.slane %v3114_v8, %v9541_v2  ;;  %v7991_v49 = vld [vmem:[%s9137_s8] ss:$0 sm:$0xff] }
0x1783   :  { %9545 = vst [vmem:[#allocation47_spill] sm:$0xff] %v7991_v49 }
0x1784   :  { %v3149_v41 = vsel %vm429_vm4, %v3148_v55, %v3144_v35 }
0x1785   :  { %v3123_v53 = vpop.xlane.xlu0 %3122 }
0x1786   :  { %v3163_v14 = vrot.slane %v3123_v53, %v9540_v36 }
0x1789   :  { %v3117_v9 = vpop.xlane.xlu1 %3116  ;;  %v3126_v12 = vpop.xlane.xlu0 %3125 }
0x178a   :  { %v3167_v6 = vrot.slane %v3126_v12, %v9541_v2  ;;  %v3153_v59 = vrot.slane %v3117_v9, %v9542_v34  ;;  %v7997_v9 = vld [vmem:[%s9138_s9] ss:$0 sm:$0xff] }
0x178b   :  { %9546 = vst [vmem:[#allocation49_spill] sm:$0xff] %v7997_v9 }
0x178c   :  { %v3168_v63 = vsel %vm429_vm4, %v3167_v6, %v3163_v14  ;;  %v3154_v11 = vsel %vm436_vm5, %v3153_v59, %v3149_v41 }
0x178d   :  { %v3120_v51 = vpop.xlane.xlu1 %3119  ;;  %v3129_v52 = vpop.xlane.xlu0 %3128 }
0x178e   :  { %v3172_v47 = vrot.slane %v3129_v52, %v9542_v34  ;;  %v3158_v25 = vrot.slane %v3120_v51, %v9543_v23  ;;  %v5843_v51 = vld [vmem:[%s9418_s30 + $0x8] sm:$0x3] }
0x1790   :  { %v3173_v19 = vsel %vm436_vm5, %v3172_v47, %v3168_v63  ;;  %v3159_v0 = vsel %vm443_vm6, %v3158_v25, %v3154_v11 }
0x1791   :  { %v3132_v3 = vpop.xlane.xlu0 %3131 }
0x1792   :  { %v3177_v39 = vrot.slane %v3132_v3, %v9543_v23  ;;  %v9548_v3 = vld [vmem:[#allocation56_spill] sm:$0xff] }
0x1794   :  { %v3178_v18 = vsel %vm443_vm6, %v3177_v39, %v3173_v19  ;;  %v9551_v19 = vld [vmem:[#allocation27_spill] sm:$0xff] }
0x1795   :  { %v3179_v26 = vsel %vm464_vm7, %v3178_v18, %v3159_v0  ;;  %v9552_v0 = vmov 0.0   ;;  %v9553_v18 = vmov 0.0|0.0  }
0x1796   :  { %v3181_v42 = vmul.f32 %v7984_v7, %v3179_v26  ;;  %v9554_v26 = vld [vmem:[#allocation28_spill] sm:$0xff] }
0x1798   :  { %3183 = vrot.lane.b32.xlu0 %v3181_v42, %s6675_s27  ;;  %v9555_v42 = vld [vmem:[#allocation52_spill] sm:$0xff] }
0x17c4   :  { %v3055_v57 = vpop.xlane.xlu1 %3054 }
0x17c5   :  { %v3056_v22 = vmul.f32 0.0078125, %v3055_v57 }
0x17c7   :  { %v3057_v43 = vadd.f32 1e-05, %v3056_v22  ;;  %v8034_v22 = vld [vmem:[%s9142_s13] ss:$0 sm:$0xff] }
0x17c8   :  { %9556 = vst [vmem:[#allocation56_spill] sm:$0xff] %v8034_v22 }
0x17c9   :  { %6356 = vrsqrt.f32 %v3057_v43 }
0x17d3   :  { %v6357_v29 = vpop.eup %6356 }
0x17d4   :  { %v3059_v8 = vmul.f32 %v6357_v29, %v3051_v1 }
0x17d6   :  { %v3060_v53 = vmul.f32 %v7991_v49, %v3059_v8 }
0x17d8   :  { %v3061_v12 = vadd.f32 %v7997_v9, %v3060_v53  ;;  %v9570_v9 = vld [vmem:[#allocation38_spill] sm:$0xff] }
0x17da   :  { %v3062_v52 = vadd.f32 %v5843_v51, %v3061_v12 }
0x17dc   :  { %v5845_v55 = vmul.f32 -1.442695, %v3062_v52 }
0x17de   :  { %6358 = vpow2.f32 %v5845_v55 }
0x17e8   :  { %v6359_v6 = vpop.eup %6358 }
0x17e9   :  { %v3066_v59 = vadd.f32 1.0, %v6359_v6  ;;  %v9558_v6 = vld [vmem:[#allocation36_spill] sm:$0xff] }
0x17eb   :  { %6360 = vrcp.f32 %v3066_v59 }
0x17f5   :  { %v8004_v47 = vpop.eup %6360 }
0x17f6   :  { %9547 = vst [vmem:[#allocation50_spill] sm:$0xff] %v8004_v47  ;;  %v3187_v41 = vmul.f32 %v8004_v47, %v9548_v3 }
0x180a   :  { %v3184_v1 = vpop.permute.xlu0 %3183 }
0x180b   :  { %v3186_v35 = vadd.f32 %v3184_v1, %v3062_v52 }
0x180d   :  { %3189 = vrot.lane.b32.xlu1 %v3186_v35, %s6676_s28  ;;  %v9557_v35 = vld [vmem:[#allocation48_spill] sm:$0xff] }
0x180e   :  { %v2749_v55 = vrot.slane %v9557_v35, %v6903_v21  ;;  %v2768_v59 = vrot.slane %v9557_v35, %v9558_v6 }
0x187f   :  { %v3190_v14 = vpop.permute.xlu1 %3189 }
0x1880   :  { %v3192_v25 = vmul.f32 %v8004_v47, %v3190_v14 }
0x1882   :  { %3194 = vrot.lane.b32.xlu1 %v3192_v25, %s6675_s27 }
0x18f4   :  { %v3195_v63 = vpop.permute.xlu1 %3194 }
0x18f5   :  { %v8010_v39 = vadd.f32 %v3195_v63, %v3187_v41  ;;  %v9559_v41 = vld [vmem:[#allocation33_spill] sm:$0xff]  ;;  %v9560_v63 = vld [vmem:[#allocation43_spill] sm:$0xff] }
0x18f7   :  { %9549 = vst [vmem:[#allocation51_spill] sm:$0xff] %v8010_v39  ;;  %6362 = vtanh.f32 %v8010_v39 }
0x1901   :  { %v8013_v11 = vpop.eup %6362 }
0x1902   :  { %9550 = vst [vmem:[#allocation45_spill] sm:$0xff] %v8013_v11  ;;  %3649 = vst.msk [vmem:[#allocation18 + $0x8] sm:$0x3] %vm130_vm1, %v8013_v11  ;;  %6119 = vmatmul.mubr.msk.f32.vlgmr.msra.gmra.mrb[12].mxu1 %vm142_vm2, %v8013_v11 }
0x1903   :  { %6269 = vmatpush3.bf16.msra.mxu1 %v9551_v19  ;;  %6134 = vmatprep.mubr.msk.f32.mxu1 %vm6672_vm0, %v9552_v0  ;;  %v9569_v19 = vclamps-f32 %v7875_v27, 5.0 }
0x1904   :  { %6270 = vmatprep.subr.bf16.mxu1 %v9553_v18 }
0x1907   :  { %6272 = vmatpush3.bf16.msra.mxu1 %v9554_v26 }
0x1908   :  { %6148 = vmatprep.subr.mxu1 %v9552_v0 }
0x190a   :  { %6135 = vmatmul.mubr.msk.f32.vlgmr.msra.gmra.mrb[14].mxu1 %vm142_vm2, %v8013_v11 }
0x190b   :  { %6149 = vmatpush3.msra.mxu1 %v9555_v42  ;;  %6150 = vmatprep.mubr.msk.f32.mxu1 %vm6672_vm0, %v9552_v0 }
0x190c   :  { %6285 = vmatprep.subr.bf16.mxu1 %v9553_v18 }
0x19d5   :  { %v3268_v57 = vpop.f32.mrb[12].mxu1 }
0x19d6   :  { %v3269_v43 = vadd.f32 %v8034_v22, %v3268_v57  ;;  %v6120_v29 = vpop.f32.mrb[13].mxu1  ;;  %v9561_v57 = vld [vmem:[#allocation34_spill] sm:$0xff] }
0x19d8   :  { %v3272_v8 = vsel %vm564_vm8, %v3269_v43, -inf }
0x19d9   :  { %3273 = vmax.xlane.f32.xlu1 %v3272_v8 }
0x19dd   :  { %v8038_v53 = vpop.f32.mrb[14].mxu1 }
0x19de   :  { %v6136_v12 = vpop.f32.mrb[15].mxu1 }
0x1a66   :  { %v3274_v51 = vpop.xlane.xlu1 %3273 }
0x1a67   :  { %vm3275_vm12 = vcmp.ge.f32.partialorder %v3269_v43, %v3274_v51 }
0x1a68   :  { %v3276_v52 = vsel %vm3275_vm12, -inf, %v3269_v43 }
0x1a69   :  { %v3277_v1 = vsel %vm564_vm8, %v3276_v52, -inf }
0x1a6a   :  { %3278 = vmax.xlane.f32.xlu0 %v3277_v1  ;;  %v2693_v1 = vrot.slane %v9560_v63, %v6903_v21 }
0x1a80   :  { %2681 = vrot.lane.b32.xlu0 %v9557_v35, %s6677_s26  ;;  %v2713_v35 = vrot.slane %v9560_v63, %v9558_v6 }
0x1a84   :  { %2755 = vbcast.lane.b32.xlu0 %v2749_v55, 264 }
0x1a88   :  { %2774 = vbcast.lane.b32.xlu0 %v2768_v59, 264 }
0x1af7   :  { %v3279_v14 = vpop.xlane.xlu0 %3278 }
0x1af8   :  { %vm3280_vm13 = vcmp.ge.f32.partialorder %v3269_v43, %v3279_v14 }
0x1af9   :  { %v3281_v25 = vsel %vm3280_vm13, %v3269_v43, 0.0  ;;  %v9562_v43 = vld [vmem:[#allocation53_spill] sm:$0xff] }
0x1afa   :  { %6124 = vmatmul.mubr.msk.f32.vlgmr.msra.gmra.mrb[14].mxu0 %vm581_vm10, %v3281_v25  ;;  %v2680_v29 = vmul.f32 %v9560_v63, %v9562_v43  ;;  %v8071_v25 = vld [vmem:[%s9144_s15] ss:$0 sm:$0xff]  ;;  %v2791_v33 = vrot.slane %v9562_v43, %v6898_v15 }
0x1afb   :  { %v2682_v3 = vpop.permute.xlu0 %2681  ;;  %6275 = vmatpush3.bf16.msra.mxu0 %v9559_v41  ;;  %6145 = vmatprep.mubr.msk.f32.mxu0 %vm6672_vm0, %v9552_v0  ;;  %9564 = vst [vmem:[#allocation48_spill] sm:$0xff] %v8071_v25  ;;  %v9568_v0 = vld [vmem:[#allocation37_spill] sm:$0xff] }
0x1afc   :  { %v2684_v42 = vmul.f32 %v9560_v63, %v2682_v3  ;;  %6276 = vmatprep.subr.bf16.mxu0 %v9553_v18 }
0x1afe   :  { %2686 = vrot.lane.b32.xlu1 %v2684_v42, %s6675_s27 }
0x1aff   :  { %6278 = vmatpush3.bf16.msra.mxu0 %v9561_v57  ;;  %v8090_v57 = vrot.slane %v8013_v11, %v6898_v15  ;;  %v9571_v11 = vclamps-f32 %v7873_v60, 5.0  ;;  %v9574_v60 = vclamps-f32 %v7890_v44, 5.0 }
0x1b00   :  { %6279 = vmatprep.subr.bf16.mxu0 %v9553_v18 }
0x1b01   :  { %v3571_v49 = vmul.f32 %v9571_v11, %v9570_v9  ;;  %v3758_v34 = vrot.slane %v8090_v57, %v6898_v15  ;;  %v3575_v11 = vmul.f32 %v9574_v60, %v9570_v9  ;;  %v3751_v44 = vcombine.high %v8090_v57, %v8090_v57 }
0x1b02   :  { %2751 = vbcast.lane.b32.xlu1 %v2749_v55, 256 }
0x1b03   :  { %v8119_v24 = vrot.slane %v3758_v34, %v6903_v21 }
0x1b06   :  { %2770 = vbcast.lane.b32.xlu1 %v2768_v59, 256 }
0x1b70   :  { %v2687_v8 = vpop.permute.xlu1 %2686 }
0x1b71   :  { %v8058_v12 = vadd.f32 %v2687_v8, %v2680_v29  ;;  %v2756_v8 = vpop.permute.xlu0 %2755 }
0x1b73   :  { %9563 = vst [vmem:[#allocation52_spill] sm:$0xff] %v8058_v12  ;;  %v2828_v51 = vrot.slane %v8058_v12, %v6903_v21  ;;  %v2847_v52 = vrot.slane %v8058_v12, %v9558_v6 }
0x1b75   :  { %2834 = vbcast.lane.b32.xlu0 %v2828_v51, 264  ;;  %2830 = vbcast.lane.b32.xlu1 %v2828_v51, 256 }
0x1b79   :  { %2853 = vbcast.lane.b32.xlu0 %v2847_v52, 264  ;;  %2849 = vbcast.lane.b32.xlu1 %v2847_v52, 256 }
0x1b7d   :  { %2778 = vbcast.lane.b32.xlu0 %v2768_v59, 272  ;;  %2759 = vbcast.lane.b32.xlu1 %v2749_v55, 272 }
0x1b81   :  { %2857 = vbcast.lane.b32.xlu0 %v2847_v52, 272  ;;  %2838 = vbcast.lane.b32.xlu1 %v2828_v51, 272 }
0x1b85   :  { %2700 = vbcast.lane.b32.xlu0 %v2693_v1, 328  ;;  %2696 = vbcast.lane.b32.xlu1 %v2693_v1, 320 }
0x1b89   :  { %2720 = vbcast.lane.b32.xlu0 %v2713_v35, 328  ;;  %2716 = vbcast.lane.b32.xlu1 %v2713_v35, 320 }
0x1b8d   :  { %2782 = vbcast.lane.b32.xlu0 %v2768_v59, 280  ;;  %2763 = vbcast.lane.b32.xlu1 %v2749_v55, 280  ;;  %v8076_v59 = vld [vmem:[#allocation10] ss:$0 sm:$0xff] }
0x1b8e   :  { %9565 = vst [vmem:[#allocation43_spill] sm:$0xff] %v8076_v59  ;;  %v8080_v29 = vadd.f32 %v8076_v59, %v8038_v53 }
0x1b90   :  { %9566 = vst [vmem:[#allocation53_spill] sm:$0xff] %v8080_v29 }
0x1b91   :  { %2861 = vbcast.lane.b32.xlu0 %v2847_v52, 280  ;;  %2842 = vbcast.lane.b32.xlu1 %v2828_v51, 280  ;;  %v2752_v51 = vpop.permute.xlu1 %2751  ;;  %v3722_v52 = vsel %vm304_vm3, %v8080_v29, 0.0 }
0x1b95   :  { %2724 = vbcast.lane.b32.xlu0 %v2713_v35, 336  ;;  %2704 = vbcast.lane.b32.xlu1 %v2693_v1, 336 }
0x1b99   :  { %2728 = vbcast.lane.b32.xlu0 %v2713_v35, 344  ;;  %2708 = vbcast.lane.b32.xlu1 %v2693_v1, 344  ;;  %v2775_v1 = vpop.permute.xlu0 %2774  ;;  %v2771_v35 = vpop.permute.xlu1 %2770 }
0x1bcd   :  { %v3351_v14 = vpop.f32.mrb[14].mxu0 }
0x1bce   :  { %v3352_v3 = vadd.f32 %v8071_v25, %v3351_v14  ;;  %v6125_v42 = vpop.f32.mrb[15].mxu0  ;;  %v2799_v25 = vrot.slane %v2791_v33, %v6898_v15 }
0x1bd0   :  { %v3581_v63 = vrot.slane %v3352_v3, %v6903_v21  ;;  %v3600_v55 = vrot.slane %v3352_v3, %v9558_v6  ;;  %v2810_v47 = vrot.slane %v2799_v25, %v6903_v21  ;;  %v9567_v6 = vld [vmem:[#allocation41_spill] sm:$0xff]  ;;  %v9572_v25 = vclamps-f32 %v7893_v13, 5.0 }
0x1bd1   :  { %9575 = vst [vmem:[#allocation41_spill] sm:$0xff] %v8119_v24 }
0x1bd2   :  { %3587 = vbcast.lane.b32.xlu0 %v3581_v63, 264  ;;  %3583 = vbcast.lane.b32.xlu1 %v3581_v63, 256  ;;  %v2817_v7 = vmul.f32 %v2810_v47, %v2752_v51 }
0x1bd6   :  { %3606 = vbcast.lane.b32.xlu0 %v3600_v55, 264  ;;  %3602 = vbcast.lane.b32.xlu1 %v3600_v55, 256 }
0x1bda   :  { %3610 = vbcast.lane.b32.xlu0 %v3600_v55, 272  ;;  %3591 = vbcast.lane.b32.xlu1 %v3581_v63, 272 }
0x1bde   :  { %3614 = vbcast.lane.b32.xlu0 %v3600_v55, 280  ;;  %3595 = vbcast.lane.b32.xlu1 %v3581_v63, 280 }
0x1be7   :  { %v2831_v14 = vpop.permute.xlu1 %2830  ;;  %v2835_v3 = vpop.permute.xlu0 %2834 }
0x1be8   :  { %v2863_v22 = vmul.f32 %v2831_v14, %v9567_v6  ;;  %v2864_v43 = vmul.f32 %v2835_v3, %v9567_v6  ;;  %v2818_v14 = vmul.f32 %v2810_v47, %v2756_v8  ;;  %v9573_v3 = vld [vmem:[#allocation42_spill] sm:$0xff] }
0x1bea   :  { %v2871_v36 = vsub.f32 %v2817_v7, %v2863_v22  ;;  %v2872_v29 = vsub.f32 %v2818_v14, %v2864_v43 }
0x1beb   :  { %v2850_v42 = vpop.permute.xlu1 %2849  ;;  %v2854_v56 = vpop.permute.xlu0 %2853 }
0x1bec   :  { %v2867_v23 = vmul.f32 %v2850_v42, %v9573_v3  ;;  %v2868_v2 = vmul.f32 %v2854_v56, %v9573_v3 }
0x1bef   :  { %v2760_v55 = vpop.permute.xlu1 %2759  ;;  %v2779_v63 = vpop.permute.xlu0 %2778 }
0x1bf3   :  { %v2839_v61 = vpop.permute.xlu1 %2838  ;;  %v2858_v48 = vpop.permute.xlu0 %2857 }
0x1bf4   :  { %v2865_v13 = vmul.f32 %v2839_v61, %v9567_v6  ;;  %v2869_v8 = vmul.f32 %v2858_v48, %v9573_v3 }
0x1bf7   :  { %v2697_v16 = vpop.permute.xlu1 %2696  ;;  %v2701_v38 = vpop.permute.xlu0 %2700 }
0x1bf8   :  { %v2730_v39 = vsub.f32 1.0, %v2697_v16  ;;  %v2879_v22 = vmul.f32 %v2871_v36, %v2697_v16  ;;  %v2880_v43 = vmul.f32 %v2872_v29, %v2701_v38 }
0x1bfa   :  { %v2738_v51 = vmul.f32 %v2730_v39, %v7864_v37 }
0x1bfb   :  { %v2717_v53 = vpop.permute.xlu1 %2716  ;;  %v2721_v4 = vpop.permute.xlu0 %2720 }
0x1bff   :  { %v2764_v46 = vpop.permute.xlu1 %2763  ;;  %v2783_v5 = vpop.permute.xlu0 %2782 }
0x1c00   :  { %v2820_v60 = vmul.f32 %v2810_v47, %v2764_v46 }
0x1c02   :  { %3723 = vadd.xlane.f32.xlu1 %v3722_v52  ;;  %v2792_v52 = vcombine.high %v2791_v33, %v2791_v33  ;;  %v3570_v33 = vmul.f32 %v9569_v19, %v9568_v0 }
0x1c03   :  { %v2843_v20 = vpop.permute.xlu1 %2842  ;;  %v2862_v59 = vpop.permute.xlu0 %2861 }
0x1c04   :  { %v2806_v12 = vrot.slane %v2792_v52, %v6898_v15  ;;  %v2731_v52 = vsub.f32 1.0, %v2701_v38  ;;  %v2870_v36 = vmul.f32 %v2862_v59, %v9573_v3  ;;  %v3765_v3 = vrot.slane %v3751_v44, %v6898_v15 }
0x1c06   :  { %v2814_v41 = vrot.slane %v2806_v12, %v6903_v21  ;;  %v8105_v12 = vmul.f32 %v9572_v25, %v9568_v0  ;;  %v2734_v25 = vsub.f32 1.0, %v2717_v53  ;;  %v2739_v42 = vmul.f32 %v2731_v52, %v7862_v10 }
0x1c07   :  { %v2705_v26 = vpop.permute.xlu1 %2704  ;;  %v2725_v18 = vpop.permute.xlu0 %2724  ;;  %v2735_v0 = vsub.f32 1.0, %v2721_v4 }
0x1c08   :  { %v2822_v27 = vmul.f32 %v2814_v41, %v2775_v1  ;;  %v2821_v19 = vmul.f32 %v2814_v41, %v2771_v35  ;;  %v2819_v35 = vmul.f32 %v2810_v47, %v2760_v55  ;;  %v2823_v61 = vmul.f32 %v2814_v41, %v2779_v63 }
0x1c09   :  { %v2742_v37 = vmul.f32 %v2734_v25, %v7877_v40  ;;  %v2732_v39 = vsub.f32 1.0, %v2705_v26  ;;  %v2736_v10 = vsub.f32 1.0, %v2725_v18  ;;  %v8125_v55 = vadd.f32 %v2879_v22, %v2738_v51 }
0x1c0a   :  { %v2875_v1 = vsub.f32 %v2821_v19, %v2867_v23  ;;  %v2876_v7 = vsub.f32 %v2822_v27, %v2868_v2  ;;  %v2873_v48 = vsub.f32 %v2819_v35, %v2865_v13  ;;  %v2877_v52 = vsub.f32 %v2823_v61, %v2869_v8 }
0x1c0b   :  { %v2709_v58 = vpop.permute.xlu1 %2708  ;;  %v2729_v56 = vpop.permute.xlu0 %2728  ;;  %v2743_v23 = vmul.f32 %v2735_v0, %v7871_v54  ;;  %v8127_v14 = vadd.f32 %v2880_v43, %v2739_v42  ;;  %v2866_v2 = vmul.f32 %v2843_v20, %v9567_v6  ;;  %v2824_v38 = vmul.f32 %v2814_v41, %v2783_v5 }
0x1c0c   :  { %v2883_v34 = vmul.f32 %v2875_v1, %v2717_v53  ;;  %v2884_v19 = vmul.f32 %v2876_v7, %v2721_v4  ;;  %v2740_v54 = vmul.f32 %v2732_v39, %v7887_v45  ;;  %v2744_v0 = vmul.f32 %v2736_v10, %v7885_v50 }
0x1c0d   :  { %v2733_v63 = vsub.f32 1.0, %v2709_v58  ;;  %v2737_v4 = vsub.f32 1.0, %v2729_v56  ;;  %v2874_v5 = vsub.f32 %v2820_v60, %v2866_v2  ;;  %v2881_v6 = vmul.f32 %v2873_v48, %v2705_v26 }
0x1c0e   :  { %v8135_v27 = vadd.f32 %v2883_v34, %v2742_v37  ;;  %v8141_v47 = vadd.f32 %v2884_v19, %v2743_v23  ;;  %v2885_v41 = vmul.f32 %v2877_v52, %v2725_v18  ;;  %v2878_v45 = vsub.f32 %v2824_v38, %v2870_v36  ;;  %v9579_v34 = vld [vmem:[#allocation46_spill] sm:$0xff] }
0x1c0f   :  { %v8149_v8 = vadd.f32 %v2881_v6, %v2740_v54  ;;  %v2745_v18 = vmul.f32 %v2737_v4, %v7913_v28  ;;  %v2882_v35 = vmul.f32 %v2874_v5, %v2709_v58  ;;  %v9577_v61 = vclamps-f32 %v7920_v62, 5.0  ;;  %v9581_v36 = vld [vmem:[#allocation54_spill] sm:$0xff] }
0x1c10   :  { %v8151_v51 = vadd.f32 %v2885_v41, %v2744_v0  ;;  %v9580_v19 = vclamps-f32 %v9579_v34, 5.0  ;;  %v9585_v34 = vld [vmem:[#allocation30_spill] sm:$0xff] }
0x1c11   :  { %v3576_v22 = vmul.f32 %v9577_v61, %v7119_v31  ;;  %v9584_v61 = vld [vmem:[#allocation53_spill] sm:$0xff] }
0x1c12   :  { %v3573_v60 = vmul.f32 %v9580_v19, %v7117_v30 }
0x1c44   :  { %v3584_v57 = vpop.permute.xlu1 %3583  ;;  %v3588_v16 = vpop.permute.xlu0 %3587 }
0x1c45   :  { %v3616_v40 = vmul.f32 %v3584_v57, %v8125_v55  ;;  %v3617_v29 = vmul.f32 %v3588_v16, %v8127_v14 }
0x1c47   :  { %v8137_v46 = vadd.f32 %v3616_v40, %v3570_v33  ;;  %v8139_v20 = vadd.f32 %v3617_v29, %v3571_v49  ;;  %v2741_v33 = vmul.f32 %v2733_v63, %v7918_v17  ;;  %v9576_v17 = vclamps-f32 %v7922_v32, 5.0 }
0x1c48   :  { %v3603_v59 = vpop.permute.xlu1 %3602  ;;  %v3607_v53 = vpop.permute.xlu0 %3606  ;;  %v9582_v40 = vclamps-f32 %v9581_v36, 5.0 }
0x1c49   :  { %v9318_v50 = vclamps-f32 %v8137_v46, 5.0  ;;  %v3620_v13 = vmul.f32 %v3603_v59, %v8135_v27  ;;  %v3621_v25 = vmul.f32 %v3607_v53, %v8141_v47  ;;  %v9319_v49 = vclamps-f32 %v8139_v20, 5.0 }
0x1c4a   :  { %v3572_v44 = vmul.f32 %v9576_v17, %v7119_v31  ;;  %v8176_v39 = vadd.f32 %v2882_v35, %v2741_v33  ;;  %v3577_v29 = vmul.f32 %v9582_v40, %v7117_v30  ;;  %v9587_v40 = vld [vmem:[#allocation31_spill] sm:$0xff] }
0x1c4b   :  { %v8155_v26 = vadd.f32 %v3620_v13, %v8105_v12  ;;  %v8157_v42 = vadd.f32 %v3621_v25, %v3575_v11  ;;  %v3776_v1 = vmul.f32 %v9318_v50, %v8119_v24  ;;  %v8169_v12 = vrot.slane %v3765_v3, %v6903_v21 }
0x1c4c   :  { %v3592_v7 = vpop.permute.xlu1 %3591  ;;  %v3611_v28 = vpop.permute.xlu0 %3610  ;;  %v2886_v11 = vmul.f32 %v2878_v45, %v2729_v56  ;;  %v3777_v62 = vmul.f32 %v9319_v49, %v8119_v24 }
0x1c4d   :  { %9578 = vst [vmem:[#allocation42_spill] sm:$0xff] %v8169_v12  ;;  %v9317_v43 = vclamps-f32 %v8157_v42, 5.0  ;;  %v3618_v48 = vmul.f32 %v3592_v7, %v8149_v8  ;;  %v3622_v58 = vmul.f32 %v3611_v28, %v8151_v51  ;;  %v9316_v37 = vclamps-f32 %v8155_v26, 5.0 }
0x1c4e   :  { %v3784_v32 = vsel %vm142_vm2, %v3776_v1, 0.0  ;;  %v8185_v56 = vadd.f32 %v2886_v11, %v2745_v18  ;;  %v3787_v63 = vsel %vm142_vm2, %v3777_v62, 0.0 }
0x1c4f   :  { %v8181_v10 = vadd.f32 %v3618_v48, %v3572_v44  ;;  %v8183_v52 = vadd.f32 %v3622_v58, %v3576_v22  ;;  %3785 = vadd.xlane.f32.xlu0 %v3784_v32  ;;  %v3781_v23 = vmul.f32 %v9317_v43, %v8169_v12  ;;  %v3780_v5 = vmul.f32 %v9316_v37, %v8169_v12 }
0x1c50   :  { %v3596_v2 = vpop.permute.xlu1 %3595  ;;  %v3615_v57 = vpop.permute.xlu0 %3614 }
0x1c51   :  { %v9315_v16 = vclamps-f32 %v8183_v52, 5.0  ;;  %v3619_v38 = vmul.f32 %v3596_v2, %v8176_v39  ;;  %v3623_v54 = vmul.f32 %v3615_v57, %v8185_v56  ;;  %v9314_v0 = vclamps-f32 %v8181_v10, 5.0  ;;  %v9586_v57 = vld [vmem:[#allocation29_spill] sm:$0xff] }
0x1c52   :  { %v3799_v4 = vsel %vm142_vm2, %v3781_v23, 0.0  ;;  %v3796_v13 = vsel %vm142_vm2, %v3780_v5, 0.0  ;;  %v9588_v5 = vld [vmem:[#allocation32_spill] sm:$0xff] }
0x1c53   :  { %v8205_v6 = vadd.f32 %v3619_v38, %v3573_v60  ;;  %v8207_v41 = vadd.f32 %v3623_v54, %v3577_v29  ;;  %3788 = vadd.xlane.f32.xlu0 %v3787_v63  ;;  %3800 = vadd.xlane.f32.xlu1 %v3799_v4  ;;  %v3782_v59 = vmul.f32 %v9315_v16, %v8169_v12 }
0x1c54   :  { %v3778_v25 = vmul.f32 %v9314_v0, %v8119_v24 }
0x1c55   :  { %9583 = vst [vmem:[#allocation46_spill] sm:$0xff] %v8205_v6  ;;  %v9313_v53 = vclamps-f32 %v8207_v41, 5.0  ;;  %v3802_v3 = vsel %vm142_vm2, %v3782_v59, 0.0  ;;  %v9312_v45 = vclamps-f32 %v8205_v6, 5.0 }
0x1c56   :  { %v3790_v1 = vsel %vm142_vm2, %v3778_v25, 0.0 }
0x1c57   :  { %3797 = vadd.xlane.f32.xlu0 %v3796_v13  ;;  %3803 = vadd.xlane.f32.xlu1 %v3802_v3  ;;  %v3783_v33 = vmul.f32 %v9313_v53, %v8169_v12  ;;  %v3779_v35 = vmul.f32 %v9312_v45, %v8119_v24 }
0x1c59   :  { %v3805_v18 = vsel %vm142_vm2, %v3783_v33, 0.0  ;;  %v3793_v17 = vsel %vm142_vm2, %v3779_v35, 0.0 }
0x1c5b   :  { %3791 = vadd.xlane.f32.xlu0 %v3790_v1  ;;  %3806 = vadd.xlane.f32.xlu1 %v3805_v18 }
0x1c5f   :  { %3794 = vadd.xlane.f32.xlu0 %v3793_v17 }
0x1c8f   :  { %v3724_v44 = vpop.xlane.xlu1 %3723 }
0x1c90   :  { %v3725_v7 = vmul.f32 0.0078125, %v3724_v44  ;;  %v9589_v44 = vld [vmem:[#allocation44_spill] sm:$0xff] }
0x1c92   :  { %v3726_v22 = vsub.f32 %v9584_v61, %v3725_v7 }
0x1c94   :  { %v3727_v28 = vmul.f32 %v3726_v22, %v3726_v22 }
0x1c96   :  { %v3728_v11 = vsel %vm304_vm3, %v3727_v28, 0.0 }
0x1c97   :  { %3729 = vadd.xlane.f32.xlu0 %v3728_v11 }
0x1cdc   :  { %v3786_v48 = vpop.xlane.xlu0 %3785 }
0x1cdd   :  { %v3819_v63 = vrot.slane %v3786_v48, %v9585_v34 }
0x1ce0   :  { %v3789_v58 = vpop.xlane.xlu0 %3788  ;;  %v3801_v32 = vpop.xlane.xlu1 %3800 }
0x1ce1   :  { %v3823_v38 = vrot.slane %v3789_v58, %v9586_v57  ;;  %v3842_v36 = vrot.slane %v3801_v32, %v9586_v57  ;;  %v9590_v32 = vld [vmem:[#allocation47_spill] sm:$0xff] }
0x1ce3   :  { %v3824_v13 = vsel %vm429_vm4, %v3823_v38, %v3819_v63 }
0x1ce4   :  { %v3798_v62 = vpop.xlane.xlu0 %3797  ;;  %v3804_v23 = vpop.xlane.xlu1 %3803 }
0x1ce5   :  { %v3838_v19 = vrot.slane %v3798_v62, %v9585_v34  ;;  %v3847_v29 = vrot.slane %v3804_v23, %v9587_v40  ;;  %v9591_v23 = vld [vmem:[#allocation49_spill] sm:$0xff] }
0x1ce7   :  { %v3843_v4 = vsel %vm429_vm4, %v3842_v36, %v3838_v19 }
0x1ce8   :  { %v3792_v60 = vpop.xlane.xlu0 %3791  ;;  %v3807_v2 = vpop.xlane.xlu1 %3806  ;;  %v3848_v33 = vsel %vm436_vm5, %v3847_v29, %v3843_v4 }
0x1ce9   :  { %v3828_v54 = vrot.slane %v3792_v60, %v9587_v40  ;;  %v3852_v59 = vrot.slane %v3807_v2, %v9588_v5  ;;  %v5856_v60 = vld [vmem:[%s9418_s30 + $0xa] sm:$0x3] }
0x1ceb   :  { %v3829_v18 = vsel %vm436_vm5, %v3828_v54, %v3824_v13  ;;  %v3853_v1 = vsel %vm443_vm6, %v3852_v59, %v3848_v33 }
0x1cec   :  { %v3795_v3 = vpop.xlane.xlu0 %3794 }
0x1ced   :  { %v3833_v25 = vrot.slane %v3795_v3, %v9588_v5  ;;  %v9593_v3 = vld [vmem:[#allocation51_spill] sm:$0xff] }
0x1cee   :  { %v9618_v5 = vld [vmem:[#allocation55_spill] sm:$0xff] }
0x1cef   :  { %v3834_v35 = vsel %vm443_vm6, %v3833_v25, %v3829_v18 }
0x1cf0   :  { %v3854_v17 = vsel %vm464_vm7, %v3853_v1, %v3834_v35  ;;  %v9596_v1 = vld [vmem:[#allocation27_spill] sm:$0xff]  ;;  %v9597_v35 = vmov 0.0  }
0x1cf1   :  { %v3856_v7 = vmul.f32 %v9589_v44, %v3854_v17  ;;  %v9598_v17 = vmov 0.0|0.0   ;;  %v9599_v44 = vld [vmem:[#allocation28_spill] sm:$0xff] }
0x1cf3   :  { %3858 = vrot.lane.b32.xlu1 %v3856_v7, %s6675_s27  ;;  %v8279_v7 = vld [vmem:[%s9143_s14] sm:$0xff] }
0x1cf4   :  { %9600 = vst [vmem:[#allocation47_spill] sm:$0xff] %v8279_v7 }
0x1d24   :  { %v3730_v61 = vpop.xlane.xlu0 %3729 }
0x1d25   :  { %v3731_v28 = vmul.f32 0.0078125, %v3730_v61 }
0x1d27   :  { %v3732_v11 = vadd.f32 1e-05, %v3731_v28  ;;  %v9601_v28 = vld [vmem:[#allocation56_spill] sm:$0xff] }
0x1d29   :  { %6364 = vrsqrt.f32 %v3732_v11 }
0x1d33   :  { %v6365_v48 = vpop.eup %6364 }
0x1d34   :  { %v3734_v58 = vmul.f32 %v6365_v48, %v3726_v22 }
0x1d36   :  { %v3735_v62 = vmul.f32 %v9590_v32, %v3734_v58 }
0x1d38   :  { %v3736_v19 = vadd.f32 %v9591_v23, %v3735_v62 }
0x1d3a   :  { %v3737_v2 = vadd.f32 %v5856_v60, %v3736_v19 }
0x1d3c   :  { %v5858_v29 = vmul.f32 -1.442695, %v3737_v2 }
0x1d3e   :  { %6366 = vpow2.f32 %v5858_v29 }
0x1d48   :  { %v6367_v54 = vpop.eup %6366 }
0x1d49   :  { %v3741_v63 = vadd.f32 1.0, %v6367_v54 }
0x1d4b   :  { %6368 = vrcp.f32 %v3741_v63 }
0x1d55   :  { %v8253_v4 = vpop.eup %6368 }
0x1d56   :  { %9592 = vst [vmem:[#allocation54_spill] sm:$0xff] %v8253_v4  ;;  %v3862_v13 = vmul.f32 %v8253_v4, %v9593_v3 }
0x1d65   :  { %v3859_v38 = vpop.permute.xlu1 %3858 }
0x1d66   :  { %v3861_v36 = vadd.f32 %v3859_v38, %v3737_v2  ;;  %v9602_v2 = vld [vmem:[#allocation45_spill] sm:$0xff]  ;;  %v9603_v38 = vld [vmem:[#allocation36_spill] sm:$0xff] }
0x1d68   :  { %3864 = vrot.lane.b32.xlu0 %v3861_v36, %s6676_s28  ;;  %v3443_v36 = vrot.slane %v9602_v2, %v9603_v38 }
0x1dda   :  { %v3865_v22 = vpop.permute.xlu0 %3864 }
0x1ddb   :  { %v3867_v59 = vmul.f32 %v8253_v4, %v3865_v22  ;;  %v9604_v22 = vld [vmem:[#allocation33_spill] sm:$0xff]  ;;  %v9612_v4 = vclamps-f32 %v8139_v20, 5.0  ;;  %v9617_v20 = vclamps-f32 %v8155_v26, 5.0 }
0x1ddd   :  { %3869 = vrot.lane.b32.xlu1 %v3867_v59, %s6675_s27  ;;  %v9605_v59 = vld [vmem:[#allocation50_spill] sm:$0xff] }
0x1e4f   :  { %v3870_v25 = vpop.permute.xlu1 %3869 }
0x1e50   :  { %v8259_v33 = vadd.f32 %v3870_v25, %v3862_v13  ;;  %v9606_v13 = vld [vmem:[#allocation34_spill] sm:$0xff]  ;;  %v3424_v25 = vrot.slane %v9602_v2, %v6903_v21 }
0x1e52   :  { %9594 = vst [vmem:[#allocation53_spill] sm:$0xff] %v8259_v33  ;;  %6370 = vtanh.f32 %v8259_v33 }
0x1e5c   :  { %v8262_v18 = vpop.eup %6370 }
0x1e5d   :  { %9595 = vst [vmem:[#allocation44_spill] sm:$0xff] %v8262_v18  ;;  %4324 = vst.msk [vmem:[#allocation18 + $0xa] sm:$0x3] %vm130_vm1, %v8262_v18  ;;  %6146 = vmatmul.mubr.msk.f32.vlgmr.msra.gmra.mrb[16].mxu0 %vm142_vm2, %v8262_v18  ;;  %v4425_v24 = vrot.slane %v8262_v18, %v6898_v15 }
0x1e5e   :  { %6281 = vmatpush3.bf16.msra.mxu0 %v9596_v1  ;;  %6161 = vmatprep.mubr.msk.f32.mxu0 %vm6672_vm0, %v9597_v35 }
0x1e5f   :  { %6282 = vmatprep.subr.bf16.mxu0 %v9598_v17 }
0x1e62   :  { %6284 = vmatpush3.bf16.msra.mxu0 %v9599_v44 }
0x1e63   :  { %6175 = vmatprep.subr.mxu0 %v9597_v35 }
0x1e65   :  { %6162 = vmatmul.mubr.msk.f32.vlgmr.msra.gmra.mrb[18].mxu0 %vm142_vm2, %v8262_v18  ;;  %v9616_v18 = vclamps-f32 %v8157_v42, 5.0 }
0x1e66   :  { %6176 = vmatpush3.msra.mxu0 %v8279_v7  ;;  %6177 = vmatprep.mubr.msk.f32.mxu0 %vm6672_vm0, %v9597_v35 }
0x1e67   :  { %6297 = vmatprep.subr.bf16.mxu0 %v9598_v17 }
0x1f30   :  { %v3943_v61 = vpop.f32.mrb[16].mxu0 }
0x1f31   :  { %v3944_v11 = vadd.f32 %v9601_v28, %v3943_v61  ;;  %v6147_v48 = vpop.f32.mrb[17].mxu0  ;;  %v9607_v61 = vld [vmem:[#allocation52_spill] sm:$0xff] }
0x1f32   :  { %v3355_v28 = vmul.f32 %v9605_v59, %v9607_v61  ;;  %v3466_v0 = vrot.slane %v9607_v61, %v6898_v15  ;;  %v4246_v61 = vmul.f32 %v9612_v4, %v9570_v9 }
0x1f33   :  { %v3947_v58 = vsel %vm564_vm8, %v3944_v11, -inf }
0x1f34   :  { %3948 = vmax.xlane.f32.xlu1 %v3947_v58  ;;  %v3467_v37 = vcombine.high %v3466_v0, %v3466_v0  ;;  %v3474_v12 = vrot.slane %v3466_v0, %v6898_v15  ;;  %v9615_v0 = vclamps-f32 %v8137_v46, 5.0  ;;  %v4426_v46 = vcombine.high %v4425_v24, %v4425_v24 }
0x1f36   :  { %v3481_v49 = vrot.slane %v3467_v37, %v6898_v15  ;;  %v9614_v37 = vld [vmem:[#allocation37_spill] sm:$0xff] }
0x1f37   :  { %v8350_v4 = vmul.f32 %v9617_v20, %v9614_v37 }
0x1f38   :  { %v8287_v32 = vpop.f32.mrb[18].mxu0 }
0x1f39   :  { %v6163_v62 = vpop.f32.mrb[19].mxu0 }
0x1fc1   :  { %v3949_v23 = vpop.xlane.xlu1 %3948 }
0x1fc2   :  { %vm3950_vm14 = vcmp.ge.f32.partialorder %v3944_v11, %v3949_v23  ;;  %v3368_v23 = vrot.slane %v9605_v59, %v6903_v21 }
0x1fc3   :  { %v3951_v19 = vsel %vm3950_vm14, -inf, %v3944_v11 }
0x1fc4   :  { %v3952_v60 = vsel %vm564_vm8, %v3951_v19, -inf  ;;  %v3388_v19 = vrot.slane %v9605_v59, %v9603_v38 }
0x1fc5   :  { %3953 = vmax.xlane.f32.xlu0 %v3952_v60 }
0x1fdb   :  { %3356 = vrot.lane.b32.xlu0 %v9602_v2, %s6677_s26  ;;  %v9609_v2 = vld [vmem:[#allocation48_spill] sm:$0xff] }
0x1fdf   :  { %3445 = vbcast.lane.b32.xlu0 %v3443_v36, 256 }
0x2052   :  { %v3954_v29 = vpop.xlane.xlu0 %3953 }
0x2053   :  { %vm3955_vm15 = vcmp.ge.f32.partialorder %v3944_v11, %v3954_v29 }
0x2054   :  { %v3956_v54 = vsel %vm3955_vm15, %v3944_v11, 0.0 }
0x2055   :  { %6151 = vmatmul.mubr.msk.f32.vlgmr.msra.gmra.mrb[16].mxu1 %vm581_vm10, %v3956_v54 }
0x2056   :  { %v3357_v63 = vpop.permute.xlu0 %3356  ;;  %6287 = vmatpush3.bf16.msra.mxu1 %v9604_v22  ;;  %6172 = vmatprep.mubr.msk.f32.mxu1 %vm6672_vm0, %v9597_v35  ;;  %v9613_v22 = vld [vmem:[#allocation35_spill] sm:$0xff]  ;;  %v4245_v35 = vmul.f32 %v9615_v0, %v9614_v37 }
0x2057   :  { %v3359_v3 = vmul.f32 %v9605_v59, %v3357_v63  ;;  %6288 = vmatprep.subr.bf16.mxu1 %v9598_v17 }
0x2059   :  { %3361 = vrot.lane.b32.xlu1 %v3359_v3, %s6675_s27 }
0x205a   :  { %6290 = vmatpush3.bf16.msra.mxu1 %v9606_v13  ;;  %v3485_v13 = vrot.slane %v3474_v12, %v6903_v21 }
0x205b   :  { %6291 = vmatprep.subr.bf16.mxu1 %v9598_v17 }
0x205d   :  { %3426 = vbcast.lane.b32.xlu1 %v3424_v25, 256 }
0x2061   :  { %3430 = vbcast.lane.b32.xlu1 %v3424_v25, 264 }
0x2065   :  { %3449 = vbcast.lane.b32.xlu1 %v3443_v36, 264 }
0x20cb   :  { %v3362_v11 = vpop.permute.xlu1 %3361 }
0x20cc   :  { %v8307_v48 = vadd.f32 %v3362_v11, %v3355_v28 }
0x20ce   :  { %9608 = vst [vmem:[#allocation49_spill] sm:$0xff] %v8307_v48  ;;  %v3503_v58 = vrot.slane %v8307_v48, %v6903_v21  ;;  %v3522_v62 = vrot.slane %v8307_v48, %v9603_v38  ;;  %v3489_v48 = vrot.slane %v3481_v49, %v6903_v21  ;;  %v8345_v49 = vmul.f32 %v9616_v18, %v9570_v9 }
0x20d0   :  { %3509 = vbcast.lane.b32.xlu1 %v3503_v58, 264  ;;  %3505 = vbcast.lane.b32.xlu0 %v3503_v58, 256 }
0x20d4   :  { %3528 = vbcast.lane.b32.xlu1 %v3522_v62, 264  ;;  %3524 = vbcast.lane.b32.xlu0 %v3522_v62, 256 }
0x20d8   :  { %3453 = vbcast.lane.b32.xlu1 %v3443_v36, 272  ;;  %3434 = vbcast.lane.b32.xlu0 %v3424_v25, 272 }
0x20dc   :  { %3532 = vbcast.lane.b32.xlu1 %v3522_v62, 272  ;;  %3513 = vbcast.lane.b32.xlu0 %v3503_v58, 272 }
0x20e0   :  { %3375 = vbcast.lane.b32.xlu1 %v3368_v23, 328  ;;  %3371 = vbcast.lane.b32.xlu0 %v3368_v23, 320 }
0x20e4   :  { %3395 = vbcast.lane.b32.xlu1 %v3388_v19, 328  ;;  %3391 = vbcast.lane.b32.xlu0 %v3388_v19, 320 }
0x20e8   :  { %3457 = vbcast.lane.b32.xlu1 %v3443_v36, 280  ;;  %3438 = vbcast.lane.b32.xlu0 %v3424_v25, 280  ;;  %v9610_v36 = vld [vmem:[#allocation43_spill] sm:$0xff]  ;;  %v3427_v25 = vpop.permute.xlu1 %3426 }
0x20e9   :  { %v8322_v3 = vadd.f32 %v9610_v36, %v8287_v32 }
0x20eb   :  { %9611 = vst [vmem:[#allocation51_spill] sm:$0xff] %v8322_v3  ;;  %v4397_v28 = vsel %vm304_vm3, %v8322_v3, 0.0 }
0x20ec   :  { %3536 = vbcast.lane.b32.xlu1 %v3522_v62, 280  ;;  %3517 = vbcast.lane.b32.xlu0 %v3503_v58, 280  ;;  %v3431_v11 = vpop.permute.xlu1 %3430  ;;  %v3446_v58 = vpop.permute.xlu0 %3445 }
0x20ed   :  { %v3493_v33 = vmul.f32 %v3485_v13, %v3431_v11  ;;  %v3496_v0 = vmul.f32 %v3489_v48, %v3446_v58 }
0x20f0   :  { %3399 = vbcast.lane.b32.xlu1 %v3388_v19, 336  ;;  %3379 = vbcast.lane.b32.xlu0 %v3368_v23, 336  ;;  %v3450_v62 = vpop.permute.xlu1 %3449 }
0x20f1   :  { %v3497_v57 = vmul.f32 %v3489_v48, %v3450_v62 }
0x20f4   :  { %3403 = vbcast.lane.b32.xlu1 %v3388_v19, 344  ;;  %3383 = vbcast.lane.b32.xlu0 %v3368_v23, 344 }
0x2128   :  { %v4026_v60 = vpop.f32.mrb[16].mxu1 }
0x2129   :  { %v4027_v29 = vadd.f32 %v9609_v2, %v4026_v60  ;;  %v6152_v54 = vpop.f32.mrb[17].mxu1 }
0x212b   :  { %v4256_v63 = vrot.slane %v4027_v29, %v6903_v21  ;;  %v4275_v59 = vrot.slane %v4027_v29, %v9603_v38 }
0x212d   :  { %4262 = vbcast.lane.b32.xlu1 %v4256_v63, 264  ;;  %4258 = vbcast.lane.b32.xlu0 %v4256_v63, 256 }
0x2131   :  { %4281 = vbcast.lane.b32.xlu1 %v4275_v59, 264  ;;  %4277 = vbcast.lane.b32.xlu0 %v4275_v59, 256 }
0x2135   :  { %4285 = vbcast.lane.b32.xlu1 %v4275_v59, 272  ;;  %4266 = vbcast.lane.b32.xlu0 %v4256_v63, 272 }
0x2139   :  { %4289 = vbcast.lane.b32.xlu1 %v4275_v59, 280  ;;  %4270 = vbcast.lane.b32.xlu0 %v4256_v63, 280 }
0x2142   :  { %v3510_v23 = vpop.permute.xlu1 %3509  ;;  %v3506_v19 = vpop.permute.xlu0 %3505 }
0x2143   :  { %v3539_v38 = vmul.f32 %v3510_v23, %v9613_v22  ;;  %v3538_v7 = vmul.f32 %v3506_v19, %v9613_v22  ;;  %v4433_v23 = vrot.slane %v4425_v24, %v6898_v15  ;;  %v3492_v19 = vmul.f32 %v3485_v13, %v3427_v25 }
0x2145   :  { %v3547_v9 = vsub.f32 %v3493_v33, %v3539_v38  ;;  %v3546_v34 = vsub.f32 %v3492_v19, %v3538_v7  ;;  %v8360_v62 = vrot.slane %v4433_v23, %v6903_v21 }
0x2146   :  { %v3529_v60 = vpop.permute.xlu1 %3528  ;;  %v3525_v2 = vpop.permute.xlu0 %3524 }
0x2147   :  { %v3543_v40 = vmul.f32 %v3529_v60, %v9618_v5  ;;  %v3542_v42 = vmul.f32 %v3525_v2, %v9618_v5  ;;  %9619 = vst [vmem:[#allocation56_spill] sm:$0xff] %v8360_v62  ;;  %v4440_v2 = vrot.slane %v4426_v46, %v6898_v15 }
0x2149   :  { %v3551_v6 = vsub.f32 %v3497_v57, %v3543_v40  ;;  %v3550_v33 = vsub.f32 %v3496_v0, %v3542_v42 }
0x214a   :  { %v3454_v29 = vpop.permute.xlu1 %3453  ;;  %v3435_v54 = vpop.permute.xlu0 %3434 }
0x214b   :  { %v3498_v20 = vmul.f32 %v3489_v48, %v3454_v29  ;;  %v3494_v60 = vmul.f32 %v3485_v13, %v3435_v54 }
0x214e   :  { %v3533_v59 = vpop.permute.xlu1 %3532  ;;  %v3514_v63 = vpop.permute.xlu0 %3513 }
0x214f   :  { %v3544_v18 = vmul.f32 %v3533_v59, %v9618_v5  ;;  %v3540_v3 = vmul.f32 %v3514_v63, %v9613_v22 }
0x2151   :  { %v3552_v7 = vsub.f32 %v3498_v20, %v3544_v18  ;;  %v3548_v63 = vsub.f32 %v3494_v60, %v3540_v3 }
0x2152   :  { %v3376_v45 = vpop.permute.xlu1 %3375  ;;  %v3372_v53 = vpop.permute.xlu0 %3371 }
0x2153   :  { %v3406_v12 = vsub.f32 1.0, %v3376_v45  ;;  %v3405_v1 = vsub.f32 1.0, %v3372_v53  ;;  %v3555_v38 = vmul.f32 %v3547_v9, %v3376_v45  ;;  %v3554_v59 = vmul.f32 %v3546_v34, %v3372_v53 }
0x2155   :  { %v3414_v37 = vmul.f32 %v3406_v12, %v8127_v14  ;;  %v3413_v25 = vmul.f32 %v3405_v1, %v8125_v55 }
0x2156   :  { %v3396_v32 = vpop.permute.xlu1 %3395  ;;  %v3392_v36 = vpop.permute.xlu0 %3391 }
0x2157   :  { %v3410_v26 = vsub.f32 1.0, %v3396_v32  ;;  %v3409_v11 = vsub.f32 1.0, %v3392_v36  ;;  %v8366_v40 = vadd.f32 %v3555_v38, %v3414_v37  ;;  %v8368_v1 = vadd.f32 %v3554_v59, %v3413_v25 }
0x2158   :  { %4398 = vadd.xlane.f32.xlu0 %v4397_v28  ;;  %v3559_v54 = vmul.f32 %v3551_v6, %v3396_v32  ;;  %v3558_v23 = vmul.f32 %v3550_v33, %v3392_v36 }
0x2159   :  { %v3418_v29 = vmul.f32 %v3410_v26, %v8141_v47  ;;  %v3417_v55 = vmul.f32 %v3409_v11, %v8135_v27 }
0x215a   :  { %v3458_v16 = vpop.permute.xlu1 %3457  ;;  %v3439_v28 = vpop.permute.xlu0 %3438 }
0x215b   :  { %v3499_v45 = vmul.f32 %v3489_v48, %v3458_v16  ;;  %v3495_v34 = vmul.f32 %v3485_v13, %v3439_v28  ;;  %v8375_v37 = vadd.f32 %v3559_v54, %v3418_v29 }
0x215e   :  { %v3537_v43 = vpop.permute.xlu1 %3536  ;;  %v3518_v50 = vpop.permute.xlu0 %3517 }
0x215f   :  { %v3545_v57 = vmul.f32 %v3537_v43, %v9618_v5  ;;  %v3541_v19 = vmul.f32 %v3518_v50, %v9613_v22  ;;  %v8381_v22 = vadd.f32 %v3558_v23, %v3417_v55 }
0x2161   :  { %v3553_v6 = vsub.f32 %v3499_v45, %v3545_v57  ;;  %v3549_v16 = vsub.f32 %v3495_v34, %v3541_v19  ;;  %v9623_v57 = vclamps-f32 %v8207_v41, 5.0 }
0x2162   :  { %v3400_v44 = vpop.permute.xlu1 %3399  ;;  %v3380_v17 = vpop.permute.xlu0 %3379 }
0x2163   :  { %v3411_v14 = vsub.f32 1.0, %v3400_v44  ;;  %v3407_v12 = vsub.f32 1.0, %v3380_v17  ;;  %v3560_v13 = vmul.f32 %v3552_v7, %v3400_v44  ;;  %v3556_v48 = vmul.f32 %v3548_v63, %v3380_v17 }
0x2164   :  { %v8412_v7 = vrot.slane %v4440_v2, %v6903_v21  ;;  %v4252_v54 = vmul.f32 %v9623_v57, %v7117_v30 }
0x2165   :  { %v3419_v27 = vmul.f32 %v3411_v14, %v8151_v51  ;;  %v3415_v43 = vmul.f32 %v3407_v12, %v8149_v8 }
0x2166   :  { %v3404_v24 = vpop.permute.xlu1 %3403  ;;  %v3384_v58 = vpop.permute.xlu0 %3383  ;;  %9622 = vst [vmem:[#allocation45_spill] sm:$0xff] %v8412_v7 }
0x2167   :  { %v3412_v46 = vsub.f32 1.0, %v3404_v24  ;;  %v3408_v5 = vsub.f32 1.0, %v3384_v58  ;;  %v3561_v18 = vmul.f32 %v3553_v6, %v3404_v24  ;;  %v8389_v26 = vadd.f32 %v3560_v13, %v3419_v27 }
0x2168   :  { %v8391_v20 = vadd.f32 %v3556_v48, %v3415_v43  ;;  %v3557_v11 = vmul.f32 %v3549_v16, %v3384_v58 }
0x2169   :  { %v3420_v36 = vmul.f32 %v3412_v46, %v8185_v56 }
0x216b   :  { %v8417_v58 = vadd.f32 %v3561_v18, %v3420_v36 }
0x219f   :  { %v4263_v9 = vpop.permute.xlu1 %4262  ;;  %v4259_v53 = vpop.permute.xlu0 %4258 }
0x21a0   :  { %v4292_v47 = vmul.f32 %v4263_v9, %v8366_v40  ;;  %v4291_v3 = vmul.f32 %v4259_v53, %v8368_v1  ;;  %v9624_v53 = vld [vmem:[#allocation46_spill] sm:$0xff] }
0x21a1   :  { %v9625_v45 = vclamps-f32 %v9624_v53, 5.0 }
0x21a2   :  { %v8377_v32 = vadd.f32 %v4292_v47, %v4246_v61  ;;  %v8379_v50 = vadd.f32 %v4291_v3, %v4245_v35  ;;  %v3416_v35 = vmul.f32 %v3408_v5, %v8176_v39  ;;  %v9620_v39 = vclamps-f32 %v8183_v52, 5.0 }
0x21a3   :  { %v4282_v28 = vpop.permute.xlu1 %4281  ;;  %v4278_v0 = vpop.permute.xlu0 %4277  ;;  %v4248_v34 = vmul.f32 %v9625_v45, %v7117_v30 }
0x21a4   :  { %v9349_v51 = vclamps-f32 %v8377_v32, 5.0  ;;  %v9350_v8 = vclamps-f32 %v8379_v50, 5.0  ;;  %v4296_v42 = vmul.f32 %v4282_v28, %v8375_v37  ;;  %v4295_v61 = vmul.f32 %v4278_v0, %v8381_v22 }
0x21a5   :  { %v4251_v60 = vmul.f32 %v9620_v39, %v7119_v31 }
0x21a6   :  { %v8394_v17 = vadd.f32 %v4296_v42, %v8345_v49  ;;  %v8397_v56 = vadd.f32 %v4295_v61, %v8350_v4  ;;  %v4452_v44 = vmul.f32 %v9349_v51, %v8360_v62  ;;  %v4451_v25 = vmul.f32 %v9350_v8, %v8360_v62 }
0x21a7   :  { %v4286_v24 = vpop.permute.xlu1 %4285  ;;  %v9621_v49 = vclamps-f32 %v8181_v10, 5.0  ;;  %v4267_v4 = vpop.permute.xlu0 %4266  ;;  %v8422_v10 = vadd.f32 %v3557_v11, %v3416_v35  ;;  %v9628_v11 = vld [vmem:[#allocation51_spill] sm:$0xff] }
0x21a8   :  { %v9348_v38 = vclamps-f32 %v8397_v56, 5.0  ;;  %v4297_v59 = vmul.f32 %v4286_v24, %v8389_v26  ;;  %v4293_v63 = vmul.f32 %v4267_v4, %v8391_v20  ;;  %v9347_v52 = vclamps-f32 %v8394_v17, 5.0 }
0x21a9   :  { %v4247_v33 = vmul.f32 %v9621_v49, %v7119_v31  ;;  %v4462_v29 = vsel %vm142_vm2, %v4452_v44, 0.0  ;;  %v4459_v14 = vsel %vm142_vm2, %v4451_v25, 0.0 }
0x21aa   :  { %v8424_v12 = vadd.f32 %v4297_v59, %v4251_v60  ;;  %4463 = vadd.xlane.f32.xlu0 %v4462_v29  ;;  %4460 = vadd.xlane.f32.xlu1 %v4459_v14  ;;  %v4455_v55 = vmul.f32 %v9348_v38, %v8412_v7  ;;  %v4456_v41 = vmul.f32 %v9347_v52, %v8412_v7 }
0x21ab   :  { %v8426_v2 = vadd.f32 %v4293_v63, %v4247_v33  ;;  %v4290_v23 = vpop.permute.xlu1 %4289  ;;  %v4271_v19 = vpop.permute.xlu0 %4270 }
0x21ac   :  { %v4298_v9 = vmul.f32 %v4290_v23, %v8417_v58  ;;  %v4294_v47 = vmul.f32 %v4271_v19, %v8422_v10  ;;  %v9345_v3 = vclamps-f32 %v8424_v12, 5.0  ;;  %v4471_v27 = vsel %vm142_vm2, %v4455_v55, 0.0  ;;  %v9629_v55 = vld [vmem:[#allocation30_spill] sm:$0xff] }
0x21ad   :  { %v9346_v46 = vclamps-f32 %v8426_v2, 5.0  ;;  %v4474_v36 = vsel %vm142_vm2, %v4456_v41, 0.0 }
0x21ae   :  { %v8445_v43 = vadd.f32 %v4298_v9, %v4252_v54  ;;  %v8447_v5 = vadd.f32 %v4294_v47, %v4248_v34  ;;  %4472 = vadd.xlane.f32.xlu0 %v4471_v27  ;;  %v4457_v28 = vmul.f32 %v9345_v3, %v8412_v7  ;;  %v9630_v54 = vld [vmem:[#allocation29_spill] sm:$0xff]  ;;  %v9631_v9 = vld [vmem:[#allocation31_spill] sm:$0xff]  ;;  %v9632_v47 = vld [vmem:[#allocation32_spill] sm:$0xff] }
0x21af   :  { %v4453_v6 = vmul.f32 %v9346_v46, %v8360_v62 }
0x21b0   :  { %9626 = vst [vmem:[#allocation50_spill] sm:$0xff] %v8445_v43  ;;  %9627 = vst [vmem:[#allocation52_spill] sm:$0xff] %v8447_v5  ;;  %v9344_v16 = vclamps-f32 %v8447_v5, 5.0  ;;  %v9343_v48 = vclamps-f32 %v8445_v43, 5.0  ;;  %v4477_v61 = vsel %vm142_vm2, %v4457_v28, 0.0 }
0x21b1   :  { %v4465_v13 = vsel %vm142_vm2, %v4453_v6, 0.0 }
0x21b2   :  { %4466 = vadd.xlane.f32.xlu1 %v4465_v13  ;;  %4475 = vadd.xlane.f32.xlu0 %v4474_v36  ;;  %v4454_v0 = vmul.f32 %v9344_v16, %v8360_v62  ;;  %v4458_v18 = vmul.f32 %v9343_v48, %v8412_v7  ;;  %v9655_v62 = vld [vmem:[#allocation41_spill] sm:$0xff] }
0x21b4   :  { %v4468_v42 = vsel %vm142_vm2, %v4454_v0, 0.0  ;;  %v4480_v35 = vsel %vm142_vm2, %v4458_v18, 0.0 }
0x21b6   :  { %4469 = vadd.xlane.f32.xlu1 %v4468_v42  ;;  %4478 = vadd.xlane.f32.xlu0 %v4477_v61 }
0x21ba   :  { %4481 = vadd.xlane.f32.xlu0 %v4480_v35  ;;  %v8488_v35 = vld [vmem:[%s9139_s10] ss:$0 sm:$0xff] }
0x21bb   :  { %9633 = vst [vmem:[#allocation48_spill] sm:$0xff] %v8488_v35 }
0x21e5   :  { %v4399_v44 = vpop.xlane.xlu0 %4398 }
0x21e6   :  { %v4400_v25 = vmul.f32 0.0078125, %v4399_v44 }
0x21e8   :  { %v4401_v39 = vsub.f32 %v9628_v11, %v4400_v25 }
0x21ea   :  { %v4402_v60 = vmul.f32 %v4401_v39, %v4401_v39 }
0x21ec   :  { %v4403_v24 = vsel %vm304_vm3, %v4402_v60, 0.0 }
0x21ed   :  { %4404 = vadd.xlane.f32.xlu1 %v4403_v24 }
0x2237   :  { %v4464_v49 = vpop.xlane.xlu0 %4463  ;;  %v4461_v33 = vpop.xlane.xlu1 %4460 }
0x2238   :  { %v4494_v57 = vrot.slane %v4461_v33, %v9629_v55  ;;  %v4498_v23 = vrot.slane %v4464_v49, %v9630_v54  ;;  %v8495_v33 = vld [vmem:[%s9137_s8] ss:$0 sm:$0xff] }
0x2239   :  { %9634 = vst [vmem:[#allocation43_spill] sm:$0xff] %v8495_v33 }
0x223a   :  { %v4499_v6 = vsel %vm429_vm4, %v4498_v23, %v4494_v57 }
0x223b   :  { %v4473_v4 = vpop.xlane.xlu0 %4472 }
0x223c   :  { %v4513_v34 = vrot.slane %v4473_v4, %v9629_v55 }
0x223f   :  { %v4467_v59 = vpop.xlane.xlu1 %4466  ;;  %v4476_v63 = vpop.xlane.xlu0 %4475 }
0x2240   :  { %v4517_v19 = vrot.slane %v4476_v63, %v9630_v54  ;;  %v4503_v53 = vrot.slane %v4467_v59, %v9631_v9  ;;  %v8501_v59 = vld [vmem:[%s9138_s9] ss:$0 sm:$0xff] }
0x2241   :  { %9635 = vst [vmem:[#allocation35_spill] sm:$0xff] %v8501_v59 }
0x2242   :  { %v4518_v13 = vsel %vm429_vm4, %v4517_v19, %v4513_v34  ;;  %v4504_v28 = vsel %vm436_vm5, %v4503_v53, %v4499_v6 }
0x2243   :  { %v4470_v29 = vpop.xlane.xlu1 %4469  ;;  %v4479_v14 = vpop.xlane.xlu0 %4478 }
0x2244   :  { %v4522_v45 = vrot.slane %v4479_v14, %v9631_v9  ;;  %v4508_v27 = vrot.slane %v4470_v29, %v9632_v47  ;;  %v5869_v29 = vld [vmem:[%s9418_s30 + $0xc] sm:$0x3] }
0x2246   :  { %v4523_v0 = vsel %vm436_vm5, %v4522_v45, %v4518_v13  ;;  %v4509_v42 = vsel %vm443_vm6, %v4508_v27, %v4504_v28 }
0x2247   :  { %v4482_v41 = vpop.xlane.xlu0 %4481 }
0x2248   :  { %v4527_v36 = vrot.slane %v4482_v41, %v9632_v47  ;;  %v9637_v41 = vld [vmem:[#allocation53_spill] sm:$0xff] }
0x224a   :  { %v4528_v61 = vsel %vm443_vm6, %v4527_v36, %v4523_v0  ;;  %v9640_v0 = vld [vmem:[#allocation27_spill] sm:$0xff] }
0x224b   :  { %v4529_v18 = vsel %vm464_vm7, %v4528_v61, %v4509_v42  ;;  %v9641_v42 = vmov 0.0   ;;  %v9642_v61 = vmov 0.0|0.0  }
0x224c   :  { %v4531_v44 = vmul.f32 %v8488_v35, %v4529_v18  ;;  %v9643_v18 = vld [vmem:[#allocation28_spill] sm:$0xff] }
0x224e   :  { %4533 = vrot.lane.b32.xlu0 %v4531_v44, %s6675_s27  ;;  %v9644_v44 = vld [vmem:[#allocation47_spill] sm:$0xff] }
0x227a   :  { %v4405_v25 = vpop.xlane.xlu1 %4404 }
0x227b   :  { %v4406_v11 = vmul.f32 0.0078125, %v4405_v25 }
0x227d   :  { %v4407_v60 = vadd.f32 1e-05, %v4406_v11  ;;  %v8537_v11 = vld [vmem:[%s9142_s13] ss:$0 sm:$0xff] }
0x227e   :  { %9645 = vst [vmem:[#allocation53_spill] sm:$0xff] %v8537_v11 }
0x227f   :  { %6372 = vrsqrt.f32 %v4407_v60 }
0x2289   :  { %v6373_v24 = vpop.eup %6372 }
0x228a   :  { %v4409_v49 = vmul.f32 %v6373_v24, %v4401_v39 }
0x228c   :  { %v4410_v4 = vmul.f32 %v8495_v33, %v4409_v49 }
0x228e   :  { %v4411_v63 = vadd.f32 %v8501_v59, %v4410_v4  ;;  %v9658_v59 = vld [vmem:[#allocation38_spill] sm:$0xff] }
0x2290   :  { %v4412_v14 = vadd.f32 %v5869_v29, %v4411_v63 }
0x2292   :  { %v5871_v23 = vmul.f32 -1.442695, %v4412_v14 }
0x2294   :  { %6374 = vpow2.f32 %v5871_v23 }
0x229e   :  { %v6375_v19 = vpop.eup %6374 }
0x229f   :  { %v4416_v53 = vadd.f32 1.0, %v6375_v19  ;;  %v9647_v19 = vld [vmem:[#allocation36_spill] sm:$0xff] }
0x22a1   :  { %6376 = vrcp.f32 %v4416_v53 }
0x22ab   :  { %v8508_v45 = vpop.eup %6376 }
0x22ac   :  { %9636 = vst [vmem:[#allocation55_spill] sm:$0xff] %v8508_v45  ;;  %v4537_v6 = vmul.f32 %v8508_v45, %v9637_v41 }
0x22c0   :  { %v4534_v39 = vpop.permute.xlu0 %4533 }
0x22c1   :  { %v4536_v57 = vadd.f32 %v4534_v39, %v4412_v14 }
0x22c3   :  { %4539 = vrot.lane.b32.xlu1 %v4536_v57, %s6676_s28  ;;  %v9646_v57 = vld [vmem:[#allocation44_spill] sm:$0xff] }
0x22c4   :  { %v4099_v23 = vrot.slane %v9646_v57, %v6903_v21  ;;  %v4118_v53 = vrot.slane %v9646_v57, %v9647_v19 }
0x2335   :  { %v4540_v34 = vpop.permute.xlu1 %4539 }
0x2336   :  { %v4542_v27 = vmul.f32 %v8508_v45, %v4540_v34  ;;  %v9656_v45 = vld [vmem:[#allocation37_spill] sm:$0xff] }
0x2338   :  { %4544 = vrot.lane.b32.xlu1 %v4542_v27, %s6675_s27 }
0x23aa   :  { %v4545_v13 = vpop.permute.xlu1 %4544 }
0x23ab   :  { %v8514_v36 = vadd.f32 %v4545_v13, %v4537_v6  ;;  %v9648_v6 = vld [vmem:[#allocation33_spill] sm:$0xff]  ;;  %v9649_v13 = vld [vmem:[#allocation54_spill] sm:$0xff] }
0x23ad   :  { %9638 = vst [vmem:[#allocation46_spill] sm:$0xff] %v8514_v36  ;;  %6378 = vtanh.f32 %v8514_v36 }
0x23b7   :  { %v8517_v28 = vpop.eup %6378 }
0x23b8   :  { %9639 = vst [vmem:[#allocation51_spill] sm:$0xff] %v8517_v28  ;;  %4999 = vst.msk [vmem:[#allocation18 + $0xc] sm:$0x3] %vm130_vm1, %v8517_v28  ;;  %6173 = vmatmul.mubr.msk.f32.vlgmr.msra.gmra.mrb[18].mxu1 %vm142_vm2, %v8517_v28  ;;  %v8589_v51 = vrot.slane %v8517_v28, %v6898_v15 }
0x23b9   :  { %6293 = vmatpush3.bf16.msra.mxu1 %v9640_v0  ;;  %6188 = vmatprep.mubr.msk.f32.mxu1 %vm6672_vm0, %v9641_v42 }
0x23ba   :  { %6294 = vmatprep.subr.bf16.mxu1 %v9642_v61  ;;  %v5108_v9 = vrot.slane %v8589_v51, %v6898_v15 }
0x23bc   :  { %v8618_v5 = vrot.slane %v5108_v9, %v6903_v21 }
0x23bd   :  { %6296 = vmatpush3.bf16.msra.mxu1 %v9643_v18  ;;  %v9650_v18 = vld [vmem:[#allocation34_spill] sm:$0xff] }
0x23be   :  { %6202 = vmatprep.subr.mxu1 %v9641_v42 }
0x23c0   :  { %6189 = vmatmul.mubr.msk.f32.vlgmr.msra.gmra.mrb[20].mxu1 %vm142_vm2, %v8517_v28  ;;  %v9659_v28 = vclamps-f32 %v8377_v32, 5.0  ;;  %v9662_v32 = vclamps-f32 %v8394_v17, 5.0  ;;  %v5101_v17 = vcombine.high %v8589_v51, %v8589_v51 }
0x23c1   :  { %6203 = vmatpush3.msra.mxu1 %v9644_v44  ;;  %6204 = vmatprep.mubr.msk.f32.mxu1 %vm6672_vm0, %v9641_v42  ;;  %v9651_v44 = vld [vmem:[#allocation49_spill] sm:$0xff] }
0x23c2   :  { %v4921_v33 = vmul.f32 %v9659_v28, %v9658_v59  ;;  %v4925_v28 = vmul.f32 %v9662_v32, %v9658_v59 }
0x248b   :  { %v4618_v25 = vpop.f32.mrb[18].mxu1 }
0x248c   :  { %v4619_v60 = vadd.f32 %v8537_v11, %v4618_v25  ;;  %v6174_v24 = vpop.f32.mrb[19].mxu1  ;;  %v4030_v25 = vmul.f32 %v9649_v13, %v9651_v44  ;;  %v9657_v11 = vclamps-f32 %v8379_v50, 5.0 }
0x248e   :  { %v4622_v49 = vsel %vm564_vm8, %v4619_v60, -inf }
0x248f   :  { %4623 = vmax.xlane.f32.xlu1 %v4622_v49 }
0x2493   :  { %v8541_v4 = vpop.f32.mrb[20].mxu1 }
0x2494   :  { %v6190_v63 = vpop.f32.mrb[21].mxu1 }
0x2495   :  { %v4063_v63 = vrot.slane %v9649_v13, %v9647_v19 }
0x251c   :  { %v4624_v29 = vpop.xlane.xlu1 %4623 }
0x251d   :  { %vm4625_vm9 = vcmp.ge.f32.partialorder %v4619_v60, %v4624_v29 }
0x251e   :  { %v4626_v14 = vsel %vm4625_vm9, -inf, %v4619_v60 }
0x251f   :  { %v4627_v39 = vsel %vm564_vm8, %v4626_v14, -inf  ;;  %v8573_v14 = vld [vmem:[%s9144_s15] ss:$0 sm:$0xff] }
0x2520   :  { %4628 = vmax.xlane.f32.xlu0 %v4627_v39  ;;  %9653 = vst [vmem:[#allocation28_spill] sm:$0xff] %v8573_v14 }
0x2536   :  { %4031 = vrot.lane.b32.xlu0 %v9646_v57, %s6677_s26 }
0x253a   :  { %4105 = vbcast.lane.b32.xlu0 %v4099_v23, 264 }
0x253e   :  { %4124 = vbcast.lane.b32.xlu0 %v4118_v53, 264 }
0x25ad   :  { %v4629_v34 = vpop.xlane.xlu0 %4628 }
0x25ae   :  { %vm4630_vm11 = vcmp.ge.f32.partialorder %v4619_v60, %v4629_v34 }
0x25af   :  { %v4631_v27 = vsel %vm4630_vm11, %v4619_v60, 0.0 }
0x25b0   :  { %6178 = vmatmul.mubr.msk.f32.vlgmr.msra.gmra.mrb[20].mxu0 %vm581_vm10, %v4631_v27 }
0x25b1   :  { %v4032_v41 = vpop.permute.xlu0 %4031  ;;  %6299 = vmatpush3.bf16.msra.mxu0 %v9648_v6  ;;  %6199 = vmatprep.mubr.msk.f32.mxu0 %vm6672_vm0, %v9641_v42 }
0x25b2   :  { %v4034_v0 = vmul.f32 %v9649_v13, %v4032_v41  ;;  %6300 = vmatprep.subr.bf16.mxu0 %v9642_v61  ;;  %v4043_v61 = vrot.slane %v9649_v13, %v6903_v21 }
0x25b4   :  { %4036 = vrot.lane.b32.xlu1 %v4034_v0, %s6675_s27 }
0x25b5   :  { %6302 = vmatpush3.bf16.msra.mxu0 %v9650_v18  ;;  %v4106_v41 = vpop.permute.xlu0 %4105 }
0x25b8   :  { %4101 = vbcast.lane.b32.xlu1 %v4099_v23, 256 }
0x25b9   :  { %v4125_v0 = vpop.permute.xlu0 %4124 }
0x25bc   :  { %4120 = vbcast.lane.b32.xlu1 %v4118_v53, 256 }
0x2626   :  { %v4037_v60 = vpop.permute.xlu1 %4036 }
0x2627   :  { %v8560_v24 = vadd.f32 %v4037_v60, %v4030_v25 }
0x2629   :  { %9652 = vst [vmem:[#allocation27_spill] sm:$0xff] %v8560_v24  ;;  %v4178_v49 = vrot.slane %v8560_v24, %v6903_v21  ;;  %v4197_v42 = vrot.slane %v8560_v24, %v9647_v19 }
0x262a   :  { %v4102_v6 = vpop.permute.xlu1 %4101 }
0x262b   :  { %4184 = vbcast.lane.b32.xlu0 %v4178_v49, 264  ;;  %4180 = vbcast.lane.b32.xlu1 %v4178_v49, 256 }
0x262e   :  { %v4121_v18 = vpop.permute.xlu1 %4120 }
0x262f   :  { %4203 = vbcast.lane.b32.xlu0 %v4197_v42, 264  ;;  %4199 = vbcast.lane.b32.xlu1 %v4197_v42, 256 }
0x2633   :  { %4128 = vbcast.lane.b32.xlu0 %v4118_v53, 272  ;;  %4109 = vbcast.lane.b32.xlu1 %v4099_v23, 272 }
0x2637   :  { %4207 = vbcast.lane.b32.xlu0 %v4197_v42, 272  ;;  %4188 = vbcast.lane.b32.xlu1 %v4178_v49, 272 }
0x263b   :  { %4050 = vbcast.lane.b32.xlu0 %v4043_v61, 328  ;;  %4046 = vbcast.lane.b32.xlu1 %v4043_v61, 320 }
0x263f   :  { %4070 = vbcast.lane.b32.xlu0 %v4063_v63, 328  ;;  %4066 = vbcast.lane.b32.xlu1 %v4063_v63, 320 }
0x2643   :  { %4132 = vbcast.lane.b32.xlu0 %v4118_v53, 280  ;;  %4113 = vbcast.lane.b32.xlu1 %v4099_v23, 280  ;;  %v6407_v53 = vld [vmem:[#allocation10] ss:$0 sm:$0xff] }
0x2644   :  { %v8579_v27 = vadd.f32 %v6407_v53, %v8541_v4  ;;  %v4141_v53 = vrot.slane %v9651_v44, %v6898_v15 }
0x2646   :  { %9654 = vst [vmem:[#allocation47_spill] sm:$0xff] %v8579_v27  ;;  %v5072_v13 = vsel %vm304_vm3, %v8579_v27, 0.0  ;;  %v4149_v52 = vrot.slane %v4141_v53, %v6898_v15 }
0x2647   :  { %4211 = vbcast.lane.b32.xlu0 %v4197_v42, 280  ;;  %4192 = vbcast.lane.b32.xlu1 %v4178_v49, 280 }
0x2648   :  { %v4160_v8 = vrot.slane %v4149_v52, %v6903_v21  ;;  %v9660_v52 = vclamps-f32 %v8397_v56, 5.0 }
0x264a   :  { %v4167_v35 = vmul.f32 %v4160_v8, %v4102_v6 }
0x264b   :  { %4074 = vbcast.lane.b32.xlu0 %v4063_v63, 336  ;;  %4054 = vbcast.lane.b32.xlu1 %v4043_v61, 336 }
0x264f   :  { %4078 = vbcast.lane.b32.xlu0 %v4063_v63, 344  ;;  %4058 = vbcast.lane.b32.xlu1 %v4043_v61, 344 }
0x2683   :  { %v4701_v29 = vpop.f32.mrb[20].mxu0 }
0x2684   :  { %v4702_v39 = vadd.f32 %v8573_v14, %v4701_v29  ;;  %v6179_v57 = vpop.f32.mrb[21].mxu0 }
0x2686   :  { %v4931_v34 = vrot.slane %v4702_v39, %v6903_v21  ;;  %v4950_v23 = vrot.slane %v4702_v39, %v9647_v19 }
0x2688   :  { %4937 = vbcast.lane.b32.xlu0 %v4931_v34, 264  ;;  %4933 = vbcast.lane.b32.xlu1 %v4931_v34, 256 }
0x268c   :  { %4956 = vbcast.lane.b32.xlu0 %v4950_v23, 264  ;;  %4952 = vbcast.lane.b32.xlu1 %v4950_v23, 256 }
0x2690   :  { %4960 = vbcast.lane.b32.xlu0 %v4950_v23, 272  ;;  %4941 = vbcast.lane.b32.xlu1 %v4931_v34, 272 }
0x2694   :  { %4964 = vbcast.lane.b32.xlu0 %v4950_v23, 280  ;;  %4945 = vbcast.lane.b32.xlu1 %v4931_v34, 280 }
0x269d   :  { %v4181_v25 = vpop.permute.xlu1 %4180  ;;  %v4185_v60 = vpop.permute.xlu0 %4184 }
0x269e   :  { %v4213_v14 = vmul.f32 %v4181_v25, %v9655_v62  ;;  %v4214_v44 = vmul.f32 %v4185_v60, %v9655_v62  ;;  %v4168_v25 = vmul.f32 %v4160_v8, %v4106_v41  ;;  %v9661_v60 = vld [vmem:[#allocation42_spill] sm:$0xff] }
0x26a0   :  { %v4221_v56 = vsub.f32 %v4167_v35, %v4213_v14 }
0x26a1   :  { %v4200_v49 = vpop.permute.xlu1 %4199  ;;  %v4204_v42 = vpop.permute.xlu0 %4203 }
0x26a2   :  { %v4217_v47 = vmul.f32 %v4200_v49, %v9661_v60  ;;  %v4218_v54 = vmul.f32 %v4204_v42, %v9661_v60 }
0x26a5   :  { %v4110_v61 = vpop.permute.xlu1 %4109  ;;  %v4129_v63 = vpop.permute.xlu0 %4128 }
0x26a9   :  { %v4189_v29 = vpop.permute.xlu1 %4188  ;;  %v4208_v39 = vpop.permute.xlu0 %4207 }
0x26aa   :  { %v4215_v55 = vmul.f32 %v4189_v29, %v9655_v62  ;;  %v4219_v41 = vmul.f32 %v4208_v39, %v9661_v60 }
0x26ad   :  { %v4047_v57 = vpop.permute.xlu1 %4046  ;;  %v4051_v34 = vpop.permute.xlu0 %4050 }
0x26ae   :  { %v4080_v36 = vsub.f32 1.0, %v4047_v57  ;;  %v4229_v14 = vmul.f32 %v4221_v56, %v4047_v57 }
0x26b0   :  { %v4088_v6 = vmul.f32 %v4080_v36, %v8368_v1 }
0x26b1   :  { %v4067_v4 = vpop.permute.xlu1 %4066  ;;  %v4071_v23 = vpop.permute.xlu0 %4070 }
0x26b2   :  { %v4085_v27 = vsub.f32 1.0, %v4071_v23 }
0x26b5   :  { %v4114_v48 = vpop.permute.xlu1 %4113  ;;  %v4133_v16 = vpop.permute.xlu0 %4132 }
0x26b6   :  { %v4170_v32 = vmul.f32 %v4160_v8, %v4114_v48 }
0x26b8   :  { %5073 = vadd.xlane.f32.xlu1 %v5072_v13  ;;  %v4142_v13 = vcombine.high %v4141_v53, %v4141_v53  ;;  %v4920_v53 = vmul.f32 %v9657_v11, %v9656_v45 }
0x26b9   :  { %v4193_v3 = vpop.permute.xlu1 %4192  ;;  %v4212_v46 = vpop.permute.xlu0 %4211 }
0x26ba   :  { %v4156_v38 = vrot.slane %v4142_v13, %v6898_v15  ;;  %v4081_v13 = vsub.f32 1.0, %v4051_v34  ;;  %v4216_v51 = vmul.f32 %v4193_v3, %v9655_v62 }
0x26bc   :  { %v4164_v7 = vrot.slane %v4156_v38, %v6903_v21  ;;  %v8604_v38 = vmul.f32 %v9660_v52, %v9656_v45  ;;  %v4222_v52 = vsub.f32 %v4168_v25, %v4214_v44  ;;  %v4084_v45 = vsub.f32 1.0, %v4067_v4 }
0x26bd   :  { %v4055_v24 = vpop.permute.xlu1 %4054  ;;  %v4075_v19 = vpop.permute.xlu0 %4074  ;;  %v4089_v49 = vmul.f32 %v4081_v13, %v8366_v40 }
0x26be   :  { %v4172_v50 = vmul.f32 %v4164_v7, %v4125_v0  ;;  %v4171_v11 = vmul.f32 %v4164_v7, %v4121_v18  ;;  %v4169_v0 = vmul.f32 %v4160_v8, %v4110_v61  ;;  %v4173_v35 = vmul.f32 %v4164_v7, %v4129_v63 }
0x26bf   :  { %v4230_v29 = vmul.f32 %v4222_v52, %v4051_v34  ;;  %v4092_v1 = vmul.f32 %v4084_v45, %v8381_v22  ;;  %v4082_v36 = vsub.f32 1.0, %v4055_v24  ;;  %v4086_v40 = vsub.f32 1.0, %v4075_v19 }
0x26c0   :  { %v4225_v18 = vsub.f32 %v4171_v11, %v4217_v47  ;;  %v4226_v44 = vsub.f32 %v4172_v50, %v4218_v54  ;;  %v4223_v39 = vsub.f32 %v4169_v0, %v4215_v55  ;;  %v4227_v13 = vsub.f32 %v4173_v35, %v4219_v41 }
0x26c1   :  { %v4059_v43 = vpop.permute.xlu1 %4058  ;;  %v4079_v42 = vpop.permute.xlu0 %4078  ;;  %v4093_v47 = vmul.f32 %v4085_v27, %v8375_v37  ;;  %v8624_v61 = vadd.f32 %v4229_v14, %v4088_v6  ;;  %v8626_v25 = vadd.f32 %v4230_v29, %v4089_v49  ;;  %v4174_v54 = vmul.f32 %v4164_v7, %v4133_v16 }
0x26c2   :  { %v4233_v9 = vmul.f32 %v4225_v18, %v4067_v4  ;;  %v4234_v11 = vmul.f32 %v4226_v44, %v4071_v23  ;;  %v4220_v55 = vmul.f32 %v4212_v46, %v9661_v60  ;;  %v4090_v37 = vmul.f32 %v4082_v36, %v8391_v20 }
0x26c3   :  { %v4094_v27 = vmul.f32 %v4086_v40, %v8389_v26  ;;  %v4083_v34 = vsub.f32 1.0, %v4059_v43  ;;  %v4087_v4 = vsub.f32 1.0, %v4079_v42  ;;  %v4224_v7 = vsub.f32 %v4170_v32, %v4216_v51 }
0x26c4   :  { %v8634_v50 = vadd.f32 %v4233_v9, %v4092_v1  ;;  %v8640_v3 = vadd.f32 %v4234_v11, %v4093_v47  ;;  %v4231_v46 = vmul.f32 %v4223_v39, %v4055_v24  ;;  %v4235_v16 = vmul.f32 %v4227_v13, %v4075_v19  ;;  %v9672_v9 = vld [vmem:[#allocation52_spill] sm:$0xff] }
0x26c5   :  { %v5115_v60 = vrot.slane %v5101_v17, %v6898_v15  ;;  %v4228_v20 = vsub.f32 %v4174_v54, %v4220_v55  ;;  %v4095_v19 = vmul.f32 %v4087_v4, %v8417_v58  ;;  %v4232_v18 = vmul.f32 %v4224_v7, %v4059_v43  ;;  %v9674_v55 = vld [vmem:[#allocation50_spill] sm:$0xff] }
0x26c6   :  { %v8648_v41 = vadd.f32 %v4231_v46, %v4090_v37  ;;  %v8650_v6 = vadd.f32 %v4235_v16, %v4094_v27  ;;  %v9668_v14 = vclamps-f32 %v8424_v12, 5.0  ;;  %v9673_v11 = vclamps-f32 %v9672_v9, 5.0  ;;  %v9679_v9 = vld [vmem:[#allocation30_spill] sm:$0xff] }
0x26c8   :  { %v4926_v29 = vmul.f32 %v9668_v14, %v7119_v31  ;;  %v4923_v32 = vmul.f32 %v9673_v11, %v7117_v30  ;;  %v9678_v14 = vld [vmem:[#allocation47_spill] sm:$0xff] }
0x26fa   :  { %v4934_v63 = vpop.permute.xlu1 %4933  ;;  %v4938_v57 = vpop.permute.xlu0 %4937 }
0x26fb   :  { %v4966_v22 = vmul.f32 %v4934_v63, %v8624_v61  ;;  %v4967_v45 = vmul.f32 %v4938_v57, %v8626_v25 }
0x26fd   :  { %v8636_v8 = vadd.f32 %v4966_v22, %v4920_v53  ;;  %v8638_v62 = vadd.f32 %v4967_v45, %v4921_v33  ;;  %v4091_v53 = vmul.f32 %v4083_v34, %v8422_v10  ;;  %v9667_v10 = vclamps-f32 %v8426_v2, 5.0 }
0x26fe   :  { %v4953_v48 = vpop.permute.xlu1 %4952  ;;  %v4957_v23 = vpop.permute.xlu0 %4956  ;;  %v9675_v22 = vclamps-f32 %v9674_v55, 5.0 }
0x26ff   :  { %9663 = vst [vmem:[#allocation44_spill] sm:$0xff] %v8636_v8  ;;  %9664 = vst [vmem:[#allocation33_spill] sm:$0xff] %v8638_v62  ;;  %v9382_v26 = vclamps-f32 %v8636_v8, 5.0  ;;  %v4970_v56 = vmul.f32 %v4953_v48, %v8634_v50  ;;  %v4971_v52 = vmul.f32 %v4957_v23, %v8640_v3  ;;  %v9383_v33 = vclamps-f32 %v8638_v62, 5.0 }
0x2700   :  { %v4922_v17 = vmul.f32 %v9667_v10, %v7119_v31  ;;  %v8675_v36 = vadd.f32 %v4232_v18, %v4091_v53  ;;  %v4927_v45 = vmul.f32 %v9675_v22, %v7117_v30  ;;  %v9681_v22 = vld [vmem:[#allocation31_spill] sm:$0xff] }
0x2701   :  { %v8654_v24 = vadd.f32 %v4970_v56, %v8604_v38  ;;  %v8656_v49 = vadd.f32 %v4971_v52, %v4925_v28  ;;  %v5126_v0 = vmul.f32 %v9382_v26, %v8618_v5  ;;  %v8668_v38 = vrot.slane %v5115_v60, %v6903_v21 }
0x2702   :  { %v4942_v35 = vpop.permute.xlu1 %4941  ;;  %v4961_v58 = vpop.permute.xlu0 %4960  ;;  %v4236_v28 = vmul.f32 %v4228_v20, %v4079_v42  ;;  %v5127_v12 = vmul.f32 %v9383_v33, %v8618_v5 }
0x2703   :  { %9665 = vst [vmem:[#allocation54_spill] sm:$0xff] %v8654_v24  ;;  %9666 = vst [vmem:[#allocation34_spill] sm:$0xff] %v8656_v49  ;;  %v9379_v44 = vclamps-f32 %v8656_v49, 5.0  ;;  %v4968_v39 = vmul.f32 %v4942_v35, %v8648_v41  ;;  %v4972_v43 = vmul.f32 %v4961_v58, %v8650_v6  ;;  %v9378_v1 = vclamps-f32 %v8654_v24, 5.0 }
0x2704   :  { %v5134_v2 = vsel %vm142_vm2, %v5126_v0, 0.0  ;;  %v8684_v42 = vadd.f32 %v4236_v28, %v4095_v19  ;;  %v5137_v34 = vsel %vm142_vm2, %v5127_v12, 0.0 }
0x2705   :  { %v8680_v40 = vadd.f32 %v4968_v39, %v4922_v17  ;;  %v8682_v13 = vadd.f32 %v4972_v43, %v4926_v29  ;;  %5135 = vadd.xlane.f32.xlu0 %v5134_v2  ;;  %v5131_v47 = vmul.f32 %v9379_v44, %v8668_v38  ;;  %v5130_v7 = vmul.f32 %v9378_v1, %v8668_v38 }
0x2706   :  { %9671 = vst [vmem:[#allocation42_spill] sm:$0xff] %v8684_v42  ;;  %v4946_v51 = vpop.permute.xlu1 %4945  ;;  %v4965_v63 = vpop.permute.xlu0 %4964 }
0x2707   :  { %9669 = vst [vmem:[#allocation49_spill] sm:$0xff] %v8680_v40  ;;  %9670 = vst [vmem:[#allocation41_spill] sm:$0xff] %v8682_v13  ;;  %v9376_v57 = vclamps-f32 %v8682_v13, 5.0  ;;  %v4969_v54 = vmul.f32 %v4946_v51, %v8675_v36  ;;  %v4973_v37 = vmul.f32 %v4965_v63, %v8684_v42  ;;  %v9380_v27 = vclamps-f32 %v8680_v40, 5.0  ;;  %v9680_v63 = vld [vmem:[#allocation29_spill] sm:$0xff] }
0x2708   :  { %v5149_v4 = vsel %vm142_vm2, %v5131_v47, 0.0  ;;  %v5146_v56 = vsel %vm142_vm2, %v5130_v7, 0.0  ;;  %v9682_v7 = vld [vmem:[#allocation32_spill] sm:$0xff] }
0x2709   :  { %v8704_v46 = vadd.f32 %v4969_v54, %v4923_v32  ;;  %v8706_v16 = vadd.f32 %v4973_v37, %v4927_v45  ;;  %5138 = vadd.xlane.f32.xlu0 %v5137_v34  ;;  %5150 = vadd.xlane.f32.xlu1 %v5149_v4  ;;  %v5132_v48 = vmul.f32 %v9376_v57, %v8668_v38 }
0x270a   :  { %v5128_v52 = vmul.f32 %v9380_v27, %v8618_v5 }
0x270b   :  { %9676 = vst [vmem:[#allocation52_spill] sm:$0xff] %v8704_v46  ;;  %9677 = vst [vmem:[#allocation50_spill] sm:$0xff] %v8706_v16  ;;  %v9377_v23 = vclamps-f32 %v8706_v16, 5.0  ;;  %v5152_v60 = vsel %vm142_vm2, %v5132_v48, 0.0  ;;  %v9381_v20 = vclamps-f32 %v8704_v46, 5.0 }
0x270c   :  { %v5140_v0 = vsel %vm142_vm2, %v5128_v52, 0.0 }
0x270d   :  { %5147 = vadd.xlane.f32.xlu0 %v5146_v56  ;;  %5153 = vadd.xlane.f32.xlu1 %v5152_v60  ;;  %v5133_v53 = vmul.f32 %v9377_v23, %v8668_v38  ;;  %v5129_v18 = vmul.f32 %v9381_v20, %v8618_v5 }
0x270f   :  { %v5155_v19 = vsel %vm142_vm2, %v5133_v53, 0.0  ;;  %v5143_v10 = vsel %vm142_vm2, %v5129_v18, 0.0 }
0x2711   :  { %5141 = vadd.xlane.f32.xlu0 %v5140_v0  ;;  %5156 = vadd.xlane.f32.xlu1 %v5155_v19 }
0x2715   :  { %5144 = vadd.xlane.f32.xlu0 %v5143_v10 }
0x2745   :  { %v5074_v17 = vpop.xlane.xlu1 %5073 }
0x2746   :  { %v5075_v35 = vmul.f32 0.0078125, %v5074_v17  ;;  %v9683_v17 = vld [vmem:[#allocation48_spill] sm:$0xff] }
0x2748   :  { %v5076_v29 = vsub.f32 %v9678_v14, %v5075_v35 }
0x274a   :  { %v5077_v58 = vmul.f32 %v5076_v29, %v5076_v29 }
0x274c   :  { %v5078_v28 = vsel %vm304_vm3, %v5077_v58, 0.0 }
0x274d   :  { %5079 = vadd.xlane.f32.xlu0 %v5078_v28 }
0x2792   :  { %v5136_v39 = vpop.xlane.xlu0 %5135 }
0x2793   :  { %v5169_v34 = vrot.slane %v5136_v39, %v9679_v9 }
0x2796   :  { %v5139_v43 = vpop.xlane.xlu0 %5138  ;;  %v5151_v2 = vpop.xlane.xlu1 %5150 }
0x2797   :  { %v5173_v54 = vrot.slane %v5139_v43, %v9680_v63  ;;  %v5192_v55 = vrot.slane %v5151_v2, %v9680_v63  ;;  %v9684_v2 = vld [vmem:[#allocation43_spill] sm:$0xff] }
0x2799   :  { %v5174_v56 = vsel %vm429_vm4, %v5173_v54, %v5169_v34  ;;  %v9686_v34 = vld [vmem:[#allocation46_spill] sm:$0xff] }
0x279a   :  { %v5148_v12 = vpop.xlane.xlu0 %5147  ;;  %v5154_v47 = vpop.xlane.xlu1 %5153 }
0x279b   :  { %v5188_v11 = vrot.slane %v5148_v12, %v9679_v9  ;;  %v5197_v45 = vrot.slane %v5154_v47, %v9681_v22  ;;  %v9685_v47 = vld [vmem:[#allocation35_spill] sm:$0xff] }
0x279d   :  { %v5193_v4 = vsel %vm429_vm4, %v5192_v55, %v5188_v11  ;;  %v5882_v11 = vld [vmem:[%s9418_s30 + $0xe] sm:$0x3] }
0x279e   :  { %v5142_v32 = vpop.xlane.xlu0 %5141  ;;  %v5157_v51 = vpop.xlane.xlu1 %5156  ;;  %v5198_v53 = vsel %vm436_vm5, %v5197_v45, %v5193_v4 }
0x279f   :  { %v5178_v37 = vrot.slane %v5142_v32, %v9681_v22  ;;  %v5202_v48 = vrot.slane %v5157_v51, %v9682_v7 }
0x27a1   :  { %v5179_v19 = vsel %vm436_vm5, %v5178_v37, %v5174_v56  ;;  %v5203_v0 = vsel %vm443_vm6, %v5202_v48, %v5198_v53 }
0x27a2   :  { %v5145_v60 = vpop.xlane.xlu0 %5144 }
0x27a3   :  { %v5183_v52 = vrot.slane %v5145_v60, %v9682_v7 }
0x27a5   :  { %v5184_v18 = vsel %vm443_vm6, %v5183_v52, %v5179_v19  ;;  %v9687_v52 = vld [vmem:[#allocation53_spill] sm:$0xff] }
0x27a6   :  { %v5204_v10 = vsel %vm464_vm7, %v5203_v0, %v5184_v18 }
0x27a7   :  { %v5206_v35 = vmul.f32 %v9683_v17, %v5204_v10 }
0x27a9   :  { %5208 = vrot.lane.b32.xlu1 %v5206_v35, %s6675_s27  ;;  %v9688_v35 = vld [vmem:[#allocation51_spill] sm:$0xff] }
0x27da   :  { %v5080_v14 = vpop.xlane.xlu0 %5079 }
0x27db   :  { %v5081_v58 = vmul.f32 0.0078125, %v5080_v14  ;;  %v9689_v14 = vld [vmem:[#allocation55_spill] sm:$0xff] }
0x27dd   :  { %v5082_v28 = vadd.f32 1e-05, %v5081_v58  ;;  %v4718_v58 = vrot.slane %v9689_v14, %v6903_v21 }
0x27df   :  { %6380 = vrsqrt.f32 %v5082_v28  ;;  %v9690_v28 = vld [vmem:[#allocation36_spill] sm:$0xff] }
0x27e9   :  { %v6381_v39 = vpop.eup %6380 }
0x27ea   :  { %v5084_v43 = vmul.f32 %v6381_v39, %v5076_v29  ;;  %v4738_v39 = vrot.slane %v9689_v14, %v9690_v28 }
0x27ec   :  { %v5085_v12 = vmul.f32 %v9684_v2, %v5084_v43  ;;  %v4774_v43 = vrot.slane %v9688_v35, %v6903_v21  ;;  %v4793_v2 = vrot.slane %v9688_v35, %v9690_v28 }
0x27ee   :  { %v5086_v9 = vadd.f32 %v9685_v47, %v5085_v12 }
0x27f0   :  { %v5087_v32 = vadd.f32 %v5882_v11, %v5086_v9 }
0x27f2   :  { %v5884_v54 = vmul.f32 -1.442695, %v5087_v32 }
0x27f4   :  { %6382 = vpow2.f32 %v5884_v54 }
0x27fe   :  { %v6383_v55 = vpop.eup %6382 }
0x27ff   :  { %v5091_v22 = vadd.f32 1.0, %v6383_v55 }
0x2801   :  { %6384 = vrcp.f32 %v5091_v22 }
0x280b   :  { %v8752_v45 = vpop.eup %6384 }
0x280c   :  { %v5212_v4 = vmul.f32 %v8752_v45, %v9686_v34 }
0x281b   :  { %v5209_v51 = vpop.permute.xlu1 %5208 }
0x281c   :  { %v5211_v63 = vadd.f32 %v5209_v51, %v5087_v32 }
0x281e   :  { %5214 = vrot.lane.b32.xlu0 %v5211_v63, %s6676_s28  ;;  %v9691_v63 = vld [vmem:[#allocation27_spill] sm:$0xff]  ;;  %s6679_s28 = smov [#allocation15]  }
0x281f   :  { %v4705_v54 = vmul.f32 %v9689_v14, %v9691_v63  ;;  %s5732_s29 = sshll.u32 %s6679_s28, 4  ;;  %s8830_s29 = int_to_ptr.vmem [resolvable:$true] %s5732_s29 }
0x2890   :  { %v5215_v29 = vpop.permute.xlu0 %5214 }
0x2891   :  { %v5217_v37 = vmul.f32 %v8752_v45, %v5215_v29 }
0x2893   :  { %5219 = vrot.lane.b32.xlu1 %v5217_v37, %s6675_s27 }
0x2905   :  { %v5220_v7 = vpop.permute.xlu1 %5219 }
0x2906   :  { %v5222_v48 = vadd.f32 %v5220_v7, %v5212_v4 }
0x2908   :  { %6386 = vtanh.f32 %v5222_v48  ;;  %5676 = vst.msk [vmem:[#allocation11] sm:$0x3] %vm130_vm1, %v5222_v48  ;;  %v5393_v48 = vrot.slane %v8752_v45, %v6903_v21 }
0x2912   :  { %v8759_v60 = vpop.eup %6386 }
0x2913   :  { %5674 = vst.msk [vmem:[#allocation18 + $0xe] sm:$0x3] %vm130_vm1, %v8759_v60  ;;  %5675 = vst.msk [vmem:[#allocation12] sm:$0x3] %vm130_vm1, %v8759_v60  ;;  %6200 = vmatmul.mubr.msk.f32.vlgmr.msra.gmra.mrb[22].mxu0 %vm142_vm2, %v8759_v60 }
0x29e6   :  { %v5293_v56 = vpop.f32.mrb[22].mxu0 }
0x29e7   :  { %v5294_v53 = vadd.f32 %v9687_v52, %v5293_v56  ;;  %v6201_v19 = vpop.f32.mrb[23].mxu0  ;;  %v5413_v56 = vrot.slane %v8752_v45, %v9690_v28  ;;  %v5449_v52 = vrot.slane %v8759_v60, %v6903_v21 }
0x29e9   :  { %v5297_v0 = vsel %vm564_vm8, %v5294_v53, -inf }
0x29ea   :  { %5298 = vmax.xlane.f32.xlu1 %v5297_v0 }
0x29fb   :  { %5381 = vrot.lane.b32.xlu1 %v8759_v60, %s6677_s26 }
0x2a77   :  { %v5299_v18 = vpop.xlane.xlu1 %5298 }
0x2a78   :  { %vm5300_vm0 = vcmp.ge.f32.partialorder %v5294_v53, %v5299_v18 }
0x2a79   :  { %v5301_v10 = vsel %vm5300_vm0, -inf, %v5294_v53 }
0x2a7a   :  { %v5302_v17 = vsel %vm564_vm8, %v5301_v10, -inf }
0x2a7b   :  { %5303 = vmax.xlane.f32.xlu0 %v5302_v17  ;;  %v5382_v32 = vpop.permute.xlu1 %5381 }
0x2a7c   :  { %v5384_v51 = vmul.f32 %v8752_v45, %v5382_v32 }
0x2a91   :  { %4706 = vrot.lane.b32.xlu0 %v9688_v35, %s6677_s26 }
0x2a95   :  { %4721 = vbcast.lane.b32.xlu0 %v4718_v58, 320 }
0x2a99   :  { %4729 = vbcast.lane.b32.xlu0 %v4718_v58, 336 }
0x2a9d   :  { %4741 = vbcast.lane.b32.xlu0 %v4738_v39, 320 }
0x2aa1   :  { %4749 = vbcast.lane.b32.xlu0 %v4738_v39, 336 }
0x2aa5   :  { %4776 = vbcast.lane.b32.xlu0 %v4774_v43, 256 }
0x2aa9   :  { %4784 = vbcast.lane.b32.xlu0 %v4774_v43, 272 }
0x2aad   :  { %4795 = vbcast.lane.b32.xlu0 %v4793_v2, 256 }
0x2ab1   :  { %4803 = vbcast.lane.b32.xlu0 %v4793_v2, 272 }
0x2b08   :  { %v5304_v12 = vpop.xlane.xlu0 %5303 }
0x2b09   :  { %vm5305_vm3 = vcmp.ge.f32.partialorder %v5294_v53, %v5304_v12 }
0x2b0a   :  { %v5306_v47 = vsel %vm5305_vm3, %v5294_v53, 0.0  ;;  %v5468_v53 = vrot.slane %v8759_v60, %v9690_v28 }
0x2b0b   :  { %6205 = vmatmul.mubr.msk.f32.vlgmr.msra.gmra.mrb[22].mxu1 %vm581_vm10, %v5306_v47 }
0x2b0c   :  { %v4707_v9 = vpop.permute.xlu0 %4706 }
0x2b0d   :  { %v4709_v11 = vmul.f32 %v9689_v14, %v4707_v9 }
0x2b0f   :  { %4711 = vrot.lane.b32.xlu1 %v4709_v11, %s6675_s27 }
0x2b10   :  { %v8808_v0 = vpop.permute.xlu0 %4721 }
0x2b13   :  { %5386 = vrot.lane.b32.xlu1 %v5384_v51, %s6675_s27  ;;  %s6678_s27 = smov [#allocation12]  }
0x2b14   :  { %v8812_v18 = vpop.permute.xlu0 %4729  ;;  %s5710_s30 = sshll.u32 %s6678_s27, 4  ;;  %s5711_s30 = int_to_ptr.vmem [resolvable:$true] %s5710_s30 }
0x2b15   :  { %s6518_s0 = scalar_lea.vmem %s5711_s30, 32  ;;  %p6523_p13 = scmp.lt.s32.totalorder %s5711_s30, %s5711_s30 }
0x2b16   :  { %p6519_p12 = scmp.ne.s32.totalorder %s5711_s30, %s6518_s0  ;;  %p6524_p0 = scmp.lt.s32.totalorder %s6518_s0, %s6518_s0 }
0x2b17   :  { %4725 = vbcast.lane.b32.xlu1 %v4718_v58, 328 }
0x2b18   :  { %v8816_v17 = vpop.permute.xlu0 %4741  ;;  %p6525_p1 = por %p6524_p0, %p6523_p13 }
0x2b1a   :  { %p6526_p2 = pnand %p6525_p1, %p6519_p12 }
0x2b1b   :  { %4733 = vbcast.lane.b32.xlu1 %v4718_v58, 344 }
0x2b1c   :  { %v8820_v14 = vpop.permute.xlu0 %4749 }
0x2b1f   :  { %4745 = vbcast.lane.b32.xlu1 %v4738_v39, 328 }
0x2b20   :  { %v8826_v9 = vpop.permute.xlu0 %4776 }
0x2b23   :  { %4753 = vbcast.lane.b32.xlu1 %v4738_v39, 344 }
0x2b24   :  { %v8832_v32 = vpop.permute.xlu0 %4784 }
0x2b27   :  { %4780 = vbcast.lane.b32.xlu1 %v4774_v43, 264 }
0x2b2b   :  { %4788 = vbcast.lane.b32.xlu1 %v4774_v43, 280  ;;  %v9692_v43 = vld [vmem:[#allocation28_spill] sm:$0xff] }
0x2b2f   :  { %4799 = vbcast.lane.b32.xlu1 %v4793_v2, 264 }
0x2b33   :  { %4807 = vbcast.lane.b32.xlu1 %v4793_v2, 280 }
0x2b81   :  { %v4712_v55 = vpop.permute.xlu1 %4711 }
0x2b82   :  { %v8789_v22 = vadd.f32 %v4712_v55, %v4705_v54 }
0x2b84   :  { %v5380_v29 = vmul.f32 %v8752_v45, %v8789_v22  ;;  %v4853_v37 = vrot.slane %v8789_v22, %v6903_v21  ;;  %v4872_v7 = vrot.slane %v8789_v22, %v9690_v28 }
0x2b85   :  { %v5387_v34 = vpop.permute.xlu1 %5386 }
0x2b86   :  { %v5389_v4 = vadd.f32 %v5387_v34, %v5380_v29  ;;  %4859 = vbcast.lane.b32.xlu1 %v4853_v37, 264  ;;  %4855 = vbcast.lane.b32.xlu0 %v4853_v37, 256 }
0x2b88   :  { %5685 = vst.msk [vmem:[#allocation15] sm:$0x3] %vm130_vm1, %v5389_v4  ;;  %v5528_v19 = vrot.slane %v5389_v4, %v6903_v21  ;;  %v5547_v45 = vrot.slane %v5389_v4, %v9690_v28 }
0x2b89   :  { %v8810_v60 = vpop.permute.xlu1 %4725 }
0x2b8a   :  { %4867 = vbcast.lane.b32.xlu1 %v4853_v37, 280  ;;  %4863 = vbcast.lane.b32.xlu0 %v4853_v37, 272 }
0x2b8d   :  { %v8814_v10 = vpop.permute.xlu1 %4733 }
0x2b8e   :  { %4878 = vbcast.lane.b32.xlu1 %v4872_v7, 264  ;;  %4874 = vbcast.lane.b32.xlu0 %v4872_v7, 256 }
0x2b91   :  { %v8818_v35 = vpop.permute.xlu1 %4745 }
0x2b92   :  { %4886 = vbcast.lane.b32.xlu1 %v4872_v7, 280  ;;  %4882 = vbcast.lane.b32.xlu0 %v4872_v7, 272 }
0x2b95   :  { %v8822_v58 = vpop.permute.xlu1 %4753 }
0x2b96   :  { %5400 = vbcast.lane.b32.xlu1 %v5393_v48, 328  ;;  %5396 = vbcast.lane.b32.xlu0 %v5393_v48, 320 }
0x2b99   :  { %v8828_v11 = vpop.permute.xlu1 %4780 }
0x2b9a   :  { %5408 = vbcast.lane.b32.xlu1 %v5393_v48, 344  ;;  %5404 = vbcast.lane.b32.xlu0 %v5393_v48, 336 }
0x2b9d   :  { %v8834_v51 = vpop.permute.xlu1 %4788 }
0x2b9e   :  { %5420 = vbcast.lane.b32.xlu1 %v5413_v56, 328  ;;  %5416 = vbcast.lane.b32.xlu0 %v5413_v56, 320 }
0x2ba2   :  { %5455 = vbcast.lane.b32.xlu1 %v5449_v52, 264  ;;  %5451 = vbcast.lane.b32.xlu0 %v5449_v52, 256 }
0x2ba6   :  { %5463 = vbcast.lane.b32.xlu1 %v5449_v52, 280  ;;  %5459 = vbcast.lane.b32.xlu0 %v5449_v52, 272 }
0x2baa   :  { %5474 = vbcast.lane.b32.xlu1 %v5468_v53, 264  ;;  %5470 = vbcast.lane.b32.xlu0 %v5468_v53, 256 }
0x2bae   :  { %5482 = vbcast.lane.b32.xlu1 %v5468_v53, 280  ;;  %5478 = vbcast.lane.b32.xlu0 %v5468_v53, 272 }
0x2bb2   :  { %5534 = vbcast.lane.b32.xlu1 %v5528_v19, 264  ;;  %5530 = vbcast.lane.b32.xlu0 %v5528_v19, 256 }
0x2bb6   :  { %5542 = vbcast.lane.b32.xlu1 %v5528_v19, 280  ;;  %5538 = vbcast.lane.b32.xlu0 %v5528_v19, 272 }
0x2bba   :  { %5553 = vbcast.lane.b32.xlu1 %v5547_v45, 264  ;;  %5549 = vbcast.lane.b32.xlu0 %v5547_v45, 256 }
0x2bbe   :  { %5561 = vbcast.lane.b32.xlu1 %v5547_v45, 280  ;;  %5557 = vbcast.lane.b32.xlu0 %v5547_v45, 272 }
0x2bc2   :  { %5428 = vbcast.lane.b32.xlu1 %v5413_v56, 344  ;;  %5424 = vbcast.lane.b32.xlu0 %v5413_v56, 336 }
0x2bde   :  { %v5376_v39 = vpop.f32.mrb[22].mxu1 }
0x2bdf   :  { %v5377_v2 = vadd.f32 %v9692_v43, %v5376_v39  ;;  %v6206_v12 = vpop.f32.mrb[23].mxu1 }
0x2be1   :  { %v5606_v47 = vrot.slane %v5377_v2, %v6903_v21 }
0x2be3   :  { %5612 = vbcast.lane.b32.xlu1 %v5606_v47, 264  ;;  %5608 = vbcast.lane.b32.xlu0 %v5606_v47, 256 }
0x2be7   :  { %5620 = vbcast.lane.b32.xlu1 %v5606_v47, 280  ;;  %5616 = vbcast.lane.b32.xlu0 %v5606_v47, 272 }
0x2be8   :  { %6529 = shalt.err (!%p6526_p2)
}
0x2be9   :  { %s6530_s11 = scalar_lea.hbm %s9146_s17, 32 }
0x2bea   :  { %p6531_p3 = scmp.ne.s32.totalorder %s9146_s17, %s6530_s11  ;;  %p6534_p4 = scmp.lt.u32.totalorder %s6530_s11, %s9146_s17 }
0x2bec   :  { %p6536_p5 = pnand %p6534_p4, %p6531_p3 }
0x2bee   :  { %6539 = shalt.err (!%p6536_p5)
}
0x2bef   :  { %5713 = dma.vmem_to_hbm [thread:$0]  %s5711_s30, 32, %s9146_s17, [#allocation13]   ;;  %v5625_v54 = vrot.slane %v5377_v2, %v9690_v28 }
0x2bf0   :  { %s6540_s3 = scalar_lea.vmem %s8830_s29, 32  ;;  %p6545_p7 = scmp.lt.s32.totalorder %s8830_s29, %s8830_s29 }
0x2bf1   :  { %p6541_p6 = scmp.ne.s32.totalorder %s8830_s29, %s6540_s3  ;;  %p6546_p8 = scmp.lt.s32.totalorder %s6540_s3, %s6540_s3 }
0x2bf3   :  { %p6547_p9 = por %p6546_p8, %p6545_p7 }
0x2bf5   :  { %p6548_p10 = pnand %p6547_p9, %p6541_p6 }
0x2bf7   :  { %6551 = shalt.err (!%p6548_p10)
}
0x2bf8   :  { %s6552_s20 = scalar_lea.hbm %s9148_s19, 32 }
0x2bf9   :  { %p6553_p11 = scmp.ne.s32.totalorder %s9148_s19, %s6552_s20  ;;  %p6556_p12 = scmp.lt.u32.totalorder %s6552_s20, %s9148_s19 }
0x2bfb   :  { %p6558_p13 = pnand %p6556_p12, %p6553_p11 }
0x2bfd   :  { %6561 = shalt.err (!%p6558_p13)
}
0x2bfe   :  { %5735 = dma.vmem_to_hbm [thread:$0]  %s8830_s29, 32, %s9148_s19, [#allocation16]   ;;  %5631 = vbcast.lane.b32.xlu1 %v5625_v54, 264  ;;  %5627 = vbcast.lane.b32.xlu0 %v5625_v54, 256 }
0x2bff   :  { %s6680_s15 = smov [#allocation11]  }
0x2c00   :  { %s5700_s2 = sshll.u32 %s6680_s15, 4  ;;  %s5701_s2 = int_to_ptr.vmem [resolvable:$true] %s5700_s2 }
0x2c01   :  { %s6562_s27 = scalar_lea.vmem %s5701_s2, 32  ;;  %p6567_p1 = scmp.lt.s32.totalorder %s5701_s2, %s5701_s2 }
0x2c02   :  { %p6563_p0 = scmp.ne.s32.totalorder %s5701_s2, %s6562_s27  ;;  %p6568_p2 = scmp.lt.s32.totalorder %s6562_s27, %s6562_s27 }
0x2c04   :  { %p6569_p3 = por %p6568_p2, %p6567_p1 }
0x2c06   :  { %p6570_p4 = pnand %p6569_p3, %p6563_p0 }
0x2c08   :  { %6573 = shalt.err (!%p6570_p4)
}
0x2c09   :  { %s6574_s0 = scalar_lea.hbm %s9145_s16, 32 }
0x2c0a   :  { %p6575_p5 = scmp.ne.s32.totalorder %s9145_s16, %s6574_s0  ;;  %p6578_p6 = scmp.lt.u32.totalorder %s6574_s0, %s9145_s16 }
0x2c0c   :  { %p6580_p7 = pnand %p6578_p6, %p6575_p5 }
0x2c0e   :  { %6583 = shalt.err (!%p6580_p7)
}
0x2c0f   :  { %5703 = dma.vmem_to_hbm [thread:$0]  %s5701_s2, 32, %s9145_s16, [#allocation4]   ;;  %v8878_v28 = vpop.permute.xlu0 %4795  ;;  %v8880_v55 = vpop.permute.xlu1 %4799  ;;  %5639 = vbcast.lane.b32.xlu1 %v5625_v54, 280  ;;  %5635 = vbcast.lane.b32.xlu0 %v5625_v54, 272 }
0x2c10   :  { %s6681_s1 = smov [#allocation18]  }
0x2c11   :  { %s5753_s21 = sshll.u32 %s6681_s1, 4  ;;  %s5754_s21 = int_to_ptr.vmem [resolvable:$true] %s5753_s21 }
0x2c12   :  { %s6584_s14 = scalar_lea.vmem %s5754_s21, 256  ;;  %p6589_p9 = scmp.lt.s32.totalorder %s5754_s21, %s5754_s21 }
0x2c13   :  { %p6585_p8 = scmp.ne.s32.totalorder %s5754_s21, %s6584_s14  ;;  %p6590_p10 = scmp.lt.s32.totalorder %s6584_s14, %s6584_s14 }
0x2c15   :  { %p6591_p11 = por %p6590_p10, %p6589_p9 }
0x2c17   :  { %p6592_p12 = pnand %p6591_p11, %p6585_p8 }
0x2c19   :  { %6595 = shalt.err (!%p6592_p12)
}
0x2c1a   :  { %s9693_s3 = sld [smem:[#allocation65_spill]] }
0x2c20   :  { %s6596_s16 = scalar_lea.hbm %s9693_s3, 256 }
0x2c21   :  { %p6597_p13 = scmp.ne.s32.totalorder %s9693_s3, %s6596_s16  ;;  %p6600_p0 = scmp.lt.u32.totalorder %s6596_s16, %s9693_s3 }
0x2c23   :  { %p6602_p1 = pnand %p6600_p0, %p6597_p13 }
0x2c25   :  { %6605 = shalt.err (!%p6602_p1)
}
0x2c26   :  { %s6682_s8 = smov 2   ;;  %v4804_v29 = vpop.permute.xlu0 %4803  ;;  %v8896_v37 = vpop.permute.xlu1 %4807  ;;  %v4816_v12 = vrot.slane %v9691_v63, %v6898_v15  ;;  %v5491_v27 = vrot.slane %v8789_v22, %v6898_v15  ;;  %v9694_v26 = vld [vmem:[#allocation56_spill] sm:$0xff]  ;;  %v4755_v13 = vsub.f32 1.0, %v8808_v0  ;;  %v4757_v22 = vsub.f32 1.0, %v8812_v18 }
0x2c27   :  { %5759 = dma.vmem_to_hbm [thread:$0]  %s5754_s21, 256, %s9693_s3, [#allocation19], %s6677_s26, %s6677_s26, %s6682_s8   ;;  %v4756_v42 = vsub.f32 1.0, %v8810_v60 }
0x2c28   :  { %v4824_v57 = vrot.slane %v4816_v12, %v6898_v15  ;;  %v4817_v23 = vcombine.high %v4816_v12, %v4816_v12  ;;  %v5492_v31 = vcombine.high %v5491_v27, %v5491_v27  ;;  %s6683_s26 = smov [#allocation17]  }
0x2c29   :  { %s5741_s13 = sshll.u32 %s6683_s26, 4  ;;  %s5742_s13 = int_to_ptr.vmem [resolvable:$true] %s5741_s13 }
0x2c2a   :  { %v4856_v34 = vpop.permute.xlu0 %4855  ;;  %v4860_v4 = vpop.permute.xlu1 %4859  ;;  %v4835_v20 = vrot.slane %v4824_v57, %v6903_v21  ;;  %v4831_v16 = vrot.slane %v4817_v23, %v6898_v15  ;;  %s6606_s12 = scalar_lea.vmem %s5742_s13, 1024  ;;  %p6611_p3 = scmp.lt.s32.totalorder %s5742_s13, %s5742_s13 }
0x2c2b   :  { %v4888_v33 = vmul.f32 %v4856_v34, %v9694_v26  ;;  %v4889_v63 = vmul.f32 %v4860_v4, %v9694_v26  ;;  %v4759_v4 = vsub.f32 1.0, %v8816_v17  ;;  %p6607_p2 = scmp.ne.s32.totalorder %s5742_s13, %s6606_s12  ;;  %p6612_p4 = scmp.lt.s32.totalorder %s6606_s12, %s6606_s12 }
0x2c2c   :  { %v4842_v57 = vmul.f32 %v4835_v20, %v8826_v9  ;;  %v4843_v34 = vmul.f32 %v4835_v20, %v8828_v11  ;;  %v4844_v46 = vmul.f32 %v4835_v20, %v8832_v32  ;;  %v4845_v23 = vmul.f32 %v4835_v20, %v8834_v51 }
0x2c2d   :  { %v4765_v11 = vmul.f32 %v4757_v22, %v8648_v41  ;;  %v5499_v32 = vrot.slane %v5491_v27, %v6898_v15  ;;  %v5506_v20 = vrot.slane %v5492_v31, %v6898_v15  ;;  %p6613_p5 = por %p6612_p4, %p6611_p3 }
0x2c2e   :  { %v4864_v7 = vpop.permute.xlu0 %4863  ;;  %v4868_v48 = vpop.permute.xlu1 %4867  ;;  %v4897_v30 = vsub.f32 %v4843_v34, %v4889_v63 }
0x2c2f   :  { %v4890_v24 = vmul.f32 %v4864_v7, %v9694_v26  ;;  %v4891_v12 = vmul.f32 %v4868_v48, %v9694_v26  ;;  %v4896_v7 = vsub.f32 %v4842_v57, %v4888_v33  ;;  %v4763_v26 = vmul.f32 %v4755_v13, %v8624_v61  ;;  %p6614_p6 = pnand %p6613_p5, %p6607_p2 }
0x2c30   :  { %v4839_v48 = vrot.slane %v4831_v16, %v6903_v21  ;;  %v8951_v33 = vmul.f32 %v4759_v4, %v8634_v50  ;;  %v4761_v61 = vsub.f32 1.0, %v8820_v14  ;;  %v4760_v13 = vsub.f32 1.0, %v8818_v35 }
0x2c31   :  { %v4898_v8 = vsub.f32 %v4844_v46, %v4890_v24  ;;  %v4899_v62 = vsub.f32 %v4845_v23, %v4891_v12  ;;  %v4758_v24 = vsub.f32 1.0, %v8814_v10  ;;  %v9695_v46 = vld [vmem:[#allocation45_spill] sm:$0xff]  ;;  %v4905_v41 = vmul.f32 %v4897_v30, %v8810_v60 }
0x2c32   :  { %v4875_v56 = vpop.permute.xlu0 %4874  ;;  %v4879_v52 = vpop.permute.xlu1 %4878  ;;  %v4904_v63 = vmul.f32 %v4896_v7, %v8808_v0  ;;  %v4846_v27 = vmul.f32 %v4839_v48, %v8878_v28  ;;  %v8961_v15 = vmul.f32 %v4839_v48, %v4804_v29  ;;  %v5510_v30 = vrot.slane %v5499_v32, %v6903_v21 }
0x2c33   :  { %v4892_v16 = vmul.f32 %v4875_v56, %v9695_v46  ;;  %v4893_v51 = vmul.f32 %v4879_v52, %v9695_v46  ;;  %v4907_v12 = vmul.f32 %v4899_v62, %v8814_v10  ;;  %v4906_v22 = vmul.f32 %v4898_v8, %v8812_v18 }
0x2c34   :  { %v4764_v56 = vmul.f32 %v4756_v42, %v8626_v25  ;;  %v4847_v52 = vmul.f32 %v4839_v48, %v8880_v55  ;;  %v8973_v0 = vrot.slane %v5506_v20, %v6903_v21  ;;  %v4766_v60 = vmul.f32 %v4758_v24, %v8675_v36 }
0x2c35   :  { %v4768_v28 = vmul.f32 %v4760_v13, %v8640_v3  ;;  %v4762_v29 = vsub.f32 1.0, %v8822_v58  ;;  %v4849_v57 = vmul.f32 %v4839_v48, %v8896_v37  ;;  %v4900_v62 = vsub.f32 %v4846_v27, %v4892_v16 }
0x2c36   :  { %v8898_v53 = vpop.permute.xlu0 %4882  ;;  %v8900_v19 = vpop.permute.xlu1 %4886  ;;  %v4901_v10 = vsub.f32 %v4847_v52, %v4893_v51  ;;  %v8979_v8 = vadd.f32 %v4905_v41, %v4764_v56  ;;  %v8981_v25 = vadd.f32 %v4904_v63, %v4763_v26  ;;  %v8985_v34 = vadd.f32 %v4907_v12, %v4766_v60 }
0x2c37   :  { %v8987_v36 = vadd.f32 %v4906_v22, %v4765_v11  ;;  %v4894_v7 = vmul.f32 %v8898_v53, %v9695_v46  ;;  %v4895_v26 = vmul.f32 %v8900_v19, %v9695_v46 }
0x2c39   :  { %v4903_v27 = vsub.f32 %v4849_v57, %v4895_v26 }
0x2c3a   :  { %v8902_v45 = vpop.permute.xlu0 %5396  ;;  %v8904_v39 = vpop.permute.xlu1 %5400 }
0x2c3b   :  { %v5430_v42 = vsub.f32 1.0, %v8902_v45  ;;  %v5431_v18 = vsub.f32 1.0, %v8904_v39 }
0x2c3d   :  { %v5439_v53 = vmul.f32 %v5431_v18, %v8979_v8  ;;  %v5438_v19 = vmul.f32 %v5430_v42, %v8981_v25 }
0x2c3e   :  { %v8906_v43 = vpop.permute.xlu0 %5404  ;;  %v8908_v2 = vpop.permute.xlu1 %5408 }
0x2c3f   :  { %v5432_v48 = vsub.f32 1.0, %v8906_v43  ;;  %v5433_v32 = vsub.f32 1.0, %v8908_v2 }
0x2c42   :  { %v8912_v47 = vpop.permute.xlu0 %5416  ;;  %v8914_v54 = vpop.permute.xlu1 %5420 }
0x2c46   :  { %v8917_v1 = vpop.permute.xlu0 %5451  ;;  %v8919_v44 = vpop.permute.xlu1 %5455 }
0x2c47   :  { %v5517_v3 = vmul.f32 %v5510_v30, %v8917_v1  ;;  %v5518_v37 = vmul.f32 %v5510_v30, %v8919_v44  ;;  %v4909_v1 = vmul.f32 %v4901_v10, %v8818_v35  ;;  %v4908_v44 = vmul.f32 %v4900_v62, %v8816_v17 }
0x2c48   :  { %v4902_v17 = vsub.f32 %v8961_v15, %v4894_v7 }
0x2c49   :  { %v9024_v18 = vadd.f32 %v4909_v1, %v4768_v28 }
0x2c4a   :  { %v8930_v49 = vpop.permute.xlu0 %5459  ;;  %v8932_v40 = vpop.permute.xlu1 %5463 }
0x2c4b   :  { %v5519_v24 = vmul.f32 %v5510_v30, %v8930_v49  ;;  %v5520_v13 = vmul.f32 %v5510_v30, %v8932_v40  ;;  %v5441_v49 = vmul.f32 %v5433_v32, %v8985_v34  ;;  %v5440_v40 = vmul.f32 %v5432_v48, %v8987_v36 }
0x2c4c   :  { %v5434_v30 = vsub.f32 1.0, %v8912_v47 }
0x2c4e   :  { %v8942_v59 = vpop.permute.xlu0 %5470  ;;  %v8944_v9 = vpop.permute.xlu1 %5474 }
0x2c52   :  { %v8963_v31 = vpop.permute.xlu0 %5478  ;;  %v8965_v50 = vpop.permute.xlu1 %5482 }
0x2c56   :  { %v5531_v21 = vpop.permute.xlu0 %5530  ;;  %v5535_v55 = vpop.permute.xlu1 %5534 }
0x2c57   :  { %v5563_v4 = vmul.f32 %v5531_v21, %v8618_v5  ;;  %v5564_v23 = vmul.f32 %v5535_v55, %v8618_v5  ;;  %v4910_v21 = vmul.f32 %v4902_v17, %v8820_v14 }
0x2c59   :  { %v5571_v11 = vsub.f32 %v5517_v3, %v5563_v4  ;;  %v5572_v20 = vsub.f32 %v5518_v37, %v5564_v23  ;;  %v5523_v37 = vmul.f32 %v8973_v0, %v8963_v31  ;;  %v5524_v4 = vmul.f32 %v8973_v0, %v8965_v50  ;;  %v9696_v50 = vld [vmem:[#allocation42_spill] sm:$0xff] }
0x2c5a   :  { %v5539_v16 = vpop.permute.xlu0 %5538  ;;  %v5543_v51 = vpop.permute.xlu1 %5542  ;;  %v4769_v31 = vmul.f32 %v4761_v61, %v8650_v6 }
0x2c5b   :  { %v5579_v46 = vmul.f32 %v5571_v11, %v8902_v45  ;;  %v5580_v41 = vmul.f32 %v5572_v20, %v8904_v39  ;;  %v5565_v63 = vmul.f32 %v5539_v16, %v8618_v5  ;;  %v5566_v35 = vmul.f32 %v5543_v51, %v8618_v5 }
0x2c5c   :  { %v5435_v45 = vsub.f32 1.0, %v8914_v54  ;;  %v5521_v39 = vmul.f32 %v8973_v0, %v8942_v59  ;;  %v5522_v5 = vmul.f32 %v8973_v0, %v8944_v9  ;;  %v9027_v59 = vadd.f32 %v4908_v44, %v8951_v33 }
0x2c5d   :  { %v5573_v12 = vsub.f32 %v5519_v24, %v5565_v63  ;;  %v5574_v22 = vsub.f32 %v5520_v13, %v5566_v35  ;;  %v5588_v56 = vadd.f32 %v5580_v41, %v5439_v53  ;;  %v5587_v52 = vadd.f32 %v5579_v46, %v5438_v19 }
0x2c5e   :  { %v5550_v15 = vpop.permute.xlu0 %5549  ;;  %v5554_v60 = vpop.permute.xlu1 %5553  ;;  %v4911_v9 = vmul.f32 %v4903_v27, %v8822_v58  ;;  %v5443_v7 = vmul.f32 %v5435_v45, %v9024_v18  ;;  %v5442_v33 = vmul.f32 %v5434_v30, %v9027_v59  ;;  %v4770_v0 = vmul.f32 %v4762_v29, %v9696_v50 }
0x2c5f   :  { %v5581_v57 = vmul.f32 %v5573_v12, %v8906_v43  ;;  %v5582_v62 = vmul.f32 %v5574_v22, %v8908_v2  ;;  %v5567_v10 = vmul.f32 %v5550_v15, %v8668_v38  ;;  %v5568_v42 = vmul.f32 %v5554_v60, %v8668_v38  ;;  %5687 = vst.msk [vmem:[#allocation17 + $0x8] sm:$0xff] %vm142_vm2, %v5588_v56 }
0x2c60   :  { %5686 = vst.msk [vmem:[#allocation17] sm:$0xff] %vm142_vm2, %v5587_v52  ;;  %v9051_v16 = vadd.f32 %v4911_v9, %v4770_v0  ;;  %v9053_v14 = vadd.f32 %v4910_v21, %v4769_v31 }
0x2c61   :  { %v5575_v43 = vsub.f32 %v5521_v39, %v5567_v10  ;;  %v5576_v55 = vsub.f32 %v5522_v5, %v5568_v42  ;;  %v5590_v2 = vadd.f32 %v5582_v62, %v5441_v49  ;;  %v5589_v3 = vadd.f32 %v5581_v57, %v5440_v40 }
0x2c62   :  { %v5558_v23 = vpop.permute.xlu0 %5557  ;;  %v5562_v28 = vpop.permute.xlu1 %5561 }
0x2c63   :  { %v5583_v26 = vmul.f32 %v5575_v43, %v8912_v47  ;;  %v5584_v48 = vmul.f32 %v5576_v55, %v8914_v54  ;;  %v5569_v32 = vmul.f32 %v5558_v23, %v8668_v38  ;;  %v5570_v11 = vmul.f32 %v5562_v28, %v8668_v38  ;;  %5689 = vst.msk [vmem:[#allocation17 + $0x18] sm:$0xff] %vm142_vm2, %v5590_v2 }
0x2c64   :  { %5688 = vst.msk [vmem:[#allocation17 + $0x10] sm:$0xff] %vm142_vm2, %v5589_v3 }
0x2c65   :  { %v5577_v20 = vsub.f32 %v5523_v37, %v5569_v32  ;;  %v5578_v47 = vsub.f32 %v5524_v4, %v5570_v11  ;;  %v5592_v1 = vadd.f32 %v5584_v48, %v5443_v7  ;;  %v5591_v54 = vadd.f32 %v5583_v26, %v5442_v33 }
0x2c66   :  { %v5425_v44 = vpop.permute.xlu0 %5424  ;;  %v5429_v24 = vpop.permute.xlu1 %5428 }
0x2c67   :  { %v5436_v13 = vsub.f32 1.0, %v5425_v44  ;;  %v5437_v38 = vsub.f32 1.0, %v5429_v24  ;;  %5691 = vst.msk [vmem:[#allocation17 + $0x28] sm:$0xff] %vm142_vm2, %v5592_v1  ;;  %5690 = vst.msk [vmem:[#allocation17 + $0x20] sm:$0xff] %vm142_vm2, %v5591_v54  ;;  %v5585_v6 = vmul.f32 %v5577_v20, %v5425_v44  ;;  %v5586_v58 = vmul.f32 %v5578_v47, %v5429_v24 }
0x2c69   :  { %v5445_v61 = vmul.f32 %v5437_v38, %v9051_v16  ;;  %v5444_v29 = vmul.f32 %v5436_v13, %v9053_v14 }
0x2c6b   :  { %v5594_v51 = vadd.f32 %v5586_v58, %v5445_v61  ;;  %v5593_v53 = vadd.f32 %v5585_v6, %v5444_v29 }
0x2c6d   :  { %5693 = vst.msk [vmem:[#allocation17 + $0x38] sm:$0xff] %vm142_vm2, %v5594_v51  ;;  %5692 = vst.msk [vmem:[#allocation17 + $0x30] sm:$0xff] %vm142_vm2, %v5593_v53 }
0x2c6e   :  { %6617 = shalt.err (!%p6614_p6)
}
0x2c6f   :  { %s9697_s27 = sld [smem:[#allocation64_spill]] }
0x2c75   :  { %s6618_s30 = scalar_lea.hbm %s9697_s27, 1024 }
0x2c76   :  { %p6619_p7 = scmp.ne.s32.totalorder %s9697_s27, %s6618_s30  ;;  %p6622_p8 = scmp.lt.u32.totalorder %s6618_s30, %s9697_s27 }
0x2c78   :  { %p6624_p9 = pnand %p6622_p8, %p6619_p7 }
0x2c7a   :  { %6627 = shalt.err (!%p6624_p9)
}
0x2c7b   :  { %5747 = dma.vmem_to_hbm [thread:$0]  %s5742_s13, 1024, %s9697_s27, [#allocation16], %s6665_s22, %s6665_s22, %s6666_s23   ;;  %v5613_v19 = vpop.permute.xlu1 %5612  ;;  %v5609_v46 = vpop.permute.xlu0 %5608  ;;  %v9698_v41 = vld [vmem:[#allocation38_spill] sm:$0xff]  ;;  %v9699_v63 = vld [vmem:[#allocation33_spill] sm:$0xff]  ;;  %v9702_v40 = vld [vmem:[#allocation44_spill] sm:$0xff] }
0x2c7c   :  { %v9700_v35 = vclamps-f32 %v9699_v63, 5.0  ;;  %v5642_v27 = vmul.f32 %v5613_v19, %v8979_v8  ;;  %v9701_v49 = vld [vmem:[#allocation37_spill] sm:$0xff]  ;;  %v9703_v12 = vclamps-f32 %v9702_v40, 5.0  ;;  %v5641_v56 = vmul.f32 %v5609_v46, %v8981_v25  ;;  %v9704_v45 = vld [vmem:[#allocation39_spill] sm:$0xff]  ;;  %v9705_v39 = vld [vmem:[#allocation52_spill] sm:$0xff]  ;;  %s6684_s11 = smov [#allocation14]  }
0x2c7d   :  { %v9706_v5 = vclamps-f32 %v9705_v39, 5.0  ;;  %v9707_v57 = vld [vmem:[#allocation40_spill] sm:$0xff]  ;;  %v9708_v62 = vld [vmem:[#allocation49_spill] sm:$0xff]  ;;  %v9710_v3 = vld [vmem:[#allocation34_spill] sm:$0xff]  ;;  %s5719_s7 = sshll.u32 %s6684_s11, 4  ;;  %s5720_s7 = int_to_ptr.vmem [resolvable:$true] %s5719_s7 }
0x2c7e   :  { %v5596_v17 = vmul.f32 %v9700_v35, %v9698_v41  ;;  %v5595_v22 = vmul.f32 %v9703_v12, %v9701_v49  ;;  %v9709_v10 = vclamps-f32 %v9708_v62, 5.0  ;;  %v9711_v37 = vclamps-f32 %v9710_v3, 5.0  ;;  %v9712_v28 = vld [vmem:[#allocation54_spill] sm:$0xff]  ;;  %v9716_v1 = vld [vmem:[#allocation41_spill] sm:$0xff]  ;;  %s6628_s1 = scalar_lea.vmem %s5720_s7, 1024  ;;  %p6633_p11 = scmp.lt.s32.totalorder %s5720_s7, %s5720_s7 }
0x2c7f   :  { %v5598_v15 = vmul.f32 %v9706_v5, %v9704_v45  ;;  %v5621_v60 = vpop.permute.xlu1 %5620  ;;  %v5617_v9 = vpop.permute.xlu0 %5616  ;;  %v9713_v7 = vclamps-f32 %v9712_v28, 5.0  ;;  %v9714_v50 = vld [vmem:[#allocation50_spill] sm:$0xff]  ;;  %v9717_v54 = vclamps-f32 %v9716_v1, 5.0  ;;  %p6629_p10 = scmp.ne.s32.totalorder %s5720_s7, %s6628_s1  ;;  %p6634_p12 = scmp.lt.s32.totalorder %s6628_s1, %s6628_s1 }
0x2c80   :  { %v5650_v52 = vadd.f32 %v5642_v27, %v5596_v17  ;;  %v5649_v30 = vadd.f32 %v5641_v56, %v5595_v22  ;;  %v5597_v42 = vmul.f32 %v9709_v10, %v9707_v57  ;;  %v5644_v43 = vmul.f32 %v5621_v60, %v8985_v34 }
0x2c81   :  { %v5643_v55 = vmul.f32 %v5617_v9, %v8987_v36  ;;  %v5600_v4 = vmul.f32 %v9711_v37, %v9698_v41  ;;  %v5599_v33 = vmul.f32 %v9713_v7, %v9701_v49  ;;  %v9715_v0 = vclamps-f32 %v9714_v50, 5.0  ;;  %p6635_p13 = por %p6634_p12, %p6633_p11 }
0x2c82   :  { %v5888_v21 = vclamps-f32 %v5650_v52, 5.0  ;;  %v5887_v8 = vclamps-f32 %v5649_v30, 5.0  ;;  %v5652_v25 = vadd.f32 %v5644_v43, %v5598_v15  ;;  %v5601_v44 = vmul.f32 %v9717_v54, %v9707_v57 }
0x2c83   :  { %v5651_v2 = vadd.f32 %v5643_v55, %v5597_v42  ;;  %v5632_v23 = vpop.permute.xlu1 %5631  ;;  %v5628_v26 = vpop.permute.xlu0 %5627  ;;  %v5602_v20 = vmul.f32 %v9715_v0, %v9704_v45  ;;  %p6636_p0 = pnand %p6635_p13, %p6629_p10 }
0x2c84   :  { %5678 = vst.msk [vmem:[#allocation14 + $0x8] sm:$0xff] %vm142_vm2, %v5888_v21  ;;  %5677 = vst.msk [vmem:[#allocation14] sm:$0xff] %vm142_vm2, %v5887_v8  ;;  %v5890_v48 = vclamps-f32 %v5652_v25, 5.0  ;;  %v5646_v36 = vmul.f32 %v5632_v23, %v9024_v18  ;;  %v5645_v32 = vmul.f32 %v5628_v26, %v9027_v59 }
0x2c85   :  { %v5889_v34 = vclamps-f32 %v5651_v2, 5.0 }
0x2c86   :  { %5680 = vst.msk [vmem:[#allocation14 + $0x18] sm:$0xff] %vm142_vm2, %v5890_v48  ;;  %v5654_v11 = vadd.f32 %v5646_v36, %v5600_v4  ;;  %v5653_v31 = vadd.f32 %v5645_v32, %v5599_v33 }
0x2c87   :  { %5679 = vst.msk [vmem:[#allocation14 + $0x10] sm:$0xff] %vm142_vm2, %v5889_v34  ;;  %v5640_v47 = vpop.permute.xlu1 %5639  ;;  %v5636_v24 = vpop.permute.xlu0 %5635 }
0x2c88   :  { %v5892_v13 = vclamps-f32 %v5654_v11, 5.0  ;;  %v5891_v18 = vclamps-f32 %v5653_v31, 5.0  ;;  %v5648_v59 = vmul.f32 %v5640_v47, %v9051_v16  ;;  %v5647_v38 = vmul.f32 %v5636_v24, %v9053_v14 }
0x2c8a   :  { %5682 = vst.msk [vmem:[#allocation14 + $0x28] sm:$0xff] %vm142_vm2, %v5892_v13  ;;  %5681 = vst.msk [vmem:[#allocation14 + $0x20] sm:$0xff] %vm142_vm2, %v5891_v18  ;;  %v5656_v6 = vadd.f32 %v5648_v59, %v5602_v20  ;;  %v5655_v58 = vadd.f32 %v5647_v38, %v5601_v44 }
0x2c8c   :  { %v5894_v61 = vclamps-f32 %v5656_v6, 5.0  ;;  %v5893_v29 = vclamps-f32 %v5655_v58, 5.0 }
0x2c8e   :  { %5684 = vst.msk [vmem:[#allocation14 + $0x38] sm:$0xff] %vm142_vm2, %v5894_v61  ;;  %5683 = vst.msk [vmem:[#allocation14 + $0x30] sm:$0xff] %vm142_vm2, %v5893_v29 }
0x2c8f   :  { %6639 = shalt.err (!%p6636_p0)
}
0x2c90   :  { %s9718_s4 = sld [smem:[#allocation63_spill]] }
0x2c96   :  { %s6640_s5 = scalar_lea.hbm %s9718_s4, 1024 }
0x2c97   :  { %p6641_p1 = scmp.ne.s32.totalorder %s9718_s4, %s6640_s5  ;;  %p6644_p2 = scmp.lt.u32.totalorder %s6640_s5, %s9718_s4 }
0x2c99   :  { %p6646_p3 = pnand %p6644_p2, %p6641_p1 }
0x2c9b   :  { %6649 = shalt.err (!%p6646_p3)
}
0x2c9c   :  { %5725 = dma.vmem_to_hbm [thread:$0]  %s5720_s7, 1024, %s9718_s4, [#allocation13], %s6665_s22, %s6665_s22, %s6666_s23  }
0x2c9d   :  { %6656 = dma.done.wait [#allocation4], 32  }
0x2c9e   :  { %6657 = vsyncadd [#allocation4], 4294967264 }
0x2c9f   :  { %6658 = dma.done.wait [#allocation13], 1056  }
0x2ca0   :  { %6659 = vsyncadd [#allocation13], 4294966240 }
0x2ca1   :  { %6660 = dma.done.wait [#allocation16], 1056  }
0x2ca2   :  { %6661 = vsyncadd [#allocation16], 4294966240 }
0x2ca3   :  { %6662 = dma.done.wait [#allocation19], 256  }
0x2ca4   :  { %6663 = vsyncadd [#allocation19], 4294967040 }
0x2ca5   :  { %5778 = vsyncpa [#allocation3], 1 }
0x2ca6   :  { %5779 = vsyncpa [#allocation6], 1 }
0x2ca7   :  { %5780 = vsyncpa [#allocation9], 1 }
0x2ca8   :  { %5781 = vsyncpa [#allocation4], 1 }
0x2ca9   :  { %5782 = vsyncpa [#allocation13], 1 }
0x2caa   :  { %5783 = vsyncpa [#allocation16], 1 }
0x2cab   :  { %5784 = vsyncpa [#allocation19], 1 }

</bundles_post_ra>
